<compile_context>
chip_gen: v6e
topology: v6e:2x2x1
jax: 0.10.0
libtpu: 0.0.40
codegen_flags: <defaults>
</compile_context>

<pallas_src>
import jax
import jax.numpy as jnp
from jax.experimental import pallas as pl
from jax.experimental.pallas import tpu as pltpu


# --------------------------------------------------------------------------
# Fused Pallas kernel: conv1 -> relu -> conv2 -> relu -> conv3 -> relu -> conv4
# --------------------------------------------------------------------------
def _deep_head_kernel(x_ref, w1_ref, b1_ref, w2_ref, b2_ref, w3_ref, b3_ref,
                      w4_ref, b4_ref, o_ref, pbuf0, pbuf1, pbuf2):
    # x_ref : (1, H, W, Cin)            bf16
    # w1_ref: (3, 3, Cin, mid)          bf16
    # w2/w3 : (3, 3, mid, mid)          bf16
    # w4_ref: (mid, Cout_pad)           bf16  (1x1 conv as a matrix)
    # b*_ref: (1, C)                    f32
    # o_ref : (1, H, W, Cout_pad)       f32   (lane-dense: Cout_pad % 128 == 0)
    # pbuf* : (H+2, W+2, C)             bf16  VMEM scratch (zero halo)
    H = o_ref.shape[1]
    W = o_ref.shape[2]

    def zero_halo(buf):
        Hp, Wp, C = buf.shape
        zrow = jnp.zeros((1, Wp, C), buf.dtype)
        zcol = jnp.zeros((Hp, 1, C), buf.dtype)
        buf[0:1, :, :] = zrow
        buf[Hp - 1:Hp, :, :] = zrow
        buf[:, 0:1, :] = zcol
        buf[:, Wp - 1:Wp, :] = zcol

    zero_halo(pbuf0)
    zero_halo(pbuf1)
    zero_halo(pbuf2)

    # Stage the input tile into the zero-haloed scratch (in-kernel "padding=1").
    pbuf0[1:H + 1, 1:W + 1, :] = x_ref[0]

    def conv3x3_relu(pbuf_in, w_ref, b_ref):
        # 3x3 / pad=1 conv over the haloed buffer as 9 shifted MXU matmuls
        # with an f32 accumulator.  Only 3 W-shifted slabs are built; the dy
        # shift is a free major-axis slice.
        Hp, Wp, Cin = pbuf_in.shape
        Cout = w_ref.shape[-1]
        acc = jnp.zeros((H * W, Cout), jnp.float32)
        for dx in range(3):
            slab = pbuf_in[:, dx:dx + W, :]                  # (Hp, W, Cin)
            for dy in range(3):
                patch = slab[dy:dy + H].reshape(H * W, Cin)  # layout-friendly
                acc = acc + jnp.dot(patch, w_ref[dy, dx],
                                    preferred_element_type=jnp.float32)
        return jnp.maximum(acc + b_ref[...], 0.0)            # (H*W, Cout) f32

    a1 = conv3x3_relu(pbuf0, w1_ref, b1_ref)
    pbuf1[1:H + 1, 1:W + 1, :] = a1.reshape(H, W, -1).astype(pbuf1.dtype)

    a2 = conv3x3_relu(pbuf1, w2_ref, b2_ref)
    pbuf2[1:H + 1, 1:W + 1, :] = a2.reshape(H, W, -1).astype(pbuf2.dtype)

    a3 = conv3x3_relu(pbuf2, w3_ref, b3_ref)                 # stays a value

    # conv4: 1x1 conv == plain matmul, no ReLU.  Output channels padded to a
    # lane multiple so the final store is unmasked / lane-dense.
    y = jnp.dot(a3.astype(w4_ref.dtype), w4_ref[...],
                preferred_element_type=jnp.float32) + b4_ref[...]
    o_ref[...] = y.reshape(1, H, W, -1).astype(o_ref.dtype)


# --------------------------------------------------------------------------
# pallas_call wrapper
# --------------------------------------------------------------------------
def _round_up(v, m):
    return ((v + m - 1) // m) * m


def deep_head_forward_nhwc(params, x_nhwc):
    """Fused DeepHeadModule forward; NHWC in / NHWC out."""
    N, H, W, Cin = x_nhwc.shape
    mid = params["w1"].shape[-1]
    Cout = params["w4"].shape[-1]
    cpad = _round_up(Cout, 128)          # lane-dense output stores

    bf16 = jnp.bfloat16
    w1 = params["w1"].astype(bf16)
    w2 = params["w2"].astype(bf16)
    w3 = params["w3"].astype(bf16)
    w4 = jnp.zeros((mid, cpad), bf16).at[:, :Cout].set(
        params["w4"].astype(bf16))
    b1 = params["b1"].reshape(1, mid).astype(jnp.float32)
    b2 = params["b2"].reshape(1, mid).astype(jnp.float32)
    b3 = params["b3"].reshape(1, mid).astype(jnp.float32)
    b4 = jnp.zeros((1, cpad), jnp.float32).at[:, :Cout].set(
        params["b4"].astype(jnp.float32))

    x_bf16 = x_nhwc.astype(bf16)

    const2 = lambda *_: (0, 0)
    const4 = lambda *_: (0, 0, 0, 0)

    out = pl.pallas_call(
        _deep_head_kernel,
        out_shape=jax.ShapeDtypeStruct((N, H, W, cpad), jnp.float32),
        grid_spec=pltpu.PrefetchScalarGridSpec(
            num_scalar_prefetch=0,
            grid=(N,),
            in_specs=[
                pl.BlockSpec((1, H, W, Cin), lambda n: (n, 0, 0, 0)),
                pl.BlockSpec((3, 3, Cin, mid), const4),
                pl.BlockSpec((1, mid), const2),
                pl.BlockSpec((3, 3, mid, mid), const4),
                pl.BlockSpec((1, mid), const2),
                pl.BlockSpec((3, 3, mid, mid), const4),
                pl.BlockSpec((1, mid), const2),
                pl.BlockSpec((mid, cpad), const2),
                pl.BlockSpec((1, cpad), const2),
            ],
            out_specs=pl.BlockSpec((1, H, W, cpad), lambda n: (n, 0, 0, 0)),
            scratch_shapes=[
                pltpu.VMEM((H + 2, W + 2, Cin), bf16),
                pltpu.VMEM((H + 2, W + 2, mid), bf16),
                pltpu.VMEM((H + 2, W + 2, mid), bf16),
            ],
        ),
        compiler_params=pltpu.CompilerParams(
            dimension_semantics=("parallel",),
            vmem_limit_bytes=48 * 1024 * 1024,
        ),
    )(x_bf16, w1, b1, w2, b2, w3, b3, w4, b4)
    return out[..., :Cout]


def deep_head_forward(params, x_nchw):
    """PyTorch-compatible entry point: NCHW in / NCHW out (transpose once)."""
    x = jnp.transpose(x_nchw, (0, 2, 3, 1))
    out = deep_head_forward_nhwc(params, x)
    return jnp.transpose(out, (0, 3, 1, 2))


# --------------------------------------------------------------------------
# Parameters
# --------------------------------------------------------------------------
def init_deep_head_params(key, input_channels, output_channels):
    mid = min(input_channels, 256)
    ks = jax.random.split(key, 8)

    def winit(k, shape, fan_in):
        return (jax.random.normal(k, shape, jnp.float32) *
                (1.0 / jnp.sqrt(fan_in)))

    return {
        "w1": winit(ks[0], (3, 3, input_channels, mid), 9 * input_channels),
        "b1": winit(ks[1], (mid,), 9 * input_channels),
        "w2": winit(ks[2], (3, 3, mid, mid), 9 * mid),
        "b2": winit(ks[3], (mid,), 9 * mid),
        "w3": winit(ks[4], (3, 3, mid, mid), 9 * mid),
        "b3": winit(ks[5], (mid,), 9 * mid),
        "w4": winit(ks[6], (mid, output_channels), mid),   # 1x1 conv as matrix
        "b4": winit(ks[7], (output_channels,), mid),
    }


# --------------------------------------------------------------------------
# Pure-JAX references (correctness checks)
# --------------------------------------------------------------------------
def _conv_nhwc(x, w_hwio, b, pad):
    dn = jax.lax.conv_dimension_numbers(
        x.shape, w_hwio.shape, ("NHWC", "HWIO", "NHWC"))
    y = jax.lax.conv_general_dilated(
        x, w_hwio, window_strides=(1, 1),
        padding=[(pad, pad), (pad, pad)], dimension_numbers=dn,
        preferred_element_type=jnp.float32)
    return y + b.reshape(1, 1, 1, -1).astype(jnp.float32)


def deep_head_reference_f32(params, x_nchw):
    """Exact f32 reference (PyTorch semantics)."""
    x = jnp.transpose(x_nchw, (0, 2, 3, 1))
    out = jax.nn.relu(_conv_nhwc(x, params["w1"], params["b1"], 1))
    out = jax.nn.relu(_conv_nhwc(out, params["w2"], params["b2"], 1))
    out = jax.nn.relu(_conv_nhwc(out, params["w3"], params["b3"], 1))
    mid, cout = params["w4"].shape
    out = _conv_nhwc(out, params["w4"].reshape(1, 1, mid, cout),
                     params["b4"], 0)
    return jnp.transpose(out, (0, 3, 1, 2))


def deep_head_reference_bf16(params, x_nchw):
    """Precision-matched reference: bf16 conv inputs/weights, f32 accumulation
    (same numerics as the fused kernel's MXU path)."""
    bf16 = jnp.bfloat16
    x = jnp.transpose(x_nchw, (0, 2, 3, 1))

    def conv(h, w, b, pad, relu):
        y = _conv_nhwc(h.astype(bf16), w.astype(bf16), b, pad)
        return jax.nn.relu(y) if relu else y

    out = conv(x, params["w1"], params["b1"], 1, True)
    out = conv(out, params["w2"], params["b2"], 1, True)
    out = conv(out, params["w3"], params["b3"], 1, True)
    mid, cout = params["w4"].shape
    out = conv(out, params["w4"].reshape(1, 1, mid, cout), params["b4"], 0,
               False)
    return jnp.transpose(out, (0, 3, 1, 2))


# --------------------------------------------------------------------------
if __name__ == "__main__":
    N, Cin, H, W = 2, 16, 16, 16   # input_channels=16 -> mid=min(16,256)=16
    Cout = 8                        # output_channels

    key = jax.random.PRNGKey(0)
    kx, kp = jax.random.split(key)
    x_nchw = jax.random.normal(kx, (N, Cin, H, W), jnp.float32)
    params = init_deep_head_params(kp, Cin, Cout)

    y = jax.block_until_ready(deep_head_forward(params, x_nchw))
    assert y.shape == (N, Cout, H, W), y.shape

    # Tight check against the precision-matched (bf16-in / f32-acc) reference,
    # plus a loose sanity check against the exact f32 reference.
    y_ref_bf16 = jax.block_until_ready(deep_head_reference_bf16(params, x_nchw))
    y_ref_f32 = jax.block_until_ready(deep_head_reference_f32(params, x_nchw))
    assert jnp.allclose(y, y_ref_bf16, atol=2e-2, rtol=2e-2), (
        float(jnp.max(jnp.abs(y - y_ref_bf16))))
    assert jnp.allclose(y, y_ref_f32, atol=1e-1, rtol=1e-1), (
        float(jnp.max(jnp.abs(y - y_ref_f32))))

    print("KERNEL_OK")
</pallas_src>

<mosaic_0001>
module attributes {stable_mosaic.version = 11 : i64} {
  func.func @_deep_head_kernel(%arg0: i32, %arg1: memref<1x16x16x16xbf16, #tpu.memory_space<vmem>>, %arg2: memref<3x3x16x16xbf16, #tpu.memory_space<vmem>>, %arg3: memref<1x16xf32, #tpu.memory_space<vmem>>, %arg4: memref<3x3x16x16xbf16, #tpu.memory_space<vmem>>, %arg5: memref<1x16xf32, #tpu.memory_space<vmem>>, %arg6: memref<3x3x16x16xbf16, #tpu.memory_space<vmem>>, %arg7: memref<1x16xf32, #tpu.memory_space<vmem>>, %arg8: memref<16x128xbf16, #tpu.memory_space<vmem>>, %arg9: memref<1x128xf32, #tpu.memory_space<vmem>>, %arg10: memref<1x16x16x128xf32, #tpu.memory_space<vmem>>, %arg11: memref<18x18x16xbf16, #tpu.memory_space<vmem>>, %arg12: memref<18x18x16xbf16, #tpu.memory_space<vmem>>, %arg13: memref<18x18x16xbf16, #tpu.memory_space<vmem>>) attributes {dimension_semantics = [#tpu.dimension_semantics<parallel>], iteration_bounds = array<i64: 2>, scalar_prefetch = 0 : i64, scratch_operands = 3 : i64, tpu.core_type = #tpu.core_type<tc>, window_params = [{transform_indices = @transform_0, window_bounds = array<i64: 1, 16, 16, 16>}, {pipeline_mode = #tpu.pipeline_mode<synchronous>, transform_indices = @transform_1, window_bounds = array<i64: 3, 3, 16, 16>}, {pipeline_mode = #tpu.pipeline_mode<synchronous>, transform_indices = @transform_2, window_bounds = array<i64: 1, 16>}, {pipeline_mode = #tpu.pipeline_mode<synchronous>, transform_indices = @transform_3, window_bounds = array<i64: 3, 3, 16, 16>}, {pipeline_mode = #tpu.pipeline_mode<synchronous>, transform_indices = @transform_4, window_bounds = array<i64: 1, 16>}, {pipeline_mode = #tpu.pipeline_mode<synchronous>, transform_indices = @transform_5, window_bounds = array<i64: 3, 3, 16, 16>}, {pipeline_mode = #tpu.pipeline_mode<synchronous>, transform_indices = @transform_6, window_bounds = array<i64: 1, 16>}, {pipeline_mode = #tpu.pipeline_mode<synchronous>, transform_indices = @transform_7, window_bounds = array<i64: 16, 128>}, {pipeline_mode = #tpu.pipeline_mode<synchronous>, transform_indices = @transform_8, window_bounds = array<i64: 1, 128>}, {transform_indices = @transform_9, window_bounds = array<i64: 1, 16, 16, 128>}]} {
    %cst = arith.constant 0.000000e+00 : bf16
    %0 = vector.broadcast %cst : bf16 to vector<1x18x16xbf16>
    %cst_0 = arith.constant 0.000000e+00 : bf16
    %1 = vector.broadcast %cst_0 : bf16 to vector<18x1x16xbf16>
    %c0 = arith.constant 0 : index
    %c0_1 = arith.constant 0 : index
    %c0_2 = arith.constant 0 : index
    %2 = vector.load %arg11[%c0, %c0_1, %c0_2] : memref<18x18x16xbf16, #tpu.memory_space<vmem>>, vector<1x18x16xbf16>
    tpu.vector_store %arg11[%c0, %c0_1, %c0_2], %0 {strides = array<i32>} : memref<18x18x16xbf16, #tpu.memory_space<vmem>>, vector<1x18x16xbf16>,
    %c17 = arith.constant 17 : index
    %c0_3 = arith.constant 0 : index
    %c0_4 = arith.constant 0 : index
    %3 = vector.load %arg11[%c17, %c0_3, %c0_4] : memref<18x18x16xbf16, #tpu.memory_space<vmem>>, vector<1x18x16xbf16>
    tpu.vector_store %arg11[%c17, %c0_3, %c0_4], %0 {strides = array<i32>} : memref<18x18x16xbf16, #tpu.memory_space<vmem>>, vector<1x18x16xbf16>,
    %c0_5 = arith.constant 0 : index
    %c0_6 = arith.constant 0 : index
    %c0_7 = arith.constant 0 : index
    %4 = vector.load %arg11[%c0_5, %c0_6, %c0_7] : memref<18x18x16xbf16, #tpu.memory_space<vmem>>, vector<18x1x16xbf16>
    tpu.vector_store %arg11[%c0_5, %c0_6, %c0_7], %1 {strides = array<i32>} : memref<18x18x16xbf16, #tpu.memory_space<vmem>>, vector<18x1x16xbf16>,
    %c0_8 = arith.constant 0 : index
    %c17_9 = arith.constant 17 : index
    %c0_10 = arith.constant 0 : index
    %5 = vector.load %arg11[%c0_8, %c17_9, %c0_10] : memref<18x18x16xbf16, #tpu.memory_space<vmem>>, vector<18x1x16xbf16>
    tpu.vector_store %arg11[%c0_8, %c17_9, %c0_10], %1 {strides = array<i32>} : memref<18x18x16xbf16, #tpu.memory_space<vmem>>, vector<18x1x16xbf16>,
    %cst_11 = arith.constant 0.000000e+00 : bf16
    %6 = vector.broadcast %cst_11 : bf16 to vector<1x18x16xbf16>
    %cst_12 = arith.constant 0.000000e+00 : bf16
    %7 = vector.broadcast %cst_12 : bf16 to vector<18x1x16xbf16>
    %c0_13 = arith.constant 0 : index
    %c0_14 = arith.constant 0 : index
    %c0_15 = arith.constant 0 : index
    %8 = vector.load %arg12[%c0_13, %c0_14, %c0_15] : memref<18x18x16xbf16, #tpu.memory_space<vmem>>, vector<1x18x16xbf16>
    tpu.vector_store %arg12[%c0_13, %c0_14, %c0_15], %6 {strides = array<i32>} : memref<18x18x16xbf16, #tpu.memory_space<vmem>>, vector<1x18x16xbf16>,
    %c17_16 = arith.constant 17 : index
    %c0_17 = arith.constant 0 : index
    %c0_18 = arith.constant 0 : index
    %9 = vector.load %arg12[%c17_16, %c0_17, %c0_18] : memref<18x18x16xbf16, #tpu.memory_space<vmem>>, vector<1x18x16xbf16>
    tpu.vector_store %arg12[%c17_16, %c0_17, %c0_18], %6 {strides = array<i32>} : memref<18x18x16xbf16, #tpu.memory_space<vmem>>, vector<1x18x16xbf16>,
    %c0_19 = arith.constant 0 : index
    %c0_20 = arith.constant 0 : index
    %c0_21 = arith.constant 0 : index
    %10 = vector.load %arg12[%c0_19, %c0_20, %c0_21] : memref<18x18x16xbf16, #tpu.memory_space<vmem>>, vector<18x1x16xbf16>
    tpu.vector_store %arg12[%c0_19, %c0_20, %c0_21], %7 {strides = array<i32>} : memref<18x18x16xbf16, #tpu.memory_space<vmem>>, vector<18x1x16xbf16>,
    %c0_22 = arith.constant 0 : index
    %c17_23 = arith.constant 17 : index
    %c0_24 = arith.constant 0 : index
    %11 = vector.load %arg12[%c0_22, %c17_23, %c0_24] : memref<18x18x16xbf16, #tpu.memory_space<vmem>>, vector<18x1x16xbf16>
    tpu.vector_store %arg12[%c0_22, %c17_23, %c0_24], %7 {strides = array<i32>} : memref<18x18x16xbf16, #tpu.memory_space<vmem>>, vector<18x1x16xbf16>,
    %cst_25 = arith.constant 0.000000e+00 : bf16
    %12 = vector.broadcast %cst_25 : bf16 to vector<1x18x16xbf16>
    %cst_26 = arith.constant 0.000000e+00 : bf16
    %13 = vector.broadcast %cst_26 : bf16 to vector<18x1x16xbf16>
    %c0_27 = arith.constant 0 : index
    %c0_28 = arith.constant 0 : index
    %c0_29 = arith.constant 0 : index
    %14 = vector.load %arg13[%c0_27, %c0_28, %c0_29] : memref<18x18x16xbf16, #tpu.memory_space<vmem>>, vector<1x18x16xbf16>
    tpu.vector_store %arg13[%c0_27, %c0_28, %c0_29], %12 {strides = array<i32>} : memref<18x18x16xbf16, #tpu.memory_space<vmem>>, vector<1x18x16xbf16>,
    %c17_30 = arith.constant 17 : index
    %c0_31 = arith.constant 0 : index
    %c0_32 = arith.constant 0 : index
    %15 = vector.load %arg13[%c17_30, %c0_31, %c0_32] : memref<18x18x16xbf16, #tpu.memory_space<vmem>>, vector<1x18x16xbf16>
    tpu.vector_store %arg13[%c17_30, %c0_31, %c0_32], %12 {strides = array<i32>} : memref<18x18x16xbf16, #tpu.memory_space<vmem>>, vector<1x18x16xbf16>,
    %c0_33 = arith.constant 0 : index
    %c0_34 = arith.constant 0 : index
    %c0_35 = arith.constant 0 : index
    %16 = vector.load %arg13[%c0_33, %c0_34, %c0_35] : memref<18x18x16xbf16, #tpu.memory_space<vmem>>, vector<18x1x16xbf16>
    tpu.vector_store %arg13[%c0_33, %c0_34, %c0_35], %13 {strides = array<i32>} : memref<18x18x16xbf16, #tpu.memory_space<vmem>>, vector<18x1x16xbf16>,
    %c0_36 = arith.constant 0 : index
    %c17_37 = arith.constant 17 : index
    %c0_38 = arith.constant 0 : index
    %17 = vector.load %arg13[%c0_36, %c17_37, %c0_38] : memref<18x18x16xbf16, #tpu.memory_space<vmem>>, vector<18x1x16xbf16>
    tpu.vector_store %arg13[%c0_36, %c17_37, %c0_38], %13 {strides = array<i32>} : memref<18x18x16xbf16, #tpu.memory_space<vmem>>, vector<18x1x16xbf16>,
    %c0_39 = arith.constant 0 : index
    %c0_40 = arith.constant 0 : index
    %c0_41 = arith.constant 0 : index
    %c0_42 = arith.constant 0 : index
    %18 = vector.load %arg1[%c0_39, %c0_40, %c0_41, %c0_42] : memref<1x16x16x16xbf16, #tpu.memory_space<vmem>>, vector<1x16x16x16xbf16>
    %19 = vector.shape_cast %18 : vector<1x16x16x16xbf16> to vector<16x16x16xbf16>
    %c1 = arith.constant 1 : index
    %c1_43 = arith.constant 1 : index
    %c0_44 = arith.constant 0 : index
    %20 = vector.load %arg11[%c1, %c1_43, %c0_44] : memref<18x18x16xbf16, #tpu.memory_space<vmem>>, vector<16x16x16xbf16>
    tpu.vector_store %arg11[%c1, %c1_43, %c0_44], %19 {strides = array<i32>} : memref<18x18x16xbf16, #tpu.memory_space<vmem>>, vector<16x16x16xbf16>,
    %cst_45 = arith.constant 0.000000e+00 : f32
    %21 = vector.broadcast %cst_45 : f32 to vector<256x16xf32>
    %c0_46 = arith.constant 0 : index
    %c0_47 = arith.constant 0 : index
    %c0_48 = arith.constant 0 : index
    %22 = vector.load %arg11[%c0_46, %c0_47, %c0_48] : memref<18x18x16xbf16, #tpu.memory_space<vmem>>, vector<18x16x16xbf16>
    %23 = vector.extract_strided_slice %22 {offsets = [0, 0, 0], sizes = [16, 16, 16], strides = [1, 1, 1]} : vector<18x16x16xbf16> to vector<16x16x16xbf16>
    %24 = vector.shape_cast %23 : vector<16x16x16xbf16> to vector<256x16xbf16>
    %c0_49 = arith.constant 0 : index
    %c0_50 = arith.constant 0 : index
    %c0_51 = arith.constant 0 : index
    %c0_52 = arith.constant 0 : index
    %25 = vector.load %arg2[%c0_49, %c0_50, %c0_51, %c0_52] : memref<3x3x16x16xbf16, #tpu.memory_space<vmem>>, vector<1x1x16x16xbf16>
    %26 = vector.shape_cast %25 : vector<1x1x16x16xbf16> to vector<16x16xbf16>
    %cst_53 = arith.constant dense<0.000000e+00> : vector<256x16xf32>
    %27 = tpu.matmul %24, %26, %cst_53 {dimension_numbers = #tpu.dot_dimension_numbers<[1], [0], [0], [1], [0, 0, 1, 1], [], []>} : vector<256x16xbf16>, vector<16x16xbf16>, vector<256x16xf32> -> vector<256x16xf32>
    %28 = arith.addf %21, %27 : vector<256x16xf32>
    %29 = vector.extract_strided_slice %22 {offsets = [1, 0, 0], sizes = [16, 16, 16], strides = [1, 1, 1]} : vector<18x16x16xbf16> to vector<16x16x16xbf16>
    %30 = vector.shape_cast %29 : vector<16x16x16xbf16> to vector<256x16xbf16>
    %c1_54 = arith.constant 1 : index
    %c0_55 = arith.constant 0 : index
    %c0_56 = arith.constant 0 : index
    %c0_57 = arith.constant 0 : index
    %31 = vector.load %arg2[%c1_54, %c0_55, %c0_56, %c0_57] : memref<3x3x16x16xbf16, #tpu.memory_space<vmem>>, vector<1x1x16x16xbf16>
    %32 = vector.shape_cast %31 : vector<1x1x16x16xbf16> to vector<16x16xbf16>
    %cst_58 = arith.constant dense<0.000000e+00> : vector<256x16xf32>
    %33 = tpu.matmul %30, %32, %cst_58 {dimension_numbers = #tpu.dot_dimension_numbers<[1], [0], [0], [1], [0, 0, 1, 1], [], []>} : vector<256x16xbf16>, vector<16x16xbf16>, vector<256x16xf32> -> vector<256x16xf32>
    %34 = arith.addf %28, %33 : vector<256x16xf32>
    %35 = vector.extract_strided_slice %22 {offsets = [2, 0, 0], sizes = [16, 16, 16], strides = [1, 1, 1]} : vector<18x16x16xbf16> to vector<16x16x16xbf16>
    %36 = vector.shape_cast %35 : vector<16x16x16xbf16> to vector<256x16xbf16>
    %c2 = arith.constant 2 : index
    %c0_59 = arith.constant 0 : index
    %c0_60 = arith.constant 0 : index
    %c0_61 = arith.constant 0 : index
    %37 = vector.load %arg2[%c2, %c0_59, %c0_60, %c0_61] : memref<3x3x16x16xbf16, #tpu.memory_space<vmem>>, vector<1x1x16x16xbf16>
    %38 = vector.shape_cast %37 : vector<1x1x16x16xbf16> to vector<16x16xbf16>
    %cst_62 = arith.constant dense<0.000000e+00> : vector<256x16xf32>
    %39 = tpu.matmul %36, %38, %cst_62 {dimension_numbers = #tpu.dot_dimension_numbers<[1], [0], [0], [1], [0, 0, 1, 1], [], []>} : vector<256x16xbf16>, vector<16x16xbf16>, vector<256x16xf32> -> vector<256x16xf32>
    %40 = arith.addf %34, %39 : vector<256x16xf32>
    %c0_63 = arith.constant 0 : index
    %c1_64 = arith.constant 1 : index
    %c0_65 = arith.constant 0 : index
    %41 = vector.load %arg11[%c0_63, %c1_64, %c0_65] : memref<18x18x16xbf16, #tpu.memory_space<vmem>>, vector<18x16x16xbf16>
    %42 = vector.extract_strided_slice %41 {offsets = [0, 0, 0], sizes = [16, 16, 16], strides = [1, 1, 1]} : vector<18x16x16xbf16> to vector<16x16x16xbf16>
    %43 = vector.shape_cast %42 : vector<16x16x16xbf16> to vector<256x16xbf16>
    %c0_66 = arith.constant 0 : index
    %c1_67 = arith.constant 1 : index
    %c0_68 = arith.constant 0 : index
    %c0_69 = arith.constant 0 : index
    %44 = vector.load %arg2[%c0_66, %c1_67, %c0_68, %c0_69] : memref<3x3x16x16xbf16, #tpu.memory_space<vmem>>, vector<1x1x16x16xbf16>
    %45 = vector.shape_cast %44 : vector<1x1x16x16xbf16> to vector<16x16xbf16>
    %cst_70 = arith.constant dense<0.000000e+00> : vector<256x16xf32>
    %46 = tpu.matmul %43, %45, %cst_70 {dimension_numbers = #tpu.dot_dimension_numbers<[1], [0], [0], [1], [0, 0, 1, 1], [], []>} : vector<256x16xbf16>, vector<16x16xbf16>, vector<256x16xf32> -> vector<256x16xf32>
    %47 = arith.addf %40, %46 : vector<256x16xf32>
    %48 = vector.extract_strided_slice %41 {offsets = [1, 0, 0], sizes = [16, 16, 16], strides = [1, 1, 1]} : vector<18x16x16xbf16> to vector<16x16x16xbf16>
    %49 = vector.shape_cast %48 : vector<16x16x16xbf16> to vector<256x16xbf16>
    %c1_71 = arith.constant 1 : index
    %c1_72 = arith.constant 1 : index
    %c0_73 = arith.constant 0 : index
    %c0_74 = arith.constant 0 : index
    %50 = vector.load %arg2[%c1_71, %c1_72, %c0_73, %c0_74] : memref<3x3x16x16xbf16, #tpu.memory_space<vmem>>, vector<1x1x16x16xbf16>
    %51 = vector.shape_cast %50 : vector<1x1x16x16xbf16> to vector<16x16xbf16>
    %cst_75 = arith.constant dense<0.000000e+00> : vector<256x16xf32>
    %52 = tpu.matmul %49, %51, %cst_75 {dimension_numbers = #tpu.dot_dimension_numbers<[1], [0], [0], [1], [0, 0, 1, 1], [], []>} : vector<256x16xbf16>, vector<16x16xbf16>, vector<256x16xf32> -> vector<256x16xf32>
    %53 = arith.addf %47, %52 : vector<256x16xf32>
    %54 = vector.extract_strided_slice %41 {offsets = [2, 0, 0], sizes = [16, 16, 16], strides = [1, 1, 1]} : vector<18x16x16xbf16> to vector<16x16x16xbf16>
    %55 = vector.shape_cast %54 : vector<16x16x16xbf16> to vector<256x16xbf16>
    %c2_76 = arith.constant 2 : index
    %c1_77 = arith.constant 1 : index
    %c0_78 = arith.constant 0 : index
    %c0_79 = arith.constant 0 : index
    %56 = vector.load %arg2[%c2_76, %c1_77, %c0_78, %c0_79] : memref<3x3x16x16xbf16, #tpu.memory_space<vmem>>, vector<1x1x16x16xbf16>
    %57 = vector.shape_cast %56 : vector<1x1x16x16xbf16> to vector<16x16xbf16>
    %cst_80 = arith.constant dense<0.000000e+00> : vector<256x16xf32>
    %58 = tpu.matmul %55, %57, %cst_80 {dimension_numbers = #tpu.dot_dimension_numbers<[1], [0], [0], [1], [0, 0, 1, 1], [], []>} : vector<256x16xbf16>, vector<16x16xbf16>, vector<256x16xf32> -> vector<256x16xf32>
    %59 = arith.addf %53, %58 : vector<256x16xf32>
    %c0_81 = arith.constant 0 : index
    %c2_82 = arith.constant 2 : index
    %c0_83 = arith.constant 0 : index
    %60 = vector.load %arg11[%c0_81, %c2_82, %c0_83] : memref<18x18x16xbf16, #tpu.memory_space<vmem>>, vector<18x16x16xbf16>
    %61 = vector.extract_strided_slice %60 {offsets = [0, 0, 0], sizes = [16, 16, 16], strides = [1, 1, 1]} : vector<18x16x16xbf16> to vector<16x16x16xbf16>
    %62 = vector.shape_cast %61 : vector<16x16x16xbf16> to vector<256x16xbf16>
    %c0_84 = arith.constant 0 : index
    %c2_85 = arith.constant 2 : index
    %c0_86 = arith.constant 0 : index
    %c0_87 = arith.constant 0 : index
    %63 = vector.load %arg2[%c0_84, %c2_85, %c0_86, %c0_87] : memref<3x3x16x16xbf16, #tpu.memory_space<vmem>>, vector<1x1x16x16xbf16>
    %64 = vector.shape_cast %63 : vector<1x1x16x16xbf16> to vector<16x16xbf16>
    %cst_88 = arith.constant dense<0.000000e+00> : vector<256x16xf32>
    %65 = tpu.matmul %62, %64, %cst_88 {dimension_numbers = #tpu.dot_dimension_numbers<[1], [0], [0], [1], [0, 0, 1, 1], [], []>} : vector<256x16xbf16>, vector<16x16xbf16>, vector<256x16xf32> -> vector<256x16xf32>
    %66 = arith.addf %59, %65 : vector<256x16xf32>
    %67 = vector.extract_strided_slice %60 {offsets = [1, 0, 0], sizes = [16, 16, 16], strides = [1, 1, 1]} : vector<18x16x16xbf16> to vector<16x16x16xbf16>
    %68 = vector.shape_cast %67 : vector<16x16x16xbf16> to vector<256x16xbf16>
    %c1_89 = arith.constant 1 : index
    %c2_90 = arith.constant 2 : index
    %c0_91 = arith.constant 0 : index
    %c0_92 = arith.constant 0 : index
    %69 = vector.load %arg2[%c1_89, %c2_90, %c0_91, %c0_92] : memref<3x3x16x16xbf16, #tpu.memory_space<vmem>>, vector<1x1x16x16xbf16>
    %70 = vector.shape_cast %69 : vector<1x1x16x16xbf16> to vector<16x16xbf16>
    %cst_93 = arith.constant dense<0.000000e+00> : vector<256x16xf32>
    %71 = tpu.matmul %68, %70, %cst_93 {dimension_numbers = #tpu.dot_dimension_numbers<[1], [0], [0], [1], [0, 0, 1, 1], [], []>} : vector<256x16xbf16>, vector<16x16xbf16>, vector<256x16xf32> -> vector<256x16xf32>
    %72 = arith.addf %66, %71 : vector<256x16xf32>
    %73 = vector.extract_strided_slice %60 {offsets = [2, 0, 0], sizes = [16, 16, 16], strides = [1, 1, 1]} : vector<18x16x16xbf16> to vector<16x16x16xbf16>
    %74 = vector.shape_cast %73 : vector<16x16x16xbf16> to vector<256x16xbf16>
    %c2_94 = arith.constant 2 : index
    %c2_95 = arith.constant 2 : index
    %c0_96 = arith.constant 0 : index
    %c0_97 = arith.constant 0 : index
    %75 = vector.load %arg2[%c2_94, %c2_95, %c0_96, %c0_97] : memref<3x3x16x16xbf16, #tpu.memory_space<vmem>>, vector<1x1x16x16xbf16>
    %76 = vector.shape_cast %75 : vector<1x1x16x16xbf16> to vector<16x16xbf16>
    %cst_98 = arith.constant dense<0.000000e+00> : vector<256x16xf32>
    %77 = tpu.matmul %74, %76, %cst_98 {dimension_numbers = #tpu.dot_dimension_numbers<[1], [0], [0], [1], [0, 0, 1, 1], [], []>} : vector<256x16xbf16>, vector<16x16xbf16>, vector<256x16xf32> -> vector<256x16xf32>
    %78 = arith.addf %72, %77 : vector<256x16xf32>
    %c0_99 = arith.constant 0 : index
    %c0_100 = arith.constant 0 : index
    %79 = vector.load %arg3[%c0_99, %c0_100] : memref<1x16xf32, #tpu.memory_space<vmem>>, vector<1x16xf32>
    %80 = vector.broadcast %79 : vector<1x16xf32> to vector<256x16xf32>
    %81 = arith.addf %78, %80 : vector<256x16xf32>
    %cst_101 = arith.constant 0.000000e+00 : f32
    %82 = vector.broadcast %cst_101 : f32 to vector<256x16xf32>
    %83 = arith.maximumf %81, %82 : vector<256x16xf32>
    %84 = vector.shape_cast %83 : vector<256x16xf32> to vector<16x16x16xf32>
    %85 = arith.truncf %84 : vector<16x16x16xf32> to vector<16x16x16xbf16>
    %c1_102 = arith.constant 1 : index
    %c1_103 = arith.constant 1 : index
    %c0_104 = arith.constant 0 : index
    %86 = vector.load %arg12[%c1_102, %c1_103, %c0_104] : memref<18x18x16xbf16, #tpu.memory_space<vmem>>, vector<16x16x16xbf16>
    tpu.vector_store %arg12[%c1_102, %c1_103, %c0_104], %85 {strides = array<i32>} : memref<18x18x16xbf16, #tpu.memory_space<vmem>>, vector<16x16x16xbf16>,
    %cst_105 = arith.constant 0.000000e+00 : f32
    %87 = vector.broadcast %cst_105 : f32 to vector<256x16xf32>
    %c0_106 = arith.constant 0 : index
    %c0_107 = arith.constant 0 : index
    %c0_108 = arith.constant 0 : index
    %88 = vector.load %arg12[%c0_106, %c0_107, %c0_108] : memref<18x18x16xbf16, #tpu.memory_space<vmem>>, vector<18x16x16xbf16>
    %89 = vector.extract_strided_slice %88 {offsets = [0, 0, 0], sizes = [16, 16, 16], strides = [1, 1, 1]} : vector<18x16x16xbf16> to vector<16x16x16xbf16>
    %90 = vector.shape_cast %89 : vector<16x16x16xbf16> to vector<256x16xbf16>
    %c0_109 = arith.constant 0 : index
    %c0_110 = arith.constant 0 : index
    %c0_111 = arith.constant 0 : index
    %c0_112 = arith.constant 0 : index
    %91 = vector.load %arg4[%c0_109, %c0_110, %c0_111, %c0_112] : memref<3x3x16x16xbf16, #tpu.memory_space<vmem>>, vector<1x1x16x16xbf16>
    %92 = vector.shape_cast %91 : vector<1x1x16x16xbf16> to vector<16x16xbf16>
    %cst_113 = arith.constant dense<0.000000e+00> : vector<256x16xf32>
    %93 = tpu.matmul %90, %92, %cst_113 {dimension_numbers = #tpu.dot_dimension_numbers<[1], [0], [0], [1], [0, 0, 1, 1], [], []>} : vector<256x16xbf16>, vector<16x16xbf16>, vector<256x16xf32> -> vector<256x16xf32>
    %94 = arith.addf %87, %93 : vector<256x16xf32>
    %95 = vector.extract_strided_slice %88 {offsets = [1, 0, 0], sizes = [16, 16, 16], strides = [1, 1, 1]} : vector<18x16x16xbf16> to vector<16x16x16xbf16>
    %96 = vector.shape_cast %95 : vector<16x16x16xbf16> to vector<256x16xbf16>
    %c1_114 = arith.constant 1 : index
    %c0_115 = arith.constant 0 : index
    %c0_116 = arith.constant 0 : index
    %c0_117 = arith.constant 0 : index
    %97 = vector.load %arg4[%c1_114, %c0_115, %c0_116, %c0_117] : memref<3x3x16x16xbf16, #tpu.memory_space<vmem>>, vector<1x1x16x16xbf16>
    %98 = vector.shape_cast %97 : vector<1x1x16x16xbf16> to vector<16x16xbf16>
    %cst_118 = arith.constant dense<0.000000e+00> : vector<256x16xf32>
    %99 = tpu.matmul %96, %98, %cst_118 {dimension_numbers = #tpu.dot_dimension_numbers<[1], [0], [0], [1], [0, 0, 1, 1], [], []>} : vector<256x16xbf16>, vector<16x16xbf16>, vector<256x16xf32> -> vector<256x16xf32>
    %100 = arith.addf %94, %99 : vector<256x16xf32>
    %101 = vector.extract_strided_slice %88 {offsets = [2, 0, 0], sizes = [16, 16, 16], strides = [1, 1, 1]} : vector<18x16x16xbf16> to vector<16x16x16xbf16>
    %102 = vector.shape_cast %101 : vector<16x16x16xbf16> to vector<256x16xbf16>
    %c2_119 = arith.constant 2 : index
    %c0_120 = arith.constant 0 : index
    %c0_121 = arith.constant 0 : index
    %c0_122 = arith.constant 0 : index
    %103 = vector.load %arg4[%c2_119, %c0_120, %c0_121, %c0_122] : memref<3x3x16x16xbf16, #tpu.memory_space<vmem>>, vector<1x1x16x16xbf16>
    %104 = vector.shape_cast %103 : vector<1x1x16x16xbf16> to vector<16x16xbf16>
    %cst_123 = arith.constant dense<0.000000e+00> : vector<256x16xf32>
    %105 = tpu.matmul %102, %104, %cst_123 {dimension_numbers = #tpu.dot_dimension_numbers<[1], [0], [0], [1], [0, 0, 1, 1], [], []>} : vector<256x16xbf16>, vector<16x16xbf16>, vector<256x16xf32> -> vector<256x16xf32>
    %106 = arith.addf %100, %105 : vector<256x16xf32>
    %c0_124 = arith.constant 0 : index
    %c1_125 = arith.constant 1 : index
    %c0_126 = arith.constant 0 : index
    %107 = vector.load %arg12[%c0_124, %c1_125, %c0_126] : memref<18x18x16xbf16, #tpu.memory_space<vmem>>, vector<18x16x16xbf16>
    %108 = vector.extract_strided_slice %107 {offsets = [0, 0, 0], sizes = [16, 16, 16], strides = [1, 1, 1]} : vector<18x16x16xbf16> to vector<16x16x16xbf16>
    %109 = vector.shape_cast %108 : vector<16x16x16xbf16> to vector<256x16xbf16>
    %c0_127 = arith.constant 0 : index
    %c1_128 = arith.constant 1 : index
    %c0_129 = arith.constant 0 : index
    %c0_130 = arith.constant 0 : index
    %110 = vector.load %arg4[%c0_127, %c1_128, %c0_129, %c0_130] : memref<3x3x16x16xbf16, #tpu.memory_space<vmem>>, vector<1x1x16x16xbf16>
    %111 = vector.shape_cast %110 : vector<1x1x16x16xbf16> to vector<16x16xbf16>
    %cst_131 = arith.constant dense<0.000000e+00> : vector<256x16xf32>
    %112 = tpu.matmul %109, %111, %cst_131 {dimension_numbers = #tpu.dot_dimension_numbers<[1], [0], [0], [1], [0, 0, 1, 1], [], []>} : vector<256x16xbf16>, vector<16x16xbf16>, vector<256x16xf32> -> vector<256x16xf32>
    %113 = arith.addf %106, %112 : vector<256x16xf32>
    %114 = vector.extract_strided_slice %107 {offsets = [1, 0, 0], sizes = [16, 16, 16], strides = [1, 1, 1]} : vector<18x16x16xbf16> to vector<16x16x16xbf16>
    %115 = vector.shape_cast %114 : vector<16x16x16xbf16> to vector<256x16xbf16>
    %c1_132 = arith.constant 1 : index
    %c1_133 = arith.constant 1 : index
    %c0_134 = arith.constant 0 : index
    %c0_135 = arith.constant 0 : index
    %116 = vector.load %arg4[%c1_132, %c1_133, %c0_134, %c0_135] : memref<3x3x16x16xbf16, #tpu.memory_space<vmem>>, vector<1x1x16x16xbf16>
    %117 = vector.shape_cast %116 : vector<1x1x16x16xbf16> to vector<16x16xbf16>
    %cst_136 = arith.constant dense<0.000000e+00> : vector<256x16xf32>
    %118 = tpu.matmul %115, %117, %cst_136 {dimension_numbers = #tpu.dot_dimension_numbers<[1], [0], [0], [1], [0, 0, 1, 1], [], []>} : vector<256x16xbf16>, vector<16x16xbf16>, vector<256x16xf32> -> vector<256x16xf32>
    %119 = arith.addf %113, %118 : vector<256x16xf32>
    %120 = vector.extract_strided_slice %107 {offsets = [2, 0, 0], sizes = [16, 16, 16], strides = [1, 1, 1]} : vector<18x16x16xbf16> to vector<16x16x16xbf16>
    %121 = vector.shape_cast %120 : vector<16x16x16xbf16> to vector<256x16xbf16>
    %c2_137 = arith.constant 2 : index
    %c1_138 = arith.constant 1 : index
    %c0_139 = arith.constant 0 : index
    %c0_140 = arith.constant 0 : index
    %122 = vector.load %arg4[%c2_137, %c1_138, %c0_139, %c0_140] : memref<3x3x16x16xbf16, #tpu.memory_space<vmem>>, vector<1x1x16x16xbf16>
    %123 = vector.shape_cast %122 : vector<1x1x16x16xbf16> to vector<16x16xbf16>
    %cst_141 = arith.constant dense<0.000000e+00> : vector<256x16xf32>
    %124 = tpu.matmul %121, %123, %cst_141 {dimension_numbers = #tpu.dot_dimension_numbers<[1], [0], [0], [1], [0, 0, 1, 1], [], []>} : vector<256x16xbf16>, vector<16x16xbf16>, vector<256x16xf32> -> vector<256x16xf32>
    %125 = arith.addf %119, %124 : vector<256x16xf32>
    %c0_142 = arith.constant 0 : index
    %c2_143 = arith.constant 2 : index
    %c0_144 = arith.constant 0 : index
    %126 = vector.load %arg12[%c0_142, %c2_143, %c0_144] : memref<18x18x16xbf16, #tpu.memory_space<vmem>>, vector<18x16x16xbf16>
    %127 = vector.extract_strided_slice %126 {offsets = [0, 0, 0], sizes = [16, 16, 16], strides = [1, 1, 1]} : vector<18x16x16xbf16> to vector<16x16x16xbf16>
    %128 = vector.shape_cast %127 : vector<16x16x16xbf16> to vector<256x16xbf16>
    %c0_145 = arith.constant 0 : index
    %c2_146 = arith.constant 2 : index
    %c0_147 = arith.constant 0 : index
    %c0_148 = arith.constant 0 : index
    %129 = vector.load %arg4[%c0_145, %c2_146, %c0_147, %c0_148] : memref<3x3x16x16xbf16, #tpu.memory_space<vmem>>, vector<1x1x16x16xbf16>
    %130 = vector.shape_cast %129 : vector<1x1x16x16xbf16> to vector<16x16xbf16>
    %cst_149 = arith.constant dense<0.000000e+00> : vector<256x16xf32>
    %131 = tpu.matmul %128, %130, %cst_149 {dimension_numbers = #tpu.dot_dimension_numbers<[1], [0], [0], [1], [0, 0, 1, 1], [], []>} : vector<256x16xbf16>, vector<16x16xbf16>, vector<256x16xf32> -> vector<256x16xf32>
    %132 = arith.addf %125, %131 : vector<256x16xf32>
    %133 = vector.extract_strided_slice %126 {offsets = [1, 0, 0], sizes = [16, 16, 16], strides = [1, 1, 1]} : vector<18x16x16xbf16> to vector<16x16x16xbf16>
    %134 = vector.shape_cast %133 : vector<16x16x16xbf16> to vector<256x16xbf16>
    %c1_150 = arith.constant 1 : index
    %c2_151 = arith.constant 2 : index
    %c0_152 = arith.constant 0 : index
    %c0_153 = arith.constant 0 : index
    %135 = vector.load %arg4[%c1_150, %c2_151, %c0_152, %c0_153] : memref<3x3x16x16xbf16, #tpu.memory_space<vmem>>, vector<1x1x16x16xbf16>
    %136 = vector.shape_cast %135 : vector<1x1x16x16xbf16> to vector<16x16xbf16>
    %cst_154 = arith.constant dense<0.000000e+00> : vector<256x16xf32>
    %137 = tpu.matmul %134, %136, %cst_154 {dimension_numbers = #tpu.dot_dimension_numbers<[1], [0], [0], [1], [0, 0, 1, 1], [], []>} : vector<256x16xbf16>, vector<16x16xbf16>, vector<256x16xf32> -> vector<256x16xf32>
    %138 = arith.addf %132, %137 : vector<256x16xf32>
    %139 = vector.extract_strided_slice %126 {offsets = [2, 0, 0], sizes = [16, 16, 16], strides = [1, 1, 1]} : vector<18x16x16xbf16> to vector<16x16x16xbf16>
    %140 = vector.shape_cast %139 : vector<16x16x16xbf16> to vector<256x16xbf16>
    %c2_155 = arith.constant 2 : index
    %c2_156 = arith.constant 2 : index
    %c0_157 = arith.constant 0 : index
    %c0_158 = arith.constant 0 : index
    %141 = vector.load %arg4[%c2_155, %c2_156, %c0_157, %c0_158] : memref<3x3x16x16xbf16, #tpu.memory_space<vmem>>, vector<1x1x16x16xbf16>
    %142 = vector.shape_cast %141 : vector<1x1x16x16xbf16> to vector<16x16xbf16>
    %cst_159 = arith.constant dense<0.000000e+00> : vector<256x16xf32>
    %143 = tpu.matmul %140, %142, %cst_159 {dimension_numbers = #tpu.dot_dimension_numbers<[1], [0], [0], [1], [0, 0, 1, 1], [], []>} : vector<256x16xbf16>, vector<16x16xbf16>, vector<256x16xf32> -> vector<256x16xf32>
    %144 = arith.addf %138, %143 : vector<256x16xf32>
    %c0_160 = arith.constant 0 : index
    %c0_161 = arith.constant 0 : index
    %145 = vector.load %arg5[%c0_160, %c0_161] : memref<1x16xf32, #tpu.memory_space<vmem>>, vector<1x16xf32>
    %146 = vector.broadcast %145 : vector<1x16xf32> to vector<256x16xf32>
    %147 = arith.addf %144, %146 : vector<256x16xf32>
    %cst_162 = arith.constant 0.000000e+00 : f32
    %148 = vector.broadcast %cst_162 : f32 to vector<256x16xf32>
    %149 = arith.maximumf %147, %148 : vector<256x16xf32>
    %150 = vector.shape_cast %149 : vector<256x16xf32> to vector<16x16x16xf32>
    %151 = arith.truncf %150 : vector<16x16x16xf32> to vector<16x16x16xbf16>
    %c1_163 = arith.constant 1 : index
    %c1_164 = arith.constant 1 : index
    %c0_165 = arith.constant 0 : index
    %152 = vector.load %arg13[%c1_163, %c1_164, %c0_165] : memref<18x18x16xbf16, #tpu.memory_space<vmem>>, vector<16x16x16xbf16>
    tpu.vector_store %arg13[%c1_163, %c1_164, %c0_165], %151 {strides = array<i32>} : memref<18x18x16xbf16, #tpu.memory_space<vmem>>, vector<16x16x16xbf16>,
    %cst_166 = arith.constant 0.000000e+00 : f32
    %153 = vector.broadcast %cst_166 : f32 to vector<256x16xf32>
    %c0_167 = arith.constant 0 : index
    %c0_168 = arith.constant 0 : index
    %c0_169 = arith.constant 0 : index
    %154 = vector.load %arg13[%c0_167, %c0_168, %c0_169] : memref<18x18x16xbf16, #tpu.memory_space<vmem>>, vector<18x16x16xbf16>
    %155 = vector.extract_strided_slice %154 {offsets = [0, 0, 0], sizes = [16, 16, 16], strides = [1, 1, 1]} : vector<18x16x16xbf16> to vector<16x16x16xbf16>
    %156 = vector.shape_cast %155 : vector<16x16x16xbf16> to vector<256x16xbf16>
    %c0_170 = arith.constant 0 : index
    %c0_171 = arith.constant 0 : index
    %c0_172 = arith.constant 0 : index
    %c0_173 = arith.constant 0 : index
    %157 = vector.load %arg6[%c0_170, %c0_171, %c0_172, %c0_173] : memref<3x3x16x16xbf16, #tpu.memory_space<vmem>>, vector<1x1x16x16xbf16>
    %158 = vector.shape_cast %157 : vector<1x1x16x16xbf16> to vector<16x16xbf16>
    %cst_174 = arith.constant dense<0.000000e+00> : vector<256x16xf32>
    %159 = tpu.matmul %156, %158, %cst_174 {dimension_numbers = #tpu.dot_dimension_numbers<[1], [0], [0], [1], [0, 0, 1, 1], [], []>} : vector<256x16xbf16>, vector<16x16xbf16>, vector<256x16xf32> -> vector<256x16xf32>
    %160 = arith.addf %153, %159 : vector<256x16xf32>
    %161 = vector.extract_strided_slice %154 {offsets = [1, 0, 0], sizes = [16, 16, 16], strides = [1, 1, 1]} : vector<18x16x16xbf16> to vector<16x16x16xbf16>
    %162 = vector.shape_cast %161 : vector<16x16x16xbf16> to vector<256x16xbf16>
    %c1_175 = arith.constant 1 : index
    %c0_176 = arith.constant 0 : index
    %c0_177 = arith.constant 0 : index
    %c0_178 = arith.constant 0 : index
    %163 = vector.load %arg6[%c1_175, %c0_176, %c0_177, %c0_178] : memref<3x3x16x16xbf16, #tpu.memory_space<vmem>>, vector<1x1x16x16xbf16>
    %164 = vector.shape_cast %163 : vector<1x1x16x16xbf16> to vector<16x16xbf16>
    %cst_179 = arith.constant dense<0.000000e+00> : vector<256x16xf32>
    %165 = tpu.matmul %162, %164, %cst_179 {dimension_numbers = #tpu.dot_dimension_numbers<[1], [0], [0], [1], [0, 0, 1, 1], [], []>} : vector<256x16xbf16>, vector<16x16xbf16>, vector<256x16xf32> -> vector<256x16xf32>
    %166 = arith.addf %160, %165 : vector<256x16xf32>
    %167 = vector.extract_strided_slice %154 {offsets = [2, 0, 0], sizes = [16, 16, 16], strides = [1, 1, 1]} : vector<18x16x16xbf16> to vector<16x16x16xbf16>
    %168 = vector.shape_cast %167 : vector<16x16x16xbf16> to vector<256x16xbf16>
    %c2_180 = arith.constant 2 : index
    %c0_181 = arith.constant 0 : index
    %c0_182 = arith.constant 0 : index
    %c0_183 = arith.constant 0 : index
    %169 = vector.load %arg6[%c2_180, %c0_181, %c0_182, %c0_183] : memref<3x3x16x16xbf16, #tpu.memory_space<vmem>>, vector<1x1x16x16xbf16>
    %170 = vector.shape_cast %169 : vector<1x1x16x16xbf16> to vector<16x16xbf16>
    %cst_184 = arith.constant dense<0.000000e+00> : vector<256x16xf32>
    %171 = tpu.matmul %168, %170, %cst_184 {dimension_numbers = #tpu.dot_dimension_numbers<[1], [0], [0], [1], [0, 0, 1, 1], [], []>} : vector<256x16xbf16>, vector<16x16xbf16>, vector<256x16xf32> -> vector<256x16xf32>
    %172 = arith.addf %166, %171 : vector<256x16xf32>
    %c0_185 = arith.constant 0 : index
    %c1_186 = arith.constant 1 : index
    %c0_187 = arith.constant 0 : index
    %173 = vector.load %arg13[%c0_185, %c1_186, %c0_187] : memref<18x18x16xbf16, #tpu.memory_space<vmem>>, vector<18x16x16xbf16>
    %174 = vector.extract_strided_slice %173 {offsets = [0, 0, 0], sizes = [16, 16, 16], strides = [1, 1, 1]} : vector<18x16x16xbf16> to vector<16x16x16xbf16>
    %175 = vector.shape_cast %174 : vector<16x16x16xbf16> to vector<256x16xbf16>
    %c0_188 = arith.constant 0 : index
    %c1_189 = arith.constant 1 : index
    %c0_190 = arith.constant 0 : index
    %c0_191 = arith.constant 0 : index
    %176 = vector.load %arg6[%c0_188, %c1_189, %c0_190, %c0_191] : memref<3x3x16x16xbf16, #tpu.memory_space<vmem>>, vector<1x1x16x16xbf16>
    %177 = vector.shape_cast %176 : vector<1x1x16x16xbf16> to vector<16x16xbf16>
    %cst_192 = arith.constant dense<0.000000e+00> : vector<256x16xf32>
    %178 = tpu.matmul %175, %177, %cst_192 {dimension_numbers = #tpu.dot_dimension_numbers<[1], [0], [0], [1], [0, 0, 1, 1], [], []>} : vector<256x16xbf16>, vector<16x16xbf16>, vector<256x16xf32> -> vector<256x16xf32>
    %179 = arith.addf %172, %178 : vector<256x16xf32>
    %180 = vector.extract_strided_slice %173 {offsets = [1, 0, 0], sizes = [16, 16, 16], strides = [1, 1, 1]} : vector<18x16x16xbf16> to vector<16x16x16xbf16>
    %181 = vector.shape_cast %180 : vector<16x16x16xbf16> to vector<256x16xbf16>
    %c1_193 = arith.constant 1 : index
    %c1_194 = arith.constant 1 : index
    %c0_195 = arith.constant 0 : index
    %c0_196 = arith.constant 0 : index
    %182 = vector.load %arg6[%c1_193, %c1_194, %c0_195, %c0_196] : memref<3x3x16x16xbf16, #tpu.memory_space<vmem>>, vector<1x1x16x16xbf16>
    %183 = vector.shape_cast %182 : vector<1x1x16x16xbf16> to vector<16x16xbf16>
    %cst_197 = arith.constant dense<0.000000e+00> : vector<256x16xf32>
    %184 = tpu.matmul %181, %183, %cst_197 {dimension_numbers = #tpu.dot_dimension_numbers<[1], [0], [0], [1], [0, 0, 1, 1], [], []>} : vector<256x16xbf16>, vector<16x16xbf16>, vector<256x16xf32> -> vector<256x16xf32>
    %185 = arith.addf %179, %184 : vector<256x16xf32>
    %186 = vector.extract_strided_slice %173 {offsets = [2, 0, 0], sizes = [16, 16, 16], strides = [1, 1, 1]} : vector<18x16x16xbf16> to vector<16x16x16xbf16>
    %187 = vector.shape_cast %186 : vector<16x16x16xbf16> to vector<256x16xbf16>
    %c2_198 = arith.constant 2 : index
    %c1_199 = arith.constant 1 : index
    %c0_200 = arith.constant 0 : index
    %c0_201 = arith.constant 0 : index
    %188 = vector.load %arg6[%c2_198, %c1_199, %c0_200, %c0_201] : memref<3x3x16x16xbf16, #tpu.memory_space<vmem>>, vector<1x1x16x16xbf16>
    %189 = vector.shape_cast %188 : vector<1x1x16x16xbf16> to vector<16x16xbf16>
    %cst_202 = arith.constant dense<0.000000e+00> : vector<256x16xf32>
    %190 = tpu.matmul %187, %189, %cst_202 {dimension_numbers = #tpu.dot_dimension_numbers<[1], [0], [0], [1], [0, 0, 1, 1], [], []>} : vector<256x16xbf16>, vector<16x16xbf16>, vector<256x16xf32> -> vector<256x16xf32>
    %191 = arith.addf %185, %190 : vector<256x16xf32>
    %c0_203 = arith.constant 0 : index
    %c2_204 = arith.constant 2 : index
    %c0_205 = arith.constant 0 : index
    %192 = vector.load %arg13[%c0_203, %c2_204, %c0_205] : memref<18x18x16xbf16, #tpu.memory_space<vmem>>, vector<18x16x16xbf16>
    %193 = vector.extract_strided_slice %192 {offsets = [0, 0, 0], sizes = [16, 16, 16], strides = [1, 1, 1]} : vector<18x16x16xbf16> to vector<16x16x16xbf16>
    %194 = vector.shape_cast %193 : vector<16x16x16xbf16> to vector<256x16xbf16>
    %c0_206 = arith.constant 0 : index
    %c2_207 = arith.constant 2 : index
    %c0_208 = arith.constant 0 : index
    %c0_209 = arith.constant 0 : index
    %195 = vector.load %arg6[%c0_206, %c2_207, %c0_208, %c0_209] : memref<3x3x16x16xbf16, #tpu.memory_space<vmem>>, vector<1x1x16x16xbf16>
    %196 = vector.shape_cast %195 : vector<1x1x16x16xbf16> to vector<16x16xbf16>
    %cst_210 = arith.constant dense<0.000000e+00> : vector<256x16xf32>
    %197 = tpu.matmul %194, %196, %cst_210 {dimension_numbers = #tpu.dot_dimension_numbers<[1], [0], [0], [1], [0, 0, 1, 1], [], []>} : vector<256x16xbf16>, vector<16x16xbf16>, vector<256x16xf32> -> vector<256x16xf32>
    %198 = arith.addf %191, %197 : vector<256x16xf32>
    %199 = vector.extract_strided_slice %192 {offsets = [1, 0, 0], sizes = [16, 16, 16], strides = [1, 1, 1]} : vector<18x16x16xbf16> to vector<16x16x16xbf16>
    %200 = vector.shape_cast %199 : vector<16x16x16xbf16> to vector<256x16xbf16>
    %c1_211 = arith.constant 1 : index
    %c2_212 = arith.constant 2 : index
    %c0_213 = arith.constant 0 : index
    %c0_214 = arith.constant 0 : index
    %201 = vector.load %arg6[%c1_211, %c2_212, %c0_213, %c0_214] : memref<3x3x16x16xbf16, #tpu.memory_space<vmem>>, vector<1x1x16x16xbf16>
    %202 = vector.shape_cast %201 : vector<1x1x16x16xbf16> to vector<16x16xbf16>
    %cst_215 = arith.constant dense<0.000000e+00> : vector<256x16xf32>
    %203 = tpu.matmul %200, %202, %cst_215 {dimension_numbers = #tpu.dot_dimension_numbers<[1], [0], [0], [1], [0, 0, 1, 1], [], []>} : vector<256x16xbf16>, vector<16x16xbf16>, vector<256x16xf32> -> vector<256x16xf32>
    %204 = arith.addf %198, %203 : vector<256x16xf32>
    %205 = vector.extract_strided_slice %192 {offsets = [2, 0, 0], sizes = [16, 16, 16], strides = [1, 1, 1]} : vector<18x16x16xbf16> to vector<16x16x16xbf16>
    %206 = vector.shape_cast %205 : vector<16x16x16xbf16> to vector<256x16xbf16>
    %c2_216 = arith.constant 2 : index
    %c2_217 = arith.constant 2 : index
    %c0_218 = arith.constant 0 : index
    %c0_219 = arith.constant 0 : index
    %207 = vector.load %arg6[%c2_216, %c2_217, %c0_218, %c0_219] : memref<3x3x16x16xbf16, #tpu.memory_space<vmem>>, vector<1x1x16x16xbf16>
    %208 = vector.shape_cast %207 : vector<1x1x16x16xbf16> to vector<16x16xbf16>
    %cst_220 = arith.constant dense<0.000000e+00> : vector<256x16xf32>
    %209 = tpu.matmul %206, %208, %cst_220 {dimension_numbers = #tpu.dot_dimension_numbers<[1], [0], [0], [1], [0, 0, 1, 1], [], []>} : vector<256x16xbf16>, vector<16x16xbf16>, vector<256x16xf32> -> vector<256x16xf32>
    %210 = arith.addf %204, %209 : vector<256x16xf32>
    %c0_221 = arith.constant 0 : index
    %c0_222 = arith.constant 0 : index
    %211 = vector.load %arg7[%c0_221, %c0_222] : memref<1x16xf32, #tpu.memory_space<vmem>>, vector<1x16xf32>
    %212 = vector.broadcast %211 : vector<1x16xf32> to vector<256x16xf32>
    %213 = arith.addf %210, %212 : vector<256x16xf32>
    %cst_223 = arith.constant 0.000000e+00 : f32
    %214 = vector.broadcast %cst_223 : f32 to vector<256x16xf32>
    %215 = arith.maximumf %213, %214 : vector<256x16xf32>
    %216 = arith.truncf %215 : vector<256x16xf32> to vector<256x16xbf16>
    %c0_224 = arith.constant 0 : index
    %c0_225 = arith.constant 0 : index
    %217 = vector.load %arg8[%c0_224, %c0_225] : memref<16x128xbf16, #tpu.memory_space<vmem>>, vector<16x128xbf16>
    %cst_226 = arith.constant dense<0.000000e+00> : vector<256x128xf32>
    %218 = tpu.matmul %216, %217, %cst_226 {dimension_numbers = #tpu.dot_dimension_numbers<[1], [0], [0], [1], [0, 0, 1, 1], [], []>} : vector<256x16xbf16>, vector<16x128xbf16>, vector<256x128xf32> -> vector<256x128xf32>
    %c0_227 = arith.constant 0 : index
    %c0_228 = arith.constant 0 : index
    %219 = vector.load %arg9[%c0_227, %c0_228] : memref<1x128xf32, #tpu.memory_space<vmem>>, vector<1x128xf32>
    %220 = vector.broadcast %219 : vector<1x128xf32> to vector<256x128xf32>
    %221 = arith.addf %218, %220 : vector<256x128xf32>
    %222 = vector.shape_cast %221 : vector<256x128xf32> to vector<1x16x16x128xf32>
    %c0_229 = arith.constant 0 : index
    %c0_230 = arith.constant 0 : index
    %c0_231 = arith.constant 0 : index
    %c0_232 = arith.constant 0 : index
    %223 = vector.load %arg10[%c0_229, %c0_230, %c0_231, %c0_232] : memref<1x16x16x128xf32, #tpu.memory_space<vmem>>, vector<1x16x16x128xf32>
    tpu.vector_store %arg10[%c0_229, %c0_230, %c0_231, %c0_232], %222 {strides = array<i32>} : memref<1x16x16x128xf32, #tpu.memory_space<vmem>>, vector<1x16x16x128xf32>,
    return
  }
  func.func @transform_0(%arg0: i32) -> (i32, i32, i32, i32) {
    %c0_i32 = arith.constant 0 : i32
    %c0_i32_0 = arith.constant 0 : i32
    %c0_i32_1 = arith.constant 0 : i32
    %c0_i32_2 = arith.constant 0 : i32
    return %arg0, %c0_i32, %c0_i32_0, %c0_i32_1 : i32, i32, i32, i32
  }
  func.func @transform_1(%arg0: i32) -> (i32, i32, i32, i32) {
    %c0_i32 = arith.constant 0 : i32
    %c0_i32_0 = arith.constant 0 : i32
    %c0_i32_1 = arith.constant 0 : i32
    %c0_i32_2 = arith.constant 0 : i32
    %c0_i32_3 = arith.constant 0 : i32
    return %c0_i32, %c0_i32_0, %c0_i32_1, %c0_i32_2 : i32, i32, i32, i32
  }
  func.func @transform_2(%arg0: i32) -> (i32, i32) {
    %c0_i32 = arith.constant 0 : i32
    %c0_i32_0 = arith.constant 0 : i32
    %c0_i32_1 = arith.constant 0 : i32
    return %c0_i32, %c0_i32_0 : i32, i32
  }
  func.func @transform_3(%arg0: i32) -> (i32, i32, i32, i32) {
    %c0_i32 = arith.constant 0 : i32
    %c0_i32_0 = arith.constant 0 : i32
    %c0_i32_1 = arith.constant 0 : i32
    %c0_i32_2 = arith.constant 0 : i32
    %c0_i32_3 = arith.constant 0 : i32
    return %c0_i32, %c0_i32_0, %c0_i32_1, %c0_i32_2 : i32, i32, i32, i32
  }
  func.func @transform_4(%arg0: i32) -> (i32, i32) {
    %c0_i32 = arith.constant 0 : i32
    %c0_i32_0 = arith.constant 0 : i32
    %c0_i32_1 = arith.constant 0 : i32
    return %c0_i32, %c0_i32_0 : i32, i32
  }
  func.func @transform_5(%arg0: i32) -> (i32, i32, i32, i32) {
    %c0_i32 = arith.constant 0 : i32
    %c0_i32_0 = arith.constant 0 : i32
    %c0_i32_1 = arith.constant 0 : i32
    %c0_i32_2 = arith.constant 0 : i32
    %c0_i32_3 = arith.constant 0 : i32
    return %c0_i32, %c0_i32_0, %c0_i32_1, %c0_i32_2 : i32, i32, i32, i32
  }
  func.func @transform_6(%arg0: i32) -> (i32, i32) {
    %c0_i32 = arith.constant 0 : i32
    %c0_i32_0 = arith.constant 0 : i32
    %c0_i32_1 = arith.constant 0 : i32
    return %c0_i32, %c0_i32_0 : i32, i32
  }
  func.func @transform_7(%arg0: i32) -> (i32, i32) {
    %c0_i32 = arith.constant 0 : i32
    %c0_i32_0 = arith.constant 0 : i32
    %c0_i32_1 = arith.constant 0 : i32
    return %c0_i32, %c0_i32_0 : i32, i32
  }
  func.func @transform_8(%arg0: i32) -> (i32, i32) {
    %c0_i32 = arith.constant 0 : i32
    %c0_i32_0 = arith.constant 0 : i32
    %c0_i32_1 = arith.constant 0 : i32
    return %c0_i32, %c0_i32_0 : i32, i32
  }
  func.func @transform_9(%arg0: i32) -> (i32, i32, i32, i32) {
    %c0_i32 = arith.constant 0 : i32
    %c0_i32_0 = arith.constant 0 : i32
    %c0_i32_1 = arith.constant 0 : i32
    %c0_i32_2 = arith.constant 0 : i32
    return %arg0, %c0_i32, %c0_i32_0, %c0_i32_1 : i32, i32, i32, i32
  }
}

</mosaic_0001>

<bundles_post_ra>
// kernel: tpu_custom_call.1
= control target key start
LH: loop header
LB: loop body
LE: loop exit
PB: predicated region body
PF: predicated region fallthrough
CT: control target
= control target key end

     0   :  { %s19191_s0 = inlined_call_operand.hbm [shape: bf16[2,16,16,16], index: 0, kind: input, shape index: {}]   ;;  %s19192_s1 = inlined_call_operand.hbm [shape: bf16[3,3,16,16], index: 1, kind: input, shape index: {}]   ;;  %s19193_s2 = inlined_call_operand.vmem [shape: f32[1,16], index: 2, kind: input, shape index: {}]   ;;  %s19194_s3 = inlined_call_operand.hbm [shape: bf16[3,3,16,16], index: 3, kind: input, shape index: {}]   ;;  %s19195_s4 = inlined_call_operand.vmem [shape: f32[1,16], index: 4, kind: input, shape index: {}]   ;;  %s19196_s5 = inlined_call_operand.hbm [shape: bf16[3,3,16,16], index: 5, kind: input, shape index: {}]   ;;  %s19197_s6 = inlined_call_operand.vmem [shape: f32[1,16], index: 6, kind: input, shape index: {}]   ;;  %s19198_s7 = inlined_call_operand.vmem [shape: bf16[16,128], index: 7, kind: input, shape index: {}]   ;;  %s19199_s8 = inlined_call_operand.vmem [shape: f32[1,128], index: 8, kind: input, shape index: {}]   ;;  %s19200_s9 = inlined_call_operand.hbm [shape: f32[2,16,16,128], index: 9, kind: output, shape index: {}]  }
   0x1   :  { %19251 = sst [smem:[#allocation76_spill]] %s19192_s1 }
   0x2   :  { %19252 = sst [smem:[#allocation77_spill]] %s19194_s3 }
   0x3   :  { %19253 = sst [smem:[#allocation78_spill]] %s19196_s5 }
   0x4   :  { %14 = vsyncpa [#allocation6], 0 }
   0x5   :  { %16 = vsyncpa [#allocation6 + $0x1], 0 }
   0x6   :  { %17 = vsyncpa [#allocation9], 0 }
   0x7   :  { %18 = vsyncpa [#allocation12], 0 }
   0x8   :  { %19 = vsyncpa [#allocation7], 0 }
   0x9   :  { %21 = vsyncpa [#allocation7 + $0x1], 0  ;;  %s14088_s30 = smov 0   ;;  %s14090_s10 = smov 0  }
   0xa   :  { %s14092_s11 = smov 0   ;;  %s14094_s12 = smov 0  }
   0xb LB: > { %s14109_s13 = sadd.s32 4294967295, %s14026_s12   ;;  %s11382_s14 = sadd.s32 4294967294, %s14026_s12   ;;  %s14026_s12 = sphi %s14094_s12, %s19595_s12   ;;  %s14022_s11 = sphi %s14092_s11, %s19594_s11   ;;  %s14018_s10 = sphi %s14090_s10, %s19593_s10   ;;  %s14014_s30 = sphi %s14088_s30, %s19592_s30  }
   0xc   : > { %p47_p0 = scmp.ne.s32.totalorder %s14018_s10, %s14014_s30  ;;  %p19201_p1 = scmp.eq.s32.totalorder %s14109_s13, 0 }
   0xd   : > { %p239_p2 = scmp.eq.s32.totalorder %s14109_s13, 1  ;;  %p245_p3 = scmp.eq.s32.totalorder %s11382_s14, 1 }
   0xe   : > { %p14118_p4 = por %p19201_p1, %p47_p0  ;;  %p11383_p5 = scmp.ge.s32.totalorder %s14026_s12, 1 }
   0xf   : > { %p14123_p6 = por %p245_p3, %p47_p0  ;;  %p252_p7 = scmp.lt.s32.totalorder %s14026_s12, 3 }
  0x10   : > { %s19254_s15 = scalar_select %p14118_p4, 1, 0 }
  0x11   : > { %s19255_s16 = scalar_select %p14123_p6, 1, 0 }
  0x12   : > { %p14128_p8 = pnand %p11383_p5, %p252_p7  ;;  %s14028_s18 = smov [#allocation8]  }
  0x13   : > { %s264_s19 = sshll.u32 %s14028_s18, 4  ;;  %s14029_s21 = smov [#allocation10]   ;;  %s265_s19 = int_to_ptr.vmem [resolvable:$true] %s264_s19 }
  0x14   : > { %s19256_s17 = scalar_select %p14128_p8, 1, 0 }
  0x15   : > { %p13672_p9 = pneg %p14128_p8  ;;  %s280_s22 = sshll.u32 %s14029_s21, 4  ;;  %s281_s22 = int_to_ptr.vmem [resolvable:$true] %s280_s22 }
  0x16   : > { %s14030_s23 = smov [#allocation11]   ;;  %s13859_s25 = scalar_lea.vmem %s265_s19, 1152 }
  0x17   : > { %p14137_p11 = pnand %p13672_p9, %p19201_p1  ;;  %s296_s24 = sshll.u32 %s14030_s23, 4  ;;  %s297_s24 = int_to_ptr.vmem [resolvable:$true] %s296_s24 }
  0x18   : > { %p13860_p13 = scmp.ne.s32.totalorder %s265_s19, %s13859_s25  ;;  %p13867_p5 = scmp.lt.s32.totalorder %s265_s19, %s265_s19 }
  0x19   : > { %p13850_p12 = pneg %p14137_p11  ;;  %p13868_p7 = scmp.lt.s32.totalorder %s13859_s25, %s13859_s25 }
  0x1b   : > { %p13862_p0 = pnand %p13860_p13, %p13850_p12  ;;  %p13869_p9 = por %p13868_p7, %p13867_p5 }
  0x1d   : > { %p13863_p3 = pneg %p13862_p0 }
  0x1f   : > { %p13870_p10 = pnand %p13869_p9, %p13863_p3 }
  0x21   : > { %13873 = shalt.err (!%p13870_p10)
}
  0x22   : > { %s19202_s26 = smov 64   ;;  %s19203_s27 = smov 4  }
  0x23   : > { %s19258_s1 = sld [smem:[#allocation76_spill]]  ;;  %s13885_s14 = scalar_lea.vmem %s281_s22, 1152 }
  0x24   : > { %p13886_p13 = scmp.ne.s32.totalorder %s281_s22, %s13885_s14  ;;  %p13893_p3 = scmp.lt.s32.totalorder %s281_s22, %s281_s22 }
  0x25   : > { %p13894_p10 = scmp.lt.s32.totalorder %s13885_s14, %s13885_s14 }
  0x26   : > { %p13888_p0 = pnand %p13886_p13, %p13850_p12 }
  0x27   : > { %p13895_p7 = por %p13894_p10, %p13893_p3 }
  0x28   : > { %p13889_p5 = pneg %p13888_p0 }
  0x29   : > { %13675 = dma.hbm_to_vmem [thread:$0]  (!%p14137_p11), %s19258_s1, 1152, %s265_s19, [#allocation9], %s19202_s26, %s19202_s26, %s19203_s27  }
  0x2a   : > { %p13896_p9 = pnand %p13895_p7, %p13889_p5 }
  0x2c   : > { %13899 = shalt.err (!%p13896_p9)
}
  0x2d   : > { %s19259_s3 = sld [smem:[#allocation77_spill]]  ;;  %s13911_s19 = scalar_lea.vmem %s297_s24, 1152 }
  0x2e   : > { %p13912_p1 = scmp.ne.s32.totalorder %s297_s24, %s13911_s19  ;;  %p13919_p3 = scmp.lt.s32.totalorder %s297_s24, %s297_s24 }
  0x2f   : > { %p13920_p5 = scmp.lt.s32.totalorder %s13911_s19, %s13911_s19 }
  0x30   : > { %p13914_p13 = pnand %p13912_p1, %p13850_p12 }
  0x31   : > { %p13921_p10 = por %p13920_p5, %p13919_p3 }
  0x32   : > { %p13915_p0 = pneg %p13914_p13 }
  0x33   : > { %13678 = dma.hbm_to_vmem [thread:$0]  (!%p14137_p11), %s19259_s3, 1152, %s281_s22, [#allocation9], %s19202_s26, %s19202_s26, %s19203_s27  }
  0x34   : > { %p13922_p7 = pnand %p13921_p10, %p13915_p0 }
  0x36   : > { %13925 = shalt.err (!%p13922_p7)
}
  0x37   : > { %s19260_s5 = sld [smem:[#allocation78_spill]]  ;;  %s14177_s22 = sadd.s32 1, %s14026_s12  }
  0x38   : > { %s31_s20 = ssub.s32 %s14026_s12, %s14177_s22  ;;  %s34_s28 = sadd.s32 1, %s14022_s11 }
  0x39   : > { %p32_p1 = scmp.eq.s32.totalorder %s31_s20, 0  ;;  %p41_p12 = scmp.ne.s32.totalorder %s14022_s11, %s14018_s10 }
  0x3a   : > { %p42_p9 = scmp.eq.s32.totalorder %s14026_s12, 0  ;;  %p13693_p13 = scmp.lt.s32.totalorder %s14026_s12, 2 }
  0x3b   : > { %s14187_s29 = scalar_select %p32_p1, %s14022_s11, %s34_s28  }
  0x3c   : > { %p43_p0 = por %p42_p9, %p41_p12  ;;  %p14191_p3 = por %p239_p2, %p41_p12 }
  0x3d   : > { %13681 = dma.hbm_to_vmem [thread:$0]  (!%p14137_p11), %s19260_s5, 1152, %s297_s24, [#allocation12], %s19202_s26, %s19202_s26, %s19203_s27  }
  0x3e   : > { %s19261_s14 = scalar_select %p14191_p3, 1, 0 }
  0x3f   : > { %s319_s18 = sand.u32 1, %s14022_s11   ;;  %s12162_s21 = sshll.u32 %s14026_s12, 11 }
  0x40   : > { %s11388_s24 = sshll.u32 %s319_s18, 7  ;;  %s14200_s25 = scalar_lea.hbm %s19191_s0, %s12162_s21 }
  0x41   : > { %s323_s20 = scalar_lea.vmem [#allocation5], %s11388_s24  ;;  %p14202_p11 = pnand %p13693_p13, %p43_p0 }
  0x42   : > { %s330_s28 = sshll.u32 %s323_s20, 4  ;;  %s14208_s27 = scalar_lea.sflag [#allocation6], %s319_s18  ;;  %s14206_s28 = int_to_ptr.vmem [resolvable:$true] %s330_s28 }
  0x43   : > { %s13926_s1 = scalar_lea.hbm %s14200_s25, 2048  ;;  %p13928_p5 = pneg %p14202_p11 }
  0x44   : > { %p13927_p2 = scmp.ne.s32.totalorder %s14200_s25, %s13926_s1  ;;  %s13931_s24 = scalar_lea.hbm %s19191_s0, 4096 }
  0x45   : > { %p13932_p1 = scmp.lt.s32.totalorder %s14200_s25, %s19191_s0  ;;  %p13933_p12 = scmp.lt.s32.totalorder %s13931_s24, %s13926_s1 }
  0x46   : > { %p13929_p10 = pnand %p13928_p5, %p13927_p2 }
  0x47   : > { %p13934_p9 = por %p13933_p12, %p13932_p1 }
  0x48   : > { %p13930_p7 = pneg %p13929_p10 }
  0x4a   : > { %p13935_p13 = pnand %p13934_p9, %p13930_p7 }
  0x4c   : > { %13938 = shalt.err (!%p13935_p13)
}
  0x4d   : > { %s13939_s18 = scalar_lea.vmem %s14206_s28, 2048  ;;  %s14033_s3 = smov [#allocation5]  }
  0x4e   : > { %p13940_p0 = scmp.ne.s32.totalorder %s14206_s28, %s13939_s18  ;;  %s13944_s5 = sshll.u32 %s14033_s3, 4  ;;  %s13945_s5 = int_to_ptr.vmem [resolvable:$false] %s13944_s5 }
  0x4f   : > { %s13946_s21 = scalar_lea.vmem %s13945_s5, 4096  ;;  %p13947_p10 = scmp.lt.s32.totalorder %s14206_s28, %s13945_s5 }
  0x50   : > { %p13942_p6 = pnand %p13940_p0, %p13928_p5  ;;  %p13948_p3 = scmp.lt.s32.totalorder %s13946_s21, %s13939_s18 }
  0x52   : > { %p13943_p2 = pneg %p13942_p6  ;;  %p13949_p4 = por %p13948_p3, %p13947_p10 }
  0x54   : > { %p13950_p8 = pnand %p13949_p4, %p13943_p2 }
  0x56   : > { %13953 = shalt.err (!%p13950_p8)
}
  0x57   : > { %s19263_s1 = smov 4   ;;  %s19264_s19 = smov 64  }
  0x58   : > { %13685 = dma.hbm_to_vmem [thread:$0]  (!%p14202_p11), %s14200_s25, 2048, %s14206_s28, %s14208_s27, %s19264_s19, %s19264_s19, %s19263_s1  }
  0x59   : > { %p19265_p6 = scmp.ne.s32.totalorder %s19256_s17, 0 }
  0x5b   : > { %342 = sbr.rel (%p19265_p6) target bundleno = 1877 (0x755), region = 56 }
  0x60   : > { %s14235_s3 = sand.u32 1, %s14018_s10   ;;  %p19266_p4 = scmp.ne.s32.totalorder %s19254_s15, 0 }
  0x61   : > { %s11392_s5 = sshll.u32 %s14235_s3, 7  ;;  %s345_s24 = scalar_lea.sflag [#allocation6], %s14235_s3 }
  0x62   : > { %s14239_s23 = scalar_lea.vmem [#allocation5], %s11392_s5 }
  0x63   : > { %13997 = dma.done.wait (%p19266_p4), %s345_s24, 2048  }
  0x64   : > { %13999 = vsyncadd (%p19266_p4), %s345_s24, 4294965248  ;;  %p19267_p8 = scmp.eq.s32.totalorder %s14109_s13, 0 }
  0x66   : > { %14001 = dma.done.wait (%p19267_p8), [#allocation9], 2304   ;;  %p19268_p3 = pmov %p19267_p8 }
  0x68   : > { %14003 = vsyncadd (%p19268_p3), [#allocation9], 4294964992  ;;  %p19269_p11 = pmov %p19268_p3 }
  0x69   : > { %p19270_p5 = pmov %p19268_p3 }
  0x6a   : > { %14005 = dma.done.wait (%p19269_p11), [#allocation12], 1152  }
  0x6b   : > { %14007 = vsyncadd (%p19270_p5), [#allocation12], 4294966144  ;;  %vm396_vm0 = vcmask 125952   ;;  %vm399_vm1 = vcmask 122880   ;;  %vm406_vm2 = vsmask.f32 256 }
  0x6c   : > { %v14034_v0 = vmov 0   ;;  %vm14273_vm3 = vmand %vm399_vm1, %vm406_vm2  ;;  %v19271_v1 = vmov 0  ;;  %vm462_vm4 = vsmask.f32 7938  ;;  %v19274_v2 = vmov 0  ;;  %v13738_v3 = vld [vmem:[#allocation8 + $0x18] sm:$0xff]  }
  0x6d   : > { %397 = vst.msk [vmem:[#allocation2] sm:$0xf] %vm396_vm0, %v14034_v0  ;;  %398 = vst.msk [vmem:[#allocation2 + $0x4] sm:$0xf] %vm396_vm0, %v14034_v0  ;;  %v19272_v1 = vsel %vm14273_vm3, 4294967295, %v19271_v1  ;;  %v13739_v4 = vld [vmem:[#allocation8] sm:$0xff]   ;;  %12704 = vmatprep.subr.bf16.mxu0 %v13738_v3 }
  0x6e   : > { %400 = vst.msk [vmem:[#allocation2 + $0x8] sm:$0x1] %vm399_vm1, %v14034_v0  ;;  %404 = vst.msk [vmem:[#allocation2 + $0xd4] sm:$0x1] %vm399_vm1, %v14034_v0  ;;  %vm780_vm6 = vsmask.f32 4368  ;;  %12705 = vmatpush3.bf16.msra.mxu0 %v13738_v3  ;;  %12738 = vmatprep.subr.bf16.mxu1 %v13739_v4 }
  0x6f   : > { %402 = vst.msk [vmem:[#allocation2 + $0xcc] sm:$0xf] %vm396_vm0, %v14034_v0  ;;  %403 = vst.msk [vmem:[#allocation2 + $0xd0] sm:$0xf] %vm396_vm0, %v14034_v0  ;;  %v411_v5 = vld [vmem:[#allocation2 + $0xc] sm:$0x1]  ;;  %12739 = vmatpush3.bf16.msra.mxu1 %v13739_v4 }
  0x70   : > { %518 = vst.msk [vmem:[#allocation3] sm:$0xf] %vm396_vm0, %v14034_v0  ;;  %519 = vst.msk [vmem:[#allocation3 + $0x4] sm:$0xf] %vm396_vm0, %v14034_v0  ;;  %v467_v6 = vld [vmem:[#allocation2 + $0x14] sm:$0x1] }
  0x71   : > { %520 = vst.msk [vmem:[#allocation3 + $0x8] sm:$0x1] %vm399_vm1, %v14034_v0  ;;  %524 = vst.msk [vmem:[#allocation3 + $0xd4] sm:$0x1] %vm399_vm1, %v14034_v0  ;;  %v748_v7 = vld [vmem:[%s14239_s23] sm:$0xf] }
  0x72   : > { %522 = vst.msk [vmem:[#allocation3 + $0xcc] sm:$0xf] %vm396_vm0, %v14034_v0  ;;  %523 = vst.msk [vmem:[#allocation3 + $0xd0] sm:$0xf] %vm396_vm0, %v14034_v0  ;;  %v412_v8 = vsel %vm14273_vm3, 0, %v411_v5  ;;  %v783_v11 = vshrl.u32 %v748_v7, 16 }
  0x73   : > { %633 = vst.msk [vmem:[#allocation4] sm:$0xf] %vm396_vm0, %v14034_v0  ;;  %634 = vst.msk [vmem:[#allocation4 + $0x4] sm:$0xf] %vm396_vm0, %v14034_v0  ;;  %v749_v10 = vld [vmem:[%s14239_s23 + $0x4] sm:$0xf] }
  0x74   : > { %635 = vst.msk [vmem:[#allocation4 + $0x8] sm:$0x1] %vm399_vm1, %v14034_v0  ;;  %639 = vst.msk [vmem:[#allocation4 + $0xd4] sm:$0x1] %vm399_vm1, %v14034_v0  ;;  %v786_v12 = vshll.u32 %v748_v7, 16  ;;  %v791_v13 = vshrl.u32 %v749_v10, 16 }
  0x75   : > { %637 = vst.msk [vmem:[#allocation4 + $0xcc] sm:$0xf] %vm396_vm0, %v14034_v0  ;;  %638 = vst.msk [vmem:[#allocation4 + $0xd0] sm:$0xf] %vm396_vm0, %v14034_v0  ;;  %v794_v14 = vshll.u32 %v749_v10, 16  ;;  %v785_v16 = vrot.slane %v783_v11, 7 }
  0x76   : > { %19273 = vst [vmem:[#allocation18_spill] sm:$0xff] %v19272_v1  ;;  %vm14279_vm5 = vmand %vm399_vm1, %vm462_vm4  ;;  %v408_v15 = vld [vmem:[#allocation2] sm:$0x1]  ;;  %v793_v18 = vrot.slane %v791_v13, 7  ;;  %v14291_v19 = vld [vmem:[#allocation8 + $0x30] sm:$0xff]   ;;  %v19277_v22 = vmov 0 }
  0x77   : > { %v19275_v2 = vsel %vm14279_vm5, 4294967295, %v19274_v2  ;;  %v468_v9 = vsel %vm14279_vm5, 0, %v467_v6  ;;  %413 = vst [vmem:[#allocation2 + $0xc] sm:$0x1] %v412_v8  ;;  %v409_v17 = vsel %vm14273_vm3, 0, %v408_v15  ;;  %vm14296_vm7 = vmor %vm406_vm2, %vm780_vm6  ;;  %v788_v23 = vor.u32 %v786_v12, %v785_v16  ;;  %v14303_v28 = vld [vmem:[#allocation8 + $0x8] sm:$0xff]   ;;  %12772 = vmatprep.subr.bf16.mxu0 %v14291_v19 }
  0x78   : > { %19276 = vst [vmem:[#allocation19_spill] sm:$0xff] %v19275_v2  ;;  %469 = vst [vmem:[#allocation2 + $0x14] sm:$0x1] %v468_v9  ;;  %v414_v20 = vld [vmem:[#allocation2 + $0x18] sm:$0x1]  ;;  %v19278_v22 = vsel %vm14296_vm7, 4294967295, %v19277_v22  ;;  %v796_v29 = vor.u32 %v794_v14, %v793_v18  ;;  %12806 = vmatprep.subr.bf16.mxu1 %v14303_v28 }
  0x79   : > { %410 = vst [vmem:[#allocation2] sm:$0x1] %v409_v17  ;;  %v750_v21 = vld [vmem:[%s14239_s23 + $0x8] sm:$0xf]  ;;  %19279 = vst [vmem:[#allocation20_spill] sm:$0xff] %v19278_v22  ;;  %v789_v24 = vrot.slane %v785_v16, 4 }
  0x7a   : > { %v415_v25 = vsel %vm14273_vm3, 0, %v414_v20  ;;  %v751_v26 = vld [vmem:[%s14239_s23 + $0xc] sm:$0xf]  ;;  %v800_v27 = vshrl.u32 %v750_v21, 16  ;;  %v798_v30 = vrot.slane %v793_v18, 4  ;;  %v803_v31 = vshll.u32 %v750_v21, 16  ;;  %vm14308_vm8 = vmand %vm396_vm0, %vm462_vm4 }
  0x7b   : > { %416 = vst [vmem:[#allocation2 + $0x18] sm:$0x1] %v415_v25  ;;  %v808_v32 = vshrl.u32 %v751_v26, 16  ;;  %v417_v33 = vld [vmem:[#allocation2 + $0x24] sm:$0x1]  ;;  %v19280_v34 = vmov 0  ;;  %v797_v39 = vsel %vm14296_vm7, %v789_v24, %v796_v29 }
  0x7c   : > { %v19281_v34 = vsel %vm14308_vm8, 4294967295, %v19280_v34  ;;  %vm1344_vm9 = vcmask 130048   ;;  %v802_v35 = vrot.slane %v800_v27, 7  ;;  %v811_v36 = vshll.u32 %v751_v26, 16  ;;  %v752_v38 = vld [vmem:[%s14239_s23 + $0x10] sm:$0xf] }
  0x7d   : > { %19282 = vst [vmem:[#allocation21_spill] sm:$0xff] %v19281_v34  ;;  %v418_v37 = vsel %vm14273_vm3, 0, %v417_v33  ;;  %v14318_v40 = vrot.slane %v808_v32, 7  ;;  %v753_v41 = vld [vmem:[%s14239_s23 + $0x14] sm:$0xf]  ;;  %v817_v42 = vshrl.u32 %v752_v38, 16 }
  0x7e   : > { %419 = vst [vmem:[#allocation2 + $0x24] sm:$0x1] %v418_v37  ;;  %v820_v43 = vshll.u32 %v752_v38, 16  ;;  %v1105_v44 = vld [vmem:[#allocation2 + $0xc] sm:$0xf]  ;;  %v806_v46 = vrot.slane %v802_v35, 4  ;;  %v805_v50 = vor.u32 %v803_v31, %v802_v35 }
  0x7f   : > { %1108 = vst.msk [vmem:[#allocation2 + $0x10] sm:$0xf] %vm396_vm0, %v797_v39  ;;  %v1109_v45 = vld [vmem:[#allocation2 + $0x14] sm:$0x1]  ;;  %v825_v47 = vshrl.u32 %v753_v41, 16  ;;  %v1106_v48 = vsel %vm14308_vm8, %v788_v23, %v1105_v44  ;;  %v813_v51 = vor.u32 %v811_v36, %v14318_v40  ;;  %v819_v55 = vrot.slane %v817_v42, 7 }
  0x80   : > { %v1110_v49 = vsel %vm14273_vm3, %v798_v30, %v1109_v45  ;;  %v420_v52 = vld [vmem:[#allocation2 + $0x30] sm:$0x1]  ;;  %v754_v53 = vld [vmem:[%s14239_s23 + $0x18] sm:$0xf]  ;;  %1107 = vst [vmem:[#allocation2 + $0xc] sm:$0xf] %v1106_v48 }
  0x81   : > { %1111 = vst [vmem:[#allocation2 + $0x14] sm:$0x1] %v1110_v49  ;;  %v13741_v54 = vld [vmem:[#allocation2] sm:$0xff]   ;;  %v14328_v56 = vrot.slane %v825_v47, 7  ;;  %v828_v57 = vshll.u32 %v753_v41, 16  ;;  %v814_v58 = vsel %vm14296_vm7, %v806_v46, %v813_v51  ;;  %v421_v59 = vsel %vm14273_vm3, 0, %v420_v52 }
  0x82   : > { %v755_v60 = vld [vmem:[%s14239_s23 + $0x1c] sm:$0xf]  ;;  %v834_v61 = vshrl.u32 %v754_v53, 16  ;;  %v837_v62 = vshll.u32 %v754_v53, 16  ;;  %12740 = vmatprep.mubr.msk.bf16.mxu1 %vm1344_vm9, %v13741_v54  ;;  %v1112_v63 = vld [vmem:[#allocation2 + $0x18] sm:$0xf]  ;;  %v822_v0 = vor.u32 %v820_v43, %v819_v55 }
  0x83   : > { %1115 = vst.msk [vmem:[#allocation2 + $0x1c] sm:$0xf] %vm396_vm0, %v814_v58  ;;  %v823_v3 = vrot.slane %v819_v55, 4  ;;  %v830_v4 = vor.u32 %v828_v57, %v14328_v56  ;;  %422 = vst [vmem:[#allocation2 + $0x30] sm:$0x1] %v421_v59  ;;  %v1113_v6 = vsel %vm14308_vm8, %v805_v50, %v1112_v63  ;;  %v842_v8 = vshrl.u32 %v755_v60, 16 }
  0x84   : > { %v423_v5 = vld [vmem:[#allocation2 + $0x3c] sm:$0x1]  ;;  %v836_v7 = vrot.slane %v834_v61, 7  ;;  %v845_v9 = vshll.u32 %v755_v60, 16  ;;  %v756_v10 = vld [vmem:[%s14239_s23 + $0x20] sm:$0xf] }
  0x85   : > { %1114 = vst [vmem:[#allocation2 + $0x18] sm:$0xf] %v1113_v6  ;;  %v831_v11 = vsel %vm14296_vm7, %v823_v3, %v830_v4  ;;  %v1119_v12 = vld [vmem:[#allocation2 + $0x24] sm:$0xf]  ;;  %v424_v13 = vsel %vm14273_vm3, 0, %v423_v5  ;;  %v851_v15 = vshrl.u32 %v756_v10, 16 }
  0x86   : > { %v757_v14 = vld [vmem:[%s14239_s23 + $0x24] sm:$0xf]  ;;  %v1120_v16 = vsel %vm14308_vm8, %v822_v0, %v1119_v12  ;;  %1122 = vst.msk [vmem:[#allocation2 + $0x28] sm:$0xf] %vm396_vm0, %v831_v11  ;;  %v839_v17 = vor.u32 %v837_v62, %v836_v7  ;;  %v840_v18 = vrot.slane %v836_v7, 4  ;;  %v14349_v20 = vrot.slane %v842_v8, 7 }
  0x87   : > { %425 = vst [vmem:[#allocation2 + $0x3c] sm:$0x1] %v424_v13  ;;  %v426_v21 = vld [vmem:[#allocation2 + $0x48] sm:$0x1]  ;;  %1121 = vst [vmem:[#allocation2 + $0x24] sm:$0xf] %v1120_v16 }
  0x88   : > { %v853_v23 = vrot.slane %v851_v15, 7  ;;  %v854_v24 = vshll.u32 %v756_v10, 16  ;;  %v859_v25 = vshrl.u32 %v757_v14, 16  ;;  %v862_v26 = vshll.u32 %v757_v14, 16  ;;  %v758_v27 = vld [vmem:[%s14239_s23 + $0x28] sm:$0xf] }
  0x89   : > { %v13740_v29 = vld [vmem:[#allocation2 + $0xc] sm:$0xff]   ;;  %v847_v30 = vor.u32 %v845_v9, %v14349_v20  ;;  %v427_v31 = vsel %vm14273_vm3, 0, %v426_v21  ;;  %v868_v32 = vshrl.u32 %v758_v27, 16  ;;  %v759_v36 = vld [vmem:[%s14239_s23 + $0x2c] sm:$0xf]  ;;  %v871_v37 = vshll.u32 %v758_v27, 16 }
  0x8a   : > { %v857_v33 = vrot.slane %v853_v23, 4  ;;  %v14355_v35 = vrot.slane %v859_v25, 7  ;;  %428 = vst [vmem:[#allocation2 + $0x48] sm:$0x1] %v427_v31  ;;  %12706 = vmatprep.mubr.msk.bf16.mxu0 %vm1344_vm9, %v13740_v29  ;;  %12741 = vmatmul.mubr.msk.bf16.vlgmr.msra.gmra.mxu1 %vm1344_vm9, %v13740_v29  ;;  %v1126_v39 = vld [vmem:[#allocation2 + $0x30] sm:$0xf]  ;;  %v856_v41 = vor.u32 %v854_v24, %v853_v23 }
  0x8b   : > { %v848_v38 = vsel %vm14296_vm7, %v840_v18, %v847_v30  ;;  %v870_v42 = vrot.slane %v868_v32, 7  ;;  %v876_v43 = vshrl.u32 %v759_v36, 16  ;;  %v1127_v44 = vsel %vm14308_vm8, %v839_v17, %v1126_v39  ;;  %v429_v47 = vld [vmem:[#allocation2 + $0x54] sm:$0x1]  ;;  %v760_v48 = vld [vmem:[%s14239_s23 + $0x30] sm:$0xf]  ;;  %12807 = vmatpush3.bf16.msra.mxu1 %v14303_v28 }
  0x8c   : > { %1129 = vst.msk [vmem:[#allocation2 + $0x34] sm:$0xf] %vm396_vm0, %v848_v38  ;;  %v864_v45 = vor.u32 %v862_v26, %v14355_v35  ;;  %v879_v46 = vshll.u32 %v759_v36, 16  ;;  %v14368_v49 = vld [vmem:[#allocation8 + $0x20] sm:$0xff]   ;;  %v14370_v50 = vld [vmem:[#allocation2 + $0x18] sm:$0xff]   ;;  %v430_v53 = vsel %vm14273_vm3, 0, %v429_v47 }
  0x8d   : > { %1128 = vst [vmem:[#allocation2 + $0x30] sm:$0xf] %v1127_v44  ;;  %v874_v51 = vrot.slane %v870_v42, 4  ;;  %v14372_v52 = vrot.slane %v876_v43, 7  ;;  %v873_v57 = vor.u32 %v871_v37, %v870_v42  ;;  %431 = vst [vmem:[#allocation2 + $0x54] sm:$0x1] %v430_v53  ;;  %12707 = vmatmul.mubr.msk.bf16.vlgmr.msra.gmra.mxu0 %vm1344_vm9, %v14370_v50  ;;  %12744 = vmatprep.mubr.msk.bf16.mxu1 %vm1344_vm9, %v14370_v50 }
  0x8e   : > { %v865_v54 = vsel %vm14296_vm7, %v857_v33, %v864_v45  ;;  %v1133_v55 = vld [vmem:[#allocation2 + $0x3c] sm:$0xf]  ;;  %v14381_v28 = vld [vmem:[#allocation2 + $0x24] sm:$0xff]   ;;  %v885_v61 = vshrl.u32 %v760_v48, 16  ;;  %12773 = vmatpush3.bf16.msra.mxu0 %v14291_v19  ;;  %v888_v62 = vshll.u32 %v760_v48, 16  ;;  %vm3208_vm13 = vcmask 1042432  }
  0x8f   : > { %v761_v58 = vld [vmem:[%s14239_s23 + $0x34] sm:$0xf]  ;;  %v1134_v59 = vsel %vm14308_vm8, %v856_v41, %v1133_v55  ;;  %1136 = vst.msk [vmem:[#allocation2 + $0x40] sm:$0xf] %vm396_vm0, %v865_v54  ;;  %v881_v60 = vor.u32 %v879_v46, %v14372_v52  ;;  %v432_v3 = vld [vmem:[#allocation2 + $0x60] sm:$0x1]  ;;  %12710 = vmatprep.mubr.msk.bf16.mxu0 %vm1344_vm9, %v14381_v28  ;;  %12840 = vmatprep.subr.bf16.mxu0 %v14368_v49 }
  0x90   : > { %1135 = vst [vmem:[#allocation2 + $0x3c] sm:$0xf] %v1134_v59  ;;  %v893_v63 = vshrl.u32 %v761_v58, 16  ;;  %v896_v0 = vshll.u32 %v761_v58, 16  ;;  %v887_v6 = vrot.slane %v885_v61, 7  ;;  %v433_v7 = vsel %vm14273_vm3, 0, %v432_v3 }
  0x91   : > { %v882_v4 = vsel %vm14296_vm7, %v874_v51, %v881_v60  ;;  %v1140_v5 = vld [vmem:[#allocation2 + $0x48] sm:$0xf]  ;;  %v762_v8 = vld [vmem:[%s14239_s23 + $0x38] sm:$0xf]  ;;  %434 = vst [vmem:[#allocation2 + $0x60] sm:$0x1] %v433_v7 }
  0x92   : > { %v1141_v19 = vsel %vm14308_vm8, %v873_v57, %v1140_v5  ;;  %1143 = vst.msk [vmem:[#allocation2 + $0x4c] sm:$0xf] %vm396_vm0, %v882_v4  ;;  %v14401_v9 = vrot.slane %v893_v63, 7  ;;  %v763_v10 = vld [vmem:[%s14239_s23 + $0x3c] sm:$0xf]  ;;  %v902_v11 = vshrl.u32 %v762_v8, 16  ;;  %12745 = vmatmul.mubr.msk.bf16.gmra.mxu1 %vm1344_vm9, %v14381_v28  ;;  %v890_v13 = vor.u32 %v888_v62, %v887_v6 }
  0x93   : > { %v905_v12 = vshll.u32 %v762_v8, 16  ;;  %1142 = vst [vmem:[#allocation2 + $0x48] sm:$0xf] %v1141_v19  ;;  %v891_v14 = vrot.slane %v887_v6, 4  ;;  %v910_v15 = vshrl.u32 %v763_v10, 16  ;;  %v913_v16 = vshll.u32 %v763_v10, 16 }
  0x94   : > { %v14406_v17 = vld [vmem:[#allocation2 + $0x30] sm:$0xff]   ;;  %v898_v18 = vor.u32 %v896_v0, %v14401_v9  ;;  %v904_v21 = vrot.slane %v902_v11, 7  ;;  %v435_v25 = vld [vmem:[#allocation2 + $0x6c] sm:$0x1]  ;;  %v764_v31 = vld [vmem:[%s14239_s23 + $0x40] sm:$0xf] }
  0x95   : > { %v1147_v23 = vld [vmem:[#allocation2 + $0x54] sm:$0xf]  ;;  %v14409_v24 = vrot.slane %v910_v15, 7  ;;  %12748 = vmatprep.mubr.msk.bf16.mxu1 %vm1344_vm9, %v14406_v17  ;;  %12711 = vmatmul.mubr.msk.bf16.gmra.mxu0 %vm1344_vm9, %v14406_v17  ;;  %v436_v36 = vsel %vm14273_vm3, 0, %v435_v25  ;;  %v919_v37 = vshrl.u32 %v764_v31, 16  ;;  %v922_v39 = vshll.u32 %v764_v31, 16 }
  0x96   : > { %v899_v26 = vsel %vm14296_vm7, %v891_v14, %v898_v18  ;;  %v1148_v27 = vsel %vm14308_vm8, %v890_v13, %v1147_v23  ;;  %v907_v29 = vor.u32 %v905_v12, %v904_v21  ;;  %v908_v30 = vrot.slane %v904_v21, 4  ;;  %437 = vst [vmem:[#allocation2 + $0x6c] sm:$0x1] %v436_v36  ;;  %v765_v38 = vld [vmem:[%s14239_s23 + $0x44] sm:$0xf]  ;;  %v14427_v42 = vld [vmem:[#allocation8 + $0x38] sm:$0xff]  }
  0x97   : > { %v14420_v32 = vld [vmem:[#allocation2 + $0x3c] sm:$0xff]   ;;  %1149 = vst [vmem:[#allocation2 + $0x54] sm:$0xf] %v1148_v27  ;;  %1150 = vst.msk [vmem:[#allocation2 + $0x58] sm:$0xf] %vm396_vm0, %v899_v26  ;;  %v915_v33 = vor.u32 %v913_v16, %v14409_v24  ;;  %v921_v45 = vrot.slane %v919_v37, 7  ;;  %12874 = vmatprep.subr.bf16.mxu1 %v14427_v42 }
  0x98   : > { %v438_v41 = vld [vmem:[#allocation2 + $0x78] sm:$0x1]  ;;  %12714 = vmatprep.mubr.msk.bf16.mxu0 %vm1344_vm9, %v14420_v32  ;;  %v1154_v44 = vld [vmem:[#allocation2 + $0x60] sm:$0xf]  ;;  %v927_v46 = vshrl.u32 %v765_v38, 16  ;;  %v930_v51 = vshll.u32 %v765_v38, 16 }
  0x99   : > { %v916_v43 = vsel %vm14296_vm7, %v908_v30, %v915_v33  ;;  %v1155_v48 = vsel %vm14308_vm8, %v907_v29, %v1154_v44  ;;  %v439_v53 = vsel %vm14273_vm3, 0, %v438_v41  ;;  %v925_v54 = vrot.slane %v921_v45, 4  ;;  %v766_v57 = vld [vmem:[%s14239_s23 + $0x48] sm:$0xf]  ;;  %v767_v58 = vld [vmem:[%s14239_s23 + $0x4c] sm:$0xf] }
  0x9a   : > { %v14433_v47 = vld [vmem:[#allocation2 + $0x48] sm:$0xff]   ;;  %1157 = vst.msk [vmem:[#allocation2 + $0x64] sm:$0xf] %vm396_vm0, %v916_v43  ;;  %12749 = vmatmul.mubr.msk.bf16.gmra.mxu1 %vm1344_vm9, %v14420_v32  ;;  %1156 = vst [vmem:[#allocation2 + $0x60] sm:$0xf] %v1155_v48  ;;  %v14443_v55 = vrot.slane %v927_v46, 7  ;;  %v924_v59 = vor.u32 %v922_v39, %v921_v45 }
  0x9b   : > { %440 = vst [vmem:[#allocation2 + $0x78] sm:$0x1] %v439_v53  ;;  %12752 = vmatprep.mubr.msk.bf16.mxu1 %vm1344_vm9, %v14433_v47  ;;  %v936_v60 = vshrl.u32 %v766_v57, 16  ;;  %v939_v61 = vshll.u32 %v766_v57, 16  ;;  %v944_v62 = vshrl.u32 %v767_v58, 16  ;;  %v947_v3 = vshll.u32 %v767_v58, 16 }
  0x9c   : > { %v441_v63 = vld [vmem:[#allocation2 + $0x84] sm:$0x1]  ;;  %v932_v0 = vor.u32 %v930_v51, %v14443_v55  ;;  %v768_v5 = vld [vmem:[%s14239_s23 + $0x50] sm:$0xf]  ;;  %v769_v6 = vld [vmem:[%s14239_s23 + $0x54] sm:$0xf] }
  0x9d   : > { %v442_v4 = vsel %vm14273_vm3, 0, %v441_v63  ;;  %v938_v8 = vrot.slane %v936_v60, 7  ;;  %12715 = vmatmul.mubr.msk.bf16.gmra.mxu0 %vm1344_vm9, %v14433_v47  ;;  %v1161_v10 = vld [vmem:[#allocation2 + $0x6c] sm:$0xf]  ;;  %v14460_v11 = vrot.slane %v944_v62, 7  ;;  %v953_v12 = vshrl.u32 %v768_v5, 16 }
  0x9e   : > { %v14454_v7 = vld [vmem:[#allocation2 + $0x54] sm:$0xff]   ;;  %443 = vst [vmem:[#allocation2 + $0x84] sm:$0x1] %v442_v4  ;;  %v933_v19 = vsel %vm14296_vm7, %v925_v54, %v932_v0  ;;  %v956_v13 = vshll.u32 %v768_v5, 16  ;;  %v1162_v14 = vsel %vm14308_vm8, %v924_v59, %v1161_v10  ;;  %v961_v18 = vshrl.u32 %v769_v6, 16  ;;  %s11396_s21 = sshll.u32 %s14235_s3, 8 }
  0x9f   : > { %12718 = vmatprep.mubr.msk.bf16.mxu0 %vm1344_vm9, %v14454_v7  ;;  %1164 = vst.msk [vmem:[#allocation2 + $0x70] sm:$0xf] %vm396_vm0, %v933_v19  ;;  %v941_v15 = vor.u32 %v939_v61, %v938_v8  ;;  %v942_v16 = vrot.slane %v938_v8, 4  ;;  %v444_v21 = vld [vmem:[#allocation2 + $0x90] sm:$0x1]  ;;  %v949_v23 = vor.u32 %v947_v3, %v14460_v11  ;;  %v955_v25 = vrot.slane %v953_v12, 7 }
  0xa0   : > { %1163 = vst [vmem:[#allocation2 + $0x6c] sm:$0xf] %v1162_v14  ;;  %v964_v26 = vshll.u32 %v769_v6, 16  ;;  %v770_v27 = vld [vmem:[%s14239_s23 + $0x58] sm:$0xf]  ;;  %v14471_v31 = vrot.slane %v961_v18, 7 }
  0xa1   : > { %v14469_v29 = vld [vmem:[#allocation2 + $0x60] sm:$0xff]   ;;  %v950_v33 = vsel %vm14296_vm7, %v942_v16, %v949_v23  ;;  %v958_v37 = vor.u32 %v956_v13, %v955_v25  ;;  %v959_v38 = vrot.slane %v955_v25, 4  ;;  %v447_v41 = vld [vmem:[#allocation2 + $0x9c] sm:$0x1]  ;;  %v445_v44 = vsel %vm14273_vm3, 0, %v444_v21  ;;  %s19076_s5 = scalar_lea.vmem [#allocation13], %s11396_s21 }
  0xa2   : > { %v1168_v30 = vld [vmem:[#allocation2 + $0x78] sm:$0xf]  ;;  %12753 = vmatmul.mubr.msk.bf16.gmra.mxu1 %vm1344_vm9, %v14454_v7  ;;  %v771_v39 = vld [vmem:[%s14239_s23 + $0x5c] sm:$0xf]  ;;  %1171 = vst.msk [vmem:[#allocation2 + $0x7c] sm:$0xf] %vm396_vm0, %v950_v33  ;;  %v966_v43 = vor.u32 %v964_v26, %v14471_v31 }
  0xa3   : > { %v1169_v36 = vsel %vm14308_vm8, %v941_v15, %v1168_v30  ;;  %12756 = vmatprep.mubr.msk.bf16.mxu1 %vm1344_vm9, %v14469_v29  ;;  %v970_v45 = vshrl.u32 %v770_v27, 16  ;;  %v772_v46 = vld [vmem:[%s14239_s23 + $0x60] sm:$0xf]  ;;  %446 = vst [vmem:[#allocation2 + $0x90] sm:$0x1] %v445_v44  ;;  %v973_v51 = vshll.u32 %v770_v27, 16 }
  0xa4   : > { %1170 = vst [vmem:[#allocation2 + $0x78] sm:$0xf] %v1169_v36  ;;  %v978_v53 = vshrl.u32 %v771_v39, 16  ;;  %v981_v54 = vshll.u32 %v771_v39, 16  ;;  %v448_v57 = vsel %vm14273_vm3, 0, %v447_v41  ;;  %v967_v58 = vsel %vm14296_vm7, %v959_v38, %v966_v43  ;;  %s12227_s24 = sshll.u32 %s14109_s13, 12 }
  0xa5   : > { %v1175_v48 = vld [vmem:[#allocation2 + $0x84] sm:$0xf]  ;;  %v972_v60 = vrot.slane %v970_v45, 7  ;;  %449 = vst [vmem:[#allocation2 + $0x9c] sm:$0x1] %v448_v57  ;;  %v987_v62 = vshrl.u32 %v772_v46, 16  ;;  %12719 = vmatmul.mubr.msk.bf16.gmra.mxu0 %vm1344_vm9, %v14469_v29  ;;  %s19143_s26 = scalar_lea.hbm %s19200_s9, %s12227_s24 }
  0xa6   : > { %v1176_v59 = vsel %vm14308_vm8, %v958_v37, %v1175_v48  ;;  %v773_v61 = vld [vmem:[%s14239_s23 + $0x64] sm:$0xf]  ;;  %v450_v63 = vld [vmem:[#allocation2 + $0xa8] sm:$0x1]  ;;  %1178 = vst.msk [vmem:[#allocation2 + $0x88] sm:$0xf] %vm396_vm0, %v967_v58 }
  0xa7   : > { %1177 = vst [vmem:[#allocation2 + $0x84] sm:$0xf] %v1176_v59  ;;  %v14497_v0 = vrot.slane %v978_v53, 7  ;;  %v990_v3 = vshll.u32 %v772_v46, 16  ;;  %v995_v4 = vshrl.u32 %v773_v61, 16  ;;  %v998_v5 = vshll.u32 %v773_v61, 16 }
  0xa8   : > { %v14499_v6 = vld [vmem:[#allocation2 + $0x6c] sm:$0xff]   ;;  %v976_v8 = vrot.slane %v972_v60, 4  ;;  %v989_v19 = vrot.slane %v987_v62, 7  ;;  %v451_v10 = vsel %vm14273_vm3, 0, %v450_v63  ;;  %v975_v12 = vor.u32 %v973_v51, %v972_v60  ;;  %v775_v16 = vld [vmem:[%s14239_s23 + $0x6c] sm:$0xf] }
  0xa9   : > { %v983_v13 = vor.u32 %v981_v54, %v14497_v0  ;;  %v14504_v14 = vrot.slane %v995_v4, 7  ;;  %452 = vst [vmem:[#allocation2 + $0xa8] sm:$0x1] %v451_v10  ;;  %v774_v15 = vld [vmem:[%s14239_s23 + $0x68] sm:$0xf]  ;;  %12722 = vmatprep.mubr.msk.bf16.mxu0 %vm1344_vm9, %v14499_v6  ;;  %v1012_v38 = vshrl.u32 %v775_v16, 16 }
  0xaa   : > { %v992_v18 = vor.u32 %v990_v3, %v989_v19  ;;  %v993_v21 = vrot.slane %v989_v19, 4  ;;  %v1004_v23 = vshrl.u32 %v774_v15, 16  ;;  %v1007_v25 = vshll.u32 %v774_v15, 16  ;;  %v453_v26 = vld [vmem:[#allocation2 + $0xb4] sm:$0x1]  ;;  %12757 = vmatmul.mubr.msk.bf16.gmra.mxu1 %vm1344_vm9, %v14499_v6  ;;  %s11267_s13 = scalar_lea.sflag [#allocation7], %s14235_s3 }
  0xab   : > { %v14510_v27 = vld [vmem:[#allocation2 + $0x78] sm:$0xff]   ;;  %v984_v30 = vsel %vm14296_vm7, %v976_v8, %v983_v13  ;;  %v1000_v33 = vor.u32 %v998_v5, %v14504_v14  ;;  %v1182_v36 = vld [vmem:[#allocation2 + $0x90] sm:$0xf]  ;;  %v1015_v39 = vshll.u32 %v775_v16, 16  ;;  %v454_v41 = vsel %vm14273_vm3, 0, %v453_v26  ;;  %p19589_p1 = scmp.ne.s32.totalorder %s19261_s14, 0 }
  0xac   : > { %1185 = vst.msk [vmem:[#allocation2 + $0x94] sm:$0xf] %vm396_vm0, %v984_v30  ;;  %v1006_v37 = vrot.slane %v1004_v23, 7  ;;  %12760 = vmatprep.mubr.msk.bf16.mxu1 %vm1344_vm9, %v14510_v27  ;;  %v1183_v43 = vsel %vm14308_vm8, %v975_v12, %v1182_v36  ;;  %v1189_v45 = vld [vmem:[#allocation2 + $0x9c] sm:$0xf]  ;;  %v14535_v58 = vrot.slane %v1012_v38, 7 }
  0xad   : > { %v1001_v44 = vsel %vm14296_vm7, %v993_v21, %v1000_v33  ;;  %455 = vst [vmem:[#allocation2 + $0xb4] sm:$0x1] %v454_v41  ;;  %v776_v46 = vld [vmem:[%s14239_s23 + $0x70] sm:$0xf]  ;;  %v777_v48 = vld [vmem:[%s14239_s23 + $0x74] sm:$0xf]  ;;  %v1190_v53 = vsel %vm14308_vm8, %v992_v18, %v1189_v45  ;;  %12723 = vmatmul.mubr.msk.bf16.gmra.mxu0 %vm1344_vm9, %v14510_v27 }
  0xae   : > { %v14528_v51 = vld [vmem:[#allocation2 + $0x84] sm:$0xff]   ;;  %1184 = vst [vmem:[#allocation2 + $0x90] sm:$0xf] %v1183_v43  ;;  %1192 = vst.msk [vmem:[#allocation2 + $0xa0] sm:$0xf] %vm396_vm0, %v1001_v44  ;;  %v1009_v54 = vor.u32 %v1007_v25, %v1006_v37  ;;  %v1010_v57 = vrot.slane %v1006_v37, 4  ;;  %v1017_v8 = vor.u32 %v1015_v39, %v14535_v58 }
  0xaf   : > { %1191 = vst [vmem:[#allocation2 + $0x9c] sm:$0xf] %v1190_v53  ;;  %v1021_v59 = vshrl.u32 %v776_v46, 16  ;;  %v1024_v60 = vshll.u32 %v776_v46, 16  ;;  %v1029_v61 = vshrl.u32 %v777_v48, 16  ;;  %12726 = vmatprep.mubr.msk.bf16.mxu0 %vm1344_vm9, %v14528_v51  ;;  %v1032_v3 = vshll.u32 %v777_v48, 16 }
  0xb0   : > { %v456_v62 = vld [vmem:[#allocation2 + $0xc0] sm:$0x1]  ;;  %v1196_v63 = vld [vmem:[#allocation2 + $0xa8] sm:$0xf]  ;;  %v779_v12 = vld [vmem:[%s14239_s23 + $0x7c] sm:$0xf]  ;;  %v1018_v21 = vsel %vm14296_vm7, %v1010_v57, %v1017_v8 }
  0xb1   : > { %v457_v4 = vsel %vm14273_vm3, 0, %v456_v62  ;;  %v778_v5 = vld [vmem:[%s14239_s23 + $0x78] sm:$0xf]  ;;  %v1197_v19 = vsel %vm14308_vm8, %v1009_v54, %v1196_v63  ;;  %v1023_v10 = vrot.slane %v1021_v59, 7  ;;  %v14546_v13 = vrot.slane %v1029_v61, 7  ;;  %s11280_s23 = sshll.u32 %s19076_s5, 4  ;;  %s19145_s23 = int_to_ptr.vmem [resolvable:$true] %s11280_s23 }
  0xb2   : > { %458 = vst [vmem:[#allocation2 + $0xc0] sm:$0x1] %v457_v4  ;;  %1198 = vst [vmem:[#allocation2 + $0xa8] sm:$0xf] %v1197_v19  ;;  %v1038_v15 = vshrl.u32 %v778_v5, 16  ;;  %v1041_v16 = vshll.u32 %v778_v5, 16  ;;  %12761 = vmatmul.mubr.msk.bf16.gmra.mxu1 %vm1344_vm9, %v14528_v51 }
  0xb3   : > { %v1046_v18 = vshrl.u32 %v779_v12, 16  ;;  %v1026_v23 = vor.u32 %v1024_v60, %v1023_v10  ;;  %v1027_v25 = vrot.slane %v1023_v10, 4  ;;  %v1049_v26 = vshll.u32 %v779_v12, 16  ;;  %1199 = vst.msk [vmem:[#allocation2 + $0xac] sm:$0xf] %vm396_vm0, %v1018_v21  ;;  %s13954_s27 = scalar_lea.vmem %s19145_s23, 4096 }
  0xb4   : > { %v1034_v30 = vor.u32 %v1032_v3, %v14546_v13  ;;  %v1203_v33 = vld [vmem:[#allocation2 + $0xb4] sm:$0xf]  ;;  %v1040_v36 = vrot.slane %v1038_v15, 7  ;;  %vm1993_vm10 = vsmask.f32 3328  ;;  %v815_v5 = vrot.slane %v14318_v40, 4  ;;  %p13955_p7 = scmp.ne.s32.totalorder %s19145_s23, %s13954_s27 }
  0xb5   : > { %v14554_v37 = vrot.slane %v1046_v18, 7  ;;  %v14556_v38 = vld [vmem:[#allocation2 + $0x90] sm:$0xff]   ;;  %v1204_v39 = vsel %vm14308_vm8, %v1026_v23, %v1203_v33  ;;  %v464_v48 = vld [vmem:[#allocation2 + $0x8] sm:$0x1]  ;;  %v1939_v53 = vld [vmem:[#allocation2] sm:$0xf] }
  0xb6   : > { %v14560_v41 = vld [vmem:[#allocation2 + $0x9c] sm:$0xff]   ;;  %v1035_v43 = vsel %vm14296_vm7, %v1027_v25, %v1034_v30  ;;  %1205 = vst [vmem:[#allocation2 + $0xb4] sm:$0xf] %v1204_v39  ;;  %v1043_v44 = vor.u32 %v1041_v16, %v1040_v36  ;;  %v1044_v45 = vrot.slane %v1040_v36, 4  ;;  %12727 = vmatmul.mubr.msk.bf16.gmra.mxu0 %vm1344_vm9, %v14556_v38  ;;  %12764 = vmatprep.mubr.msk.bf16.mxu1 %vm1344_vm9, %v14556_v38  ;;  %vm1994_vm11 = vsmask.f32 7440  ;;  %p13956_p12 = pnand %p13955_p7, %p19589_p1 }
  0xb7   : > { %v1051_v46 = vor.u32 %v1049_v26, %v14554_v37  ;;  %1206 = vst.msk [vmem:[#allocation2 + $0xb8] sm:$0xf] %vm396_vm0, %v1035_v43  ;;  %12730 = vmatprep.mubr.msk.bf16.mxu0 %vm1344_vm9, %v14560_v41  ;;  %v465_v59 = vsel %vm14279_vm5, 0, %v464_v48  ;;  %v1940_v60 = vld [vmem:[#allocation2 + $0x4] sm:$0xf]  ;;  %v1997_v61 = vshrl.u32 %v1939_v53, 16  ;;  %vm14596_vm12 = vmor %vm1993_vm10, %vm1994_vm11 }
  0xb8   : > { %466 = vst [vmem:[#allocation2 + $0x8] sm:$0x1] %v465_v59  ;;  %v2000_v63 = vshll.u32 %v1939_v53, 16  ;;  %v2006_v3 = vshll.u32 %v1940_v60, 16  ;;  %v2010_v4 = vshrl.u32 %v1940_v60, 16  ;;  %vm3209_vm14 = vcmask 1046532   ;;  %p13957_p9 = pneg %p13956_p12 }
  0xb9   : > { %v1052_v54 = vsel %vm14296_vm7, %v1044_v45, %v1051_v46  ;;  %v1210_v57 = vld [vmem:[#allocation2 + $0xc0] sm:$0xf]  ;;  %v1999_v8 = vrot.slane %v1997_v61, 4  ;;  %v1942_v19 = vld [vmem:[#allocation2 + $0xc] sm:$0xf]  ;;  %vm15001_vm15 = vmor %vm3208_vm13, %vm3209_vm14  ;;  %s14035_s25 = smov [#allocation13]  }
  0xba   : > { %v1211_v62 = vsel %vm14308_vm8, %v1043_v44, %v1210_v57  ;;  %1213 = vst.msk [vmem:[#allocation2 + $0xc4] sm:$0xf] %vm396_vm0, %v1052_v54  ;;  %v1943_v10 = vld [vmem:[#allocation2 + $0x10] sm:$0xf]  ;;  %v14580_v12 = vld [vmem:[#allocation2 + $0xa8] sm:$0xff]   ;;  %12765 = vmatmul.mubr.msk.bf16.gmra.mxu1 %vm1344_vm9, %v14560_v41  ;;  %v2002_v15 = vrot.slane %v2000_v63, 5 }
  0xbb   : > { %1212 = vst [vmem:[#allocation2 + $0xc0] sm:$0xf] %v1211_v62  ;;  %v2008_v16 = vrot.slane %v2006_v3, 5  ;;  %v2012_v18 = vrot.slane %v2010_v4, 4  ;;  %v1944_v21 = vld [vmem:[#allocation2 + $0x14] sm:$0x1]  ;;  %12768 = vmatprep.mubr.msk.bf16.mxu1 %vm1344_vm9, %v14580_v12 }
  0xbc   : > { %v2021_v23 = vshrl.u32 %v1942_v19, 16  ;;  %v2024_v25 = vshll.u32 %v1942_v19, 16  ;;  %v2030_v26 = vshll.u32 %v1943_v10, 16  ;;  %v2034_v30 = vshrl.u32 %v1943_v10, 16  ;;  %v470_v44 = vld [vmem:[#allocation2 + $0x20] sm:$0x1] }
  0xbd   : > { %v2003_v36 = vor.u32 %v2002_v15, %v1999_v8  ;;  %v2013_v39 = vor.u32 %v2012_v18, %v2008_v16  ;;  %v2040_v43 = vshll.u32 %v1944_v21, 16  ;;  %v1945_v61 = vld [vmem:[#allocation2 + $0x18] sm:$0xf]  ;;  %v19283_v63 = vmov 0  ;;  %v14602_v15 = vld [vmem:[#allocation2 + $0x1c] sm:$0xf] }
  0xbe   : > { %v14587_v45 = vld [vmem:[#allocation2 + $0xb4] sm:$0xff]   ;;  %v2023_v46 = vrot.slane %v2021_v23, 4  ;;  %v2026_v48 = vrot.slane %v2024_v25, 5  ;;  %v2032_v53 = vrot.slane %v2030_v26, 5  ;;  %12731 = vmatmul.mubr.msk.bf16.gmra.mxu0 %vm1344_vm9, %v14580_v12  ;;  %v2036_v60 = vrot.slane %v2034_v30, 4  ;;  %s13958_s28 = sshll.u32 %s14035_s25, 4  ;;  %s13959_s28 = int_to_ptr.vmem [resolvable:$false] %s13958_s28 }
  0xbf   : > { %v2004_v57 = vrot.slane %v2003_v36, 4  ;;  %v2014_v59 = vrot.slane %v2013_v39, 4  ;;  %12734 = vmatprep.mubr.msk.bf16.mxu0 %vm1344_vm9, %v14587_v45  ;;  %v1941_v62 = vld [vmem:[#allocation2 + $0x8] sm:$0x1]  ;;  %v19284_v63 = vsel %vm14596_vm12, 4294967295, %v19283_v63  ;;  %v2042_v4 = vrot.slane %v2040_v43, 5  ;;  %p13961_p13 = scmp.lt.s32.totalorder %s19145_s23, %s13959_s28 }
  0xc0   : > { %19285 = vst [vmem:[#allocation22_spill] sm:$0xff] %v19284_v63  ;;  %v2027_v3 = vor.u32 %v2026_v48, %v2023_v46  ;;  %v471_v8 = vsel %vm14279_vm5, 0, %v470_v44  ;;  %v2016_v19 = vshll.u32 %v1941_v62, 16  ;;  %v2037_v10 = vor.u32 %v2036_v60, %v2032_v53  ;;  %v473_v30 = vld [vmem:[#allocation2 + $0x2c] sm:$0x1]  ;;  %s13960_s20 = scalar_lea.vmem %s13959_s28, 8192 }
  0xc1   : > { %472 = vst [vmem:[#allocation2 + $0x20] sm:$0x1] %v471_v8  ;;  %v2045_v18 = vshrl.u32 %v1945_v61, 16  ;;  %v2048_v25 = vshll.u32 %v1945_v61, 16  ;;  %v2054_v26 = vshll.u32 %v14602_v15, 16  ;;  %v2009_v43 = vsel %vm14596_vm12, %v2004_v57, %v2008_v16  ;;  %p13962_p0 = scmp.lt.s32.totalorder %s13960_s20, %s13954_s27 }
  0xc2   : > { %v2028_v23 = vrot.slane %v2027_v3, 4  ;;  %v14607_v39 = vld [vmem:[#allocation2 + $0xc0] sm:$0xff]   ;;  %12769 = vmatmul.mubr.msk.bf16.gmra.mxu1 %vm1344_vm9, %v14587_v45  ;;  %v2018_v44 = vrot.slane %v2016_v19, 5  ;;  %v2038_v46 = vrot.slane %v2037_v10, 4  ;;  %v2058_v62 = vshrl.u32 %v14602_v15, 16 }
  0xc3   : > { %v1948_v48 = vld [vmem:[#allocation2 + $0x24] sm:$0xf]  ;;  %v474_v3 = vsel %vm14279_vm5, 0, %v473_v30  ;;  %v1949_v8 = vld [vmem:[#allocation2 + $0x28] sm:$0xf]  ;;  %v2047_v57 = vrot.slane %v2045_v18, 4  ;;  %p13963_p2 = por %p13962_p0, %p13961_p13 }
  0xc4   : > { %v2033_v61 = vsel %vm14596_vm12, %v2028_v23, %v2032_v53  ;;  %v2019_v36 = vsel %vm14596_vm12, %v2014_v59, %v2018_v44  ;;  %v2043_v16 = vsel %vm14596_vm12, %v2038_v46, %v2042_v4  ;;  %v2050_v19 = vrot.slane %v2048_v25, 5  ;;  %475 = vst [vmem:[#allocation2 + $0x2c] sm:$0x1] %v474_v3  ;;  %v476_v10 = vld [vmem:[#allocation2 + $0x38] sm:$0x1] }
  0xc5   : > { %v1951_v60 = vld [vmem:[#allocation2 + $0x30] sm:$0xf]  ;;  %v11466_v53 = vcombine.low %v2009_v43, %v2019_v36  ;;  %v14624_v23 = vrot.slane %v2054_v26, 5  ;;  %v2069_v54 = vshrl.u32 %v1948_v48, 16  ;;  %v1952_v33 = vld [vmem:[#allocation2 + $0x34] sm:$0xf]  ;;  %v14628_v30 = vcombine.low %v2033_v61, %v2043_v16  ;;  %p13964_p10 = pnand %p13963_p2, %p13957_p9 }
  0xc6   : > { %12735 = vmatmul.mubr.msk.bf16.gmra.mxu0 %vm1344_vm9, %v14607_v39  ;;  %v2072_v59 = vshll.u32 %v1948_v48, 16  ;;  %v2078_v44 = vshll.u32 %v1949_v8, 16  ;;  %v2082_v4 = vshrl.u32 %v1949_v8, 16  ;;  %v479_v18 = vld [vmem:[#allocation2 + $0x44] sm:$0x1]  ;;  %v2060_v36 = vrot.slane %v2058_v62, 4 }
  0xc7   : > { %12774 = vmatprep.mubr.msk.bf16.mxu0 %vm1344_vm9, %v14370_v50  ;;  %12808 = vmatprep.mubr.msk.bf16.mxu1 %vm1344_vm9, %v11466_v53  ;;  %v2071_v26 = vrot.slane %v2069_v54, 4  ;;  %v477_v43 = vsel %vm14279_vm5, 0, %v476_v10  ;;  %v2093_v46 = vshrl.u32 %v1951_v60, 16  ;;  %v2051_v61 = vor.u32 %v2050_v19, %v2047_v57  ;;  %v1954_v50 = vld [vmem:[#allocation2 + $0x3c] sm:$0xf] }
  0xc8   : > { %v1116_v25 = vld [vmem:[#allocation2 + $0x20] sm:$0x1]  ;;  %v2074_v3 = vrot.slane %v2072_v59, 5  ;;  %v14639_v8 = vrot.slane %v2078_v44, 5  ;;  %478 = vst [vmem:[#allocation2 + $0x38] sm:$0x1] %v477_v43  ;;  %v2061_v19 = vor.u32 %v2060_v36, %v14624_v23 }
  0xc9   : > { %v1117_v48 = vsel %vm14273_vm3, %v815_v5, %v1116_v25  ;;  %v934_v16 = vrot.slane %v14443_v55, 4  ;;  %v2084_v62 = vrot.slane %v2082_v4, 4  ;;  %v2095_v54 = vrot.slane %v2093_v46, 4  ;;  %v1955_v57 = vld [vmem:[#allocation2 + $0x40] sm:$0xf] }
  0xca   : > { %1118 = vst [vmem:[#allocation2 + $0x20] sm:$0x1] %v1117_v48  ;;  %v2096_v53 = vshll.u32 %v1951_v60, 16  ;;  %12809 = vmatmul.mubr.msk.bf16.vlgmr.msra.gmra.mxu1 %vm1344_vm9, %v14628_v30  ;;  %v2075_v10 = vor.u32 %v2074_v3, %v2071_v26  ;;  %v2102_v40 = vshll.u32 %v1952_v33, 16  ;;  %v2106_v21 = vshrl.u32 %v1952_v33, 16  ;;  %v14648_v60 = vld [vmem:[#allocation8 + $0x10] sm:$0xff]  }
  0xcb   : > { %v480_v5 = vsel %vm14279_vm5, 0, %v479_v18  ;;  %v1123_v59 = vld [vmem:[#allocation2 + $0x2c] sm:$0x1]  ;;  %v2117_v25 = vshrl.u32 %v1954_v50, 16  ;;  %v2120_v43 = vshll.u32 %v1954_v50, 16  ;;  %12875 = vmatpush3.bf16.msra.mxu1 %v14427_v42  ;;  %v2052_v4 = vrot.slane %v2051_v61, 4 }
  0xcc   : > { %v2098_v44 = vrot.slane %v2096_v53, 5  ;;  %481 = vst [vmem:[#allocation2 + $0x44] sm:$0x1] %v480_v5  ;;  %v19286_v26 = vrot.slane %v14328_v56, 4  ;;  %v14654_v46 = vrot.slane %v2075_v10, 4  ;;  %v2085_v18 = vor.u32 %v2084_v62, %v14639_v8 }
  0xcd   : > { %v482_v36 = vld [vmem:[#allocation2 + $0x50] sm:$0x1]  ;;  %v1957_v48 = vld [vmem:[#allocation2 + $0x48] sm:$0xf]  ;;  %v14657_v3 = vrot.slane %v2102_v40, 5  ;;  %v2108_v50 = vrot.slane %v2106_v21, 4 }
  0xce   : > { %v1124_v33 = vsel %vm14273_vm3, %v19286_v26, %v1123_v59  ;;  %v2119_v53 = vrot.slane %v2117_v25, 4  ;;  %v2122_v42 = vrot.slane %v2120_v43, 5  ;;  %12775 = vmatmul.mubr.msk.bf16.vlgmr.msra.gmra.mxu0 %vm1344_vm9, %v14381_v28  ;;  %v2099_v56 = vor.u32 %v2098_v44, %v2095_v54  ;;  %v1975_v55 = vld [vmem:[#allocation2 + $0x90] sm:$0xf]  ;;  %v624_v1 = vld [vmem:[#allocation3 + $0xbc] sm:$0x1] }
  0xcf   : > { %1125 = vst [vmem:[#allocation2 + $0x2c] sm:$0x1] %v1124_v33  ;;  %v2126_v61 = vshll.u32 %v1955_v57, 16  ;;  %v2130_v59 = vshrl.u32 %v1955_v57, 16  ;;  %12841 = vmatpush3.bf16.msra.mxu0 %v14368_v49  ;;  %12778 = vmatprep.mubr.msk.bf16.mxu0 %vm1344_vm9, %v14406_v17  ;;  %v1130_v62 = vld [vmem:[#allocation2 + $0x38] sm:$0x1]  ;;  %v2057_v28 = vsel %vm14596_vm12, %v2052_v4, %v14624_v23  ;;  %v2081_v33 = vsel %vm14596_vm12, %v14654_v46, %v14639_v8 }
  0xd0   : > { %v2123_v40 = vor.u32 %v2122_v42, %v2119_v53  ;;  %v483_v21 = vsel %vm14279_vm5, 0, %v482_v36  ;;  %v2141_v25 = vshrl.u32 %v1957_v48, 16  ;;  %v2062_v54 = vrot.slane %v2061_v19, 4  ;;  %v1958_v57 = vld [vmem:[#allocation2 + $0x4c] sm:$0xf]  ;;  %12908 = vmatprep.subr.bf16.mxu0 %v14648_v60 }
  0xd1   : > { %v14669_v26 = vld [vmem:[#allocation2 + $0x20] sm:$0x1]  ;;  %v19287_v49 = vrot.slane %v14349_v20, 4  ;;  %484 = vst [vmem:[#allocation2 + $0x50] sm:$0x1] %v483_v21  ;;  %v2086_v36 = vrot.slane %v2085_v18, 4  ;;  %v2109_v23 = vor.u32 %v2108_v50, %v14657_v3 }
  0xd2   : > { %v2064_v44 = vshll.u32 %v14669_v26, 16  ;;  %v485_v19 = vld [vmem:[#allocation2 + $0x5c] sm:$0x1]  ;;  %v1960_v20 = vld [vmem:[#allocation2 + $0x54] sm:$0xf]  ;;  %v14685_v4 = vrot.slane %v2099_v56, 4 }
  0xd3   : > { %v1131_v17 = vsel %vm14273_vm3, %v19287_v49, %v1130_v62  ;;  %v1137_v53 = vld [vmem:[#allocation2 + $0x44] sm:$0x1]  ;;  %v14687_v42 = vrot.slane %v2126_v61, 5  ;;  %v2132_v62 = vrot.slane %v2130_v59, 4  ;;  %v2144_v21 = vshll.u32 %v1957_v48, 16 }
  0xd4   : > { %1132 = vst [vmem:[#allocation2 + $0x38] sm:$0x1] %v1131_v17  ;;  %v2066_v49 = vrot.slane %v2064_v44, 5  ;;  %v19288_v43 = vrot.slane %v14355_v35, 4  ;;  %v14693_v8 = vrot.slane %v2123_v40, 4  ;;  %v2143_v46 = vrot.slane %v2141_v25, 4 }
  0xd5   : > { %v1961_v18 = vld [vmem:[#allocation2 + $0x58] sm:$0xf]  ;;  %v2146_v17 = vrot.slane %v2144_v21, 5  ;;  %v2150_v56 = vshll.u32 %v1958_v57, 16  ;;  %v2154_v5 = vshrl.u32 %v1958_v57, 16  ;;  %v486_v61 = vsel %vm14279_vm5, 0, %v485_v19 }
  0xd6   : > { %v1138_v10 = vsel %vm14273_vm3, %v19288_v43, %v1137_v53  ;;  %v1950_v50 = vld [vmem:[#allocation2 + $0x2c] sm:$0x1]  ;;  %v2067_v48 = vsel %vm14596_vm12, %v2062_v54, %v2066_v49  ;;  %v2110_v35 = vrot.slane %v2109_v23, 4  ;;  %487 = vst [vmem:[#allocation2 + $0x5c] sm:$0x1] %v486_v61  ;;  %v2165_v44 = vshrl.u32 %v1960_v20, 16  ;;  %12779 = vmatmul.mubr.msk.bf16.gmra.mxu0 %vm1344_vm9, %v14420_v32 }
  0xd7   : > { %1139 = vst [vmem:[#allocation2 + $0x44] sm:$0x1] %v1138_v10  ;;  %v2088_v59 = vshll.u32 %v1950_v50, 16  ;;  %v14701_v40 = vcombine.low %v2057_v28, %v2067_v48  ;;  %v2105_v10 = vsel %vm14596_vm12, %v14685_v4, %v14657_v3  ;;  %v2168_v25 = vshll.u32 %v1960_v20, 16  ;;  %v488_v57 = vld [vmem:[#allocation2 + $0x68] sm:$0x1]  ;;  %12782 = vmatprep.mubr.msk.bf16.mxu0 %vm1344_vm9, %v14433_v47 }
  0xd8   : > { %v2174_v43 = vshll.u32 %v1961_v18, 16  ;;  %v2129_v54 = vsel %vm14596_vm12, %v14693_v8, %v14687_v42  ;;  %v2133_v32 = vor.u32 %v2132_v62, %v14687_v42  ;;  %v1144_v28 = vld [vmem:[#allocation2 + $0x50] sm:$0x1]  ;;  %v2178_v23 = vshrl.u32 %v1961_v18, 16  ;;  %v1963_v8 = vld [vmem:[#allocation2 + $0x60] sm:$0xf] }
  0xd9   : > { %v2090_v19 = vrot.slane %v2088_v59, 5  ;;  %v14714_v53 = vld [vmem:[#allocation8 + $0x28] sm:$0xff]   ;;  %12812 = vmatprep.mubr.msk.bf16.mxu1 %vm1344_vm9, %v14701_v40  ;;  %v19289_v20 = vrot.slane %v14372_v52, 4  ;;  %v2147_v4 = vor.u32 %v2146_v17, %v2143_v46  ;;  %v14722_v21 = vrot.slane %v2150_v56, 5  ;;  %v1964_v61 = vld [vmem:[#allocation2 + $0x64] sm:$0xf] }
  0xda   : > { %v2156_v49 = vrot.slane %v2154_v5, 4  ;;  %v2167_v18 = vrot.slane %v2165_v44, 4  ;;  %v2170_v50 = vrot.slane %v2168_v25, 5  ;;  %12942 = vmatprep.subr.bf16.mxu1 %v14714_v53  ;;  %v14729_v52 = vrot.slane %v2174_v43, 5  ;;  %v491_v5 = vld [vmem:[#allocation2 + $0x74] sm:$0x1] }
  0xdb   : > { %v1953_v3 = vld [vmem:[#allocation2 + $0x38] sm:$0x1]  ;;  %v1145_v47 = vsel %vm14273_vm3, %v19289_v20, %v1144_v28  ;;  %v2091_v42 = vsel %vm14596_vm12, %v2086_v36, %v2090_v19  ;;  %v2180_v59 = vrot.slane %v2178_v23, 4  ;;  %v489_v46 = vsel %vm14279_vm5, 0, %v488_v57  ;;  %v1966_v17 = vld [vmem:[#allocation2 + $0x6c] sm:$0xf] }
  0xdc   : > { %v2112_v62 = vshll.u32 %v1953_v3, 16  ;;  %1146 = vst [vmem:[#allocation2 + $0x50] sm:$0x1] %v1145_v47  ;;  %v14727_v48 = vcombine.low %v2081_v33, %v2091_v42  ;;  %v2134_v36 = vrot.slane %v2133_v32, 4  ;;  %490 = vst [vmem:[#allocation2 + $0x68] sm:$0x1] %v489_v46  ;;  %v2157_v33 = vor.u32 %v2156_v49, %v14722_v21 }
  0xdd   : > { %v2189_v19 = vshrl.u32 %v1963_v8, 16  ;;  %v2192_v44 = vshll.u32 %v1963_v8, 16  ;;  %v1151_v43 = vld [vmem:[#allocation2 + $0x5c] sm:$0x1]  ;;  %v2198_v3 = vshll.u32 %v1964_v61, 16  ;;  %v2202_v23 = vshrl.u32 %v1964_v61, 16 }
  0xde   : > { %v2114_v56 = vrot.slane %v2112_v62, 5  ;;  %v1956_v28 = vld [vmem:[#allocation2 + $0x44] sm:$0x1]  ;;  %12813 = vmatmul.mubr.msk.bf16.gmra.mxu1 %vm1344_vm9, %v14727_v48  ;;  %v2148_v20 = vrot.slane %v2147_v4, 4  ;;  %v19290_v47 = vrot.slane %v14401_v9, 4  ;;  %v2171_v42 = vor.u32 %v2170_v50, %v2167_v18  ;;  %12783 = vmatmul.mubr.msk.bf16.gmra.mxu0 %vm1344_vm9, %v14454_v7 }
  0xdf   : > { %v2136_v25 = vshll.u32 %v1956_v28, 16  ;;  %v14742_v8 = vld [vmem:[#allocation2 + $0x70] sm:$0xf]  ;;  %v2181_v61 = vor.u32 %v2180_v59, %v14729_v52  ;;  %v2191_v46 = vrot.slane %v2189_v19, 4  ;;  %12786 = vmatprep.mubr.msk.bf16.mxu0 %vm1344_vm9, %v14469_v29  ;;  %v2194_v9 = vrot.slane %v2192_v44, 5 }
  0xe0   : > { %v2115_v57 = vsel %vm14596_vm12, %v2110_v35, %v2114_v56  ;;  %v1152_v32 = vsel %vm14273_vm3, %v19290_v47, %v1151_v43  ;;  %v14751_v35 = vrot.slane %v2198_v3, 5  ;;  %v492_v4 = vsel %vm14279_vm5, 0, %v491_v5  ;;  %v494_v50 = vld [vmem:[#allocation2 + $0x80] sm:$0x1]  ;;  %v14768_v43 = vld [vmem:[#allocation2 + $0x7c] sm:$0xf] }
  0xe1   : > { %v14746_v62 = vcombine.low %v2105_v10, %v2115_v57  ;;  %v2138_v49 = vrot.slane %v2136_v25, 5  ;;  %1153 = vst [vmem:[#allocation2 + $0x5c] sm:$0x1] %v1152_v32  ;;  %v2213_v18 = vshrl.u32 %v1966_v17, 16  ;;  %v2204_v59 = vrot.slane %v2202_v23, 4 }
  0xe2   : > { %493 = vst [vmem:[#allocation2 + $0x74] sm:$0x1] %v492_v4  ;;  %v2216_v56 = vshll.u32 %v1966_v17, 16  ;;  %v2222_v29 = vshll.u32 %v14742_v8, 16  ;;  %v2153_v5 = vsel %vm14596_vm12, %v2148_v20, %v14722_v21  ;;  %v2158_v19 = vrot.slane %v2157_v33, 4 }
  0xe3   : > { %12816 = vmatprep.mubr.msk.bf16.mxu1 %vm1344_vm9, %v14746_v62  ;;  %v2139_v7 = vsel %vm14596_vm12, %v2134_v36, %v2138_v49  ;;  %v14759_v10 = vld [vmem:[#allocation2 + $0x50] sm:$0x1]  ;;  %v1969_v25 = vld [vmem:[#allocation2 + $0x78] sm:$0xf]  ;;  %v2172_v36 = vrot.slane %v2171_v42, 4  ;;  %v2215_v57 = vrot.slane %v2213_v18, 4  ;;  %v2195_v33 = vor.u32 %v2194_v9, %v2191_v46 }
  0xe4   : > { %v14762_v28 = vcombine.low %v2129_v54, %v2139_v7  ;;  %v2160_v44 = vshll.u32 %v14759_v10, 16  ;;  %v1158_v3 = vld [vmem:[#allocation2 + $0x68] sm:$0x1]  ;;  %v2218_v23 = vrot.slane %v2216_v56, 5  ;;  %v2226_v17 = vshrl.u32 %v14742_v8, 16 }
  0xe5   : > { %v2182_v32 = vrot.slane %v2181_v61, 4  ;;  %v19291_v54 = vrot.slane %v14409_v24, 4  ;;  %v495_v21 = vsel %vm14279_vm5, 0, %v494_v50  ;;  %v2205_v20 = vor.u32 %v2204_v59, %v14751_v35 }
  0xe6   : > { %v2162_v47 = vrot.slane %v2160_v44, 5  ;;  %12817 = vmatmul.mubr.msk.bf16.gmra.mxu1 %vm1344_vm9, %v14762_v28  ;;  %v14780_v42 = vrot.slane %v2222_v29, 5  ;;  %496 = vst [vmem:[#allocation2 + $0x80] sm:$0x1] %v495_v21  ;;  %v2237_v4 = vshrl.u32 %v1969_v25, 16  ;;  %v2240_v18 = vshll.u32 %v1969_v25, 16  ;;  %12787 = vmatmul.mubr.msk.bf16.gmra.mxu0 %vm1344_vm9, %v14499_v6 }
  0xe7   : > { %v1159_v49 = vsel %vm14273_vm3, %v19291_v54, %v1158_v3  ;;  %v2246_v7 = vshll.u32 %v14768_v43, 16  ;;  %v2250_v50 = vshrl.u32 %v14768_v43, 16  ;;  %v2219_v59 = vor.u32 %v2218_v23, %v2215_v57  ;;  %v497_v29 = vld [vmem:[#allocation2 + $0x8c] sm:$0x1]  ;;  %12790 = vmatprep.mubr.msk.bf16.mxu0 %vm1344_vm9, %v14510_v27  ;;  %v1972_v57 = vld [vmem:[#allocation2 + $0x84] sm:$0xf] }
  0xe8   : > { %1160 = vst [vmem:[#allocation2 + $0x68] sm:$0x1] %v1159_v49  ;;  %v2163_v24 = vsel %vm14596_vm12, %v2158_v19, %v2162_v47  ;;  %v14784_v61 = vld [vmem:[#allocation2 + $0x5c] sm:$0x1]  ;;  %v2228_v56 = vrot.slane %v2226_v17, 4  ;;  %v2239_v44 = vrot.slane %v2237_v4, 4  ;;  %v2177_v6 = vsel %vm14596_vm12, %v2172_v36, %v14729_v52 }
  0xe9   : > { %v14790_v46 = vcombine.low %v2153_v5, %v2163_v24  ;;  %v2184_v9 = vshll.u32 %v14784_v61, 16  ;;  %v1165_v19 = vld [vmem:[#allocation2 + $0x74] sm:$0x1]  ;;  %v2242_v25 = vrot.slane %v2240_v18, 5  ;;  %v14795_v3 = vrot.slane %v2246_v7, 5 }
  0xea   : > { %v2252_v47 = vrot.slane %v2250_v50, 4  ;;  %v1166_v27 = vsel %vm14273_vm3, %v934_v16, %v1165_v19  ;;  %v2196_v23 = vrot.slane %v2195_v33, 4  ;;  %v498_v17 = vsel %vm14279_vm5, 0, %v497_v29  ;;  %v14809_v49 = vld [vmem:[#allocation2 + $0x88] sm:$0xf] }
  0xeb   : > { %12820 = vmatprep.mubr.msk.bf16.mxu1 %vm1344_vm9, %v14790_v46  ;;  %v2186_v5 = vrot.slane %v2184_v9, 5  ;;  %1167 = vst [vmem:[#allocation2 + $0x74] sm:$0x1] %v1166_v27  ;;  %v500_v21 = vld [vmem:[#allocation2 + $0x98] sm:$0x1]  ;;  %v2206_v24 = vrot.slane %v2205_v20, 4  ;;  %v2229_v33 = vor.u32 %v2228_v56, %v14780_v42  ;;  %v2243_v7 = vor.u32 %v2242_v25, %v2239_v44 }
  0xec   : > { %v14813_v52 = vrot.slane %v2219_v59, 4  ;;  %499 = vst [vmem:[#allocation2 + $0x8c] sm:$0x1] %v498_v17  ;;  %v2253_v50 = vor.u32 %v2252_v47, %v14795_v3  ;;  %v503_v9 = vld [vmem:[#allocation2 + $0xa4] sm:$0x1]  ;;  %v2261_v59 = vshrl.u32 %v1972_v57, 16  ;;  %v2201_v56 = vsel %vm14596_vm12, %v2196_v23, %v14751_v35 }
  0xed   : > { %v2187_v4 = vsel %vm14596_vm12, %v2182_v32, %v2186_v5  ;;  %v1172_v18 = vld [vmem:[#allocation2 + $0x80] sm:$0x1]  ;;  %v19292_v32 = vrot.slane %v14460_v11, 4  ;;  %v2264_v19 = vshll.u32 %v1972_v57, 16  ;;  %v2270_v44 = vshll.u32 %v14809_v49, 16 }
  0xee   : > { %v14815_v36 = vcombine.low %v2177_v6, %v2187_v4  ;;  %v501_v25 = vsel %vm14279_vm5, 0, %v500_v21  ;;  %v14834_v47 = vld [vmem:[#allocation2 + $0x94] sm:$0xf]  ;;  %12791 = vmatmul.mubr.msk.bf16.gmra.mxu0 %vm1344_vm9, %v14528_v51  ;;  %v2225_v6 = vsel %vm14596_vm12, %v14813_v52, %v14780_v42  ;;  %v2274_v5 = vshrl.u32 %v14809_v49, 16  ;;  %v1978_v27 = vld [vmem:[#allocation2 + $0x9c] sm:$0xf] }
  0xef   : > { %v14817_v16 = vld [vmem:[#allocation2 + $0x68] sm:$0x1]  ;;  %v1173_v20 = vsel %vm14273_vm3, %v19292_v32, %v1172_v18  ;;  %502 = vst [vmem:[#allocation2 + $0x98] sm:$0x1] %v501_v25  ;;  %v2285_v35 = vshrl.u32 %v1975_v55, 16  ;;  %v2230_v57 = vrot.slane %v2229_v33, 4  ;;  %12794 = vmatprep.mubr.msk.bf16.mxu0 %vm1344_vm9, %v14556_v38 }
  0xf0   : > { %v2208_v29 = vshll.u32 %v14817_v16, 16  ;;  %12821 = vmatmul.mubr.msk.bf16.gmra.mxu1 %vm1344_vm9, %v14815_v36  ;;  %1174 = vst [vmem:[#allocation2 + $0x80] sm:$0x1] %v1173_v20  ;;  %v2244_v23 = vrot.slane %v2243_v7, 4  ;;  %v2288_v17 = vshll.u32 %v1975_v55, 16  ;;  %v504_v51 = vsel %vm14279_vm5, 0, %v503_v9 }
  0xf1   : > { %v14847_v21 = vld [vmem:[#allocation2 + $0xa0] sm:$0xf]  ;;  %v459_v4 = vld [vmem:[#allocation2 + $0xcc] sm:$0x1]  ;;  %v2254_v18 = vrot.slane %v2253_v50, 4  ;;  %v2266_v32 = vrot.slane %v2264_v19, 5 }
  0xf2   : > { %v2210_v11 = vrot.slane %v2208_v29, 5  ;;  %v14851_v52 = vld [vmem:[#allocation2 + $0x74] sm:$0x1]  ;;  %v2263_v29 = vrot.slane %v2261_v59, 4  ;;  %505 = vst [vmem:[#allocation2 + $0xa4] sm:$0x1] %v504_v51 }
  0xf3   : > { %v2232_v38 = vshll.u32 %v14851_v52, 16  ;;  %v1179_v55 = vld [vmem:[#allocation2 + $0x8c] sm:$0x1]  ;;  %v14856_v7 = vrot.slane %v2270_v44, 5  ;;  %v2294_v9 = vshll.u32 %v14834_v47, 16  ;;  %v19293_v20 = vrot.slane %v14471_v31, 4 }
  0xf4   : > { %v2211_v42 = vsel %vm14596_vm12, %v2206_v24, %v2210_v11  ;;  %v2276_v25 = vrot.slane %v2274_v5, 4  ;;  %v2287_v11 = vrot.slane %v2285_v35, 4  ;;  %v2298_v50 = vshrl.u32 %v14834_v47, 16 }
  0xf5   : > { %v14853_v33 = vcombine.low %v2201_v56, %v2211_v42  ;;  %v1180_v24 = vsel %vm14273_vm3, %v19293_v20, %v1179_v55  ;;  %v2234_v59 = vrot.slane %v2232_v38, 5  ;;  %v2290_v19 = vrot.slane %v2288_v17, 5 }
  0xf6   : > { %1181 = vst [vmem:[#allocation2 + $0x8c] sm:$0x1] %v1180_v24  ;;  %v2309_v56 = vshrl.u32 %v1978_v27, 16  ;;  %v2312_v44 = vshll.u32 %v1978_v27, 16  ;;  %v2249_v31 = vsel %vm14596_vm12, %v2244_v23, %v14795_v3  ;;  %v2318_v42 = vshll.u32 %v14847_v21, 16  ;;  %12795 = vmatmul.mubr.msk.bf16.gmra.mxu0 %vm1344_vm9, %v14560_v41 }
  0xf7   : > { %12824 = vmatprep.mubr.msk.bf16.mxu1 %vm1344_vm9, %v14853_v33  ;;  %v14866_v51 = vld [vmem:[#allocation2 + $0x80] sm:$0x1]  ;;  %v2322_v5 = vshrl.u32 %v14847_v21, 16  ;;  %v460_v35 = vsel %vm14273_vm3, 0, %v459_v4  ;;  %v2235_v38 = vsel %vm14596_vm12, %v2230_v57, %v2234_v59  ;;  %v2267_v55 = vor.u32 %v2266_v32, %v2263_v29  ;;  %v1186_v27 = vld [vmem:[#allocation2 + $0x98] sm:$0x1]  ;;  %12798 = vmatprep.mubr.msk.bf16.mxu0 %vm1344_vm9, %v14580_v12 }
  0xf8   : > { %v2256_v17 = vshll.u32 %v14866_v51, 16  ;;  %v14878_v20 = vrot.slane %v2294_v9, 5  ;;  %461 = vst [vmem:[#allocation2 + $0xcc] sm:$0x1] %v460_v35  ;;  %v506_v24 = vld [vmem:[#allocation2 + $0xb0] sm:$0x1]  ;;  %v14880_v54 = vcombine.low %v2225_v6, %v2235_v38  ;;  %v2277_v29 = vor.u32 %v2276_v25, %v14856_v7 }
  0xf9   : > { %v19294_v3 = vrot.slane %v14497_v0, 4  ;;  %v2300_v4 = vrot.slane %v2298_v50, 4  ;;  %v2311_v57 = vrot.slane %v2309_v56, 4  ;;  %v2291_v32 = vor.u32 %v2290_v19, %v2287_v11  ;;  %v1193_v6 = vld [vmem:[#allocation2 + $0xa4] sm:$0x1] }
  0xfa   : > { %v2258_v59 = vrot.slane %v2256_v17, 5  ;;  %v2314_v9 = vrot.slane %v2312_v44, 5  ;;  %12825 = vmatmul.mubr.msk.bf16.gmra.mxu1 %vm1344_vm9, %v14880_v54  ;;  %v19295_v0 = vrot.slane %v14504_v14, 4  ;;  %v14897_v50 = vrot.slane %v2318_v42, 5  ;;  %v1981_v35 = vld [vmem:[#allocation2 + $0xa8] sm:$0xf] }
  0xfb   : > { %v1187_v23 = vsel %vm14273_vm3, %v19294_v3, %v1186_v27  ;;  %v2324_v56 = vrot.slane %v2322_v5, 4  ;;  %v507_v25 = vsel %vm14279_vm5, 0, %v506_v24  ;;  %v2268_v11 = vrot.slane %v2267_v55, 4  ;;  %v509_v42 = vld [vmem:[#allocation2 + $0xbc] sm:$0x1] }
  0xfc   : > { %1188 = vst [vmem:[#allocation2 + $0x98] sm:$0x1] %v1187_v23  ;;  %v1194_v41 = vsel %vm14273_vm3, %v19295_v0, %v1193_v6  ;;  %v2259_v12 = vsel %vm14596_vm12, %v2254_v18, %v2258_v59  ;;  %508 = vst [vmem:[#allocation2 + $0xb0] sm:$0x1] %v507_v25  ;;  %v2301_v14 = vor.u32 %v2300_v4, %v14878_v20  ;;  %v2278_v17 = vrot.slane %v2277_v29, 4 }
  0xfd   : > { %1195 = vst [vmem:[#allocation2 + $0xa4] sm:$0x1] %v1194_v41  ;;  %v14903_v19 = vcombine.low %v2249_v31, %v2259_v12  ;;  %v14905_v44 = vld [vmem:[#allocation2 + $0x8c] sm:$0x1]  ;;  %v2315_v38 = vor.u32 %v2314_v9, %v2311_v57  ;;  %v2333_v24 = vshrl.u32 %v1981_v35, 16  ;;  %v2336_v3 = vshll.u32 %v1981_v35, 16 }
  0xfe   : > { %v2280_v5 = vshll.u32 %v14905_v44, 16  ;;  %v14909_v27 = vld [vmem:[#allocation2 + $0xac] sm:$0xf]  ;;  %v1019_v18 = vrot.slane %v14535_v58, 4  ;;  %v1036_v55 = vrot.slane %v14546_v13, 4  ;;  %v2292_v31 = vrot.slane %v2291_v32, 4  ;;  %12799 = vmatmul.mubr.msk.bf16.gmra.mxu0 %vm1344_vm9, %v14587_v45 }
  0xff   : > { %12828 = vmatprep.mubr.msk.bf16.mxu1 %vm1344_vm9, %v14903_v19  ;;  %v2325_v23 = vor.u32 %v2324_v56, %v14897_v50  ;;  %v2273_v4 = vsel %vm14596_vm12, %v2268_v11, %v14856_v7  ;;  %v510_v59 = vsel %vm14279_vm5, 0, %v509_v42  ;;  %v1984_v29 = vld [vmem:[#allocation2 + $0xb4] sm:$0xf]  ;;  %v14921_v6 = vld [vmem:[#allocation2 + $0xb8] sm:$0xf]  ;;  %v2302_v13 = vrot.slane %v2301_v14, 4  ;;  %12802 = vmatprep.mubr.msk.bf16.mxu0 %vm1344_vm9, %v14607_v39 }
 0x100   : > { %v2282_v57 = vrot.slane %v2280_v5, 5  ;;  %v2316_v32 = vrot.slane %v2315_v38, 4  ;;  %v2342_v9 = vshll.u32 %v14909_v27, 16  ;;  %v2346_v0 = vshrl.u32 %v14909_v27, 16  ;;  %511 = vst [vmem:[#allocation2 + $0xbc] sm:$0x1] %v510_v59 }
 0x101   : > { %v2335_v56 = vrot.slane %v2333_v24, 4  ;;  %v2338_v25 = vrot.slane %v2336_v3, 5  ;;  %v512_v45 = vld [vmem:[#allocation2 + $0xc8] sm:$0x1]  ;;  %v2297_v12 = vsel %vm14596_vm12, %v2292_v31, %v14878_v20  ;;  %v2326_v14 = vrot.slane %v2325_v23, 4  ;;  %v13760_v20 = vld [vmem:[#allocation2 + $0xcc] sm:$0xff]  }
 0x102   : > { %v2283_v7 = vsel %vm14596_vm12, %v2278_v17, %v2282_v57  ;;  %v2357_v42 = vshrl.u32 %v1984_v29, 16  ;;  %v2360_v24 = vshll.u32 %v1984_v29, 16  ;;  %v2321_v3 = vsel %vm14596_vm12, %v2316_v32, %v14897_v50  ;;  %v515_v50 = vld [vmem:[#allocation2 + $0xd4] sm:$0x1] }
 0x103   : > { %v14925_v58 = vld [vmem:[#allocation2 + $0x98] sm:$0x1]  ;;  %v14934_v35 = vcombine.low %v2273_v4, %v2283_v7  ;;  %v1200_v38 = vld [vmem:[#allocation2 + $0xb0] sm:$0x1]  ;;  %v2344_v31 = vrot.slane %v2342_v9, 5  ;;  %v2348_v23 = vrot.slane %v2346_v0, 4 }
 0x104   : > { %v2304_v41 = vshll.u32 %v14925_v58, 16  ;;  %v14939_v11 = vld [vmem:[#allocation2 + $0xa4] sm:$0x1]  ;;  %v1201_v39 = vsel %vm14273_vm3, %v1019_v18, %v1200_v38  ;;  %v2366_v4 = vshll.u32 %v14921_v6, 16  ;;  %v2370_v18 = vshrl.u32 %v14921_v6, 16 }
 0x105   : > { %v2328_v5 = vshll.u32 %v14939_v11, 16  ;;  %12829 = vmatmul.mubr.msk.bf16.gmra.mxu1 %vm1344_vm9, %v14934_v35  ;;  %1202 = vst [vmem:[#allocation2 + $0xb0] sm:$0x1] %v1201_v39  ;;  %v513_v29 = vsel %vm14279_vm5, 0, %v512_v45  ;;  %v2359_v0 = vrot.slane %v2357_v42, 4  ;;  %v2362_v38 = vrot.slane %v2360_v24, 5 }
 0x106   : > { %v2306_v17 = vrot.slane %v2304_v41, 5  ;;  %v2339_v41 = vor.u32 %v2338_v25, %v2335_v56  ;;  %514 = vst [vmem:[#allocation2 + $0xc8] sm:$0x1] %v513_v29  ;;  %12803 = vmatmul.mubr.msk.bf16.gmra.mxu0 %vm1344_vm9, %v13760_v20  ;;  %v2368_v56 = vrot.slane %v2366_v4, 5  ;;  %v2372_v25 = vrot.slane %v2370_v18, 4 }
 0x107   : > { %v2330_v59 = vrot.slane %v2328_v5, 5  ;;  %v1207_v9 = vld [vmem:[#allocation2 + $0xbc] sm:$0x1]  ;;  %12842 = vmatprep.mubr.msk.bf16.mxu0 %vm1344_vm9, %v14628_v30  ;;  %v3227_v5 = vrot.slane %v14602_v15, 5  ;;  %v2363_v24 = vor.u32 %v2362_v38, %v2359_v0  ;;  %v3230_v18 = vrot.slane %v14669_v26, 5 }
 0x108   : > { %v2307_v57 = vsel %vm14596_vm12, %v2302_v13, %v2306_v17  ;;  %v2349_v17 = vor.u32 %v2348_v23, %v2344_v31  ;;  %v1208_v45 = vsel %vm14273_vm3, %v1036_v55, %v1207_v9  ;;  %v2340_v42 = vrot.slane %v2339_v41, 4  ;;  %v3144_v26 = vld [vmem:[#allocation2 + $0x18] sm:$0xe] }
 0x109   : > { %v14955_v7 = vcombine.low %v2297_v12, %v2307_v57  ;;  %v2331_v32 = vsel %vm14596_vm12, %v2326_v14, %v2330_v59  ;;  %1209 = vst [vmem:[#allocation2 + $0xbc] sm:$0x1] %v1208_v45  ;;  %v516_v12 = vsel %vm14279_vm5, 0, %v515_v50  ;;  %v1053_v14 = vrot.slane %v14554_v37, 4  ;;  %v14981_v57 = vld [vmem:[#allocation8 + $0x40] sm:$0xff]  }
 0x10a   : > { %v14961_v13 = vcombine.low %v2321_v3, %v2331_v32  ;;  %517 = vst [vmem:[#allocation2 + $0xd4] sm:$0x1] %v516_v12  ;;  %v2350_v55 = vrot.slane %v2349_v17, 4  ;;  %v2373_v20 = vor.u32 %v2372_v25, %v2368_v56  ;;  %v2345_v23 = vsel %vm14596_vm12, %v2340_v42, %v2344_v31 }
 0x10b   : > { %12832 = vmatprep.mubr.msk.bf16.mxu1 %vm1344_vm9, %v14955_v7  ;;  %v3229_v15 = vrot.slane %v3227_v5, 4  ;;  %v2364_v59 = vrot.slane %v2363_v24, 4  ;;  %v19296_v38 = vmov 0  ;;  %v11537_v17 = vrot.slane %v3144_v26, 9  ;;  %v3151_v24 = vld [vmem:[#allocation2 + $0x6c] sm:$0xe] }
 0x10c   : > { %v14972_v39 = vld [vmem:[#allocation2 + $0xb0] sm:$0x1]  ;;  %v2374_v50 = vrot.slane %v2373_v20, 4  ;;  %v19297_v38 = vsel %vm15001_vm15, 4294967295, %v19296_v38  ;;  %v3286_v42 = vrot.slane %v14866_v51, 5  ;;  %v3307_v20 = vrot.slane %v14939_v11, 5 }
 0x10d   : > { %12833 = vmatmul.mubr.msk.bf16.gmra.mxu1 %vm1344_vm9, %v14961_v13  ;;  %v2352_v3 = vshll.u32 %v14972_v39, 16  ;;  %v1214_v30 = vld [vmem:[#allocation2 + $0xc8] sm:$0x1]  ;;  %v2369_v9 = vsel %vm14596_vm12, %v2364_v59, %v2368_v56  ;;  %19298 = vst [vmem:[#allocation23_spill] sm:$0xff] %v19297_v38  ;;  %v3228_v12 = vsel %vm15001_vm15, %v11537_v17, %v3227_v5  ;;  %v3293_v5 = vrot.slane %v14905_v44, 5 }
 0x10e   : > { %v1215_v37 = vsel %vm14273_vm3, %v1053_v14, %v1214_v30  ;;  %12843 = vmatmul.mubr.msk.bf16.vlgmr.msra.gmra.mxu0 %vm1344_vm9, %v14701_v40  ;;  %v3279_v14 = vrot.slane %v14851_v52, 5  ;;  %v11544_v52 = vrot.slane %v3151_v24, 9  ;;  %v3154_v51 = vld [vmem:[#allocation2 + $0x90] sm:$0xe]  ;;  %v3314_v44 = vrot.slane %v14972_v39, 5 }
 0x10f   : > { %v2354_v4 = vrot.slane %v2352_v3, 5  ;;  %1216 = vst [vmem:[#allocation2 + $0xc8] sm:$0x1] %v1215_v37  ;;  %12909 = vmatpush3.bf16.msra.mxu0 %v14648_v60  ;;  %12846 = vmatprep.mubr.msk.bf16.mxu0 %vm1344_vm9, %v14727_v48  ;;  %v3231_v60 = vsel %vm15001_vm15, %v3229_v15, %v3230_v18  ;;  %v3152_v3 = vld [vmem:[#allocation2 + $0x78] sm:$0xe]  ;;  %v3318_v24 = vrot.slane %v14921_v6, 5 }
 0x110   : > { %v14986_v41 = vld [vmem:[#allocation2 + $0xbc] sm:$0x1]  ;;  %12976 = vmatprep.subr.bf16.mxu0 %v14981_v57  ;;  %v15017_v56 = vcombine.low %v3228_v12, %v3231_v60  ;;  %v11545_v30 = vrot.slane %v3152_v3, 9  ;;  %v3156_v37 = vld [vmem:[#allocation2 + $0xa8] sm:$0xe] }
 0x111   : > { %v2355_v29 = vsel %vm14596_vm12, %v2350_v55, %v2354_v4  ;;  %v2376_v32 = vshll.u32 %v14986_v41, 16  ;;  %v3300_v55 = vrot.slane %v14925_v58, 5  ;;  %v3155_v58 = vld [vmem:[#allocation2 + $0x9c] sm:$0xe]  ;;  %v3321_v11 = vrot.slane %v14986_v41, 5 }
 0x112   : > { %v14990_v31 = vcombine.low %v2345_v23, %v2355_v29  ;;  %v3283_v23 = vrot.slane %v14768_v43, 5  ;;  %v3157_v18 = vld [vmem:[#allocation2 + $0xb4] sm:$0xe]  ;;  %v11547_v29 = vrot.slane %v3154_v51, 9  ;;  %v3297_v43 = vrot.slane %v14834_v47, 5 }
 0x113   : > { %v2378_v0 = vrot.slane %v2376_v32, 5  ;;  %v3158_v41 = vld [vmem:[#allocation2 + $0xc0] sm:$0xe]  ;;  %v11548_v26 = vrot.slane %v3155_v58, 9  ;;  %v1988_v51 = vld [vmem:[#allocation2 + $0xc4] sm:$0xf] }
 0x114   : > { %12836 = vmatprep.mubr.msk.bf16.mxu1 %vm1344_vm9, %v14990_v31  ;;  %v3284_v15 = vsel %vm15001_vm15, %v11545_v30, %v3283_v23  ;;  %v3285_v59 = vrot.slane %v3283_v23, 4  ;;  %v3298_v17 = vsel %vm15001_vm15, %v11547_v29, %v3297_v43  ;;  %v1987_v6 = vld [vmem:[#allocation2 + $0xc0] sm:$0xf] }
 0x115   : > { %v2379_v45 = vsel %vm14596_vm12, %v2374_v50, %v2378_v0 }
 0x116   : > { %v15009_v25 = vcombine.low %v2369_v9, %v2379_v45  ;;  %12847 = vmatmul.mubr.msk.bf16.gmra.mxu0 %vm1344_vm9, %v14746_v62  ;;  %v3287_v32 = vsel %vm15001_vm15, %v3285_v59, %v3286_v42  ;;  %v3304_v9 = vrot.slane %v14847_v21, 5  ;;  %v3299_v21 = vrot.slane %v3297_v43, 4 }
 0x117   : > { %12850 = vmatprep.mubr.msk.bf16.mxu0 %vm1344_vm9, %v14762_v28  ;;  %v15058_v0 = vcombine.low %v3284_v15, %v3287_v32  ;;  %v11549_v45 = vrot.slane %v3156_v37, 9  ;;  %v11550_v42 = vrot.slane %v3157_v18, 9  ;;  %v2679_v18 = vshrl.u32 %v1987_v6, 16 }
 0x118   : > { %12837 = vmatmul.mubr.msk.bf16.gmra.mxu1 %vm1344_vm9, %v15009_v25  ;;  %v3306_v60 = vrot.slane %v3304_v9, 4 }
 0x119   : > { %12876 = vmatprep.mubr.msk.bf16.mxu1 %vm1344_vm9, %v14701_v40  ;;  %v3153_v40 = vld [vmem:[#allocation2 + $0x84] sm:$0xe] }
 0x11a   : > { %v11546_v39 = vrot.slane %v3153_v40, 9  ;;  %v3308_v40 = vsel %vm15001_vm15, %v3306_v60, %v3307_v20 }
 0x11e   : > { %12851 = vmatmul.mubr.msk.bf16.gmra.mxu0 %vm1344_vm9, %v14790_v46 }
 0x11f   : > { %12854 = vmatprep.mubr.msk.bf16.mxu0 %vm1344_vm9, %v14815_v36 }
 0x120   : > { %12877 = vmatmul.mubr.msk.bf16.vlgmr.msra.gmra.mxu1 %vm1344_vm9, %v14727_v48  ;;  %v3276_v48 = vrot.slane %v14742_v8, 5  ;;  %v3290_v8 = vrot.slane %v14809_v49, 5 }
 0x121   : > { %12880 = vmatprep.mubr.msk.bf16.mxu1 %vm1344_vm9, %v14746_v62  ;;  %12943 = vmatpush3.bf16.msra.mxu1 %v14714_v53 }
 0x122   : > { %v3277_v62 = vsel %vm15001_vm15, %v11544_v52, %v3276_v48  ;;  %v3278_v4 = vrot.slane %v3276_v48, 4  ;;  %v3291_v49 = vsel %vm15001_vm15, %v11546_v39, %v3290_v8  ;;  %v3292_v47 = vrot.slane %v3290_v8, 4  ;;  %v1989_v48 = vld [vmem:[#allocation2 + $0xc8] sm:$0x1] }
 0x123   : > { %v11584_v52 = vrot.slane %v3158_v41, 9  ;;  %v3629_v23 = vrot.slane %v1989_v48, 5  ;;  %v2692_v8 = vshrl.u32 %v1988_v51, 16 }
 0x124   : > { %v3280_v53 = vsel %vm15001_vm15, %v3278_v4, %v3279_v14  ;;  %v3294_v12 = vsel %vm15001_vm15, %v3292_v47, %v3293_v5  ;;  %v3311_v14 = vrot.slane %v14909_v27, 5  ;;  %v3626_v4 = vrot.slane %v1988_v51, 5  ;;  %v13820_v47 = vld [vmem:[#allocation2 + $0x4] sm:$0xf] }
 0x125   : > { %v15049_v50 = vcombine.low %v3277_v62, %v3280_v53  ;;  %v15074_v3 = vcombine.low %v3291_v49, %v3294_v12  ;;  %v3319_v62 = vsel %vm15001_vm15, %v11550_v42, %v3318_v24  ;;  %v2698_v49 = vshll.u32 %v1989_v48, 16 }
 0x126   : > { %12855 = vmatmul.mubr.msk.bf16.gmra.mxu0 %vm1344_vm9, %v14853_v33  ;;  %v3312_v27 = vsel %vm15001_vm15, %v11549_v45, %v3311_v14  ;;  %v3313_v5 = vrot.slane %v3311_v14, 4  ;;  %v3627_v59 = vsel %vm15001_vm15, %v11584_v52, %v3626_v4  ;;  %v3628_v39 = vrot.slane %v3626_v4, 4 }
 0x127   : > { %12858 = vmatprep.mubr.msk.bf16.mxu0 %vm1344_vm9, %v14880_v54  ;;  %v2700_v12 = vrot.slane %v2698_v49, 5  ;;  %v3145_v49 = vld [vmem:[#allocation2 + $0x24] sm:$0xe] }
 0x128   : > { %12881 = vmatmul.mubr.msk.bf16.gmra.mxu1 %vm1344_vm9, %v14762_v28  ;;  %v3305_v28 = vsel %vm15001_vm15, %v11548_v26, %v3304_v9  ;;  %v3315_v20 = vsel %vm15001_vm15, %v3313_v5, %v3314_v44  ;;  %v2682_v44 = vshll.u32 %v1987_v6, 16  ;;  %v3630_v29 = vsel %vm15001_vm15, %v3628_v39, %v3629_v23 }
 0x129   : > { %12884 = vmatprep.mubr.msk.bf16.mxu1 %vm1344_vm9, %v14790_v46  ;;  %v3301_v46 = vsel %vm15001_vm15, %v3299_v21, %v3300_v55  ;;  %v15082_v30 = vcombine.low %v3305_v28, %v3308_v40  ;;  %v3320_v55 = vrot.slane %v3318_v24, 4  ;;  %v15090_v37 = vcombine.low %v3312_v27, %v3315_v20  ;;  %v3142_v21 = vld [vmem:[#allocation2] sm:$0xe]  ;;  %v1990_v28 = vld [vmem:[#allocation2 + $0xcc] sm:$0xf] }
 0x12a   : > { %v15080_v58 = vcombine.low %v3298_v17, %v3301_v46  ;;  %v15108_v43 = vcombine.low %v3627_v59, %v3630_v29  ;;  %v2684_v41 = vrot.slane %v2682_v44, 5  ;;  %v2694_v26 = vrot.slane %v2692_v8, 4  ;;  %v13821_v24 = vld [vmem:[#allocation2 + $0x8] sm:$0x1]  ;;  %v15138_v59 = vld [vmem:[#allocation2 + $0xd4] sm:$0x1] }
 0x12b   : > { %v3322_v15 = vsel %vm15001_vm15, %v3320_v55, %v3321_v11  ;;  %v2688_v11 = vshll.u32 %v1988_v51, 16  ;;  %v3213_v17 = vrot.slane %v13820_v47, 5  ;;  %v11535_v14 = vrot.slane %v3142_v21, 9 }
 0x12c   : > { %v15100_v53 = vcombine.low %v3319_v62, %v3322_v15  ;;  %v3216_v46 = vrot.slane %v13821_v24, 5  ;;  %v2914_v40 = vshll.u32 %v1990_v28, 16  ;;  %v3143_v62 = vld [vmem:[#allocation2 + $0xc] sm:$0xe]  ;;  %v3146_v24 = vld [vmem:[#allocation2 + $0x30] sm:$0xe] }
 0x12d   : > { %v2690_v32 = vrot.slane %v2688_v11, 5  ;;  %v3215_v42 = vrot.slane %v3213_v17, 4  ;;  %v3214_v6 = vsel %vm15001_vm15, %v11535_v14, %v3213_v17  ;;  %v13823_v11 = vld [vmem:[#allocation2 + $0x14] sm:$0x1]  ;;  %v13826_v14 = vld [vmem:[#allocation2 + $0x2c] sm:$0x1] }
 0x12e   : > { %12859 = vmatmul.mubr.msk.bf16.gmra.mxu0 %vm1344_vm9, %v14903_v19  ;;  %v3223_v8 = vrot.slane %v13823_v11, 5 }
 0x12f   : > { %12862 = vmatprep.mubr.msk.bf16.mxu0 %vm1344_vm9, %v14934_v35  ;;  %v2695_v9 = vor.u32 %v2694_v26, %v2690_v32  ;;  %v3217_v23 = vsel %vm15001_vm15, %v3215_v42, %v3216_v46  ;;  %v3237_v42 = vrot.slane %v13826_v14, 5  ;;  %v3258_v14 = vrot.slane %v14759_v10, 5 }
 0x130   : > { %12885 = vmatmul.mubr.msk.bf16.gmra.mxu1 %vm1344_vm9, %v14815_v36  ;;  %v2681_v36 = vrot.slane %v2679_v18, 4  ;;  %v11551_v39 = vcombine.low %v3214_v6, %v3217_v23  ;;  %v11536_v18 = vrot.slane %v3143_v62, 9  ;;  %v13828_v62 = vld [vmem:[#allocation2 + $0x40] sm:$0xf] }
 0x131   : > { %12888 = vmatprep.mubr.msk.bf16.mxu1 %vm1344_vm9, %v14853_v33  ;;  %v2696_v45 = vrot.slane %v2695_v9, 4 }
 0x132   : > { %v2685_v33 = vor.u32 %v2684_v41, %v2681_v36  ;;  %v2930_v41 = vshll.u32 %v15138_v59, 16 }
 0x133   : > { %v2701_v27 = vsel %vm14596_vm12, %v2696_v45, %v2700_v12  ;;  %v11538_v12 = vrot.slane %v3145_v49, 9  ;;  %v3148_v49 = vld [vmem:[#allocation2 + $0x48] sm:$0xe] }
 0x134   : > { %v2686_v60 = vrot.slane %v2685_v33, 4  ;;  %v13824_v33 = vld [vmem:[#allocation2 + $0x28] sm:$0xf]  ;;  %v2932_v17 = vrot.slane %v2930_v41, 5 }
 0x135   : > { %v3234_v9 = vrot.slane %v13824_v33, 5  ;;  %v13830_v33 = vld [vmem:[#allocation2 + $0x44] sm:$0x1] }
 0x136   : > { %12863 = vmatmul.mubr.msk.bf16.gmra.mxu0 %vm1344_vm9, %v14955_v7  ;;  %v2691_v48 = vsel %vm14596_vm12, %v2686_v60, %v2690_v32  ;;  %v13825_v60 = vld [vmem:[#allocation2 + $0x34] sm:$0xf] }
 0x137   : > { %12866 = vmatprep.mubr.msk.bf16.mxu0 %vm1344_vm9, %v14961_v13  ;;  %v11499_v4 = vcombine.low %v2691_v48, %v2701_v27  ;;  %v3241_v45 = vrot.slane %v13825_v60, 5  ;;  %v11539_v48 = vrot.slane %v3146_v24, 9 }
 0x138   : > { %12889 = vmatmul.mubr.msk.bf16.gmra.mxu1 %vm1344_vm9, %v14880_v54  ;;  %v15118_v54 = vld [vmem:[#allocation2 + $0xd0] sm:$0xf] }
 0x139   : > { %12892 = vmatprep.mubr.msk.bf16.mxu1 %vm1344_vm9, %v14903_v19  ;;  %v2911_v19 = vshrl.u32 %v1990_v28, 16  ;;  %v2920_v52 = vshll.u32 %v15118_v54, 16  ;;  %v2924_v51 = vshrl.u32 %v15118_v54, 16  ;;  %v3243_v27 = vrot.slane %v3241_v45, 4 }
 0x13a   : > { %v3242_v11 = vsel %vm15001_vm15, %v11539_v48, %v3241_v45  ;;  %v3149_v48 = vld [vmem:[#allocation2 + $0x54] sm:$0xe] }
 0x13b   : > { %v2913_v55 = vrot.slane %v2911_v19, 4  ;;  %v2922_v20 = vrot.slane %v2920_v52, 5  ;;  %v2926_v15 = vrot.slane %v2924_v51, 4 }
 0x13d   : > { %v2927_v36 = vor.u32 %v2926_v15, %v2922_v20  ;;  %v3147_v15 = vld [vmem:[#allocation2 + $0x3c] sm:$0xe] }
 0x13e   : > { %12867 = vmatmul.mubr.msk.bf16.gmra.mxu0 %vm1344_vm9, %v14990_v31 }
 0x13f   : > { %12870 = vmatprep.mubr.msk.bf16.mxu0 %vm1344_vm9, %v15009_v25  ;;  %v2928_v47 = vrot.slane %v2927_v36, 4 }
 0x140   : > { %12893 = vmatmul.mubr.msk.bf16.gmra.mxu1 %vm1344_vm9, %v14934_v35  ;;  %v13822_v35 = vld [vmem:[#allocation2 + $0x10] sm:$0xf] }
 0x141   : > { %12896 = vmatprep.mubr.msk.bf16.mxu1 %vm1344_vm9, %v14955_v7  ;;  %v3220_v5 = vrot.slane %v13822_v35, 5  ;;  %v2916_v7 = vrot.slane %v2914_v40, 5  ;;  %v2933_v40 = vsel %vm14596_vm12, %v2928_v47, %v2932_v17  ;;  %v13827_v35 = vld [vmem:[#allocation2 + $0x38] sm:$0x1] }
 0x143   : > { %v3222_v44 = vrot.slane %v3220_v5, 4  ;;  %v2917_v29 = vor.u32 %v2916_v7, %v2913_v55  ;;  %v3221_v32 = vsel %vm15001_vm15, %v11536_v18, %v3220_v5  ;;  %v3244_v5 = vrot.slane %v13827_v35, 5 }
 0x144   : > { %v3248_v55 = vrot.slane %v13828_v62, 5 }
 0x145   : > { %v3224_v26 = vsel %vm15001_vm15, %v3222_v44, %v3223_v8  ;;  %v3245_v8 = vsel %vm15001_vm15, %v3243_v27, %v3244_v5 }
 0x146   : > { %12871 = vmatmul.mubr.msk.bf16.gmra.mxu0 %vm1344_vm9, %v11499_v4  ;;  %v11552_v28 = vcombine.low %v3221_v32, %v3224_v26  ;;  %v11540_v32 = vrot.slane %v3147_v15, 9  ;;  %v3250_v26 = vrot.slane %v3248_v55, 4  ;;  %v3265_v15 = vrot.slane %v14784_v61, 5 }
 0x147   : > { %12910 = vmatprep.mubr.msk.bf16.mxu0 %vm1344_vm9, %v11551_v39 }
 0x148   : > { %12897 = vmatmul.mubr.msk.bf16.gmra.mxu1 %vm1344_vm9, %v14961_v13  ;;  %v2918_v13 = vrot.slane %v2917_v29, 4  ;;  %v13829_v29 = vld [vmem:[#allocation2 + $0x4c] sm:$0xf]  ;;  %v3249_v24 = vsel %vm15001_vm15, %v11540_v32, %v3248_v55 }
 0x149   : > { %12900 = vmatprep.mubr.msk.bf16.mxu1 %vm1344_vm9, %v14990_v31  ;;  %v3236_v31 = vrot.slane %v3234_v9, 4  ;;  %v3255_v36 = vrot.slane %v13829_v29, 5 }
 0x14a   : > { %v12742_v21 = vpop.f32.mrf.mxu1  ;;  %v2923_v19 = vsel %vm14596_vm12, %v2918_v13, %v2922_v20 }
 0x14b   : > { %v3238_v23 = vsel %vm15001_vm15, %v3236_v31, %v3237_v42  ;;  %v11517_v39 = vcombine.low %v2923_v19, %v2933_v40  ;;  %v3257_v31 = vrot.slane %v3255_v36, 4  ;;  %v13831_v19 = vld [vmem:[#allocation2 + $0x58] sm:$0xf] }
 0x14c   : > { %v1602_v46 = vpop.f32.mrf.mxu1  ;;  %v3262_v40 = vrot.slane %v13831_v19, 5 }
 0x14d   : > { %v12708_v52 = vpop.f32.mrf.mxu0 }
 0x14e   : > { %12911 = vmatmul.mubr.msk.bf16.vlgmr.msra.gmra.mxu0 %vm1344_vm9, %v11552_v28  ;;  %v12743_v51 = vpop.f32.mrf.mxu1  ;;  %v15159_v6 = vadd.f32 %v12742_v21, %v12708_v52  ;;  %v15180_v21 = vcombine.low %v3242_v11, %v3245_v8 }
 0x14f   : > { %12977 = vmatpush3.bf16.msra.mxu0 %v14981_v57  ;;  %v1427_v7 = vpop.f32.mrf.mxu0  ;;  %12914 = vmatprep.mubr.msk.bf16.mxu0 %vm1344_vm9, %v15017_v56 }
 0x150   : > { %12901 = vmatmul.mubr.msk.bf16.gmra.mxu1 %vm1344_vm9, %v15009_v25  ;;  %v3235_v25 = vsel %vm15001_vm15, %v11538_v12, %v3234_v9  ;;  %v1605_v20 = vpop.f32.mrf.mxu1  ;;  %v3251_v9 = vrot.slane %v13830_v33, 5  ;;  %v11541_v12 = vrot.slane %v3148_v49, 9  ;;  %v3272_v33 = vrot.slane %v14817_v16, 5 }
 0x151   : > { %12904 = vmatprep.mubr.msk.bf16.mxu1 %vm1344_vm9, %v11499_v4  ;;  %v15168_v4 = vadd.f32 %v1602_v46, %v1427_v7  ;;  %v12709_v18 = vpop.f32.mrf.mxu0  ;;  %v15170_v57 = vcombine.low %v3235_v25, %v3238_v23  ;;  %v3259_v25 = vsel %vm15001_vm15, %v3257_v31, %v3258_v14  ;;  %v13832_v23 = vld [vmem:[#allocation2 + $0x64] sm:$0xf]  ;;  %v11542_v7 = vrot.slane %v3149_v48, 9 }
 0x152   : > { %v12746_v44 = vpop.f32.mrf.mxu1  ;;  %v15176_v41 = vadd.f32 %v12743_v51, %v12709_v18  ;;  %v3252_v46 = vsel %vm15001_vm15, %v3250_v26, %v3251_v9  ;;  %v3256_v5 = vsel %vm15001_vm15, %v11541_v12, %v3255_v36  ;;  %v3269_v62 = vrot.slane %v13832_v23, 5 }
 0x153   : > { %v1430_v13 = vpop.f32.mrf.mxu0  ;;  %v15197_v35 = vcombine.low %v3249_v24, %v3252_v46  ;;  %v15208_v8 = vcombine.low %v3256_v5, %v3259_v25  ;;  %v3263_v9 = vsel %vm15001_vm15, %v11542_v7, %v3262_v40 }
 0x154   : > { %v1618_v47 = vpop.f32.mrf.mxu1  ;;  %v15178_v17 = vadd.f32 %v1605_v20, %v1430_v13  ;;  %v3264_v20 = vrot.slane %v3262_v40, 4  ;;  %v3271_v26 = vrot.slane %v3269_v62, 4 }
 0x155   : > { %v12712_v60 = vpop.f32.mrf.mxu0 }
 0x156   : > { %12915 = vmatmul.mubr.msk.bf16.gmra.mxu0 %vm1344_vm9, %v15170_v57  ;;  %v12747_v45 = vpop.f32.mrf.mxu1  ;;  %v15187_v42 = vadd.f32 %v12746_v44, %v12712_v60  ;;  %v3266_v49 = vsel %vm15001_vm15, %v3264_v20, %v3265_v15  ;;  %v3273_v14 = vsel %vm15001_vm15, %v3271_v26, %v3272_v33 }
 0x157   : > { %12918 = vmatprep.mubr.msk.bf16.mxu0 %vm1344_vm9, %v15180_v21  ;;  %v1443_v52 = vpop.f32.mrf.mxu0  ;;  %v15227_v12 = vcombine.low %v3263_v9, %v3266_v49 }
 0x158   : > { %12905 = vmatmul.mubr.msk.bf16.gmra.mxu1 %vm1344_vm9, %v11517_v39  ;;  %v1621_v51 = vpop.f32.mrf.mxu1  ;;  %v15195_v27 = vadd.f32 %v1618_v47, %v1443_v52  ;;  %v3150_v39 = vld [vmem:[#allocation2 + $0x60] sm:$0xe] }
 0x159   : > { %12944 = vmatprep.mubr.msk.bf16.mxu1 %vm1344_vm9, %v11552_v28  ;;  %v12713_v10 = vpop.f32.mrf.mxu0  ;;  %v11543_v32 = vrot.slane %v3150_v39, 9 }
 0x15a   : > { %v12750_v28 = vpop.f32.mrf.mxu1  ;;  %v15203_v55 = vadd.f32 %v12747_v45, %v12713_v10 }
 0x15b   : > { %v1446_v18 = vpop.f32.mrf.mxu0  ;;  %v3270_v31 = vsel %vm15001_vm15, %v11543_v32, %v3269_v62 }
 0x15c   : > { %v1634_v44 = vpop.f32.mrf.mxu1  ;;  %v15206_v11 = vadd.f32 %v1621_v51, %v1446_v18  ;;  %v15237_v52 = vcombine.low %v3270_v31, %v3273_v14 }
 0x15d   : > { %v12716_v29 = vpop.f32.mrf.mxu0 }
 0x15e   : > { %12919 = vmatmul.mubr.msk.bf16.gmra.mxu0 %vm1344_vm9, %v15197_v35  ;;  %v12751_v36 = vpop.f32.mrf.mxu1  ;;  %v15217_v61 = vadd.f32 %v12750_v28, %v12716_v29 }
 0x15f   : > { %12922 = vmatprep.mubr.msk.bf16.mxu0 %vm1344_vm9, %v15208_v8  ;;  %v1459_v13 = vpop.f32.mrf.mxu0 }
 0x160   : > { %12945 = vmatmul.mubr.msk.bf16.vlgmr.msra.gmra.mxu1 %vm1344_vm9, %v15017_v56  ;;  %v1637_v47 = vpop.f32.mrf.mxu1  ;;  %v15225_v60 = vadd.f32 %v1634_v44, %v1459_v13 }
 0x161   : > { %12948 = vmatprep.mubr.msk.bf16.mxu1 %vm1344_vm9, %v15170_v57  ;;  %v12717_v45 = vpop.f32.mrf.mxu0 }
 0x162   : > { %v12754_v16 = vpop.f32.mrf.mxu1  ;;  %v15233_v24 = vadd.f32 %v12751_v36, %v12717_v45 }
 0x163   : > { %v1462_v46 = vpop.f32.mrf.mxu0 }
 0x164   : > { %v1650_v19 = vpop.f32.mrf.mxu1  ;;  %v15235_v40 = vadd.f32 %v1637_v47, %v1462_v46 }
 0x165   : > { %v12720_v51 = vpop.f32.mrf.mxu0 }
 0x166   : > { %12923 = vmatmul.mubr.msk.bf16.gmra.mxu0 %vm1344_vm9, %v15227_v12  ;;  %v12755_v48 = vpop.f32.mrf.mxu1  ;;  %v15245_v10 = vadd.f32 %v12754_v16, %v12720_v51 }
 0x167   : > { %12926 = vmatprep.mubr.msk.bf16.mxu0 %vm1344_vm9, %v15237_v52  ;;  %v1475_v28 = vpop.f32.mrf.mxu0 }
 0x168   : > { %12949 = vmatmul.mubr.msk.bf16.gmra.mxu1 %vm1344_vm9, %v15180_v21  ;;  %v1653_v5 = vpop.f32.mrf.mxu1  ;;  %v15249_v25 = vadd.f32 %v1650_v19, %v1475_v28 }
 0x169   : > { %12952 = vmatprep.mubr.msk.bf16.mxu1 %vm1344_vm9, %v15197_v35  ;;  %v12721_v23 = vpop.f32.mrf.mxu0 }
 0x16a   : > { %v12758_v62 = vpop.f32.mrf.mxu1  ;;  %v15251_v7 = vadd.f32 %v12755_v48, %v12721_v23 }
 0x16b   : > { %v1478_v20 = vpop.f32.mrf.mxu0 }
 0x16c   : > { %v1666_v15 = vpop.f32.mrf.mxu1  ;;  %v15253_v39 = vadd.f32 %v1653_v5, %v1478_v20 }
 0x16d   : > { %v12724_v18 = vpop.f32.mrf.mxu0 }
 0x16e   : > { %12927 = vmatmul.mubr.msk.bf16.gmra.mxu0 %vm1344_vm9, %v15049_v50  ;;  %v12759_v44 = vpop.f32.mrf.mxu1  ;;  %v15261_v29 = vadd.f32 %v12758_v62, %v12724_v18 }
 0x16f   : > { %12930 = vmatprep.mubr.msk.bf16.mxu0 %vm1344_vm9, %v15058_v0  ;;  %v1491_v36 = vpop.f32.mrf.mxu0 }
 0x170   : > { %12953 = vmatmul.mubr.msk.bf16.gmra.mxu1 %vm1344_vm9, %v15208_v8  ;;  %v15265_v32 = vpop.f32.mrf.mxu1  ;;  %v15267_v26 = vadd.f32 %v1666_v15, %v1491_v36 }
 0x171   : > { %12956 = vmatprep.mubr.msk.bf16.mxu1 %vm1344_vm9, %v15227_v12  ;;  %v12725_v33 = vpop.f32.mrf.mxu0 }
 0x172   : > { %v12762_v9 = vpop.f32.mrf.mxu1  ;;  %v15269_v49 = vadd.f32 %v12759_v44, %v12725_v33 }
 0x173   : > { %v15271_v13 = vpop.f32.mrf.mxu0 }
 0x174   : > { %v1682_v47 = vpop.f32.mrf.mxu1 }
 0x176   : > { %v12728_v45 = vpop.f32.mrf.mxu0  ;;  %12931 = vmatmul.mubr.msk.bf16.gmra.mxu0 %vm1344_vm9, %v15074_v3  ;;  %v12763_v16 = vpop.f32.mrf.mxu1 }
 0x177   : > { %v15279_v31 = vadd.f32 %v12762_v9, %v12728_v45  ;;  %12934 = vmatprep.mubr.msk.bf16.mxu0 %vm1344_vm9, %v15080_v58 }
 0x178   : > { %12957 = vmatmul.mubr.msk.bf16.gmra.mxu1 %vm1344_vm9, %v15237_v52  ;;  %v1507_v14 = vpop.f32.mrf.mxu0  ;;  %v15283_v46 = vpop.f32.mrf.mxu1 }
 0x179   : > { %12960 = vmatprep.mubr.msk.bf16.mxu1 %vm1344_vm9, %v15049_v50  ;;  %v15285_v19 = vadd.f32 %v1682_v47, %v1507_v14 }
 0x17a   : > { %v12729_v51 = vpop.f32.mrf.mxu0  ;;  %v12766_v48 = vpop.f32.mrf.mxu1 }
 0x17b   : > { %v15287_v28 = vadd.f32 %v12763_v16, %v12729_v51 }
 0x17c   : > { %v15289_v5 = vpop.f32.mrf.mxu0  ;;  %v1698_v23 = vpop.f32.mrf.mxu1 }
 0x17e   : > { %v12732_v62 = vpop.f32.mrf.mxu0  ;;  %12935 = vmatmul.mubr.msk.bf16.gmra.mxu0 %vm1344_vm9, %v15082_v30  ;;  %v12767_v20 = vpop.f32.mrf.mxu1 }
 0x17f   : > { %v15297_v15 = vadd.f32 %v12766_v48, %v12732_v62  ;;  %12938 = vmatprep.mubr.msk.bf16.mxu0 %vm1344_vm9, %v15090_v37 }
 0x180   : > { %12961 = vmatmul.mubr.msk.bf16.gmra.mxu1 %vm1344_vm9, %v15058_v0  ;;  %v1523_v18 = vpop.f32.mrf.mxu0  ;;  %v15301_v44 = vpop.f32.mrf.mxu1 }
 0x181   : > { %12964 = vmatprep.mubr.msk.bf16.mxu1 %vm1344_vm9, %v15074_v3  ;;  %19299 = vst [vmem:[#allocation24_spill] sm:$0xff] %v15301_v44  ;;  %v15303_v36 = vadd.f32 %v1698_v23, %v1523_v18 }
 0x182   : > { %v12733_v33 = vpop.f32.mrf.mxu0  ;;  %v12770_v9 = vpop.f32.mrf.mxu1 }
 0x183   : > { %v15305_v47 = vadd.f32 %v12767_v20, %v12733_v33 }
 0x184   : > { %v15307_v45 = vpop.f32.mrf.mxu0  ;;  %v1714_v16 = vpop.f32.mrf.mxu1 }
 0x185   : > { %19300 = vst [vmem:[#allocation25_spill] sm:$0xff] %v15307_v45 }
 0x186   : > { %v12736_v14 = vpop.f32.mrf.mxu0  ;;  %12939 = vmatmul.mubr.msk.bf16.gmra.mxu0 %vm1344_vm9, %v15100_v53  ;;  %v12771_v51 = vpop.f32.mrf.mxu1 }
 0x187   : > { %v15315_v48 = vadd.f32 %v12770_v9, %v12736_v14  ;;  %12978 = vmatprep.mubr.msk.bf16.mxu0 %vm1344_vm9, %v15017_v56 }
 0x188   : > { %12965 = vmatmul.mubr.msk.bf16.gmra.mxu1 %vm1344_vm9, %v15080_v58  ;;  %v1539_v23 = vpop.f32.mrf.mxu0  ;;  %v15319_v62 = vpop.f32.mrf.mxu1 }
 0x189   : > { %12968 = vmatprep.mubr.msk.bf16.mxu1 %vm1344_vm9, %v15082_v30  ;;  %19301 = vst [vmem:[#allocation26_spill] sm:$0xff] %v15319_v62  ;;  %v15321_v20 = vadd.f32 %v1714_v16, %v1539_v23 }
 0x18a   : > { %v12737_v18 = vpop.f32.mrf.mxu0  ;;  %v12810_v33 = vpop.f32.mrf.mxu1 }
 0x18b   : > { %v15323_v63 = vadd.f32 %v12771_v51, %v12737_v18 }
 0x18c   : > { %v15325_v22 = vpop.f32.mrf.mxu0  ;;  %v2519_v9 = vpop.f32.mrf.mxu1 }
 0x18d   : > { %19302 = vst [vmem:[#allocation27_spill] sm:$0xff] %v15325_v22 }
 0x18e   : > { %v12776_v34 = vpop.f32.mrf.mxu0  ;;  %12979 = vmatmul.mubr.msk.bf16.vlgmr.msra.gmra.mxu0 %vm1344_vm9, %v15170_v57  ;;  %v12811_v18 = vpop.f32.mrf.mxu1 }
 0x18f   : > { %v1909_v56 = vadd.f32 %v12776_v34, %v15159_v6  ;;  %12982 = vmatprep.mubr.msk.bf16.mxu0 %vm1344_vm9, %v15180_v21 }
 0x190   : > { %12969 = vmatmul.mubr.msk.bf16.gmra.mxu1 %vm1344_vm9, %v15090_v37  ;;  %v1780_v16 = vpop.f32.mrf.mxu0 }
 0x191   : > { %12972 = vmatprep.mubr.msk.bf16.mxu1 %vm1344_vm9, %v15100_v53  ;;  %v1907_v14 = vadd.f32 %v1780_v16, %v15168_v4  ;;  %v15337_v51 = vadd.f32 %v12810_v33, %v1909_v56  ;;  %v15354_v4 = vpop.f32.mrf.mxu1 }
 0x192   : > { %v12777_v23 = vpop.f32.mrf.mxu0 }
 0x193   : > { %v1910_v62 = vadd.f32 %v12777_v23, %v15176_v41  ;;  %v15340_v22 = vadd.f32 %v2519_v9, %v1907_v14 }
 0x194   : > { %v1783_v57 = vpop.f32.mrf.mxu0 }
 0x195   : > { %v15343_v44 = vadd.f32 %v1783_v57, %v15178_v17  ;;  %v15345_v45 = vadd.f32 %v12811_v18, %v1910_v62 }
 0x196   : > { %v12780_v34 = vpop.f32.mrf.mxu0  ;;  %12983 = vmatmul.mubr.msk.bf16.gmra.mxu0 %vm1344_vm9, %v15197_v35 }
 0x197   : > { %v1913_v6 = vadd.f32 %v12780_v34, %v15187_v42  ;;  %12986 = vmatprep.mubr.msk.bf16.mxu0 %vm1344_vm9, %v15208_v8 }
 0x198   : > { %12973 = vmatmul.mubr.msk.bf16.gmra.mxu1 %vm1344_vm9, %v15108_v43  ;;  %v1796_v41 = vpop.f32.mrf.mxu0 }
 0x199   : > { %v1911_v17 = vadd.f32 %v1796_v41, %v15195_v27 }
 0x19a   : > { %v12781_v21 = vpop.f32.mrf.mxu0 }
 0x19b   : > { %v1914_v62 = vadd.f32 %v12781_v21, %v15203_v55 }
 0x19c   : > { %v1799_v9 = vpop.f32.mrf.mxu0 }
 0x19d   : > { %v15361_v16 = vadd.f32 %v1799_v9, %v15206_v11 }
 0x19e   : > { %v12814_v33 = vpop.f32.mrf.mxu1  ;;  %v12784_v42 = vpop.f32.mrf.mxu0  ;;  %12987 = vmatmul.mubr.msk.bf16.gmra.mxu0 %vm1344_vm9, %v15227_v12 }
 0x19f   : > { %v15358_v56 = vadd.f32 %v12814_v33, %v1913_v6  ;;  %v1917_v14 = vadd.f32 %v12784_v42, %v15217_v61  ;;  %12990 = vmatprep.mubr.msk.bf16.mxu0 %vm1344_vm9, %v15237_v52 }
 0x1a0   : > { %v2535_v35 = vpop.f32.mrf.mxu1  ;;  %v1812_v55 = vpop.f32.mrf.mxu0 }
 0x1a1   : > { %v15365_v8 = vadd.f32 %v2535_v35, %v1911_v17  ;;  %v1915_v18 = vadd.f32 %v1812_v55, %v15225_v60 }
 0x1a2   : > { %v12815_v27 = vpop.f32.mrf.mxu1  ;;  %v12785_v57 = vpop.f32.mrf.mxu0 }
 0x1a3   : > { %v15370_v23 = vadd.f32 %v12815_v27, %v1914_v62  ;;  %v1918_v34 = vadd.f32 %v12785_v57, %v15233_v24 }
 0x1a4   : > { %v15373_v11 = vpop.f32.mrf.mxu1  ;;  %v1815_v12 = vpop.f32.mrf.mxu0 }
 0x1a5   : > { %v15379_v61 = vadd.f32 %v1815_v12, %v15235_v40 }
 0x1a6   : > { %v12818_v6 = vpop.f32.mrf.mxu1  ;;  %v12788_v52 = vpop.f32.mrf.mxu0  ;;  %12991 = vmatmul.mubr.msk.bf16.gmra.mxu0 %vm1344_vm9, %v15049_v50 }
 0x1a7   : > { %v15376_v41 = vadd.f32 %v12818_v6, %v1917_v14  ;;  %v1921_v60 = vadd.f32 %v12788_v52, %v15245_v10  ;;  %12994 = vmatprep.mubr.msk.bf16.mxu0 %vm1344_vm9, %v15058_v0 }
 0x1a8   : > { %v2551_v17 = vpop.f32.mrf.mxu1  ;;  %v1828_v62 = vpop.f32.mrf.mxu0 }
 0x1a9   : > { %v15383_v21 = vadd.f32 %v2551_v17, %v1915_v18  ;;  %v1919_v9 = vadd.f32 %v1828_v62, %v15249_v25 }
 0x1aa   : > { %v12819_v24 = vpop.f32.mrf.mxu1  ;;  %v12789_v35 = vpop.f32.mrf.mxu0 }
 0x1ab   : > { %v15388_v33 = vadd.f32 %v12819_v24, %v1918_v34  ;;  %v1922_v42 = vadd.f32 %v12789_v35, %v15251_v7  ;;  %v3159_v24 = vld [vmem:[#allocation2 + $0xcc] sm:$0xe] }
 0x1ac   : > { %v15391_v40 = vpop.f32.mrf.mxu1  ;;  %v1831_v14 = vpop.f32.mrf.mxu0 }
 0x1ad   : > { %v15395_v27 = vadd.f32 %v1831_v14, %v15253_v39 }
 0x1ae   : > { %v12792_v55 = vpop.f32.mrf.mxu0  ;;  %12995 = vmatmul.mubr.msk.bf16.gmra.mxu0 %vm1344_vm9, %v15074_v3 }
 0x1af   : > { %v1925_v18 = vadd.f32 %v12792_v55, %v15261_v29  ;;  %12998 = vmatprep.mubr.msk.bf16.mxu0 %vm1344_vm9, %v15080_v58  ;;  %v3844_v29 = vrot.slane %v15118_v54, 5 }
 0x1b0   : > { %v12822_v50 = vpop.f32.mrf.mxu1  ;;  %v1844_v7 = vpop.f32.mrf.mxu0 }
 0x1b1   : > { %v15397_v10 = vadd.f32 %v12822_v50, %v1921_v60  ;;  %v1923_v34 = vadd.f32 %v1844_v7, %v15267_v26  ;;  %v3846_v50 = vrot.slane %v3844_v29, 4 }
 0x1b2   : > { %v2567_v0 = vpop.f32.mrf.mxu1  ;;  %v12793_v6 = vpop.f32.mrf.mxu0 }
 0x1b3   : > { %v15404_v25 = vadd.f32 %v2567_v0, %v1919_v9  ;;  %v1926_v12 = vadd.f32 %v12793_v6, %v15269_v49  ;;  %v3847_v9 = vrot.slane %v15138_v59, 5  ;;  %v13765_v0 = vld [vmem:[#allocation10 + $0x18] sm:$0xff]  }
 0x1b4   : > { %v12823_v57 = vpop.f32.mrf.mxu1  ;;  %v15412_v3 = vpop.f32.mrf.mxu0  ;;  %13010 = vmatprep.subr.bf16.mxu1 %v13765_v0 }
 0x1b5   : > { %v15407_v39 = vadd.f32 %v12823_v57, %v1922_v42  ;;  %13011 = vmatpush3.bf16.msra.mxu1 %v13765_v0 }
 0x1b6   : > { %v15410_v17 = vpop.f32.mrf.mxu1  ;;  %v12796_v52 = vpop.f32.mrf.mxu0  ;;  %12999 = vmatmul.mubr.msk.bf16.gmra.mxu0 %vm1344_vm9, %v15082_v30 }
 0x1b7   : > { %v1929_v58 = vadd.f32 %v12796_v52, %v15279_v31  ;;  %13002 = vmatprep.mubr.msk.bf16.mxu0 %vm1344_vm9, %v15090_v37  ;;  %v11603_v31 = vrot.slane %v3159_v24, 9 }
 0x1b8   : > { %v1860_v60 = vpop.f32.mrf.mxu0 }
 0x1b9   : > { %v1927_v49 = vadd.f32 %v1860_v60, %v15285_v19  ;;  %v3845_v19 = vsel %vm15001_vm15, %v11603_v31, %v3844_v29 }
 0x1ba   : > { %v12826_v26 = vpop.f32.mrf.mxu1  ;;  %v12797_v42 = vpop.f32.mrf.mxu0 }
 0x1bb   : > { %v15420_v62 = vadd.f32 %v12826_v26, %v1925_v18  ;;  %v1930_v30 = vadd.f32 %v12797_v42, %v15287_v28  ;;  %v3848_v28 = vsel %vm15001_vm15, %v3846_v50, %v3847_v9 }
 0x1bc   : > { %v2583_v35 = vpop.f32.mrf.mxu1  ;;  %v15427_v55 = vpop.f32.mrf.mxu0  ;;  %v11604_v52 = vcombine.low %v3845_v19, %v3848_v28 }
 0x1bd   : > { %v15424_v14 = vadd.f32 %v2583_v35, %v1923_v34 }
 0x1be   : > { %v12827_v37 = vpop.f32.mrf.mxu1  ;;  %v12800_v7 = vpop.f32.mrf.mxu0  ;;  %13003 = vmatmul.mubr.msk.bf16.gmra.mxu0 %vm1344_vm9, %v15100_v53 }
 0x1bf   : > { %v15429_v54 = vadd.f32 %v12827_v37, %v1926_v12  ;;  %v1933_v59 = vadd.f32 %v12800_v7, %v15297_v15  ;;  %13006 = vmatprep.mubr.msk.bf16.mxu0 %vm1344_vm9, %v15108_v43 }
 0x1c0   : > { %v15431_v18 = vpop.f32.mrf.mxu1  ;;  %v1876_v57 = vpop.f32.mrf.mxu0 }
 0x1c1   : > { %v1931_v34 = vadd.f32 %v1876_v57, %v15303_v36 }
 0x1c2   : > { %v12801_v12 = vpop.f32.mrf.mxu0 }
 0x1c3   : > { %v1934_v15 = vadd.f32 %v12801_v12, %v15305_v47 }
 0x1c4   : > { %v15446_v43 = vpop.f32.mrf.mxu0 }
 0x1c5   : > { %v12830_v6 = vpop.f32.mrf.mxu1 }
 0x1c6   : > { %v15443_v53 = vadd.f32 %v12830_v6, %v1929_v58  ;;  %v12804_v24 = vpop.f32.mrf.mxu0  ;;  %13007 = vmatmul.mubr.msk.bf16.gmra.mxu0 %vm1344_vm9, %v11604_v52 }
 0x1c7   : > { %v2599_v26 = vpop.f32.mrf.mxu1  ;;  %v1937_v36 = vadd.f32 %v12804_v24, %v15315_v48 }
 0x1c8   : > { %v15448_v60 = vadd.f32 %v2599_v26, %v1927_v49  ;;  %v1892_v42 = vpop.f32.mrf.mxu0 }
 0x1c9   : > { %v12831_v29 = vpop.f32.mrf.mxu1  ;;  %v1935_v58 = vadd.f32 %v1892_v42, %v15321_v20 }
 0x1ca   : > { %v15451_v9 = vadd.f32 %v12831_v29, %v1930_v30  ;;  %v12805_v47 = vpop.f32.mrf.mxu0 }
 0x1cb   : > { %v15454_v35 = vpop.f32.mrf.mxu1  ;;  %v1938_v49 = vadd.f32 %v12805_v47, %v15323_v63 }
 0x1cc   : > { %v15460_v0 = vpop.f32.mrf.mxu0 }
 0x1cd   : > { %v12834_v31 = vpop.f32.mrf.mxu1 }
 0x1ce   : > { %v15457_v50 = vadd.f32 %v12834_v31, %v1933_v59  ;;  %v12844_v19 = vpop.f32.mrf.mxu0 }
 0x1cf   : > { %v2615_v37 = vpop.f32.mrf.mxu1  ;;  %v15467_v48 = vadd.f32 %v12844_v19, %v15337_v51 }
 0x1d0   : > { %v15462_v7 = vadd.f32 %v2615_v37, %v1931_v34  ;;  %v2751_v57 = vpop.f32.mrf.mxu0 }
 0x1d1   : > { %v12835_v30 = vpop.f32.mrf.mxu1  ;;  %v15470_v20 = vadd.f32 %v2751_v57, %v15340_v22  ;;  %v528_v57 = vld [vmem:[#allocation3 + $0xc] sm:$0x1] }
 0x1d2   : > { %v15464_v28 = vadd.f32 %v12835_v30, %v1934_v15  ;;  %v12845_v6 = vpop.f32.mrf.mxu0 }
 0x1d3   : > { %v15472_v59 = vpop.f32.mrf.mxu1  ;;  %v15475_v63 = vadd.f32 %v12845_v6, %v15345_v45 }
 0x1d4   : > { %v15477_v12 = vpop.f32.mrf.mxu0 }
 0x1d5   : > { %19303 = vst [vmem:[#allocation28_spill] sm:$0xff] %v15475_v63 }
 0x1d6   : > { %v12848_v52 = vpop.f32.mrf.mxu0 }
 0x1d7   : > { %v15482_v15 = vadd.f32 %v12848_v52, %v15358_v56 }
 0x1d8   : > { %v12838_v34 = vpop.f32.mrf.mxu1  ;;  %v2767_v29 = vpop.f32.mrf.mxu0 }
 0x1d9   : > { %v15479_v26 = vadd.f32 %v12838_v34, %v1937_v36  ;;  %19304 = vst [vmem:[#allocation29_spill] sm:$0xff] %v15482_v15  ;;  %v2882_v22 = vadd.f32 %v2767_v29, %v15365_v8  ;;  %v531_v36 = vld [vmem:[#allocation3 + $0x18] sm:$0x1]  ;;  %v585_v34 = vld [vmem:[#allocation3 + $0x20] sm:$0x1] }
 0x1da   : > { %v2631_v51 = vpop.f32.mrf.mxu1  ;;  %v12849_v31 = vpop.f32.mrf.mxu0 }
 0x1db   : > { %v15484_v24 = vadd.f32 %v2631_v51, %v1935_v58  ;;  %v2885_v45 = vadd.f32 %v12849_v31, %v15370_v23  ;;  %v532_v58 = vsel %vm14273_vm3, 0, %v531_v36  ;;  %v586_v51 = vsel %vm14279_vm5, 0, %v585_v34  ;;  %v582_v31 = vld [vmem:[#allocation3 + $0x14] sm:$0x1] }
 0x1dc   : > { %v12839_v42 = vpop.f32.mrf.mxu1  ;;  %v15492_v30 = vpop.f32.mrf.mxu0  ;;  %533 = vst [vmem:[#allocation3 + $0x18] sm:$0x1] %v532_v58  ;;  %587 = vst [vmem:[#allocation3 + $0x20] sm:$0x1] %v586_v51  ;;  %v583_v58 = vsel %vm14279_vm5, 0, %v582_v31 }
 0x1dd   : > { %v15487_v47 = vadd.f32 %v12839_v42, %v1938_v49  ;;  %v529_v49 = vsel %vm14273_vm3, 0, %v528_v57  ;;  %584 = vst [vmem:[#allocation3 + $0x14] sm:$0x1] %v583_v58  ;;  %v537_v57 = vld [vmem:[#allocation3 + $0x30] sm:$0x1] }
 0x1de   : > { %v15490_v37 = vpop.f32.mrf.mxu1  ;;  %v12852_v56 = vpop.f32.mrf.mxu0  ;;  %530 = vst [vmem:[#allocation3 + $0xc] sm:$0x1] %v529_v49 }
 0x1df   : > { %v2888_v8 = vadd.f32 %v12852_v56, %v15376_v41 }
 0x1e0   : > { %v15494_v19 = vpop.f32.mrf.mxu1  ;;  %v2783_v23 = vpop.f32.mrf.mxu0 }
 0x1e1   : > { %v2886_v52 = vadd.f32 %v2783_v23, %v15383_v21  ;;  %v538_v23 = vsel %vm14273_vm3, 0, %v537_v57 }
 0x1e2   : > { %v15501_v6 = vpop.f32.mrf.mxu1  ;;  %v12853_v42 = vpop.f32.mrf.mxu0  ;;  %539 = vst [vmem:[#allocation3 + $0x30] sm:$0x1] %v538_v23 }
 0x1e3   : > { %19305 = vst [vmem:[#allocation30_spill] sm:$0xff] %v15501_v6  ;;  %v2889_v41 = vadd.f32 %v12853_v42, %v15388_v33  ;;  %v534_v42 = vld [vmem:[#allocation3 + $0x24] sm:$0x1] }
 0x1e4   : > { %v15506_v29 = vpop.f32.mrf.mxu1  ;;  %v15511_v56 = vpop.f32.mrf.mxu0  ;;  %v535_v31 = vsel %vm14273_vm3, 0, %v534_v42  ;;  %v588_v42 = vld [vmem:[#allocation3 + $0x2c] sm:$0x1] }
 0x1e5   : > { %19306 = vst [vmem:[#allocation31_spill] sm:$0xff] %v15506_v29  ;;  %536 = vst [vmem:[#allocation3 + $0x24] sm:$0x1] %v535_v31  ;;  %v525_v31 = vld [vmem:[#allocation3] sm:$0x1] }
 0x1e6   : > { %v15509_v36 = vpop.f32.mrf.mxu1  ;;  %v12856_v49 = vpop.f32.mrf.mxu0 }
 0x1e7   : > { %19307 = vst [vmem:[#allocation32_spill] sm:$0xff] %v15509_v36  ;;  %v2892_v34 = vadd.f32 %v12856_v49, %v15397_v10  ;;  %v591_v49 = vld [vmem:[#allocation3 + $0x38] sm:$0x1] }
 0x1e8   : > { %v15515_v21 = vpop.f32.mrf.mxu1  ;;  %v2799_v51 = vpop.f32.mrf.mxu0 }
 0x1e9   : > { %19308 = vst [vmem:[#allocation33_spill] sm:$0xff] %v15515_v21  ;;  %v2890_v15 = vadd.f32 %v2799_v51, %v15404_v25 }
 0x1ea   : > { %v2999_v33 = vpop.f32.mrf.mxu1  ;;  %v12857_v36 = vpop.f32.mrf.mxu0 }
 0x1eb   : > { %v15520_v38 = vadd.f32 %v2999_v33, %v2882_v22  ;;  %v2893_v57 = vadd.f32 %v12857_v36, %v15407_v39  ;;  %v592_v22 = vsel %vm14279_vm5, 0, %v591_v49  ;;  %v589_v36 = vsel %vm14279_vm5, 0, %v588_v42  ;;  %v540_v42 = vld [vmem:[#allocation3 + $0x3c] sm:$0x1] }
 0x1ec   : > { %v12883_v58 = vpop.f32.mrf.mxu1  ;;  %v15530_v10 = vpop.f32.mrf.mxu0  ;;  %593 = vst [vmem:[#allocation3 + $0x38] sm:$0x1] %v592_v22  ;;  %v526_v49 = vsel %vm14273_vm3, 0, %v525_v31  ;;  %590 = vst [vmem:[#allocation3 + $0x2c] sm:$0x1] %v589_v36 }
 0x1ed   : > { %v15525_v21 = vadd.f32 %v12883_v58, %v2885_v45  ;;  %v543_v45 = vld [vmem:[#allocation3 + $0x48] sm:$0x1]  ;;  %527 = vst [vmem:[#allocation3] sm:$0x1] %v526_v49  ;;  %v597_v31 = vld [vmem:[#allocation3 + $0x50] sm:$0x1] }
 0x1ee   : > { %v15528_v29 = vpop.f32.mrf.mxu1  ;;  %v12860_v25 = vpop.f32.mrf.mxu0  ;;  %v594_v36 = vld [vmem:[#allocation3 + $0x44] sm:$0x1] }
 0x1ef   : > { %19309 = vst [vmem:[#allocation34_spill] sm:$0xff] %v15528_v29  ;;  %v2896_v51 = vadd.f32 %v12860_v25, %v15420_v62  ;;  %v544_v29 = vsel %vm14273_vm3, 0, %v543_v45 }
 0x1f0   : > { %v12886_v23 = vpop.f32.mrf.mxu1  ;;  %v2815_v39 = vpop.f32.mrf.mxu0  ;;  %545 = vst [vmem:[#allocation3 + $0x48] sm:$0x1] %v544_v29  ;;  %v13766_v29 = vld [vmem:[#allocation10] sm:$0xff]  }
 0x1f1   : > { %v15534_v33 = vadd.f32 %v12886_v23, %v2888_v8  ;;  %v2894_v8 = vadd.f32 %v2815_v39, %v15424_v14  ;;  %v598_v14 = vsel %vm14279_vm5, 0, %v597_v31  ;;  %13044 = vmatprep.subr.bf16.mxu0 %v13766_v29 }
 0x1f2   : > { %v3015_v58 = vpop.f32.mrf.mxu1  ;;  %v12861_v22 = vpop.f32.mrf.mxu0  ;;  %599 = vst [vmem:[#allocation3 + $0x50] sm:$0x1] %v598_v14  ;;  %13045 = vmatpush3.bf16.msra.mxu0 %v13766_v29  ;;  %v546_v29 = vld [vmem:[#allocation3 + $0x54] sm:$0x1] }
 0x1f3   : > { %v15543_v63 = vadd.f32 %v3015_v58, %v2886_v52  ;;  %v2897_v25 = vadd.f32 %v12861_v22, %v15429_v54  ;;  %v541_v52 = vsel %vm14273_vm3, 0, %v540_v42  ;;  %v595_v22 = vsel %vm14279_vm5, 0, %v594_v36 }
 0x1f4   : > { %v12887_v62 = vpop.f32.mrf.mxu1  ;;  %v15551_v45 = vpop.f32.mrf.mxu0  ;;  %542 = vst [vmem:[#allocation3 + $0x3c] sm:$0x1] %v541_v52  ;;  %v13767_v42 = vld [vmem:[#allocation3] sm:$0xff]   ;;  %596 = vst [vmem:[#allocation3 + $0x44] sm:$0x1] %v595_v22 }
 0x1f5   : > { %v15546_v23 = vadd.f32 %v12887_v62, %v2889_v41  ;;  %19311 = vst [vmem:[#allocation36_spill] sm:$0xff] %v15551_v45  ;;  %13046 = vmatprep.mubr.msk.bf16.mxu0 %vm1344_vm9, %v13767_v42  ;;  %v600_v42 = vld [vmem:[#allocation3 + $0x5c] sm:$0x1] }
 0x1f6   : > { %v15549_v6 = vpop.f32.mrf.mxu1  ;;  %v12864_v39 = vpop.f32.mrf.mxu0 }
 0x1f7   : > { %19310 = vst [vmem:[#allocation35_spill] sm:$0xff] %v15549_v6  ;;  %v2900_v54 = vadd.f32 %v12864_v39, %v15443_v53  ;;  %v549_v6 = vld [vmem:[#allocation3 + $0x60] sm:$0x1] }
 0x1f8   : > { %v12890_v58 = vpop.f32.mrf.mxu1  ;;  %v2831_v62 = vpop.f32.mrf.mxu0  ;;  %v550_v53 = vsel %vm14273_vm3, 0, %v549_v6 }
 0x1f9   : > { %v15557_v41 = vadd.f32 %v12890_v58, %v2892_v34  ;;  %v2898_v31 = vadd.f32 %v2831_v62, %v15448_v60  ;;  %551 = vst [vmem:[#allocation3 + $0x60] sm:$0x1] %v550_v53  ;;  %v547_v60 = vsel %vm14273_vm3, 0, %v546_v29  ;;  %v601_v53 = vsel %vm14279_vm5, 0, %v600_v42 }
 0x1fa   : > { %v3031_v49 = vpop.f32.mrf.mxu1  ;;  %v12865_v34 = vpop.f32.mrf.mxu0  ;;  %548 = vst [vmem:[#allocation3 + $0x54] sm:$0x1] %v547_v60  ;;  %602 = vst [vmem:[#allocation3 + $0x5c] sm:$0x1] %v601_v53  ;;  %v555_v60 = vld [vmem:[#allocation3 + $0x78] sm:$0x1] }
 0x1fb   : > { %v15562_v52 = vadd.f32 %v3031_v49, %v2890_v15  ;;  %v2901_v39 = vadd.f32 %v12865_v34, %v15451_v9  ;;  %v603_v49 = vld [vmem:[#allocation3 + $0x68] sm:$0x1] }
 0x1fc   : > { %v12891_v14 = vpop.f32.mrf.mxu1  ;;  %v15573_v15 = vpop.f32.mrf.mxu0  ;;  %v604_v6 = vsel %vm14279_vm5, 0, %v603_v49 }
 0x1fd   : > { %v15568_v58 = vadd.f32 %v12891_v14, %v2893_v57  ;;  %19313 = vst [vmem:[#allocation38_spill] sm:$0xff] %v15573_v15  ;;  %605 = vst [vmem:[#allocation3 + $0x68] sm:$0x1] %v604_v6 }
 0x1fe   : > { %v15571_v36 = vpop.f32.mrf.mxu1  ;;  %v12868_v22 = vpop.f32.mrf.mxu0 }
 0x1ff   : > { %19312 = vst [vmem:[#allocation37_spill] sm:$0xff] %v15571_v36  ;;  %v2904_v9 = vadd.f32 %v12868_v22, %v15457_v50 }
 0x200   : > { %v12894_v62 = vpop.f32.mrf.mxu1  ;;  %v2847_v34 = vpop.f32.mrf.mxu0 }
 0x201   : > { %v15579_v57 = vadd.f32 %v12894_v62, %v2896_v51  ;;  %v2902_v29 = vadd.f32 %v2847_v34, %v15462_v7  ;;  %v556_v51 = vsel %vm14273_vm3, 0, %v555_v60  ;;  %v552_v62 = vld [vmem:[#allocation3 + $0x6c] sm:$0x1] }
 0x202   : > { %v3047_v14 = vpop.f32.mrf.mxu1  ;;  %v12869_v45 = vpop.f32.mrf.mxu0  ;;  %557 = vst [vmem:[#allocation3 + $0x78] sm:$0x1] %v556_v51  ;;  %v553_v7 = vsel %vm14273_vm3, 0, %v552_v62 }
 0x203   : > { %v15584_v15 = vadd.f32 %v3047_v14, %v2894_v8  ;;  %v2905_v50 = vadd.f32 %v12869_v45, %v15464_v28  ;;  %554 = vst [vmem:[#allocation3 + $0x6c] sm:$0x1] %v553_v7  ;;  %v609_v8 = vld [vmem:[#allocation3 + $0x80] sm:$0x1]  ;;  %v606_v45 = vld [vmem:[#allocation3 + $0x74] sm:$0x1] }
 0x204   : > { %v12895_v36 = vpop.f32.mrf.mxu1  ;;  %v15594_v6 = vpop.f32.mrf.mxu0  ;;  %v610_v34 = vsel %vm14279_vm5, 0, %v609_v8  ;;  %v607_v60 = vsel %vm14279_vm5, 0, %v606_v45  ;;  %v15608_v7 = vld [vmem:[#allocation10 + $0x30] sm:$0xff]  }
 0x205   : > { %v15589_v49 = vadd.f32 %v12895_v36, %v2897_v25  ;;  %611 = vst [vmem:[#allocation3 + $0x80] sm:$0x1] %v610_v34  ;;  %19315 = vst [vmem:[#allocation40_spill] sm:$0xff] %v15608_v7  ;;  %13078 = vmatprep.subr.bf16.mxu1 %v15608_v7 }
 0x206   : > { %v15592_v22 = vpop.f32.mrf.mxu1  ;;  %v12872_v14 = vpop.f32.mrf.mxu0  ;;  %608 = vst [vmem:[#allocation3 + $0x74] sm:$0x1] %v607_v60 }
 0x207   : > { %19314 = vst [vmem:[#allocation39_spill] sm:$0xff] %v15592_v22  ;;  %v2908_v28 = vadd.f32 %v12872_v14, %v15479_v26  ;;  %v561_v22 = vld [vmem:[#allocation3 + $0x90] sm:$0x1] }
 0x208   : > { %v12898_v42 = vpop.f32.mrf.mxu1  ;;  %v2863_v53 = vpop.f32.mrf.mxu0  ;;  %v562_v26 = vsel %vm14273_vm3, 0, %v561_v22  ;;  %v612_v22 = vld [vmem:[#allocation3 + $0x8c] sm:$0x1] }
 0x209   : > { %v15600_v25 = vadd.f32 %v12898_v42, %v2900_v54  ;;  %v2906_v62 = vadd.f32 %v2863_v53, %v15484_v24  ;;  %563 = vst [vmem:[#allocation3 + $0x90] sm:$0x1] %v562_v26  ;;  %v613_v26 = vsel %vm14279_vm5, 0, %v612_v22 }
 0x20a   : > { %v3063_v36 = vpop.f32.mrf.mxu1  ;;  %v12873_v54 = vpop.f32.mrf.mxu0  ;;  %614 = vst [vmem:[#allocation3 + $0x8c] sm:$0x1] %v613_v26 }
 0x20b   : > { %v15605_v51 = vadd.f32 %v3063_v36, %v2898_v31  ;;  %v2909_v14 = vadd.f32 %v12873_v54, %v15487_v47  ;;  %v558_v31 = vld [vmem:[#allocation3 + $0x84] sm:$0x1]  ;;  %v615_v36 = vld [vmem:[#allocation3 + $0x98] sm:$0x1] }
 0x20c   : > { %v12899_v8 = vpop.f32.mrf.mxu1  ;;  %v15618_v24 = vpop.f32.mrf.mxu0  ;;  %v559_v45 = vsel %vm14273_vm3, 0, %v558_v31 }
 0x20d   : > { %v15612_v42 = vadd.f32 %v12899_v8, %v2901_v39  ;;  %560 = vst [vmem:[#allocation3 + $0x84] sm:$0x1] %v559_v45  ;;  %v616_v39 = vsel %vm14279_vm5, 0, %v615_v36 }
 0x20e   : > { %v15616_v34 = vpop.f32.mrf.mxu1  ;;  %v15622_v60 = vpop.f32.mrf.mxu0  ;;  %617 = vst [vmem:[#allocation3 + $0x98] sm:$0x1] %v616_v39  ;;  %v564_v39 = vld [vmem:[#allocation3 + $0x9c] sm:$0x1] }
 0x20f   : > { %19316 = vst [vmem:[#allocation41_spill] sm:$0xff] %v15616_v34  ;;  %19317 = vst [vmem:[#allocation42_spill] sm:$0xff] %v15622_v60  ;;  %v567_v34 = vld [vmem:[#allocation3 + $0xa8] sm:$0x1] }
 0x210   : > { %v12902_v53 = vpop.f32.mrf.mxu1  ;;  %v15628_v54 = vpop.f32.mrf.mxu0 }
 0x211   : > { %v15626_v47 = vadd.f32 %v12902_v53, %v2904_v9  ;;  %19318 = vst [vmem:[#allocation43_spill] sm:$0xff] %v15628_v54  ;;  %v568_v9 = vsel %vm14273_vm3, 0, %v567_v34 }
 0x212   : > { %v3079_v8 = vpop.f32.mrf.mxu1  ;;  %v15634_v45 = vpop.f32.mrf.mxu0  ;;  %569 = vst [vmem:[#allocation3 + $0xa8] sm:$0x1] %v568_v9 }
 0x213   : > { %v15632_v7 = vadd.f32 %v3079_v8, %v2902_v29  ;;  %19319 = vst [vmem:[#allocation44_spill] sm:$0xff] %v15634_v45  ;;  %v565_v29 = vsel %vm14273_vm3, 0, %v564_v39 }
 0x214   : > { %v12903_v31 = vpop.f32.mrf.mxu1  ;;  %v15642_v53 = vpop.f32.mrf.mxu0  ;;  %566 = vst [vmem:[#allocation3 + $0x9c] sm:$0x1] %v565_v29 }
 0x215   : > { %v15636_v60 = vadd.f32 %v12903_v31, %v2905_v50  ;;  %19321 = vst [vmem:[#allocation46_spill] sm:$0xff] %v15642_v53  ;;  %v621_v50 = vld [vmem:[#allocation3 + $0xb0] sm:$0x1]  ;;  %v618_v53 = vld [vmem:[#allocation3 + $0xa4] sm:$0x1] }
 0x216   : > { %v15640_v36 = vpop.f32.mrf.mxu1  ;;  %v15646_v8 = vpop.f32.mrf.mxu0  ;;  %v622_v34 = vsel %vm14279_vm5, 0, %v621_v50  ;;  %v619_v29 = vsel %vm14279_vm5, 0, %v618_v53 }
 0x217   : > { %19320 = vst [vmem:[#allocation45_spill] sm:$0xff] %v15640_v36  ;;  %623 = vst [vmem:[#allocation3 + $0xb0] sm:$0x1] %v622_v34  ;;  %v570_v34 = vld [vmem:[#allocation3 + $0xb4] sm:$0x1] }
 0x218   : > { %v12906_v22 = vpop.f32.mrf.mxu1  ;;  %v3478_v45 = vpop.f32.mrf.mxu0  ;;  %620 = vst [vmem:[#allocation3 + $0xa4] sm:$0x1] %v619_v29 }
 0x219   : > { %v15648_v26 = vadd.f32 %v12906_v22, %v2908_v28  ;;  %v15655_v9 = vadd.f32 %v3478_v45, %v15520_v38 }
 0x21a   : > { %v3095_v31 = vpop.f32.mrf.mxu1  ;;  %v12917_v54 = vpop.f32.mrf.mxu0 }
 0x21b   : > { %19322 = vst [vmem:[#allocation47_spill] sm:$0xff] %v15648_v26  ;;  %v15652_v36 = vadd.f32 %v3095_v31, %v2906_v62  ;;  %19323 = vst [vmem:[#allocation48_spill] sm:$0xff] %v15655_v9  ;;  %v15662_v22 = vadd.f32 %v12917_v54, %v15525_v21  ;;  %v573_v26 = vld [vmem:[#allocation3 + $0xc0] sm:$0x1]  ;;  %v571_v21 = vsel %vm14273_vm3, 0, %v570_v34 }
 0x21c   : > { %v12907_v39 = vpop.f32.mrf.mxu1  ;;  %v15666_v62 = vpop.f32.mrf.mxu0  ;;  %v574_v38 = vsel %vm14273_vm3, 0, %v573_v26  ;;  %572 = vst [vmem:[#allocation3 + $0xb4] sm:$0x1] %v571_v21 }
 0x21d   : > { %v15659_v28 = vadd.f32 %v12907_v39, %v2909_v14  ;;  %19325 = vst [vmem:[#allocation50_spill] sm:$0xff] %v15662_v22  ;;  %575 = vst [vmem:[#allocation3 + $0xc0] sm:$0x1] %v574_v38  ;;  %v627_v38 = vld [vmem:[#allocation3 + $0xc8] sm:$0x1] }
 0x21e   : > { %v15664_v50 = vpop.f32.mrf.mxu1  ;;  %v12920_v31 = vpop.f32.mrf.mxu0 }
 0x21f   : > { %19324 = vst [vmem:[#allocation49_spill] sm:$0xff] %v15659_v28  ;;  %v15673_v14 = vadd.f32 %v12920_v31, %v15534_v33  ;;  %v628_v33 = vsel %vm14279_vm5, 0, %v627_v38 }
 0x220   : > { %v15670_v45 = vpop.f32.mrf.mxu1  ;;  %v3494_v53 = vpop.f32.mrf.mxu0  ;;  %629 = vst [vmem:[#allocation3 + $0xc8] sm:$0x1] %v628_v33 }
 0x221   : > { %19326 = vst [vmem:[#allocation51_spill] sm:$0xff] %v15673_v14  ;;  %v15680_v39 = vadd.f32 %v3494_v53, %v15543_v63  ;;  %v625_v53 = vsel %vm14279_vm5, 0, %v624_v1 }
 0x222   : > { %v15677_v54 = vpop.f32.mrf.mxu1  ;;  %v12921_v26 = vpop.f32.mrf.mxu0  ;;  %626 = vst [vmem:[#allocation3 + $0xbc] sm:$0x1] %v625_v53  ;;  %v579_v53 = vld [vmem:[#allocation3 + $0x8] sm:$0x1] }
 0x223   : > { %19327 = vst [vmem:[#allocation52_spill] sm:$0xff] %v15680_v39  ;;  %v15685_v22 = vadd.f32 %v12921_v26, %v15546_v23 }
 0x224   : > { %v15682_v29 = vpop.f32.mrf.mxu1  ;;  %v15691_v34 = vpop.f32.mrf.mxu0 }
 0x225   : > { %19328 = vst [vmem:[#allocation53_spill] sm:$0xff] %v15685_v22 }
 0x226   : > { %v15689_v31 = vpop.f32.mrf.mxu1  ;;  %v12924_v63 = vpop.f32.mrf.mxu0 }
 0x227   : > { %v15698_v39 = vadd.f32 %v12924_v63, %v15557_v41 }
 0x228   : > { %v15693_v21 = vpop.f32.mrf.mxu1  ;;  %v3510_v26 = vpop.f32.mrf.mxu0 }
 0x229   : > { %19329 = vst [vmem:[#allocation54_spill] sm:$0xff] %v15698_v39  ;;  %v15703_v38 = vadd.f32 %v3510_v26, %v15562_v52  ;;  %v580_v26 = vsel %vm14279_vm5, 0, %v579_v53 }
 0x22a   : > { %v15700_v23 = vpop.f32.mrf.mxu1  ;;  %v12925_v33 = vpop.f32.mrf.mxu0  ;;  %581 = vst [vmem:[#allocation3 + $0x8] sm:$0x1] %v580_v26 }
 0x22b   : > { %19330 = vst [vmem:[#allocation55_spill] sm:$0xff] %v15703_v38  ;;  %v15708_v14 = vadd.f32 %v12925_v33, %v15568_v58 }
 0x22c   : > { %v15705_v22 = vpop.f32.mrf.mxu1  ;;  %v15712_v28 = vpop.f32.mrf.mxu0 }
 0x22d   : > { %19331 = vst [vmem:[#allocation56_spill] sm:$0xff] %v15708_v14 }
 0x22e   : > { %v15710_v9 = vpop.f32.mrf.mxu1  ;;  %v12928_v41 = vpop.f32.mrf.mxu0 }
 0x22f   : > { %v15717_v63 = vadd.f32 %v12928_v41, %v15579_v57 }
 0x230   : > { %v15714_v1 = vpop.f32.mrf.mxu1  ;;  %v3526_v52 = vpop.f32.mrf.mxu0 }
 0x231   : > { %19332 = vst [vmem:[#allocation57_spill] sm:$0xff] %v15714_v1  ;;  %19333 = vst [vmem:[#allocation58_spill] sm:$0xff] %v15717_v63  ;;  %v15724_v58 = vadd.f32 %v3526_v52, %v15584_v15 }
 0x232   : > { %v15719_v39 = vpop.f32.mrf.mxu1  ;;  %v12929_v14 = vpop.f32.mrf.mxu0 }
 0x233   : > { %19334 = vst [vmem:[#allocation59_spill] sm:$0xff] %v15724_v58  ;;  %v15729_v38 = vadd.f32 %v12929_v14, %v15589_v49  ;;  %v1670_v14 = vadd.f32 %v15265_v32, %v15271_v13  ;;  %v15752_v58 = vld [vmem:[#allocation10 + $0x8] sm:$0xff]   ;;  %v2647_v32 = vadd.f32 %v15354_v4, %v15343_v44  ;;  %v2659_v44 = vadd.f32 %v15410_v17, %v15395_v27 }
 0x234   : > { %v15726_v33 = vpop.f32.mrf.mxu1  ;;  %v15733_v57 = vpop.f32.mrf.mxu0  ;;  %13112 = vmatprep.subr.bf16.mxu0 %v15752_v58 }
 0x235   : > { %19335 = vst [vmem:[#allocation60_spill] sm:$0xff] %v15729_v38  ;;  %v1924_v13 = vadd.f32 %v15412_v3, %v1670_v14  ;;  %v19346_v14 = vld [vmem:[#allocation36_spill] sm:$0xff] }
 0x236   : > { %v15731_v1 = vpop.f32.mrf.mxu1  ;;  %v12932_v63 = vpop.f32.mrf.mxu0 }
 0x237   : > { %v15738_v2 = vadd.f32 %v12932_v63, %v15600_v25  ;;  %v1686_v25 = vadd.f32 %v15283_v46, %v15289_v5  ;;  %v19341_v63 = vld [vmem:[#allocation25_spill] sm:$0xff]  ;;  %v2651_v46 = vadd.f32 %v15373_v11, %v15361_v16  ;;  %v2879_v16 = vadd.f32 %v15477_v12, %v2647_v32 }
 0x238   : > { %v15735_v41 = vpop.f32.mrf.mxu1  ;;  %v3542_v15 = vpop.f32.mrf.mxu0  ;;  %v19351_v32 = vld [vmem:[#allocation33_spill] sm:$0xff] }
 0x239   : > { %19336 = vst [vmem:[#allocation61_spill] sm:$0xff] %v15735_v41  ;;  %19337 = vst [vmem:[#allocation62_spill] sm:$0xff] %v15738_v2  ;;  %v15743_v52 = vadd.f32 %v3542_v15, %v15605_v51  ;;  %v19342_v2 = vld [vmem:[#allocation24_spill] sm:$0xff]  ;;  %v19343_v41 = vld [vmem:[#allocation27_spill] sm:$0xff]  ;;  %v1928_v5 = vadd.f32 %v15427_v55, %v1686_v25  ;;  %v2883_v11 = vadd.f32 %v15492_v30, %v2651_v46 }
 0x23a   : > { %v15740_v53 = vpop.f32.mrf.mxu1  ;;  %v12933_v49 = vpop.f32.mrf.mxu0  ;;  %v19344_v51 = vld [vmem:[#allocation26_spill] sm:$0xff]  ;;  %v19347_v25 = vld [vmem:[#allocation28_spill] sm:$0xff] }
 0x23b   : > { %19338 = vst [vmem:[#allocation63_spill] sm:$0xff] %v15740_v53  ;;  %19339 = vst [vmem:[#allocation64_spill] sm:$0xff] %v15743_v52  ;;  %v15750_v38 = vadd.f32 %v12933_v49, %v15612_v42  ;;  %v1702_v53 = vadd.f32 %v19342_v2, %v19341_v63  ;;  %v1718_v15 = vadd.f32 %v19344_v51, %v19343_v41  ;;  %v19352_v46 = vld [vmem:[#allocation34_spill] sm:$0xff] }
 0x23c   : > { %v15745_v26 = vpop.f32.mrf.mxu1  ;;  %v2655_v63 = vadd.f32 %v15391_v40, %v15379_v61  ;;  %v2667_v40 = vadd.f32 %v15454_v35, %v1928_v5  ;;  %v19348_v35 = vld [vmem:[#allocation31_spill] sm:$0xff]  ;;  %v3115_v5 = vadd.f32 %v19352_v46, %v2883_v11 }
 0x23d   : > { %19340 = vst [vmem:[#allocation65_spill] sm:$0xff] %v15745_v26  ;;  %v15762_v26 = vpop.f32.mrf.mxu0  ;;  %v1932_v2 = vadd.f32 %v15446_v43, %v1702_v53  ;;  %v1936_v42 = vadd.f32 %v15460_v0, %v1718_v15  ;;  %v2663_v43 = vadd.f32 %v15431_v18, %v1924_v13  ;;  %v2891_v53 = vadd.f32 %v15530_v10, %v2659_v44  ;;  %v19345_v18 = vld [vmem:[#allocation30_spill] sm:$0xff] }
 0x23e   : > { %v15760_v52 = vpop.f32.mrf.mxu1  ;;  %v2887_v0 = vadd.f32 %v15511_v56, %v2655_v63  ;;  %v3110_v56 = vadd.f32 %v19345_v18, %v15470_v20  ;;  %v3113_v51 = vadd.f32 %v19348_v35, %v19347_v25  ;;  %v19353_v20 = vld [vmem:[#allocation35_spill] sm:$0xff]  ;;  %v19358_v25 = vld [vmem:[#allocation44_spill] sm:$0xff] }
 0x23f   : > { %v12936_v49 = vpop.f32.mrf.mxu0  ;;  %v2671_v27 = vadd.f32 %v15472_v59, %v1932_v2  ;;  %v2675_v17 = vadd.f32 %v15490_v37, %v1936_v42  ;;  %v2895_v10 = vadd.f32 %v19346_v14, %v2663_v43  ;;  %v19349_v59 = vld [vmem:[#allocation32_spill] sm:$0xff]  ;;  %v19350_v37 = vld [vmem:[#allocation29_spill] sm:$0xff]  ;;  %v19357_v14 = vld [vmem:[#allocation43_spill] sm:$0xff] }
 0x240   : > { %v15773_v41 = vpop.f32.mrf.mxu1  ;;  %v15780_v4 = vadd.f32 %v12936_v49, %v15626_v47  ;;  %v3112_v47 = vadd.f32 %v15494_v19, %v15467_v48  ;;  %v3111_v15 = vadd.f32 %v19349_v59, %v2879_v16  ;;  %v3116_v13 = vadd.f32 %v19351_v32, %v19350_v37  ;;  %v19354_v42 = vld [vmem:[#allocation37_spill] sm:$0xff] }
 0x241   : > { %v3558_v55 = vpop.f32.mrf.mxu0  ;;  %v3119_v19 = vadd.f32 %v19353_v20, %v2887_v0  ;;  %v3123_v49 = vadd.f32 %v19354_v42, %v2891_v53  ;;  %v2903_v44 = vadd.f32 %v15594_v6, %v2671_v27  ;;  %v5379_v43 = vld [vmem:[#allocation3 + $0x4] sm:$0xf]  ;;  %v2907_v16 = vadd.f32 %v15618_v24, %v2675_v17  ;;  %v19359_v0 = vld [vmem:[#allocation39_spill] sm:$0xff]  ;;  %v19360_v53 = vld [vmem:[#allocation46_spill] sm:$0xff] }
 0x242   : > { %v15784_v3 = vpop.f32.mrf.mxu1  ;;  %v15790_v61 = vadd.f32 %v3558_v55, %v15632_v7  ;;  %v5378_v55 = vld [vmem:[#allocation3] sm:$0xf]  ;;  %v3589_v11 = vadd.f32 %v19357_v14, %v3110_v56  ;;  %v3592_v35 = vadd.f32 %v19358_v25, %v3113_v51  ;;  %v3127_v32 = vadd.f32 %v19359_v0, %v2895_v10  ;;  %v19361_v6 = vld [vmem:[#allocation47_spill] sm:$0xff] }
 0x243   : > { %v12937_v30 = vpop.f32.mrf.mxu0  ;;  %v3590_v46 = vadd.f32 %v19360_v53, %v3111_v15  ;;  %v5433_v17 = vshrl.u32 %v5378_v55, 16  ;;  %v5442_v56 = vshll.u32 %v5379_v43, 16  ;;  %v5446_v42 = vshrl.u32 %v5379_v43, 16  ;;  %v19362_v51 = vld [vmem:[#allocation41_spill] sm:$0xff]  ;;  %v19367_v53 = vld [vmem:[#allocation51_spill] sm:$0xff] }
 0x244   : > { %v15795_v12 = vpop.f32.mrf.mxu1  ;;  %v15803_v7 = vadd.f32 %v12937_v30, %v15636_v60  ;;  %v19355_v60 = vld [vmem:[#allocation38_spill] sm:$0xff]  ;;  %v3594_v10 = vadd.f32 %v15666_v62, %v3115_v5  ;;  %v3807_v25 = vadd.f32 %v15677_v54, %v3589_v11  ;;  %v3598_v62 = vadd.f32 %v15691_v34, %v3119_v19  ;;  %v19364_v5 = vld [vmem:[#allocation49_spill] sm:$0xff] }
 0x245   : > { %v15813_v48 = vpop.f32.mrf.mxu0  ;;  %v2899_v63 = vadd.f32 %v19355_v60, %v2667_v40  ;;  %v19356_v30 = vld [vmem:[#allocation42_spill] sm:$0xff]  ;;  %v3595_v40 = vadd.f32 %v15646_v8, %v3116_v13  ;;  %v3139_v8 = vadd.f32 %v15664_v50, %v2907_v16  ;;  %v3808_v43 = vadd.f32 %v15689_v31, %v3590_v46  ;;  %v19368_v46 = vld [vmem:[#allocation57_spill] sm:$0xff] }
 0x246   : > { %v15811_v2 = vpop.f32.mrf.mxu1  ;;  %v3591_v18 = vadd.f32 %v19356_v30, %v3112_v47  ;;  %v5436_v47 = vshll.u32 %v5378_v55, 16  ;;  %v19363_v30 = vld [vmem:[#allocation45_spill] sm:$0xff]  ;;  %v15851_v16 = vrot.slane %v5433_v17, 4  ;;  %v15855_v54 = vrot.slane %v5442_v56, 5  ;;  %v19371_v56 = vld [vmem:[#allocation54_spill] sm:$0xff] }
 0x247   : > { %v12940_v37 = vpop.f32.mrf.mxu0  ;;  %v3131_v60 = vadd.f32 %v19362_v51, %v2899_v63  ;;  %v3135_v14 = vadd.f32 %v19363_v30, %v2903_v44  ;;  %v15845_v63 = vadd.f32 %v15693_v21, %v3595_v40  ;;  %v19366_v21 = vld [vmem:[#allocation50_spill] sm:$0xff]  ;;  %v15868_v19 = vadd.f32 %v15710_v9, %v3594_v10  ;;  %v19373_v51 = vld [vmem:[#allocation55_spill] sm:$0xff] }
 0x248   : > { %v15823_v59 = vpop.f32.mrf.mxu1  ;;  %v15829_v27 = vadd.f32 %v12940_v37, %v19361_v6  ;;  %v3809_v13 = vadd.f32 %v15670_v45, %v3591_v18  ;;  %v3810_v37 = vadd.f32 %v15682_v29, %v3592_v35  ;;  %v15853_v45 = vrot.slane %v5436_v47, 5  ;;  %v19365_v18 = vld [vmem:[#allocation48_spill] sm:$0xff]  ;;  %v15871_v35 = vld [vmem:[#allocation3 + $0x8] sm:$0x1]  ;;  %v19374_v30 = vld [vmem:[#allocation63_spill] sm:$0xff] }
 0x249   : > { %v3574_v24 = vpop.f32.mrf.mxu0  ;;  %v15857_v29 = vrot.slane %v5446_v42, 4  ;;  %v15861_v31 = vadd.f32 %v15700_v23, %v19365_v18  ;;  %v15865_v34 = vadd.f32 %v15705_v22, %v19366_v21  ;;  %v3602_v11 = vadd.f32 %v15712_v28, %v3123_v49  ;;  %v19369_v6 = vld [vmem:[#allocation52_spill] sm:$0xff]  ;;  %v19370_v23 = vld [vmem:[#allocation53_spill] sm:$0xff]  ;;  %v15889_v28 = vld [vmem:[%s19193_s2] ss:$0 sm:$0xff] }
 0x24a   : > { %v15831_v20 = vpop.f32.mrf.mxu1  ;;  %v15837_v15 = vadd.f32 %v3574_v24, %v15652_v36  ;;  %v15875_v40 = vadd.f32 %v19368_v46, %v19367_v53  ;;  %v15879_v24 = vadd.f32 %v15719_v39, %v19369_v6  ;;  %v15883_v17 = vadd.f32 %v15726_v33, %v19370_v23  ;;  %v19372_v42 = vld [vmem:[#allocation61_spill] sm:$0xff]  ;;  %v19375_v18 = vld [vmem:[#allocation56_spill] sm:$0xff]  ;;  %v19378_v23 = vld [vmem:[#allocation59_spill] sm:$0xff] }
 0x24b   : > { %v12941_v0 = vpop.f32.mrf.mxu0  ;;  %v3606_v22 = vadd.f32 %v15733_v57, %v3127_v32  ;;  %v15892_v49 = vadd.f32 %v15731_v1, %v3598_v62  ;;  %v15896_v39 = vadd.f32 %v19372_v42, %v19371_v56  ;;  %v15900_v33 = vadd.f32 %v19374_v30, %v19373_v51  ;;  %v19376_v21 = vld [vmem:[#allocation65_spill] sm:$0xff]  ;;  %v19379_v56 = vld [vmem:[#allocation60_spill] sm:$0xff]  ;;  %v739_v1 = vld [vmem:[#allocation4 + $0xbc] sm:$0x1] }
 0x24c   : > { %v12967_v55 = vpop.f32.mrf.mxu1  ;;  %v15849_v36 = vadd.f32 %v12941_v0, %v19364_v5  ;;  %v3610_v57 = vadd.f32 %v15762_v26, %v3131_v60  ;;  %v5439_v5 = vor.u32 %v15853_v45, %v15851_v16  ;;  %v5452_v62 = vshll.u32 %v15871_v35, 16  ;;  %v19377_v60 = vld [vmem:[#allocation58_spill] sm:$0xff] }
 0x24d   : > { %v3577_v50 = vpop.f32.mrf.mxu0  ;;  %v15910_v53 = vadd.f32 %v19376_v21, %v19375_v18  ;;  %v15913_v46 = vadd.f32 %v15760_v52, %v3602_v11  ;;  %v15918_v6 = vadd.f32 %v15773_v41, %v19377_v60  ;;  %v15926_v42 = vadd.f32 %v15795_v12, %v19379_v56 }
 0x24e   : > { %v3763_v44 = vpop.f32.mrf.mxu1  ;;  %v15929_v51 = vadd.f32 %v15811_v2, %v3606_v22  ;;  %v3614_v30 = vadd.f32 %v15813_v48, %v3135_v14  ;;  %v15942_v12 = vadd.f32 %v12967_v55, %v15750_v38  ;;  %v3618_v48 = vadd.f32 %v3577_v50, %v3139_v8 }
 0x24f   : > { %v12980_v47 = vpop.f32.mrf.mxu0  ;;  %v15944_v2 = vadd.f32 %v3763_v44, %v3610_v57  ;;  %v19386_v16 = vor.u32 %v15857_v29, %v15855_v54 }
 0x250   : > { %v12970_v9 = vpop.f32.mrf.mxu1  ;;  %v4027_v10 = vadd.f32 %v12980_v47, %v3809_v13  ;;  %v15922_v47 = vadd.f32 %v15784_v3, %v19378_v23  ;;  %v19381_v3 = vld [vmem:[#allocation64_spill] sm:$0xff] }
 0x251   : > { %v3898_v0 = vpop.f32.mrf.mxu0  ;;  %v15939_v21 = vadd.f32 %v15831_v20, %v19381_v3  ;;  %v16252_v45 = vrot.slane %v19386_v16, 4 }
 0x252   : > { %v3776_v32 = vpop.f32.mrf.mxu1  ;;  %v4066_v13 = vadd.f32 %v15889_v28, %v4027_v10  ;;  %v4025_v26 = vadd.f32 %v3898_v0, %v3807_v25  ;;  %v19380_v0 = vld [vmem:[#allocation62_spill] sm:$0xff] }
 0x253   : > { %v12981_v11 = vpop.f32.mrf.mxu0  ;;  %v15935_v18 = vadd.f32 %v15823_v59, %v19380_v0  ;;  %v15951_v59 = vadd.f32 %v3776_v32, %v15790_v61 }
 0x254   : > { %v12971_v52 = vpop.f32.mrf.mxu1  ;;  %v4098_v25 = vmax.f32 %v4066_v13, 0.0  ;;  %v4064_v10 = vadd.f32 %v15889_v28, %v4025_v26  ;;  %v4028_v41 = vadd.f32 %v12981_v11, %v3810_v37  ;;  %v15948_v26 = vadd.f32 %v12970_v9, %v15780_v4 }
 0x255   : > { %v3901_v60 = vpop.f32.mrf.mxu0  ;;  %v15954_v20 = vadd.f32 %v12971_v52, %v15803_v7 }
 0x256   : > { %v3779_v22 = vpop.f32.mrf.mxu1  ;;  %v12165_v14 = vpack.c.bf16 %v4098_v25, %v4098_v25  ;;  %v4096_v13 = vmax.f32 %v4064_v10, 0.0  ;;  %v4067_v37 = vadd.f32 %v15889_v28, %v4028_v41  ;;  %v4026_v55 = vadd.f32 %v3901_v60, %v3808_v43  ;;  %v4552_v10 = vld [vmem:[#allocation3 + $0x18] sm:$0xf] }
 0x257   : > { %v12984_v44 = vpop.f32.mrf.mxu0  ;;  %v15956_v57 = vadd.f32 %v3779_v22, %v3614_v30 }
 0x258   : > { %v12974_v38 = vpop.f32.mrf.mxu1  ;;  %v4242_v50 = vshrl.u32 %v12165_v14, 16  ;;  %v12163_v23 = vpack.c.bf16 %v4096_v13, %v4096_v13  ;;  %v4245_v11 = vshll.u32 %v12165_v14, 16  ;;  %v4099_v4 = vmax.f32 %v4067_v37, 0.0  ;;  %v4545_v37 = vld [vmem:[#allocation3 + $0xc] sm:$0xf] }
 0x259   : > { %v15959_v8 = vadd.f32 %v12974_v38, %v15829_v27  ;;  %v4065_v9 = vadd.f32 %v15889_v28, %v4026_v55  ;;  %v4031_v61 = vadd.f32 %v12984_v44, %v15845_v63  ;;  %v3914_v32 = vpop.f32.mrf.mxu0 }
 0x25a   : > { %v3792_v56 = vpop.f32.mrf.mxu1  ;;  %v4244_v43 = vrot.slane %v4242_v50, 7  ;;  %v4225_v52 = vshrl.u32 %v12163_v23, 16  ;;  %v4228_v30 = vshll.u32 %v12163_v23, 16  ;;  %v12166_v27 = vpack.c.bf16 %v4099_v4, %v4099_v4 }
 0x25b   : > { %v15964_v7 = vadd.f32 %v3792_v56, %v15837_v15  ;;  %v4097_v41 = vmax.f32 %v4065_v9, 0.0  ;;  %v4070_v0 = vadd.f32 %v15889_v28, %v4031_v61  ;;  %v4029_v3 = vadd.f32 %v3914_v32, %v15861_v31  ;;  %v12985_v22 = vpop.f32.mrf.mxu0 }
 0x25c   : > { %v12975_v25 = vpop.f32.mrf.mxu1  ;;  %v4247_v63 = vor.u32 %v4245_v11, %v4244_v43  ;;  %v4248_v14 = vrot.slane %v4244_v43, 4  ;;  %v4227_v13 = vrot.slane %v4225_v52, 7  ;;  %v4250_v38 = vshrl.u32 %v12166_v27, 16 }
 0x25d   : > { %v15969_v60 = vadd.f32 %v12975_v25, %v15849_v36  ;;  %v4253_v55 = vshll.u32 %v12166_v27, 16  ;;  %v12164_v44 = vpack.c.bf16 %v4097_v41, %v4097_v41  ;;  %v4102_v50 = vmax.f32 %v4070_v0, 0.0  ;;  %v3917_v23 = vpop.f32.mrf.mxu0  ;;  %v4556_v27 = vld [vmem:[#allocation3 + $0x20] sm:$0x1] }
 0x25e   : > { %v3795_v15 = vpop.f32.mrf.mxu1  ;;  %v4553_v9 = vsel %vm14308_vm8, %v4247_v63, %v4552_v10  ;;  %v4230_v31 = vor.u32 %v4228_v30, %v4227_v13  ;;  %v4231_v61 = vrot.slane %v4227_v13, 4  ;;  %v4252_v36 = vrot.slane %v4250_v38, 7  ;;  %v4549_v38 = vld [vmem:[#allocation3 + $0x14] sm:$0x1] }
 0x25f   : > { %v15971_v56 = vadd.f32 %v3795_v15, %v3618_v48  ;;  %4554 = vst [vmem:[#allocation3 + $0x18] sm:$0xf] %v4553_v9  ;;  %v4233_v32 = vshrl.u32 %v12164_v44, 16  ;;  %v4236_v11 = vshll.u32 %v12164_v44, 16  ;;  %v12169_v43 = vpack.c.bf16 %v4102_v50, %v4102_v50  ;;  %v12988_v52 = vpop.f32.mrf.mxu0 }
 0x260   : > { %v4546_v25 = vsel %vm14308_vm8, %v4230_v31, %v4545_v37  ;;  %v4068_v41 = vadd.f32 %v15889_v28, %v4029_v3  ;;  %v4032_v48 = vadd.f32 %v12985_v22, %v15865_v34  ;;  %v4030_v0 = vadd.f32 %v3917_v23, %v15868_v19 }
 0x261   : > { %4547 = vst [vmem:[#allocation3 + $0xc] sm:$0xf] %v4546_v25  ;;  %v4255_v10 = vor.u32 %v4253_v55, %v4252_v36  ;;  %v4257_v30 = vrot.slane %v4252_v36, 4  ;;  %v4235_v63 = vrot.slane %v4233_v32, 7  ;;  %v4276_v13 = vshrl.u32 %v12169_v43, 16  ;;  %v3930_v15 = vpop.f32.mrf.mxu0 }
 0x262   : > { %v4279_v44 = vshll.u32 %v12169_v43, 16  ;;  %v4100_v50 = vmax.f32 %v4068_v41, 0.0  ;;  %v4071_v9 = vadd.f32 %v15889_v28, %v4032_v48  ;;  %v4069_v37 = vadd.f32 %v15889_v28, %v4030_v0 }
 0x263   : > { %v4256_v3 = vsel %vm14296_vm7, %v4248_v14, %v4255_v10  ;;  %v4557_v34 = vsel %vm14273_vm3, %v4257_v30, %v4556_v27  ;;  %v4238_v19 = vor.u32 %v4236_v11, %v4235_v63  ;;  %v4240_v22 = vrot.slane %v4235_v63, 4  ;;  %v12989_v55 = vpop.f32.mrf.mxu0  ;;  %v4566_v14 = vld [vmem:[#allocation3 + $0x30] sm:$0xf] }
 0x264   : > { %4555 = vst.msk [vmem:[#allocation3 + $0x1c] sm:$0xf] %vm396_vm0, %v4256_v3  ;;  %4558 = vst [vmem:[#allocation3 + $0x20] sm:$0x1] %v4557_v34  ;;  %v4278_v23 = vrot.slane %v4276_v13, 7  ;;  %v12167_v36 = vpack.c.bf16 %v4100_v50, %v4100_v50  ;;  %v4103_v32 = vmax.f32 %v4071_v9, 0.0  ;;  %v4035_v48 = vadd.f32 %v12988_v52, %v15875_v40 }
 0x265   : > { %v4101_v43 = vmax.f32 %v4069_v37, 0.0  ;;  %v4239_v25 = vsel %vm14296_vm7, %v4231_v61, %v4238_v19  ;;  %v4550_v41 = vsel %vm14273_vm3, %v4240_v22, %v4549_v38  ;;  %v4033_v11 = vadd.f32 %v3930_v15, %v15879_v24  ;;  %v3933_v27 = vpop.f32.mrf.mxu0 }
 0x266   : > { %4548 = vst.msk [vmem:[#allocation3 + $0x10] sm:$0xf] %vm396_vm0, %v4239_v25  ;;  %4551 = vst [vmem:[#allocation3 + $0x14] sm:$0x1] %v4550_v41  ;;  %v4281_v0 = vor.u32 %v4279_v44, %v4278_v23  ;;  %v4282_v10 = vrot.slane %v4278_v23, 4  ;;  %v4259_v30 = vshrl.u32 %v12167_v36, 16  ;;  %v12170_v13 = vpack.c.bf16 %v4103_v32, %v4103_v32 }
 0x267   : > { %v4262_v63 = vshll.u32 %v12167_v36, 16  ;;  %v12168_v50 = vpack.c.bf16 %v4101_v43, %v4101_v43  ;;  %v4074_v61 = vadd.f32 %v15889_v28, %v4035_v48  ;;  %v4072_v9 = vadd.f32 %v15889_v28, %v4033_v11  ;;  %v12992_v38 = vpop.f32.mrf.mxu0  ;;  %v4559_v44 = vld [vmem:[#allocation3 + $0x24] sm:$0xf]  ;;  %v4563_v11 = vld [vmem:[#allocation3 + $0x2c] sm:$0x1] }
 0x268   : > { %v4567_v40 = vsel %vm14308_vm8, %v4281_v0, %v4566_v14  ;;  %v4261_v52 = vrot.slane %v4259_v30, 7  ;;  %v4036_v24 = vadd.f32 %v12989_v55, %v15883_v17  ;;  %v4034_v15 = vadd.f32 %v3933_v27, %v15892_v49  ;;  %v4570_v55 = vld [vmem:[#allocation3 + $0x38] sm:$0x1] }
 0x269   : > { %4568 = vst [vmem:[#allocation3 + $0x30] sm:$0xf] %v4567_v40  ;;  %v4284_v37 = vshrl.u32 %v12170_v13, 16  ;;  %v4287_v3 = vshll.u32 %v12170_v13, 16  ;;  %v4267_v34 = vshrl.u32 %v12168_v50, 16  ;;  %v4270_v19 = vshll.u32 %v12168_v50, 16  ;;  %v3946_v22 = vpop.f32.mrf.mxu0 }
 0x26a   : > { %v4264_v23 = vor.u32 %v4262_v63, %v4261_v52  ;;  %v4265_v36 = vrot.slane %v4261_v52, 4  ;;  %v4106_v32 = vmax.f32 %v4074_v61, 0.0  ;;  %v4104_v43 = vmax.f32 %v4072_v9, 0.0 }
 0x26b   : > { %v4286_v25 = vrot.slane %v4284_v37, 7  ;;  %v4269_v41 = vrot.slane %v4267_v34, 7  ;;  %v4075_v14 = vadd.f32 %v15889_v28, %v4036_v24  ;;  %v4073_v48 = vadd.f32 %v15889_v28, %v4034_v15  ;;  %v12993_v17 = vpop.f32.mrf.mxu0  ;;  %v16005_v34 = vld [vmem:[#allocation3 + $0x18] sm:$0xff]  }
 0x26c   : > { %v4560_v49 = vsel %vm14308_vm8, %v4264_v23, %v4559_v44  ;;  %v12173_v27 = vpack.c.bf16 %v4106_v32, %v4106_v32  ;;  %v12171_v0 = vpack.c.bf16 %v4104_v43, %v4104_v43  ;;  %v4039_v30 = vadd.f32 %v12992_v38, %v15896_v39 }
 0x26d   : > { %4561 = vst [vmem:[#allocation3 + $0x24] sm:$0xf] %v4560_v49  ;;  %v4289_v63 = vor.u32 %v4287_v3, %v4286_v25  ;;  %v4291_v13 = vrot.slane %v4286_v25, 4  ;;  %v4272_v50 = vor.u32 %v4270_v19, %v4269_v41  ;;  %v4274_v61 = vrot.slane %v4269_v41, 4  ;;  %v3949_v9 = vpop.f32.mrf.mxu0  ;;  %v13768_v40 = vld [vmem:[#allocation3 + $0xc] sm:$0xff]   ;;  %v13786_v19 = vld [vmem:[#allocation10 + $0x20] sm:$0xff]  }
 0x26e   : > { %v4310_v52 = vshrl.u32 %v12173_v27, 16  ;;  %v4313_v24 = vshll.u32 %v12173_v27, 16  ;;  %v4293_v15 = vshrl.u32 %v12171_v0, 16  ;;  %v4296_v37 = vshll.u32 %v12171_v0, 16  ;;  %13012 = vmatprep.mubr.msk.bf16.mxu1 %vm1344_vm9, %v13768_v40  ;;  %13047 = vmatmul.mubr.msk.bf16.vlgmr.msra.gmra.mxu0 %vm1344_vm9, %v13768_v40  ;;  %v4573_v41 = vld [vmem:[#allocation3 + $0x3c] sm:$0xf] }
 0x26f   : > { %v4290_v44 = vsel %vm14296_vm7, %v4282_v10, %v4289_v63  ;;  %v4571_v23 = vsel %vm14273_vm3, %v4291_v13, %v4570_v55  ;;  %v4273_v39 = vsel %vm14296_vm7, %v4265_v36, %v4272_v50  ;;  %v4564_v38 = vsel %vm14273_vm3, %v4274_v61, %v4563_v11  ;;  %v12996_v3 = vpop.f32.mrf.mxu0  ;;  %13013 = vmatmul.mubr.msk.bf16.vlgmr.msra.gmra.mxu1 %vm1344_vm9, %v16005_v34  ;;  %v4580_v36 = vld [vmem:[#allocation3 + $0x48] sm:$0xf]  ;;  %v19385_v50 = vld [vmem:[#allocation40_spill] sm:$0xff] }
 0x270   : > { %4569 = vst.msk [vmem:[#allocation3 + $0x34] sm:$0xf] %vm396_vm0, %v4290_v44  ;;  %4572 = vst [vmem:[#allocation3 + $0x38] sm:$0x1] %v4571_v23  ;;  %v16018_v10 = vrot.slane %v4310_v52, 7  ;;  %v16020_v32 = vrot.slane %v4293_v15, 7  ;;  %v4078_v49 = vadd.f32 %v15889_v28, %v4039_v30  ;;  %v4037_v55 = vadd.f32 %v3946_v22, %v15900_v33  ;;  %13050 = vmatprep.mubr.msk.bf16.mxu0 %vm1344_vm9, %v16005_v34 }
 0x271   : > { %4562 = vst.msk [vmem:[#allocation3 + $0x28] sm:$0xf] %vm396_vm0, %v4273_v39  ;;  %4565 = vst [vmem:[#allocation3 + $0x2c] sm:$0x1] %v4564_v38  ;;  %v4107_v43 = vmax.f32 %v4075_v14, 0.0  ;;  %v4105_v25 = vmax.f32 %v4073_v48, 0.0  ;;  %v4040_v11 = vadd.f32 %v12993_v17, %v15910_v53  ;;  %v4038_v27 = vadd.f32 %v3949_v9, %v15913_v46  ;;  %v3962_v14 = vpop.f32.mrf.mxu0  ;;  %13079 = vmatpush3.bf16.msra.mxu1 %v19385_v50 }
 0x272   : > { %v4315_v48 = vor.u32 %v4313_v24, %v16018_v10  ;;  %v4316_v0 = vrot.slane %v16018_v10, 4  ;;  %v4298_v63 = vor.u32 %v4296_v37, %v16020_v32  ;;  %v4299_v13 = vrot.slane %v16020_v32, 4  ;;  %13113 = vmatpush3.bf16.msra.mxu0 %v15752_v58  ;;  %13146 = vmatprep.subr.bf16.mxu1 %v13786_v19  ;;  %v4584_v44 = vld [vmem:[#allocation3 + $0x50] sm:$0x1]  ;;  %v4577_v23 = vld [vmem:[#allocation3 + $0x44] sm:$0x1] }
 0x273   : > { %v12174_v33 = vpack.c.bf16 %v4107_v43, %v4107_v43  ;;  %v12172_v53 = vpack.c.bf16 %v4105_v25, %v4105_v25  ;;  %v4110_v22 = vmax.f32 %v4078_v49, 0.0  ;;  %v4076_v46 = vadd.f32 %v15889_v28, %v4037_v55  ;;  %v16038_v17 = vpop.f32.mrf.mxu0 }
 0x274   : > { %v4581_v30 = vsel %vm14308_vm8, %v4315_v48, %v4580_v36  ;;  %v4574_v61 = vsel %vm14308_vm8, %v4298_v63, %v4573_v41  ;;  %v4079_v9 = vadd.f32 %v15889_v28, %v4040_v11  ;;  %v4077_v40 = vadd.f32 %v15889_v28, %v4038_v27 }
 0x275   : > { %4582 = vst [vmem:[#allocation3 + $0x48] sm:$0xf] %v4581_v30  ;;  %4575 = vst [vmem:[#allocation3 + $0x3c] sm:$0xf] %v4574_v61  ;;  %v4318_v58 = vshrl.u32 %v12174_v33, 16  ;;  %v4321_v52 = vshll.u32 %v12174_v33, 16  ;;  %v16046_v37 = vpop.f32.mrf.mxu0  ;;  %v12177_v39 = vpack.c.bf16 %v4110_v22, %v4110_v22  ;;  %v4043_v25 = vadd.f32 %v12996_v3, %v15918_v6 }
 0x276   : > { %v4301_v24 = vshrl.u32 %v12172_v53, 16  ;;  %v4304_v15 = vshll.u32 %v12172_v53, 16  ;;  %v4108_v38 = vmax.f32 %v4076_v46, 0.0  ;;  %v4111_v19 = vmax.f32 %v4079_v9, 0.0 }
 0x277   : > { %v4109_v10 = vmax.f32 %v4077_v40, 0.0  ;;  %v4320_v32 = vrot.slane %v4318_v58, 7  ;;  %v4041_v36 = vadd.f32 %v3962_v14, %v15922_v47  ;;  %v16050_v41 = vpop.f32.mrf.mxu0  ;;  %v4344_v55 = vshrl.u32 %v12177_v39, 16  ;;  %v16054_v63 = vld [vmem:[#allocation3 + $0x30] sm:$0xff]   ;;  %v4594_v58 = vld [vmem:[#allocation3 + $0x60] sm:$0xf] }
 0x278   : > { %v4303_v43 = vrot.slane %v4301_v24, 7  ;;  %v16052_v49 = vld [vmem:[#allocation3 + $0x24] sm:$0xff]   ;;  %v4347_v11 = vshll.u32 %v12177_v39, 16  ;;  %v12175_v27 = vpack.c.bf16 %v4108_v38, %v4108_v38  ;;  %v12178_v48 = vpack.c.bf16 %v4111_v19, %v4111_v19  ;;  %v16076_v38 = vld [vmem:[#allocation10 + $0x38] sm:$0xff]  }
 0x279   : > { %v4323_v50 = vor.u32 %v4321_v52, %v4320_v32  ;;  %v4325_v33 = vrot.slane %v4320_v32, 4  ;;  %13016 = vmatprep.mubr.msk.bf16.mxu1 %vm1344_vm9, %v16052_v49  ;;  %13051 = vmatmul.mubr.msk.bf16.gmra.mxu0 %vm1344_vm9, %v16052_v49  ;;  %v3978_v6 = vpop.f32.mrf.mxu0  ;;  %v4346_v47 = vrot.slane %v4344_v55, 7  ;;  %v4587_v52 = vld [vmem:[#allocation3 + $0x54] sm:$0xf]  ;;  %v4598_v19 = vld [vmem:[#allocation3 + $0x68] sm:$0x1]  ;;  %v12176_v32 = vpack.c.bf16 %v4109_v10, %v4109_v10 }
 0x27a   : > { %v4306_v53 = vor.u32 %v4304_v15, %v4303_v43  ;;  %v4308_v22 = vrot.slane %v4303_v43, 4  ;;  %v4327_v3 = vshrl.u32 %v12175_v27, 16  ;;  %v4330_v14 = vshll.u32 %v12175_v27, 16  ;;  %13017 = vmatmul.mubr.msk.bf16.gmra.mxu1 %vm1344_vm9, %v16054_v63  ;;  %13054 = vmatprep.mubr.msk.bf16.mxu0 %vm1344_vm9, %v16054_v63 }
 0x27b   : > { %v4352_v46 = vshrl.u32 %v12178_v48, 16  ;;  %v4324_v30 = vsel %vm14296_vm7, %v4316_v0, %v4323_v50  ;;  %v4585_v61 = vsel %vm14273_vm3, %v4325_v33, %v4584_v44  ;;  %v16072_v24 = vpop.f32.mrf.mxu0  ;;  %v4349_v0 = vor.u32 %v4347_v11, %v4346_v47  ;;  %13180 = vmatprep.subr.bf16.mxu0 %v16076_v38 }
 0x27c   : > { %v4307_v9 = vsel %vm14296_vm7, %v4299_v13, %v4306_v53  ;;  %v4578_v40 = vsel %vm14273_vm3, %v4308_v22, %v4577_v23  ;;  %4583 = vst.msk [vmem:[#allocation3 + $0x4c] sm:$0xf] %vm396_vm0, %v4324_v30  ;;  %4586 = vst [vmem:[#allocation3 + $0x50] sm:$0x1] %v4585_v61  ;;  %v4350_v15 = vrot.slane %v4346_v47, 4  ;;  %v4329_v39 = vrot.slane %v4327_v3, 7 }
 0x27d   : > { %4576 = vst.msk [vmem:[#allocation3 + $0x40] sm:$0xf] %vm396_vm0, %v4307_v9  ;;  %4579 = vst [vmem:[#allocation3 + $0x44] sm:$0x1] %v4578_v40  ;;  %v4354_v44 = vrot.slane %v4352_v46, 7  ;;  %v4355_v13 = vshll.u32 %v12178_v48, 16  ;;  %v4082_v23 = vadd.f32 %v15889_v28, %v4043_v25  ;;  %v4080_v43 = vadd.f32 %v15889_v28, %v4041_v36  ;;  %v16080_v55 = vpop.f32.mrf.mxu0 }
 0x27e   : > { %v4595_v27 = vsel %vm14308_vm8, %v4349_v0, %v4594_v58  ;;  %v4332_v50 = vor.u32 %v4330_v14, %v4329_v39  ;;  %v4333_v33 = vrot.slane %v4329_v39, 4  ;;  %v4335_v22 = vshrl.u32 %v12176_v32, 16  ;;  %v4591_v40 = vld [vmem:[#allocation3 + $0x5c] sm:$0x1] }
 0x27f   : > { %v4359_v11 = vrot.slane %v4354_v44, 4  ;;  %4596 = vst [vmem:[#allocation3 + $0x60] sm:$0xf] %v4595_v27  ;;  %v4357_v53 = vor.u32 %v4355_v13, %v4354_v44  ;;  %v4338_v48 = vshll.u32 %v12176_v32, 16  ;;  %v4114_v47 = vmax.f32 %v4082_v23, 0.0  ;;  %v16091_v14 = vpop.f32.mrf.mxu0 }
 0x280   : > { %v4588_v10 = vsel %vm14308_vm8, %v4332_v50, %v4587_v52  ;;  %v4112_v36 = vmax.f32 %v4080_v43, 0.0  ;;  %v4044_v3 = vadd.f32 %v16038_v17, %v15926_v42  ;;  %v4337_v30 = vrot.slane %v4335_v22, 7  ;;  %v4608_v27 = vld [vmem:[#allocation3 + $0x78] sm:$0xf] }
 0x281   : > { %v4599_v25 = vsel %vm14273_vm3, %v4359_v11, %v4598_v19  ;;  %4589 = vst [vmem:[#allocation3 + $0x54] sm:$0xf] %v4588_v10  ;;  %v4358_v46 = vsel %vm14296_vm7, %v4350_v15, %v4357_v53  ;;  %v12181_v61 = vpack.c.bf16 %v4114_v47, %v4114_v47  ;;  %v4042_v9 = vadd.f32 %v16046_v37, %v15929_v51  ;;  %v16107_v43 = vpop.f32.mrf.mxu0  ;;  %v4601_v47 = vld [vmem:[#allocation3 + $0x6c] sm:$0xf] }
 0x282   : > { %4600 = vst [vmem:[#allocation3 + $0x68] sm:$0x1] %v4599_v25  ;;  %4597 = vst.msk [vmem:[#allocation3 + $0x64] sm:$0xf] %vm396_vm0, %v4358_v46  ;;  %v12179_v58 = vpack.c.bf16 %v4112_v36, %v4112_v36  ;;  %v4083_v52 = vadd.f32 %v15889_v28, %v4044_v3  ;;  %v4047_v42 = vadd.f32 %v16050_v41, %v15935_v18  ;;  %v4342_v39 = vrot.slane %v4337_v30, 4 }
 0x283   : > { %v4045_v17 = vadd.f32 %v3978_v6, %v15939_v21  ;;  %v4340_v0 = vor.u32 %v4338_v48, %v4337_v30  ;;  %v4378_v15 = vshrl.u32 %v12181_v61, 16  ;;  %v4381_v44 = vshll.u32 %v12181_v61, 16  ;;  %v16105_v23 = vld [vmem:[#allocation3 + $0x48] sm:$0xff]   ;;  %v16130_v61 = vpop.f32.mrf.mxu0 }
 0x284   : > { %v16102_v13 = vld [vmem:[#allocation3 + $0x3c] sm:$0xff]   ;;  %v4361_v19 = vshrl.u32 %v12179_v58, 16  ;;  %v4364_v32 = vshll.u32 %v12179_v58, 16  ;;  %v4115_v51 = vmax.f32 %v4083_v52, 0.0  ;;  %v4081_v37 = vadd.f32 %v15889_v28, %v4042_v9 }
 0x285   : > { %v4341_v18 = vsel %vm14296_vm7, %v4333_v33, %v4340_v0  ;;  %v4592_v21 = vsel %vm14273_vm3, %v4342_v39, %v4591_v40  ;;  %v4380_v41 = vrot.slane %v4378_v15, 7  ;;  %v4086_v6 = vadd.f32 %v15889_v28, %v4047_v42  ;;  %13020 = vmatprep.mubr.msk.bf16.mxu1 %vm1344_vm9, %v16102_v13  ;;  %13055 = vmatmul.mubr.msk.bf16.gmra.mxu0 %vm1344_vm9, %v16102_v13  ;;  %v4612_v0 = vld [vmem:[#allocation3 + $0x80] sm:$0x1] }
 0x286   : > { %4590 = vst.msk [vmem:[#allocation3 + $0x58] sm:$0xf] %vm396_vm0, %v4341_v18  ;;  %4593 = vst [vmem:[#allocation3 + $0x5c] sm:$0x1] %v4592_v21  ;;  %v16119_v50 = vrot.slane %v4361_v19, 7  ;;  %v12182_v11 = vpack.c.bf16 %v4115_v51, %v4115_v51  ;;  %v4113_v33 = vmax.f32 %v4081_v37, 0.0  ;;  %v4084_v53 = vadd.f32 %v15889_v28, %v4045_v17  ;;  %13021 = vmatmul.mubr.msk.bf16.gmra.mxu1 %vm1344_vm9, %v16105_v23 }
 0x287   : > { %13058 = vmatprep.mubr.msk.bf16.mxu0 %vm1344_vm9, %v16105_v23  ;;  %v4383_v22 = vor.u32 %v4381_v44, %v4380_v41  ;;  %v4384_v48 = vrot.slane %v4380_v41, 4  ;;  %v4118_v10 = vmax.f32 %v4086_v6, 0.0  ;;  %v4048_v25 = vadd.f32 %v16072_v24, %v15942_v12  ;;  %v4605_v37 = vld [vmem:[#allocation3 + $0x74] sm:$0x1]  ;;  %v3997_v41 = vpop.f32.mrf.mxu0 }
 0x288   : > { %v4366_v36 = vor.u32 %v4364_v32, %v16119_v50  ;;  %v4367_v3 = vrot.slane %v16119_v50, 4  ;;  %v4386_v46 = vshrl.u32 %v12182_v11, 16  ;;  %v4389_v30 = vshll.u32 %v12182_v11, 16 }
 0x289   : > { %v4609_v9 = vsel %vm14308_vm8, %v4383_v22, %v4608_v27  ;;  %v12180_v40 = vpack.c.bf16 %v4113_v33, %v4113_v33  ;;  %v12185_v58 = vpack.c.bf16 %v4118_v10, %v4118_v10  ;;  %v4116_v52 = vmax.f32 %v4084_v53, 0.0  ;;  %v4622_v53 = vld [vmem:[#allocation3 + $0x90] sm:$0xf]  ;;  %v16148_v10 = vld [vmem:[#allocation3 + $0x60] sm:$0xff]  }
 0x28a   : > { %4610 = vst [vmem:[#allocation3 + $0x78] sm:$0xf] %v4609_v9  ;;  %v4602_v42 = vsel %vm14308_vm8, %v4366_v36, %v4601_v47  ;;  %v4388_v17 = vrot.slane %v4386_v46, 7  ;;  %v4087_v12 = vadd.f32 %v15889_v28, %v4048_v25  ;;  %v4046_v24 = vadd.f32 %v16080_v55, %v15944_v2 }
 0x28b   : > { %4603 = vst [vmem:[#allocation3 + $0x6c] sm:$0xf] %v4602_v42  ;;  %v4369_v39 = vshrl.u32 %v12180_v40, 16  ;;  %v4372_v15 = vshll.u32 %v12180_v40, 16  ;;  %v4412_v44 = vshrl.u32 %v12185_v58, 16  ;;  %v4415_v19 = vshll.u32 %v12185_v58, 16  ;;  %v13008_v40 = vpop.f32.mrf.mxu0 }
 0x28c   : > { %v4391_v32 = vor.u32 %v4389_v30, %v4388_v17  ;;  %v4393_v51 = vrot.slane %v4388_v17, 4  ;;  %v12183_v18 = vpack.c.bf16 %v4116_v52, %v4116_v52  ;;  %v4119_v21 = vmax.f32 %v4087_v12, 0.0  ;;  %v4615_v17 = vld [vmem:[#allocation3 + $0x84] sm:$0xf] }
 0x28d   : > { %v4371_v6 = vrot.slane %v4369_v39, 7  ;;  %v4414_v27 = vrot.slane %v4412_v44, 7  ;;  %v4085_v50 = vadd.f32 %v15889_v28, %v4046_v24  ;;  %v4051_v11 = vadd.f32 %v16091_v14, %v15948_v26  ;;  %v16142_v2 = vld [vmem:[#allocation3 + $0x54] sm:$0xff]  }
 0x28e   : > { %v4392_v55 = vsel %vm14296_vm7, %v4384_v48, %v4391_v32  ;;  %v4613_v33 = vsel %vm14273_vm3, %v4393_v51, %v4612_v0  ;;  %v4395_v22 = vshrl.u32 %v12183_v18, 16  ;;  %v4398_v47 = vshll.u32 %v12183_v18, 16  ;;  %13024 = vmatprep.mubr.msk.bf16.mxu1 %vm1344_vm9, %v16142_v2  ;;  %13059 = vmatmul.mubr.msk.bf16.gmra.mxu0 %vm1344_vm9, %v16142_v2  ;;  %v4010_v18 = vpop.f32.mrf.mxu0 }
 0x28f   : > { %4611 = vst.msk [vmem:[#allocation3 + $0x7c] sm:$0xf] %vm396_vm0, %v4392_v55  ;;  %4614 = vst [vmem:[#allocation3 + $0x80] sm:$0x1] %v4613_v33  ;;  %v4374_v25 = vor.u32 %v4372_v15, %v4371_v6  ;;  %v4376_v36 = vrot.slane %v4371_v6, 4  ;;  %v4417_v46 = vor.u32 %v4415_v19, %v4414_v27  ;;  %v4418_v26 = vrot.slane %v4414_v27, 4  ;;  %13025 = vmatmul.mubr.msk.bf16.gmra.mxu1 %vm1344_vm9, %v16148_v10 }
 0x290   : > { %v16155_v14 = vrot.slane %v4395_v22, 7  ;;  %v12186_v48 = vpack.c.bf16 %v4119_v21, %v4119_v21  ;;  %v4117_v30 = vmax.f32 %v4085_v50, 0.0  ;;  %v4090_v9 = vadd.f32 %v15889_v28, %v4051_v11  ;;  %13062 = vmatprep.mubr.msk.bf16.mxu0 %vm1344_vm9, %v16148_v10  ;;  %v4626_v21 = vld [vmem:[#allocation3 + $0x98] sm:$0x1] }
 0x291   : > { %v4375_v58 = vsel %vm14296_vm7, %v4367_v3, %v4374_v25  ;;  %v4606_v52 = vsel %vm14273_vm3, %v4376_v36, %v4605_v37  ;;  %v4623_v42 = vsel %vm14308_vm8, %v4417_v46, %v4622_v53  ;;  %v4049_v12 = vadd.f32 %v16107_v43, %v15951_v59 }
 0x292   : > { %4604 = vst.msk [vmem:[#allocation3 + $0x70] sm:$0xf] %vm396_vm0, %v4375_v58  ;;  %4607 = vst [vmem:[#allocation3 + $0x74] sm:$0x1] %v4606_v52  ;;  %v4400_v24 = vor.u32 %v4398_v47, %v16155_v14  ;;  %v4401_v0 = vrot.slane %v16155_v14, 4  ;;  %v4420_v39 = vshrl.u32 %v12186_v48, 16  ;;  %v12184_v15 = vpack.c.bf16 %v4117_v30, %v4117_v30  ;;  %v13009_v14 = vpop.f32.mrf.mxu0 }
 0x293   : > { %4624 = vst [vmem:[#allocation3 + $0x90] sm:$0xf] %v4623_v42  ;;  %v4423_v3 = vshll.u32 %v12186_v48, 16  ;;  %v4122_v44 = vmax.f32 %v4090_v9, 0.0  ;;  %v4088_v19 = vadd.f32 %v15889_v28, %v4049_v12  ;;  %v4052_v32 = vadd.f32 %v16130_v61, %v15954_v20  ;;  %v4636_v52 = vld [vmem:[#allocation3 + $0xa8] sm:$0xf] }
 0x294   : > { %v4616_v59 = vsel %vm14308_vm8, %v4400_v24, %v4615_v17  ;;  %v4422_v43 = vrot.slane %v4420_v39, 7  ;;  %v4050_v51 = vadd.f32 %v3997_v41, %v15956_v57  ;;  %v4055_v37 = vadd.f32 %v13008_v40, %v15959_v8  ;;  %v4619_v41 = vld [vmem:[#allocation3 + $0x8c] sm:$0x1] }
 0x295   : > { %4617 = vst [vmem:[#allocation3 + $0x84] sm:$0xf] %v4616_v59  ;;  %v4403_v6 = vshrl.u32 %v12184_v15, 16  ;;  %v4406_v27 = vshll.u32 %v12184_v15, 16  ;;  %v12189_v50 = vpack.c.bf16 %v4122_v44, %v4122_v44  ;;  %v4120_v11 = vmax.f32 %v4088_v19, 0.0 }
 0x296   : > { %v4425_v55 = vor.u32 %v4423_v3, %v4422_v43  ;;  %v4427_v33 = vrot.slane %v4422_v43, 4  ;;  %v4091_v53 = vadd.f32 %v15889_v28, %v4052_v32  ;;  %v4089_v20 = vadd.f32 %v15889_v28, %v4050_v51  ;;  %v16190_v24 = vld [vmem:[#allocation3 + $0x78] sm:$0xff]   ;;  %v4013_v51 = vpop.f32.mrf.mxu0 }
 0x297   : > { %v4405_v61 = vrot.slane %v4403_v6, 7  ;;  %v4446_v22 = vshrl.u32 %v12189_v50, 16  ;;  %v4449_v47 = vshll.u32 %v12189_v50, 16  ;;  %v12187_v25 = vpack.c.bf16 %v4120_v11, %v4120_v11 }
 0x298   : > { %v4426_v57 = vsel %vm14296_vm7, %v4418_v26, %v4425_v55  ;;  %v4627_v8 = vsel %vm14273_vm3, %v4427_v33, %v4626_v21  ;;  %v4123_v36 = vmax.f32 %v4091_v53, 0.0  ;;  %v4121_v46 = vmax.f32 %v4089_v20, 0.0  ;;  %v4640_v53 = vld [vmem:[#allocation3 + $0xb0] sm:$0x1] }
 0x299   : > { %4625 = vst.msk [vmem:[#allocation3 + $0x94] sm:$0xf] %vm396_vm0, %v4426_v57  ;;  %4628 = vst [vmem:[#allocation3 + $0x98] sm:$0x1] %v4627_v8  ;;  %v4408_v48 = vor.u32 %v4406_v27, %v4405_v61  ;;  %v4410_v30 = vrot.slane %v4405_v61, 4  ;;  %v4448_v9 = vrot.slane %v4446_v22, 7  ;;  %v4094_v12 = vadd.f32 %v15889_v28, %v4055_v37 }
 0x29a   : > { %v4429_v40 = vshrl.u32 %v12187_v25, 16  ;;  %v16187_v58 = vld [vmem:[#allocation3 + $0x6c] sm:$0xff]   ;;  %v4432_v42 = vshll.u32 %v12187_v25, 16  ;;  %v12190_v17 = vpack.c.bf16 %v4123_v36, %v4123_v36  ;;  %v12188_v26 = vpack.c.bf16 %v4121_v46, %v4121_v46  ;;  %v4629_v37 = vld [vmem:[#allocation3 + $0x9c] sm:$0xf] }
 0x29b   : > { %v4409_v39 = vsel %vm14296_vm7, %v4401_v0, %v4408_v48  ;;  %v4620_v3 = vsel %vm14273_vm3, %v4410_v30, %v4619_v41  ;;  %v4451_v15 = vor.u32 %v4449_v47, %v4448_v9  ;;  %v4452_v44 = vrot.slane %v4448_v9, 4  ;;  %13028 = vmatprep.mubr.msk.bf16.mxu1 %vm1344_vm9, %v16187_v58  ;;  %13063 = vmatmul.mubr.msk.bf16.gmra.mxu0 %vm1344_vm9, %v16187_v58  ;;  %v5381_v9 = vld [vmem:[#allocation3 + $0xc] sm:$0xf] }
 0x29c   : > { %4618 = vst.msk [vmem:[#allocation3 + $0x88] sm:$0xf] %vm396_vm0, %v4409_v39  ;;  %4621 = vst [vmem:[#allocation3 + $0x8c] sm:$0x1] %v4620_v3  ;;  %v4431_v19 = vrot.slane %v4429_v40, 7  ;;  %v4454_v32 = vshrl.u32 %v12190_v17, 16  ;;  %13029 = vmatmul.mubr.msk.bf16.gmra.mxu1 %vm1344_vm9, %v16190_v24  ;;  %13066 = vmatprep.mubr.msk.bf16.mxu0 %vm1344_vm9, %v16190_v24  ;;  %v4053_v27 = vadd.f32 %v4010_v18, %v15964_v7 }
 0x29d   : > { %v4457_v59 = vshll.u32 %v12190_v17, 16  ;;  %v4437_v43 = vshrl.u32 %v12188_v26, 16  ;;  %v4637_v0 = vsel %vm14308_vm8, %v4451_v15, %v4636_v52  ;;  %v4440_v21 = vshll.u32 %v12188_v26, 16  ;;  %v4633_v7 = vld [vmem:[#allocation3 + $0xa4] sm:$0x1] }
 0x29e   : > { %v4126_v6 = vmax.f32 %v4094_v12, 0.0  ;;  %4638 = vst [vmem:[#allocation3 + $0xa8] sm:$0xf] %v4637_v0  ;;  %v4434_v50 = vor.u32 %v4432_v42, %v4431_v19  ;;  %v4435_v11 = vrot.slane %v4431_v19, 4  ;;  %v4456_v55 = vrot.slane %v4454_v32, 7 }
 0x29f   : > { %v4439_v33 = vrot.slane %v4437_v43, 7  ;;  %v4092_v61 = vadd.f32 %v15889_v28, %v4053_v27  ;;  %v4056_v22 = vadd.f32 %v13009_v14, %v15969_v60  ;;  %v4054_v47 = vadd.f32 %v4013_v51, %v15971_v56  ;;  %v5382_v12 = vld [vmem:[#allocation3 + $0x10] sm:$0xf]  ;;  %v4650_v39 = vld [vmem:[#allocation3 + $0xc0] sm:$0xf] }
 0x2a0   : > { %v12193_v20 = vpack.c.bf16 %v4126_v6, %v4126_v6  ;;  %v4630_v25 = vsel %vm14308_vm8, %v4434_v50, %v4629_v37  ;;  %v4459_v57 = vor.u32 %v4457_v59, %v4456_v55  ;;  %v4461_v8 = vrot.slane %v4456_v55, 4  ;;  %v16229_v15 = vld [vmem:[#allocation3 + $0x90] sm:$0xff]  }
 0x2a1   : > { %v4442_v41 = vor.u32 %v4440_v21, %v4439_v33  ;;  %4631 = vst [vmem:[#allocation3 + $0x9c] sm:$0xf] %v4630_v25  ;;  %v4444_v18 = vrot.slane %v4439_v33, 4  ;;  %v4124_v48 = vmax.f32 %v4092_v61, 0.0  ;;  %v4095_v14 = vadd.f32 %v15889_v28, %v4056_v22  ;;  %v4643_v21 = vld [vmem:[#allocation3 + $0xb4] sm:$0xf] }
 0x2a2   : > { %v4480_v36 = vshrl.u32 %v12193_v20, 16  ;;  %v4483_v46 = vshll.u32 %v12193_v20, 16  ;;  %v4460_v30 = vsel %vm14296_vm7, %v4452_v44, %v4459_v57  ;;  %v4641_v60 = vsel %vm14273_vm3, %v4461_v8, %v4640_v53  ;;  %v5384_v33 = vld [vmem:[#allocation3 + $0x18] sm:$0xf]  ;;  %v4654_v20 = vld [vmem:[#allocation3 + $0xc8] sm:$0x1] }
 0x2a3   : > { %v4443_v56 = vsel %vm14296_vm7, %v4435_v11, %v4442_v41  ;;  %4639 = vst.msk [vmem:[#allocation3 + $0xac] sm:$0xf] %vm396_vm0, %v4460_v30  ;;  %4642 = vst [vmem:[#allocation3 + $0xb0] sm:$0x1] %v4641_v60  ;;  %v4634_v40 = vsel %vm14273_vm3, %v4444_v18, %v4633_v7  ;;  %v12191_v42 = vpack.c.bf16 %v4124_v48, %v4124_v48  ;;  %v16227_v26 = vld [vmem:[#allocation3 + $0x84] sm:$0xff]   ;;  %v4127_v3 = vmax.f32 %v4095_v14, 0.0 }
 0x2a4   : > { %4632 = vst.msk [vmem:[#allocation3 + $0xa0] sm:$0xf] %vm396_vm0, %v4443_v56  ;;  %v16224_v52 = vrot.slane %v4480_v36, 7  ;;  %v4093_v17 = vadd.f32 %v15889_v28, %v4054_v47  ;;  %4635 = vst [vmem:[#allocation3 + $0xa4] sm:$0x1] %v4634_v40  ;;  %v16234_v44 = vrot.slane %v5439_v5, 4  ;;  %13032 = vmatprep.mubr.msk.bf16.mxu1 %vm1344_vm9, %v16227_v26  ;;  %13067 = vmatmul.mubr.msk.bf16.gmra.mxu0 %vm1344_vm9, %v16227_v26 }
 0x2a5   : > { %v16238_v19 = vrot.slane %v5452_v62, 5  ;;  %v4463_v28 = vshrl.u32 %v12191_v42, 16  ;;  %v5457_v59 = vshrl.u32 %v5381_v9, 16  ;;  %v5460_v43 = vshll.u32 %v5381_v9, 16  ;;  %13033 = vmatmul.mubr.msk.bf16.gmra.mxu1 %vm1344_vm9, %v16229_v15  ;;  %13070 = vmatprep.mubr.msk.bf16.mxu0 %vm1344_vm9, %v16229_v15  ;;  %v5385_v47 = vld [vmem:[#allocation3 + $0x1c] sm:$0xf] }
 0x2a6   : > { %v4485_v32 = vor.u32 %v4483_v46, %v16224_v52  ;;  %v12194_v51 = vpack.c.bf16 %v4127_v3, %v4127_v3  ;;  %v4125_v0 = vmax.f32 %v4093_v17, 0.0  ;;  %v5466_v35 = vshll.u32 %v5382_v12, 16  ;;  %v4647_v36 = vld [vmem:[#allocation3 + $0xbc] sm:$0x1]  ;;  %v5383_v9 = vld [vmem:[#allocation3 + $0x14] sm:$0x1] }
 0x2a7   : > { %v4465_v62 = vrot.slane %v4463_v28, 7  ;;  %v4466_v37 = vshll.u32 %v12191_v42, 16  ;;  %v5470_v6 = vshrl.u32 %v5382_v12, 16  ;;  %v5445_v55 = vsel %vm14596_vm12, %v16234_v44, %v15855_v54  ;;  %v5386_v28 = vld [vmem:[#allocation3 + $0x20] sm:$0x1] }
 0x2a8   : > { %v4651_v5 = vsel %vm14308_vm8, %v4485_v32, %v4650_v39  ;;  %v4488_v27 = vshrl.u32 %v12194_v51, 16  ;;  %v12192_v50 = vpack.c.bf16 %v4125_v0, %v4125_v0  ;;  %v4486_v29 = vrot.slane %v16224_v52, 4  ;;  %v6580_v39 = vld [vmem:[#allocation3 + $0x18] sm:$0xe]  ;;  %v16471_v31 = vld [vmem:[#allocation3 + $0x94] sm:$0xf] }
 0x2a9   : > { %4652 = vst [vmem:[#allocation3 + $0xc0] sm:$0xf] %v4651_v5  ;;  %v4468_v53 = vor.u32 %v4466_v37, %v4465_v62  ;;  %v5459_v61 = vrot.slane %v5457_v59, 4  ;;  %v5462_v22 = vrot.slane %v5460_v43, 5  ;;  %v4491_v57 = vshll.u32 %v12194_v51, 16 }
 0x2aa   : > { %v4490_v25 = vrot.slane %v4488_v27, 7  ;;  %v4471_v8 = vshrl.u32 %v12192_v50, 16  ;;  %v5455_v7 = vsel %vm14596_vm12, %v16252_v45, %v16238_v19  ;;  %v4474_v18 = vshll.u32 %v12192_v50, 16  ;;  %v16273_v14 = vld [vmem:[#allocation3 + $0xa8] sm:$0xff]   ;;  %v5387_v59 = vld [vmem:[#allocation3 + $0x24] sm:$0xf] }
 0x2ab   : > { %v16261_v41 = vld [vmem:[#allocation3 + $0x9c] sm:$0xff]   ;;  %v4644_v54 = vsel %vm14308_vm8, %v4468_v53, %v4643_v21  ;;  %v16269_v46 = vrot.slane %v5466_v35, 5  ;;  %v5472_v48 = vrot.slane %v5470_v6, 4  ;;  %v5481_v40 = vshrl.u32 %v5384_v33, 16  ;;  %v5388_v50 = vld [vmem:[#allocation3 + $0x28] sm:$0xf] }
 0x2ac   : > { %4645 = vst [vmem:[#allocation3 + $0xb4] sm:$0xf] %v4644_v54  ;;  %v4493_v30 = vor.u32 %v4491_v57, %v4490_v25  ;;  %v4495_v60 = vrot.slane %v4490_v25, 4  ;;  %v4473_v56 = vrot.slane %v4471_v8, 7  ;;  %13036 = vmatprep.mubr.msk.bf16.mxu1 %vm1344_vm9, %v16261_v41  ;;  %v4469_v52 = vrot.slane %v4465_v62, 4  ;;  %13071 = vmatmul.mubr.msk.bf16.gmra.mxu0 %vm1344_vm9, %v16261_v41 }
 0x2ad   : > { %v5463_v42 = vor.u32 %v5462_v22, %v5459_v61  ;;  %v5484_v17 = vshll.u32 %v5384_v33, 16  ;;  %v5490_v12 = vshll.u32 %v5385_v47, 16  ;;  %13037 = vmatmul.mubr.msk.bf16.gmra.mxu1 %vm1344_vm9, %v16273_v14  ;;  %13074 = vmatprep.mubr.msk.bf16.mxu0 %vm1344_vm9, %v16273_v14  ;;  %v5473_v43 = vor.u32 %v5472_v48, %v16269_v46  ;;  %v5389_v48 = vld [vmem:[#allocation3 + $0x2c] sm:$0x1]  ;;  %v5420_v4 = vld [vmem:[#allocation3 + $0xa8] sm:$0xf] }
 0x2ae   : > { %v4494_v3 = vsel %vm14296_vm7, %v4486_v29, %v4493_v30  ;;  %v4655_v44 = vsel %vm14273_vm3, %v4495_v60, %v4654_v20  ;;  %v4476_v19 = vor.u32 %v4474_v18, %v4473_v56  ;;  %v4478_v32 = vrot.slane %v4473_v56, 4 }
 0x2af   : > { %4653 = vst.msk [vmem:[#allocation3 + $0xc4] sm:$0xf] %vm396_vm0, %v4494_v3  ;;  %4656 = vst [vmem:[#allocation3 + $0xc8] sm:$0x1] %v4655_v44  ;;  %v5476_v51 = vshll.u32 %v5383_v9, 16  ;;  %v5483_v0 = vrot.slane %v5481_v40, 4  ;;  %v11724_v37 = vcombine.low %v5445_v55, %v5455_v7 }
 0x2b0   : > { %v5486_v16 = vrot.slane %v5484_v17, 5  ;;  %v4477_v45 = vsel %vm14296_vm7, %v4469_v52, %v4476_v19  ;;  %v4648_v35 = vsel %vm14273_vm3, %v4478_v32, %v4647_v36  ;;  %v16291_v5 = vrot.slane %v5490_v12, 5  ;;  %v5390_v7 = vld [vmem:[#allocation3 + $0x30] sm:$0xf]  ;;  %v5391_v9 = vld [vmem:[#allocation3 + $0x34] sm:$0xf] }
 0x2b1   : > { %v5494_v62 = vshrl.u32 %v5385_v47, 16  ;;  %4646 = vst.msk [vmem:[#allocation3 + $0xb8] sm:$0xf] %vm396_vm0, %v4477_v45  ;;  %4649 = vst [vmem:[#allocation3 + $0xbc] sm:$0x1] %v4648_v35  ;;  %v5500_v6 = vshll.u32 %v5386_v28, 16 }
 0x2b2   : > { %v5487_v21 = vor.u32 %v5486_v16, %v5483_v0  ;;  %v6660_v27 = vrot.slane %v5385_v47, 5  ;;  %v11795_v29 = vrot.slane %v6580_v39, 9  ;;  %v5505_v53 = vshrl.u32 %v5387_v59, 16  ;;  %v5393_v19 = vld [vmem:[#allocation3 + $0x3c] sm:$0xf] }
 0x2b3   : > { %v5496_v33 = vrot.slane %v5494_v62, 4  ;;  %v5508_v20 = vshll.u32 %v5387_v59, 16  ;;  %v5464_v61 = vrot.slane %v5463_v42, 4  ;;  %v5478_v22 = vrot.slane %v5476_v51, 5  ;;  %v16308_v62 = vld [vmem:[#allocation3 + $0x40] sm:$0xf] }
 0x2b4   : > { %v6662_v25 = vrot.slane %v6660_v27, 4  ;;  %v6663_v57 = vrot.slane %v5386_v28, 5  ;;  %v5474_v8 = vrot.slane %v5473_v43, 4  ;;  %v6661_v36 = vsel %vm15001_vm15, %v11795_v29, %v6660_v27 }
 0x2b5   : > { %v5497_v54 = vor.u32 %v5496_v33, %v16291_v5  ;;  %v5514_v55 = vshll.u32 %v5388_v50, 16  ;;  %v5507_v30 = vrot.slane %v5505_v53, 4  ;;  %v5510_v60 = vrot.slane %v5508_v20, 5  ;;  %v16326_v53 = vld [vmem:[#allocation3 + $0x38] sm:$0x1] }
 0x2b6   : > { %v6664_v47 = vsel %vm15001_vm15, %v6662_v25, %v6663_v57  ;;  %v5518_v56 = vshrl.u32 %v5388_v50, 16  ;;  %v5488_v40 = vrot.slane %v5487_v21, 4  ;;  %v5502_v52 = vrot.slane %v5500_v6, 5  ;;  %v16305_v51 = vld [vmem:[#allocation3 + $0xc0] sm:$0xff]   ;;  %19390 = vst [vmem:[#allocation24_spill] sm:$0xff] %v16326_v53 }
 0x2b7   : > { %v16299_v42 = vcombine.low %v6661_v36, %v6664_v47  ;;  %v16301_v17 = vrot.slane %v5514_v55, 5  ;;  %v5498_v12 = vrot.slane %v5497_v54, 4  ;;  %v5529_v3 = vshrl.u32 %v5390_v7, 16  ;;  %v5396_v57 = vld [vmem:[#allocation3 + $0x48] sm:$0xf] }
 0x2b8   : > { %v5520_v39 = vrot.slane %v5518_v56, 4  ;;  %v5532_v44 = vshll.u32 %v5390_v7, 16  ;;  %v16303_v32 = vld [vmem:[#allocation3 + $0xb4] sm:$0xff]   ;;  %v5524_v28 = vshll.u32 %v5389_v48, 16  ;;  %v5538_v59 = vshll.u32 %v5391_v9, 16 }
 0x2b9   : > { %19389 = vst [vmem:[#allocation25_spill] sm:$0xff] %v16299_v42  ;;  %v5542_v43 = vshrl.u32 %v5391_v9, 16  ;;  %v5511_v0 = vor.u32 %v5510_v60, %v5507_v30  ;;  %v5531_v45 = vrot.slane %v5529_v3, 4  ;;  %13040 = vmatprep.mubr.msk.bf16.mxu1 %vm1344_vm9, %v16303_v32  ;;  %13075 = vmatmul.mubr.msk.bf16.gmra.mxu0 %vm1344_vm9, %v16303_v32  ;;  %v5469_v21 = vsel %vm14596_vm12, %v5464_v61, %v16269_v46  ;;  %v16336_v48 = vld [vmem:[#allocation3 + $0x4c] sm:$0xf] }
 0x2ba   : > { %v5521_v16 = vor.u32 %v5520_v39, %v16301_v17  ;;  %v5534_v35 = vrot.slane %v5532_v44, 5  ;;  %v16317_v6 = vrot.slane %v5538_v59, 5  ;;  %13041 = vmatmul.mubr.msk.bf16.gmra.mxu1 %vm1344_vm9, %v16305_v51  ;;  %13114 = vmatprep.mubr.msk.bf16.mxu0 %vm1344_vm9, %v11724_v37  ;;  %v5479_v50 = vsel %vm14596_vm12, %v5474_v8, %v5478_v22  ;;  %v5399_v3 = vld [vmem:[#allocation3 + $0x54] sm:$0xf] }
 0x2bb   : > { %v5544_v27 = vrot.slane %v5542_v43, 4  ;;  %v5503_v33 = vsel %vm14596_vm12, %v5498_v12, %v5502_v52  ;;  %13080 = vmatprep.mubr.msk.bf16.mxu1 %vm1344_vm9, %v16005_v34  ;;  %v5493_v46 = vsel %vm14596_vm12, %v5488_v40, %v16291_v5  ;;  %v5553_v61 = vshrl.u32 %v5393_v19, 16  ;;  %v16343_v5 = vld [vmem:[#allocation3 + $0x44] sm:$0x1]  ;;  %v16355_v43 = vld [vmem:[#allocation3 + $0x58] sm:$0xf] }
 0x2bc   : > { %v5522_v29 = vrot.slane %v5521_v16, 4  ;;  %v5535_v20 = vor.u32 %v5534_v35, %v5531_v45  ;;  %v5556_v25 = vshll.u32 %v5393_v19, 16  ;;  %v5562_v37 = vshll.u32 %v16308_v62, 16 }
 0x2bd   : > { %v5512_v22 = vrot.slane %v5511_v0, 4  ;;  %v5526_v8 = vrot.slane %v5524_v28, 5  ;;  %v5545_v54 = vor.u32 %v5544_v27, %v16317_v6  ;;  %v5566_v36 = vshrl.u32 %v16308_v62, 16  ;;  %v16357_v0 = vld [vmem:[#allocation10 + $0x10] sm:$0xff]   ;;  %v16364_v27 = vld [vmem:[#allocation10 + $0x28] sm:$0xff]  }
 0x2be   : > { %v16338_v55 = vcombine.low %v5469_v21, %v5479_v50  ;;  %v16340_v34 = vcombine.low %v5493_v46, %v5503_v33  ;;  %v5548_v7 = vshll.u32 %v16326_v53, 16  ;;  %v16345_v47 = vrot.slane %v5562_v37, 5  ;;  %v16372_v33 = vld [vmem:[#allocation3 + $0x50] sm:$0x1]  ;;  %v5402_v37 = vld [vmem:[#allocation3 + $0x60] sm:$0xf] }
 0x2bf   : > { %v5527_v30 = vsel %vm14596_vm12, %v5522_v29, %v5526_v8  ;;  %v5536_v60 = vrot.slane %v5535_v20, 4  ;;  %v5568_v56 = vrot.slane %v5566_v36, 4  ;;  %v5577_v9 = vshrl.u32 %v5396_v57, 16  ;;  %v13833_v20 = vld [vmem:[#allocation10 + $0x20] sm:$0xff]  }
 0x2c0   : > { %v5555_v40 = vrot.slane %v5553_v61, 4  ;;  %v5558_v52 = vrot.slane %v5556_v25, 5  ;;  %v5580_v12 = vshll.u32 %v5396_v57, 16  ;;  %v5586_v39 = vshll.u32 %v16336_v48, 16 }
 0x2c1   : > { %v5517_v44 = vsel %vm14596_vm12, %v5512_v22, %v16301_v17  ;;  %v5546_v19 = vrot.slane %v5545_v54, 4  ;;  %v5569_v28 = vor.u32 %v5568_v56, %v16345_v47  ;;  %v5572_v59 = vshll.u32 %v16343_v5, 16  ;;  %13115 = vmatmul.mubr.msk.bf16.vlgmr.msra.gmra.mxu0 %vm1344_vm9, %v16338_v55 }
 0x2c2   : > { %v5579_v16 = vrot.slane %v5577_v9, 4  ;;  %v5582_v45 = vrot.slane %v5580_v12, 5  ;;  %v16361_v35 = vrot.slane %v5586_v39, 5  ;;  %v5590_v21 = vshrl.u32 %v16336_v48, 16  ;;  %13081 = vmatmul.mubr.msk.bf16.vlgmr.msra.gmra.mxu1 %vm1344_vm9, %v16052_v49  ;;  %13118 = vmatprep.mubr.msk.bf16.mxu0 %vm1344_vm9, %v16340_v34  ;;  %v16394_v39 = vld [vmem:[#allocation3 + $0x5c] sm:$0x1] }
 0x2c3   : > { %v16370_v17 = vcombine.low %v5517_v44, %v5527_v30  ;;  %v5550_v50 = vrot.slane %v5548_v7, 5  ;;  %v5601_v29 = vshrl.u32 %v5399_v3, 16  ;;  %13147 = vmatpush3.bf16.msra.mxu1 %v13833_v20  ;;  %13084 = vmatprep.mubr.msk.bf16.mxu1 %vm1344_vm9, %v16054_v63  ;;  %v5541_v46 = vsel %vm14596_vm12, %v5536_v60, %v16317_v6  ;;  %v16386_v30 = vld [vmem:[#allocation3 + $0x64] sm:$0xf] }
 0x2c4   : > { %v5559_v61 = vor.u32 %v5558_v52, %v5555_v40  ;;  %v5592_v49 = vrot.slane %v5590_v21, 4  ;;  %v5604_v25 = vshll.u32 %v5399_v3, 16  ;;  %v5570_v22 = vrot.slane %v5569_v28, 4  ;;  %13181 = vmatpush3.bf16.msra.mxu0 %v16076_v38  ;;  %13214 = vmatprep.subr.bf16.mxu1 %v16357_v0 }
 0x2c5   : > { %v5551_v57 = vsel %vm14596_vm12, %v5546_v19, %v5550_v50  ;;  %v5574_v8 = vrot.slane %v5572_v59, 5  ;;  %v5610_v54 = vshll.u32 %v16355_v43, 16  ;;  %v5583_v63 = vor.u32 %v5582_v45, %v5579_v16  ;;  %13248 = vmatprep.subr.bf16.mxu0 %v16364_v27 }
 0x2c6   : > { %v5593_v36 = vor.u32 %v5592_v49, %v16361_v35  ;;  %v5596_v6 = vshll.u32 %v16372_v33, 16  ;;  %v5603_v7 = vrot.slane %v5601_v29, 4  ;;  %v5606_v60 = vrot.slane %v5604_v25, 5  ;;  %v5405_v29 = vld [vmem:[#allocation3 + $0x6c] sm:$0xf] }
 0x2c7   : > { %v16389_v56 = vrot.slane %v5610_v54, 5  ;;  %v5614_v9 = vshrl.u32 %v16355_v43, 16  ;;  %v5625_v40 = vshrl.u32 %v5402_v37, 16  ;;  %v16392_v52 = vcombine.low %v5541_v46, %v5551_v57  ;;  %v16410_v25 = vld [vmem:[#allocation3 + $0x70] sm:$0xf] }
 0x2c8   : > { %v5560_v38 = vrot.slane %v5559_v61, 4  ;;  %v5594_v12 = vrot.slane %v5593_v36, 4  ;;  %v5628_v3 = vshll.u32 %v5402_v37, 16  ;;  %v5575_v44 = vsel %vm14596_vm12, %v5570_v22, %v5574_v8  ;;  %v16419_v57 = vld [vmem:[#allocation3 + $0x68] sm:$0x1] }
 0x2c9   : > { %v5616_v19 = vrot.slane %v5614_v9, 4  ;;  %v5627_v28 = vrot.slane %v5625_v40, 4  ;;  %v5634_v59 = vshll.u32 %v16386_v30, 16  ;;  %13119 = vmatmul.mubr.msk.bf16.gmra.mxu0 %vm1344_vm9, %v16370_v17  ;;  %v5584_v16 = vrot.slane %v5583_v63, 4  ;;  %v5408_v9 = vld [vmem:[#allocation3 + $0x78] sm:$0xf] }
 0x2ca   : > { %v5598_v45 = vrot.slane %v5596_v6, 5  ;;  %v5630_v21 = vrot.slane %v5628_v3, 5  ;;  %v5638_v50 = vshrl.u32 %v16386_v30, 16  ;;  %13085 = vmatmul.mubr.msk.bf16.gmra.mxu1 %vm1344_vm9, %v16102_v13  ;;  %13122 = vmatprep.mubr.msk.bf16.mxu0 %vm1344_vm9, %v16392_v52  ;;  %v5607_v20 = vor.u32 %v5606_v60, %v5603_v7  ;;  %v16429_v40 = vld [vmem:[#allocation3 + $0x7c] sm:$0xf] }
 0x2cb   : > { %v5617_v46 = vor.u32 %v5616_v19, %v16389_v56  ;;  %v5620_v61 = vshll.u32 %v16394_v39, 16  ;;  %v16408_v49 = vrot.slane %v5634_v59, 5  ;;  %13088 = vmatprep.mubr.msk.bf16.mxu1 %vm1344_vm9, %v16105_v23  ;;  %v5565_v37 = vsel %vm14596_vm12, %v5560_v38, %v16345_v47  ;;  %v16434_v19 = vld [vmem:[#allocation3 + $0x74] sm:$0x1] }
 0x2cc   : > { %v5599_v13 = vsel %vm14596_vm12, %v5594_v12, %v5598_v45  ;;  %v5631_v22 = vor.u32 %v5630_v21, %v5627_v28  ;;  %v5640_v8 = vrot.slane %v5638_v50, 4  ;;  %v16421_v54 = vcombine.low %v5565_v37, %v5575_v44 }
 0x2cd   : > { %v5618_v63 = vrot.slane %v5617_v46, 4  ;;  %v5649_v36 = vshrl.u32 %v5405_v29, 16  ;;  %v5652_v6 = vshll.u32 %v5405_v29, 16  ;;  %v5589_v23 = vsel %vm14596_vm12, %v5584_v16, %v16361_v35 }
 0x2ce   : > { %v5641_v7 = vor.u32 %v5640_v8, %v16408_v49  ;;  %v5658_v47 = vshll.u32 %v16410_v25, 16  ;;  %v5662_v60 = vshrl.u32 %v16410_v25, 16  ;;  %v16431_v38 = vcombine.low %v5589_v23, %v5599_v13  ;;  %v5411_v13 = vld [vmem:[#allocation3 + $0x84] sm:$0xf] }
 0x2cf   : > { %v5608_v12 = vrot.slane %v5607_v20, 4  ;;  %v5622_v3 = vrot.slane %v5620_v61, 5  ;;  %v5644_v44 = vshll.u32 %v16419_v57, 16  ;;  %v5632_v28 = vrot.slane %v5631_v22, 4 }
 0x2d0   : > { %v5651_v59 = vrot.slane %v5649_v36, 4  ;;  %v5654_v35 = vrot.slane %v5652_v6, 5  ;;  %v16436_v16 = vrot.slane %v5658_v47, 5  ;;  %v5642_v21 = vrot.slane %v5641_v7, 4  ;;  %v16453_v36 = vld [vmem:[#allocation3 + $0x80] sm:$0x1] }
 0x2d1   : > { %v5623_v45 = vsel %vm14596_vm12, %v5618_v63, %v5622_v3  ;;  %v5664_v50 = vrot.slane %v5662_v60, 4  ;;  %v5673_v29 = vshrl.u32 %v5408_v9, 16  ;;  %13123 = vmatmul.mubr.msk.bf16.gmra.mxu0 %vm1344_vm9, %v16421_v54  ;;  %v5668_v20 = vshll.u32 %v16434_v19, 16  ;;  %v16457_v60 = vld [vmem:[#allocation3 + $0x88] sm:$0xf] }
 0x2d2   : > { %v5676_v46 = vshll.u32 %v5408_v9, 16  ;;  %v5682_v61 = vshll.u32 %v16429_v40, 16  ;;  %v5686_v37 = vshrl.u32 %v16429_v40, 16  ;;  %13089 = vmatmul.mubr.msk.bf16.gmra.mxu1 %vm1344_vm9, %v16142_v2  ;;  %13126 = vmatprep.mubr.msk.bf16.mxu0 %vm1344_vm9, %v16431_v38  ;;  %v5613_v22 = vsel %vm14596_vm12, %v5608_v12, %v16389_v56 }
 0x2d3   : > { %v5646_v8 = vrot.slane %v5644_v44, 5  ;;  %v5665_v63 = vor.u32 %v5664_v50, %v16436_v16  ;;  %v5675_v6 = vrot.slane %v5673_v29, 4  ;;  %13092 = vmatprep.mubr.msk.bf16.mxu1 %vm1344_vm9, %v16148_v10  ;;  %v5655_v23 = vor.u32 %v5654_v35, %v5651_v59  ;;  %v5414_v59 = vld [vmem:[#allocation3 + $0x90] sm:$0xf] }
 0x2d4   : > { %v5678_v7 = vrot.slane %v5676_v46, 5  ;;  %v5684_v47 = vrot.slane %v5682_v61, 5  ;;  %v5688_v2 = vrot.slane %v5686_v37, 4  ;;  %v16459_v9 = vcombine.low %v5613_v22, %v5623_v45 }
 0x2d5   : > { %v5637_v56 = vsel %vm14596_vm12, %v5632_v28, %v16408_v49  ;;  %v5647_v12 = vsel %vm14596_vm12, %v5642_v21, %v5646_v8  ;;  %v5697_v3 = vshrl.u32 %v5411_v13, 16  ;;  %v5670_v44 = vrot.slane %v5668_v20, 5  ;;  %v16473_v21 = vld [vmem:[#allocation3 + $0x8c] sm:$0x1] }
 0x2d6   : > { %19391 = vst [vmem:[#allocation27_spill] sm:$0xff] %v16459_v9  ;;  %v5679_v50 = vor.u32 %v5678_v7, %v5675_v6  ;;  %v5689_v29 = vor.u32 %v5688_v2, %v5684_v47  ;;  %v5700_v10 = vshll.u32 %v5411_v13, 16  ;;  %v5666_v35 = vrot.slane %v5665_v63, 4  ;;  %v5417_v2 = vld [vmem:[#allocation3 + $0x9c] sm:$0xf] }
 0x2d7   : > { %v5692_v46 = vshll.u32 %v16453_v36, 16  ;;  %v5706_v61 = vshll.u32 %v16457_v60, 16  ;;  %v5710_v45 = vshrl.u32 %v16457_v60, 16  ;;  %v16469_v37 = vcombine.low %v5637_v56, %v5647_v12 }
 0x2d8   : > { %v5656_v22 = vrot.slane %v5655_v23, 4  ;;  %v5690_v49 = vrot.slane %v5689_v29, 4  ;;  %v5699_v28 = vrot.slane %v5697_v3, 4  ;;  %v5702_v20 = vrot.slane %v5700_v10, 5  ;;  %v16489_v29 = vld [vmem:[#allocation3 + $0x98] sm:$0x1] }
 0x2d9   : > { %19392 = vst [vmem:[#allocation26_spill] sm:$0xff] %v16469_v37  ;;  %v16475_v8 = vrot.slane %v5706_v61, 5  ;;  %v5712_v13 = vrot.slane %v5710_v45, 4  ;;  %v5721_v63 = vshrl.u32 %v5414_v59, 16  ;;  %13127 = vmatmul.mubr.msk.bf16.gmra.mxu0 %vm1344_vm9, %v16459_v9  ;;  %v5680_v6 = vrot.slane %v5679_v50, 4 }
 0x2da   : > { %v5724_v7 = vshll.u32 %v5414_v59, 16  ;;  %13093 = vmatmul.mubr.msk.bf16.gmra.mxu1 %vm1344_vm9, %v16187_v58  ;;  %13130 = vmatprep.mubr.msk.bf16.mxu0 %vm1344_vm9, %v16469_v37  ;;  %v5671_v23 = vsel %vm14596_vm12, %v5666_v35, %v5670_v44  ;;  %v5694_v56 = vrot.slane %v5692_v46, 5  ;;  %v5716_v50 = vshll.u32 %v16473_v21, 16  ;;  %v16498_v61 = vld [vmem:[#allocation3 + $0xa0] sm:$0xf] }
 0x2db   : > { %v5713_v12 = vor.u32 %v5712_v13, %v16475_v8  ;;  %v5723_v3 = vrot.slane %v5721_v63, 4  ;;  %13096 = vmatprep.mubr.msk.bf16.mxu1 %vm1344_vm9, %v16190_v24  ;;  %v5730_v58 = vshll.u32 %v16471_v31, 16  ;;  %v5734_v59 = vshrl.u32 %v16471_v31, 16  ;;  %v16509_v9 = vld [vmem:[#allocation3 + $0xac] sm:$0xf] }
 0x2dc   : > { %v5726_v10 = vrot.slane %v5724_v7, 5  ;;  %v5661_v44 = vsel %vm14596_vm12, %v5656_v22, %v16436_v16  ;;  %v5695_v35 = vsel %vm14596_vm12, %v5690_v49, %v5694_v56  ;;  %v5703_v46 = vor.u32 %v5702_v20, %v5699_v28  ;;  %19395 = vst [vmem:[#allocation28_spill] sm:$0xff] %v16509_v9 }
 0x2dd   : > { %v5745_v24 = vshrl.u32 %v5417_v2, 16  ;;  %v16500_v45 = vcombine.low %v5661_v44, %v5671_v23  ;;  %v5685_v13 = vsel %vm14596_vm12, %v5680_v6, %v5684_v47  ;;  %v5732_v63 = vrot.slane %v5730_v58, 5 }
 0x2de   : > { %v5736_v7 = vrot.slane %v5734_v59, 4  ;;  %v5714_v53 = vrot.slane %v5713_v12, 4  ;;  %v5727_v42 = vor.u32 %v5726_v10, %v5723_v3  ;;  %v5740_v37 = vshll.u32 %v16489_v29, 16  ;;  %v16513_v12 = vld [vmem:[#allocation3 + $0xa4] sm:$0x1] }
 0x2df   : > { %19393 = vst [vmem:[#allocation30_spill] sm:$0xff] %v16500_v45  ;;  %v5748_v16 = vshll.u32 %v5417_v2, 16  ;;  %v16505_v22 = vcombine.low %v5685_v13, %v5695_v35  ;;  %v5718_v49 = vrot.slane %v5716_v50, 5  ;;  %v5754_v20 = vshll.u32 %v16498_v61, 16  ;;  %19396 = vst [vmem:[#allocation31_spill] sm:$0xff] %v16513_v12 }
 0x2e0   : > { %v5737_v28 = vor.u32 %v5736_v7, %v5732_v63  ;;  %v5704_v56 = vrot.slane %v5703_v46, 4  ;;  %v5747_v23 = vrot.slane %v5745_v24, 4  ;;  %v5758_v44 = vshrl.u32 %v16498_v61, 16  ;;  %v16521_v46 = vld [vmem:[#allocation3 + $0xb0] sm:$0x1] }
 0x2e1   : > { %19394 = vst [vmem:[#allocation36_spill] sm:$0xff] %v16505_v22  ;;  %v5769_v47 = vshrl.u32 %v5420_v4, 16  ;;  %13131 = vmatmul.mubr.msk.bf16.gmra.mxu0 %vm1344_vm9, %v16500_v45  ;;  %v5750_v2 = vrot.slane %v5748_v16, 5  ;;  %v5756_v3 = vrot.slane %v5754_v20, 5  ;;  %v5772_v10 = vshll.u32 %v5420_v4, 16 }
 0x2e2   : > { %v5738_v6 = vrot.slane %v5737_v28, 4  ;;  %13097 = vmatmul.mubr.msk.bf16.gmra.mxu1 %vm1344_vm9, %v16227_v26  ;;  %13134 = vmatprep.mubr.msk.bf16.mxu0 %vm1344_vm9, %v16505_v22  ;;  %v5719_v50 = vsel %vm14596_vm12, %v5714_v53, %v5718_v49  ;;  %v5728_v58 = vrot.slane %v5727_v42, 4  ;;  %v5742_v59 = vrot.slane %v5740_v37, 5  ;;  %v5423_v7 = vld [vmem:[#allocation3 + $0xb4] sm:$0xf] }
 0x2e3   : > { %v5760_v35 = vrot.slane %v5758_v44, 4  ;;  %13100 = vmatprep.mubr.msk.bf16.mxu1 %vm1344_vm9, %v16229_v15  ;;  %v5771_v24 = vrot.slane %v5769_v47, 4  ;;  %v5774_v13 = vrot.slane %v5772_v10, 5  ;;  %v5778_v4 = vshll.u32 %v16509_v9, 16  ;;  %v16531_v37 = vld [vmem:[#allocation3 + $0xb8] sm:$0xf] }
 0x2e4   : > { %v5782_v26 = vshrl.u32 %v16509_v9, 16  ;;  %v5709_v16 = vsel %vm14596_vm12, %v5704_v56, %v16475_v8  ;;  %v5764_v42 = vshll.u32 %v16513_v12, 16  ;;  %v5743_v49 = vsel %vm14596_vm12, %v5738_v6, %v5742_v59  ;;  %v576_v9 = vld [vmem:[#allocation3 + $0xcc] sm:$0x1] }
 0x2e5   : > { %v5761_v53 = vor.u32 %v5760_v35, %v5756_v3  ;;  %v5751_v15 = vor.u32 %v5750_v2, %v5747_v23  ;;  %v5780_v28 = vrot.slane %v5778_v4, 5  ;;  %v16535_v44 = vcombine.low %v5709_v16, %v5719_v50  ;;  %v16554_v16 = vld [vmem:[#allocation3 + $0xbc] sm:$0x1] }
 0x2e6   : > { %v5784_v20 = vrot.slane %v5782_v26, 4  ;;  %v5733_v47 = vsel %vm14596_vm12, %v5728_v58, %v5732_v63  ;;  %v5788_v10 = vshll.u32 %v16521_v46, 16  ;;  %v5793_v22 = vshrl.u32 %v5423_v7, 16 }
 0x2e7   : > { %v5775_v8 = vor.u32 %v5774_v13, %v5771_v24  ;;  %v5796_v35 = vshll.u32 %v5423_v7, 16  ;;  %v5802_v45 = vshll.u32 %v16531_v37, 16  ;;  %v16541_v12 = vcombine.low %v5733_v47, %v5743_v49 }
 0x2e8   : > { %v5785_v56 = vor.u32 %v5784_v20, %v5780_v28  ;;  %v5762_v6 = vrot.slane %v5761_v53, 4  ;;  %v5806_v23 = vshrl.u32 %v16531_v37, 16  ;;  %v5752_v2 = vrot.slane %v5751_v15, 4  ;;  %v630_v53 = vld [vmem:[#allocation3 + $0xd4] sm:$0x1] }
 0x2e9   : > { %13135 = vmatmul.mubr.msk.bf16.gmra.mxu0 %vm1344_vm9, %v16535_v44  ;;  %v5766_v50 = vrot.slane %v5764_v42, 5  ;;  %v5795_v58 = vrot.slane %v5793_v22, 4  ;;  %v5798_v59 = vrot.slane %v5796_v35, 5  ;;  %v5804_v24 = vrot.slane %v5802_v45, 5 }
 0x2ea   : > { %v5786_v63 = vrot.slane %v5785_v56, 4  ;;  %13101 = vmatmul.mubr.msk.bf16.gmra.mxu1 %vm1344_vm9, %v16261_v41  ;;  %13138 = vmatprep.mubr.msk.bf16.mxu0 %vm1344_vm9, %v16541_v12  ;;  %v5808_v13 = vrot.slane %v5806_v23, 4  ;;  %v577_v4 = vsel %vm14273_vm3, 0, %v576_v9  ;;  %v5776_v26 = vrot.slane %v5775_v8, 4 }
 0x2eb   : > { %13104 = vmatprep.mubr.msk.bf16.mxu1 %vm1344_vm9, %v16273_v14  ;;  %v5790_v7 = vrot.slane %v5788_v10, 5  ;;  %578 = vst [vmem:[#allocation3 + $0xcc] sm:$0x1] %v577_v4  ;;  %v5767_v41 = vsel %vm14596_vm12, %v5762_v6, %v5766_v50  ;;  %v5757_v42 = vsel %vm14596_vm12, %v5752_v2, %v5756_v3  ;;  %v5799_v9 = vor.u32 %v5798_v59, %v5795_v58  ;;  %v6584_v2 = vld [vmem:[#allocation3 + $0x48] sm:$0xe] }
 0x2ec   : > { %v5809_v22 = vor.u32 %v5808_v13, %v5804_v24  ;;  %v5812_v49 = vshll.u32 %v16554_v16, 16  ;;  %v16563_v14 = vcombine.low %v5757_v42, %v5767_v41  ;;  %v5781_v15 = vsel %vm14596_vm12, %v5776_v26, %v5780_v28  ;;  %v6585_v58 = vld [vmem:[#allocation3 + $0x54] sm:$0xe] }
 0x2ed   : > { %v5791_v45 = vsel %vm14596_vm12, %v5786_v63, %v5790_v7  ;;  %v631_v47 = vsel %vm14279_vm5, 0, %v630_v53  ;;  %v5800_v3 = vrot.slane %v5799_v9, 4  ;;  %v6691_v50 = vrot.slane %v16372_v33, 5  ;;  %v6588_v9 = vld [vmem:[#allocation3 + $0x78] sm:$0xe] }
 0x2ee   : > { %v16569_v10 = vcombine.low %v5781_v15, %v5791_v45  ;;  %v5810_v8 = vrot.slane %v5809_v22, 4  ;;  %632 = vst [vmem:[#allocation3 + $0xd4] sm:$0x1] %v631_v47  ;;  %v5814_v56 = vrot.slane %v5812_v49, 5  ;;  %v6705_v63 = vrot.slane %v16419_v57, 5  ;;  %v16600_v22 = vld [vmem:[#allocation10 + $0x40] sm:$0xff]  }
 0x2ef   : > { %v5805_v35 = vsel %vm14596_vm12, %v5800_v3, %v5804_v24  ;;  %v6684_v13 = vrot.slane %v16343_v5, 5  ;;  %v6688_v4 = vrot.slane %v16336_v48, 5  ;;  %v6719_v26 = vrot.slane %v16453_v36, 5  ;;  %v6587_v45 = vld [vmem:[#allocation3 + $0x6c] sm:$0xe] }
 0x2f0   : > { %v5815_v28 = vsel %vm14596_vm12, %v5810_v8, %v5814_v56  ;;  %v6733_v7 = vrot.slane %v16489_v29, 5  ;;  %v6695_v41 = vrot.slane %v16355_v43, 5  ;;  %v11800_v5 = vrot.slane %v6585_v58, 9 }
 0x2f1   : > { %13139 = vmatmul.mubr.msk.bf16.gmra.mxu0 %vm1344_vm9, %v16563_v14  ;;  %v16583_v23 = vcombine.low %v5805_v35, %v5815_v28  ;;  %v6690_v53 = vrot.slane %v6688_v4, 4  ;;  %v6698_v42 = vrot.slane %v16394_v39, 5  ;;  %v6702_v47 = vrot.slane %v16386_v30, 5  ;;  %v6589_v28 = vld [vmem:[#allocation3 + $0x84] sm:$0xe] }
 0x2f2   : > { %13105 = vmatmul.mubr.msk.bf16.gmra.mxu1 %vm1344_vm9, %v16303_v32  ;;  %13142 = vmatprep.mubr.msk.bf16.mxu0 %vm1344_vm9, %v16569_v10  ;;  %v13787_v6 = vld [vmem:[#allocation3 + $0xcc] sm:$0xff]   ;;  %v6583_v32 = vld [vmem:[#allocation3 + $0x3c] sm:$0xe]  ;;  %v6697_v36 = vrot.slane %v6695_v41, 4  ;;  %v6696_v15 = vsel %vm15001_vm15, %v11800_v5, %v6695_v41  ;;  %v6709_v8 = vrot.slane %v16410_v25, 5  ;;  %v11802_v56 = vrot.slane %v6587_v45, 9 }
 0x2f3   : > { %13108 = vmatprep.mubr.msk.bf16.mxu1 %vm1344_vm9, %v16305_v51  ;;  %v6681_v51 = vrot.slane %v16308_v62, 5  ;;  %v11798_v59 = vrot.slane %v6583_v32, 9  ;;  %v6586_v62 = vld [vmem:[#allocation3 + $0x60] sm:$0xe]  ;;  %v6692_v49 = vsel %vm15001_vm15, %v6690_v53, %v6691_v50  ;;  %v6704_v25 = vrot.slane %v6702_v47, 4 }
 0x2f4   : > { %v11801_v3 = vrot.slane %v6586_v62, 9  ;;  %v11803_v35 = vrot.slane %v6588_v9, 9  ;;  %v6716_v32 = vrot.slane %v16429_v40, 5  ;;  %v6710_v50 = vsel %vm15001_vm15, %v11802_v56, %v6709_v8  ;;  %v16664_v53 = vld [vmem:[#allocation3 + $0xc8] sm:$0x1] }
 0x2f5   : > { %v6683_v24 = vrot.slane %v6681_v51, 4  ;;  %v6682_v33 = vsel %vm15001_vm15, %v11798_v59, %v6681_v51  ;;  %v6723_v51 = vrot.slane %v16457_v60, 5  ;;  %v11804_v58 = vrot.slane %v6589_v28, 9  ;;  %v6594_v56 = vld [vmem:[#allocation3 + $0xc0] sm:$0xe] }
 0x2f6   : > { %v6730_v59 = vrot.slane %v16471_v31, 5  ;;  %v6726_v40 = vrot.slane %v16473_v21, 5  ;;  %v6737_v21 = vrot.slane %v16498_v61, 5  ;;  %v7062_v28 = vrot.slane %v16664_v53, 5 }
 0x2f7   : > { %v6685_v57 = vsel %vm15001_vm15, %v6683_v24, %v6684_v13  ;;  %v6718_v13 = vrot.slane %v6716_v32, 4  ;;  %v6724_v62 = vsel %vm15001_vm15, %v11804_v58, %v6723_v51  ;;  %v19400_v58 = vld [vmem:[#allocation27_spill] sm:$0xff] }
 0x2f8   : > { %v16608_v48 = vcombine.low %v6682_v33, %v6685_v57  ;;  %v6732_v33 = vrot.slane %v6730_v59, 4  ;;  %v5427_v57 = vld [vmem:[#allocation3 + $0xc4] sm:$0xf] }
 0x2f9   : > { %13143 = vmatmul.mubr.msk.bf16.gmra.mxu0 %vm1344_vm9, %v16583_v23  ;;  %v6720_v31 = vsel %vm15001_vm15, %v6718_v13, %v6719_v26 }
 0x2fa   : > { %13109 = vmatmul.mubr.msk.bf16.gmra.mxu1 %vm1344_vm9, %v13787_v6  ;;  %13182 = vmatprep.mubr.msk.bf16.mxu0 %vm1344_vm9, %v16340_v34  ;;  %v6711_v6 = vrot.slane %v6709_v8, 4 }
 0x2fb   : > { %13148 = vmatprep.mubr.msk.bf16.mxu1 %vm1344_vm9, %v16338_v55  ;;  %v11799_v55 = vrot.slane %v6584_v2, 9  ;;  %v6590_v2 = vld [vmem:[#allocation3 + $0x90] sm:$0xe] }
 0x2fc   : > { %v11805_v41 = vrot.slane %v6590_v2, 9 }
 0x2fd   : > { %v6689_v43 = vsel %vm15001_vm15, %v11799_v55, %v6688_v4  ;;  %v6591_v4 = vld [vmem:[#allocation3 + $0x9c] sm:$0xe]  ;;  %v6725_v55 = vrot.slane %v6723_v51, 4  ;;  %v11842_v51 = vrot.slane %v6594_v56, 9 }
 0x2fe   : > { %v16626_v39 = vcombine.low %v6689_v43, %v6692_v49  ;;  %v6731_v45 = vsel %vm15001_vm15, %v11805_v41, %v6730_v59  ;;  %v11806_v43 = vrot.slane %v6591_v4, 9  ;;  %v6592_v49 = vld [vmem:[#allocation3 + $0xa8] sm:$0xe]  ;;  %v19403_v41 = vld [vmem:[#allocation36_spill] sm:$0xff] }
 0x2ff   : > { %v6727_v26 = vsel %vm15001_vm15, %v6725_v55, %v6726_v40  ;;  %v19401_v40 = vld [vmem:[#allocation26_spill] sm:$0xff] }
 0x300   : > { %v16674_v61 = vcombine.low %v6724_v62, %v6727_v26  ;;  %v6738_v29 = vsel %vm15001_vm15, %v11806_v43, %v6737_v21  ;;  %v19402_v55 = vld [vmem:[#allocation30_spill] sm:$0xff]  ;;  %v6128_v62 = vshrl.u32 %v5427_v57, 16 }
 0x301   : > { %13183 = vmatmul.mubr.msk.bf16.vlgmr.msra.gmra.mxu0 %vm1344_vm9, %v16370_v17  ;;  %v5429_v26 = vld [vmem:[#allocation3 + $0xcc] sm:$0xf] }
 0x302   : > { %13149 = vmatmul.mubr.msk.bf16.vlgmr.msra.gmra.mxu1 %vm1344_vm9, %v16340_v34  ;;  %13186 = vmatprep.mubr.msk.bf16.mxu0 %vm1344_vm9, %v16392_v52  ;;  %v6699_v34 = vsel %vm15001_vm15, %v6697_v36, %v6698_v42  ;;  %v6739_v36 = vrot.slane %v6737_v21, 4  ;;  %v19398_v42 = vld [vmem:[#allocation31_spill] sm:$0xff] }
 0x303   : > { %13215 = vmatpush3.bf16.msra.mxu1 %v16357_v0  ;;  %13152 = vmatprep.mubr.msk.bf16.mxu1 %vm1344_vm9, %v16370_v17  ;;  %v16632_v30 = vcombine.low %v6696_v15, %v6699_v34  ;;  %v6712_v0 = vrot.slane %v16434_v19, 5  ;;  %v6703_v17 = vsel %vm15001_vm15, %v11801_v3, %v6702_v47  ;;  %v6740_v9 = vrot.slane %v19398_v42, 5  ;;  %v6593_v15 = vld [vmem:[#allocation3 + $0xb4] sm:$0xe]  ;;  %v19399_v34 = vld [vmem:[#allocation28_spill] sm:$0xff] }
 0x304   : > { %13249 = vmatpush3.bf16.msra.mxu0 %v16364_v27  ;;  %13282 = vmatprep.subr.bf16.mxu1 %v16600_v22  ;;  %v6706_v27 = vsel %vm15001_vm15, %v6704_v25, %v6705_v63  ;;  %v6717_v63 = vsel %vm15001_vm15, %v11803_v35, %v6716_v32  ;;  %v6747_v47 = vrot.slane %v16521_v46, 5  ;;  %v6744_v3 = vrot.slane %v19399_v34, 5 }
 0x305   : > { %v16644_v19 = vcombine.low %v6703_v17, %v6706_v27  ;;  %v6713_v24 = vsel %vm15001_vm15, %v6711_v6, %v6712_v0  ;;  %v16666_v5 = vcombine.low %v6717_v63, %v6720_v31  ;;  %v7059_v25 = vrot.slane %v5427_v57, 5 }
 0x306   : > { %v16649_v60 = vcombine.low %v6710_v50, %v6713_v24  ;;  %v11807_v35 = vrot.slane %v6592_v49, 9  ;;  %v6746_v46 = vrot.slane %v6744_v3, 4  ;;  %v11808_v17 = vrot.slane %v6593_v15, 9 }
 0x307   : > { %v6754_v32 = vrot.slane %v16554_v16, 5  ;;  %v7060_v16 = vsel %vm15001_vm15, %v11842_v51, %v7059_v25  ;;  %v6124_v31 = vshll.u32 %v5427_v57, 16  ;;  %v6350_v57 = vshll.u32 %v5429_v26, 16 }
 0x308   : > { %v6745_v2 = vsel %vm15001_vm15, %v11807_v35, %v6744_v3  ;;  %v6748_v27 = vsel %vm15001_vm15, %v6746_v46, %v6747_v47  ;;  %v6134_v3 = vshll.u32 %v16664_v53, 16 }
 0x309   : > { %13187 = vmatmul.mubr.msk.bf16.gmra.mxu0 %vm1344_vm9, %v16421_v54  ;;  %v16702_v59 = vcombine.low %v6745_v2, %v6748_v27  ;;  %v6126_v43 = vrot.slane %v6124_v31, 5  ;;  %v6352_v56 = vrot.slane %v6350_v57, 5  ;;  %v6578_v27 = vld [vmem:[#allocation3] sm:$0xe] }
 0x30a   : > { %13153 = vmatmul.mubr.msk.bf16.gmra.mxu1 %vm1344_vm9, %v16392_v52  ;;  %13190 = vmatprep.mubr.msk.bf16.mxu0 %vm1344_vm9, %v16431_v38  ;;  %v6734_v52 = vsel %vm15001_vm15, %v6732_v33, %v6733_v7  ;;  %v6741_v7 = vsel %vm15001_vm15, %v6739_v36, %v6740_v9  ;;  %v6347_v9 = vshrl.u32 %v5429_v26, 16  ;;  %v6136_v35 = vrot.slane %v6134_v3, 5 }
 0x30b   : > { %13156 = vmatprep.mubr.msk.bf16.mxu1 %vm1344_vm9, %v16421_v54  ;;  %v16682_v8 = vcombine.low %v6731_v45, %v6734_v52  ;;  %v6751_v54 = vrot.slane %v16531_v37, 5  ;;  %v16691_v0 = vcombine.low %v6738_v29, %v6741_v7  ;;  %v7061_v37 = vrot.slane %v7059_v25, 4  ;;  %v16728_v45 = vld [vmem:[#allocation3 + $0xd0] sm:$0xf]  ;;  %v16741_v7 = vld [vmem:[#allocation3 + $0xd4] sm:$0x1] }
 0x30c   : > { %v6130_v52 = vrot.slane %v6128_v62, 4  ;;  %v6356_v49 = vshll.u32 %v16728_v45, 16  ;;  %v6360_v15 = vshrl.u32 %v16728_v45, 16 }
 0x30d   : > { %v6753_v6 = vrot.slane %v6751_v54, 4  ;;  %v6752_v50 = vsel %vm15001_vm15, %v11808_v17, %v6751_v54  ;;  %v7063_v13 = vsel %vm15001_vm15, %v7061_v37, %v7062_v28  ;;  %v6349_v54 = vrot.slane %v6347_v9, 4  ;;  %v13835_v37 = vld [vmem:[#allocation3 + $0x10] sm:$0xf] }
 0x30e   : > { %v16716_v63 = vcombine.low %v7060_v16, %v7063_v13  ;;  %v6131_v47 = vor.u32 %v6130_v52, %v6126_v43  ;;  %v6358_v28 = vrot.slane %v6356_v49, 5  ;;  %v6362_v29 = vrot.slane %v6360_v15, 4  ;;  %v6579_v52 = vld [vmem:[#allocation3 + $0xc] sm:$0xe] }
 0x30f   : > { %v6755_v24 = vsel %vm15001_vm15, %v6753_v6, %v6754_v32  ;;  %v6353_v46 = vor.u32 %v6352_v56, %v6349_v54  ;;  %v6366_v17 = vshll.u32 %v16741_v7, 16  ;;  %v13834_v32 = vld [vmem:[#allocation3 + $0x4] sm:$0xf]  ;;  %v6653_v2 = vrot.slane %v13835_v37, 5  ;;  %v13838_v56 = vld [vmem:[#allocation3 + $0x28] sm:$0xf] }
 0x310   : > { %v16714_v4 = vcombine.low %v6752_v50, %v6755_v24  ;;  %v6132_v25 = vrot.slane %v6131_v47, 4  ;;  %v6363_v53 = vor.u32 %v6362_v29, %v6358_v28  ;;  %v6646_v51 = vrot.slane %v13834_v32, 5  ;;  %v6581_v32 = vld [vmem:[#allocation3 + $0x24] sm:$0xe] }
 0x311   : > { %13191 = vmatmul.mubr.msk.bf16.gmra.mxu0 %vm1344_vm9, %v19400_v58  ;;  %v6354_v50 = vrot.slane %v6353_v46, 4  ;;  %v6368_v24 = vrot.slane %v6366_v17, 5  ;;  %v6655_v62 = vrot.slane %v6653_v2, 4  ;;  %v11794_v3 = vrot.slane %v6579_v52, 9  ;;  %v6582_v52 = vld [vmem:[#allocation3 + $0x30] sm:$0xe] }
 0x312   : > { %13157 = vmatmul.mubr.msk.bf16.gmra.mxu1 %vm1344_vm9, %v16431_v38  ;;  %13194 = vmatprep.mubr.msk.bf16.mxu0 %vm1344_vm9, %v19401_v40  ;;  %v5426_v38 = vld [vmem:[#allocation3 + $0xc0] sm:$0xf]  ;;  %v6137_v6 = vsel %vm14596_vm12, %v6132_v25, %v6136_v35 }
 0x313   : > { %13160 = vmatprep.mubr.msk.bf16.mxu1 %vm1344_vm9, %v19400_v58  ;;  %v6115_v33 = vshrl.u32 %v5426_v38, 16  ;;  %v6118_v21 = vshll.u32 %v5426_v38, 16  ;;  %v6364_v58 = vrot.slane %v6363_v53, 4  ;;  %v6359_v26 = vsel %vm14596_vm12, %v6354_v50, %v6358_v28  ;;  %v13840_v50 = vld [vmem:[#allocation3 + $0x34] sm:$0xf] }
 0x314   : > { %v6667_v28 = vrot.slane %v13838_v56, 5  ;;  %v6654_v35 = vsel %vm15001_vm15, %v11794_v3, %v6653_v2 }
 0x315   : > { %v6117_v36 = vrot.slane %v6115_v33, 4  ;;  %v6120_v42 = vrot.slane %v6118_v21, 5 }
 0x316   : > { %v6669_v17 = vrot.slane %v6667_v28, 4 }
 0x317   : > { %v6121_v34 = vor.u32 %v6120_v42, %v6117_v36  ;;  %v13837_v42 = vld [vmem:[#allocation3 + $0x14] sm:$0x1] }
 0x318   : > { %v6656_v9 = vrot.slane %v13837_v42, 5  ;;  %v19405_v42 = vld [vmem:[#allocation24_spill] sm:$0xff] }
 0x319   : > { %13195 = vmatmul.mubr.msk.bf16.gmra.mxu0 %vm1344_vm9, %v19402_v55 }
 0x31a   : > { %13161 = vmatmul.mubr.msk.bf16.gmra.mxu1 %vm1344_vm9, %v19401_v40  ;;  %13198 = vmatprep.mubr.msk.bf16.mxu0 %vm1344_vm9, %v19403_v41  ;;  %v6657_v54 = vsel %vm15001_vm15, %v6655_v62, %v6656_v9  ;;  %v6677_v9 = vrot.slane %v19405_v42, 5 }
 0x31b   : > { %13164 = vmatprep.mubr.msk.bf16.mxu1 %vm1344_vm9, %v19402_v55  ;;  %v11793_v55 = vrot.slane %v6578_v27, 9  ;;  %v11810_v46 = vcombine.low %v6654_v35, %v6657_v54  ;;  %v13839_v27 = vld [vmem:[#allocation3 + $0x2c] sm:$0x1] }
 0x321   : > { %13199 = vmatmul.mubr.msk.bf16.gmra.mxu0 %vm1344_vm9, %v16535_v44 }
 0x322   : > { %13165 = vmatmul.mubr.msk.bf16.gmra.mxu1 %vm1344_vm9, %v19403_v41  ;;  %13202 = vmatprep.mubr.msk.bf16.mxu0 %vm1344_vm9, %v16541_v12  ;;  %v6648_v41 = vrot.slane %v6646_v51, 4 }
 0x323   : > { %13168 = vmatprep.mubr.msk.bf16.mxu1 %vm1344_vm9, %v16535_v44  ;;  %v6122_v44 = vrot.slane %v6121_v34, 4 }
 0x329   : > { %13203 = vmatmul.mubr.msk.bf16.gmra.mxu0 %vm1344_vm9, %v16563_v14 }
 0x32a   : > { %13169 = vmatmul.mubr.msk.bf16.gmra.mxu1 %vm1344_vm9, %v16541_v12  ;;  %13206 = vmatprep.mubr.msk.bf16.mxu0 %vm1344_vm9, %v16569_v10  ;;  %v6127_v12 = vsel %vm14596_vm12, %v6122_v44, %v6126_v43  ;;  %v6369_v43 = vsel %vm14596_vm12, %v6364_v58, %v6368_v24  ;;  %v6674_v58 = vrot.slane %v13840_v50, 5 }
 0x32b   : > { %13172 = vmatprep.mubr.msk.bf16.mxu1 %vm1344_vm9, %v16563_v14  ;;  %v11757_v16 = vcombine.low %v6127_v12, %v6137_v6  ;;  %v13836_v14 = vld [vmem:[#allocation3 + $0x8] sm:$0x1]  ;;  %v11775_v34 = vcombine.low %v6359_v26, %v6369_v43  ;;  %v6670_v12 = vrot.slane %v13839_v27, 5  ;;  %v19404_v43 = vld [vmem:[#allocation25_spill] sm:$0xff] }
 0x32c   : > { %v6649_v38 = vrot.slane %v13836_v14, 5 }
 0x32e   : > { %v13048_v13 = vpop.f32.mrf.mxu0  ;;  %v6650_v15 = vsel %vm15001_vm15, %v6648_v41, %v6649_v38 }
 0x32f   : > { %v13014_v40 = vpop.f32.mrf.mxu1 }
 0x330   : > { %v16756_v31 = vadd.f32 %v13048_v13, %v13014_v40  ;;  %v5041_v33 = vpop.f32.mrf.mxu0  ;;  %v11796_v40 = vrot.slane %v6581_v32, 9 }
 0x331   : > { %13207 = vmatmul.mubr.msk.bf16.gmra.mxu0 %vm1344_vm9, %v16583_v23  ;;  %v4866_v21 = vpop.f32.mrf.mxu1 }
 0x332   : > { %13173 = vmatmul.mubr.msk.bf16.gmra.mxu1 %vm1344_vm9, %v16569_v10  ;;  %13210 = vmatprep.mubr.msk.bf16.mxu0 %vm1344_vm9, %v11757_v16  ;;  %v16767_v36 = vadd.f32 %v5041_v33, %v4866_v21  ;;  %v13049_v57 = vpop.f32.mrf.mxu0  ;;  %v6647_v10 = vsel %vm15001_vm15, %v11793_v55, %v6646_v51  ;;  %v6668_v38 = vsel %vm15001_vm15, %v11796_v40, %v6667_v28  ;;  %v6676_v21 = vrot.slane %v6674_v58, 4 }
 0x333   : > { %13176 = vmatprep.mubr.msk.bf16.mxu1 %vm1344_vm9, %v16583_v23  ;;  %v13015_v49 = vpop.f32.mrf.mxu1  ;;  %v11809_v44 = vcombine.low %v6647_v10, %v6650_v15 }
 0x334   : > { %v16775_v47 = vadd.f32 %v13049_v57, %v13015_v49  ;;  %v5044_v23 = vpop.f32.mrf.mxu0  ;;  %v11797_v57 = vrot.slane %v6582_v52, 9  ;;  %v6678_v49 = vsel %vm15001_vm15, %v6676_v21, %v6677_v9 }
 0x335   : > { %v4869_v29 = vpop.f32.mrf.mxu1 }
 0x336   : > { %v16779_v25 = vadd.f32 %v5044_v23, %v4869_v29 }
 0x339   : > { %v13052_v53 = vpop.f32.mrf.mxu0  ;;  %13211 = vmatmul.mubr.msk.bf16.gmra.mxu0 %vm1344_vm9, %v11775_v34  ;;  %v6675_v34 = vsel %vm15001_vm15, %v11797_v57, %v6674_v58 }
 0x33a   : > { %v13018_v6 = vpop.f32.mrf.mxu1  ;;  %13177 = vmatmul.mubr.msk.bf16.gmra.mxu1 %vm1344_vm9, %v11757_v16  ;;  %13250 = vmatprep.mubr.msk.bf16.mxu0 %vm1344_vm9, %v11810_v46  ;;  %v6671_v16 = vsel %vm15001_vm15, %v6669_v17, %v6670_v12  ;;  %v16816_v56 = vcombine.low %v6675_v34, %v6678_v49 }
 0x33b   : > { %v16786_v51 = vadd.f32 %v13052_v53, %v13018_v6  ;;  %v5057_v37 = vpop.f32.mrf.mxu0  ;;  %13216 = vmatprep.mubr.msk.bf16.mxu1 %vm1344_vm9, %v11809_v44  ;;  %v16797_v33 = vcombine.low %v6668_v38, %v6671_v16 }
 0x33c   : > { %v4882_v2 = vpop.f32.mrf.mxu1 }
 0x33d   : > { %v16789_v24 = vadd.f32 %v5057_v37, %v4882_v2  ;;  %v13053_v13 = vpop.f32.mrf.mxu0 }
 0x33e   : > { %v13019_v55 = vpop.f32.mrf.mxu1 }
 0x33f   : > { %v16793_v41 = vadd.f32 %v13053_v13, %v13019_v55  ;;  %v5060_v14 = vpop.f32.mrf.mxu0 }
 0x340   : > { %v4885_v62 = vpop.f32.mrf.mxu1 }
 0x341   : > { %v16799_v26 = vadd.f32 %v5060_v14, %v4885_v62  ;;  %13251 = vmatmul.mubr.msk.bf16.vlgmr.msra.gmra.mxu0 %vm1344_vm9, %v19404_v43 }
 0x342   : > { %13217 = vmatmul.mubr.msk.bf16.vlgmr.msra.gmra.mxu1 %vm1344_vm9, %v11810_v46  ;;  %13254 = vmatprep.mubr.msk.bf16.mxu0 %vm1344_vm9, %v16797_v33 }
 0x343   : > { %13283 = vmatpush3.bf16.msra.mxu1 %v16600_v22  ;;  %13220 = vmatprep.mubr.msk.bf16.mxu1 %vm1344_vm9, %v19404_v43 }
 0x345   : > { %v13056_v10 = vpop.f32.mrf.mxu0 }
 0x346   : > { %v13022_v15 = vpop.f32.mrf.mxu1 }
 0x347   : > { %v16814_v3 = vadd.f32 %v13056_v10, %v13022_v15  ;;  %v5073_v54 = vpop.f32.mrf.mxu0 }
 0x348   : > { %v4898_v28 = vpop.f32.mrf.mxu1 }
 0x349   : > { %v16818_v23 = vadd.f32 %v5073_v54, %v4898_v28  ;;  %v13057_v22 = vpop.f32.mrf.mxu0  ;;  %13255 = vmatmul.mubr.msk.bf16.gmra.mxu0 %vm1344_vm9, %v16816_v56 }
 0x34a   : > { %v13023_v29 = vpop.f32.mrf.mxu1  ;;  %13221 = vmatmul.mubr.msk.bf16.gmra.mxu1 %vm1344_vm9, %v16797_v33  ;;  %13258 = vmatprep.mubr.msk.bf16.mxu0 %vm1344_vm9, %v16608_v48 }
 0x34b   : > { %v16826_v35 = vadd.f32 %v13057_v22, %v13023_v29  ;;  %v5076_v44 = vpop.f32.mrf.mxu0  ;;  %13224 = vmatprep.mubr.msk.bf16.mxu1 %vm1344_vm9, %v16816_v56 }
 0x34c   : > { %v4901_v46 = vpop.f32.mrf.mxu1 }
 0x34d   : > { %v16830_v53 = vadd.f32 %v5076_v44, %v4901_v46 }
 0x34e   : > { %v13060_v17 = vpop.f32.mrf.mxu0 }
 0x34f   : > { %v13026_v6 = vpop.f32.mrf.mxu1 }
 0x350   : > { %v16832_v32 = vadd.f32 %v13060_v17, %v13026_v6  ;;  %v5089_v37 = vpop.f32.mrf.mxu0 }
 0x351   : > { %13259 = vmatmul.mubr.msk.bf16.gmra.mxu0 %vm1344_vm9, %v16626_v39  ;;  %v4914_v27 = vpop.f32.mrf.mxu1 }
 0x352   : > { %13225 = vmatmul.mubr.msk.bf16.gmra.mxu1 %vm1344_vm9, %v16608_v48  ;;  %13262 = vmatprep.mubr.msk.bf16.mxu0 %vm1344_vm9, %v16632_v30  ;;  %v16840_v12 = vadd.f32 %v5089_v37, %v4914_v27  ;;  %v13061_v2 = vpop.f32.mrf.mxu0 }
 0x353   : > { %13228 = vmatprep.mubr.msk.bf16.mxu1 %vm1344_vm9, %v16626_v39  ;;  %v13027_v50 = vpop.f32.mrf.mxu1 }
 0x354   : > { %v16844_v58 = vadd.f32 %v13061_v2, %v13027_v50  ;;  %v5092_v13 = vpop.f32.mrf.mxu0 }
 0x355   : > { %v4917_v40 = vpop.f32.mrf.mxu1 }
 0x356   : > { %v16846_v16 = vadd.f32 %v5092_v13, %v4917_v40 }
 0x359   : > { %13263 = vmatmul.mubr.msk.bf16.gmra.mxu0 %vm1344_vm9, %v16644_v19 }
 0x35a   : > { %13229 = vmatmul.mubr.msk.bf16.gmra.mxu1 %vm1344_vm9, %v16632_v30  ;;  %13266 = vmatprep.mubr.msk.bf16.mxu0 %vm1344_vm9, %v16649_v60 }
 0x35b   : > { %v13064_v55 = vpop.f32.mrf.mxu0  ;;  %13232 = vmatprep.mubr.msk.bf16.mxu1 %vm1344_vm9, %v16644_v19 }
 0x35c   : > { %v13030_v14 = vpop.f32.mrf.mxu1 }
 0x35d   : > { %v16856_v38 = vadd.f32 %v13064_v55, %v13030_v14  ;;  %v5105_v62 = vpop.f32.mrf.mxu0 }
 0x35e   : > { %v4930_v21 = vpop.f32.mrf.mxu1 }
 0x35f   : > { %v16858_v52 = vadd.f32 %v5105_v62, %v4930_v21  ;;  %v13065_v42 = vpop.f32.mrf.mxu0 }
 0x360   : > { %v13031_v9 = vpop.f32.mrf.mxu1 }
 0x361   : > { %v16860_v57 = vadd.f32 %v13065_v42, %v13031_v9  ;;  %v16862_v49 = vpop.f32.mrf.mxu0  ;;  %13267 = vmatmul.mubr.msk.bf16.gmra.mxu0 %vm1344_vm9, %v16666_v5 }
 0x362   : > { %v16866_v10 = vpop.f32.mrf.mxu1  ;;  %13233 = vmatmul.mubr.msk.bf16.gmra.mxu1 %vm1344_vm9, %v16649_v60  ;;  %13270 = vmatprep.mubr.msk.bf16.mxu0 %vm1344_vm9, %v16674_v61 }
 0x363   : > { %13236 = vmatprep.mubr.msk.bf16.mxu1 %vm1344_vm9, %v16666_v5 }
 0x364   : > { %v13068_v15 = vpop.f32.mrf.mxu0 }
 0x365   : > { %v13034_v34 = vpop.f32.mrf.mxu1 }
 0x366   : > { %v16874_v54 = vadd.f32 %v13068_v15, %v13034_v34  ;;  %v5121_v28 = vpop.f32.mrf.mxu0 }
 0x367   : > { %v4946_v22 = vpop.f32.mrf.mxu1 }
 0x368   : > { %v16876_v29 = vadd.f32 %v5121_v28, %v4946_v22  ;;  %v13069_v44 = vpop.f32.mrf.mxu0 }
 0x369   : > { %13271 = vmatmul.mubr.msk.bf16.gmra.mxu0 %vm1344_vm9, %v16682_v8  ;;  %v13035_v46 = vpop.f32.mrf.mxu1 }
 0x36a   : > { %13237 = vmatmul.mubr.msk.bf16.gmra.mxu1 %vm1344_vm9, %v16674_v61  ;;  %13274 = vmatprep.mubr.msk.bf16.mxu0 %vm1344_vm9, %v16691_v0  ;;  %v16884_v17 = vadd.f32 %v13069_v44, %v13035_v46  ;;  %v16886_v6 = vpop.f32.mrf.mxu0 }
 0x36b   : > { %13240 = vmatprep.mubr.msk.bf16.mxu1 %vm1344_vm9, %v16682_v8  ;;  %v16890_v37 = vpop.f32.mrf.mxu1 }
 0x36c   : > { %v13072_v27 = vpop.f32.mrf.mxu0 }
 0x36d   : > { %v13038_v2 = vpop.f32.mrf.mxu1 }
 0x36e   : > { %v16892_v50 = vadd.f32 %v13072_v27, %v13038_v2  ;;  %v5137_v13 = vpop.f32.mrf.mxu0 }
 0x36f   : > { %v4962_v40 = vpop.f32.mrf.mxu1 }
 0x370   : > { %v16894_v55 = vadd.f32 %v5137_v13, %v4962_v40  ;;  %v13073_v14 = vpop.f32.mrf.mxu0 }
 0x371   : > { %13275 = vmatmul.mubr.msk.bf16.gmra.mxu0 %vm1344_vm9, %v16702_v59  ;;  %v13039_v62 = vpop.f32.mrf.mxu1 }
 0x372   : > { %13241 = vmatmul.mubr.msk.bf16.gmra.mxu1 %vm1344_vm9, %v16691_v0  ;;  %13278 = vmatprep.mubr.msk.bf16.mxu0 %vm1344_vm9, %v16714_v4  ;;  %v16902_v21 = vadd.f32 %v13073_v14, %v13039_v62  ;;  %v16906_v42 = vpop.f32.mrf.mxu0 }
 0x373   : > { %13244 = vmatprep.mubr.msk.bf16.mxu1 %vm1344_vm9, %v16702_v59  ;;  %19406 = vst [vmem:[#allocation32_spill] sm:$0xff] %v16906_v42  ;;  %v16908_v9 = vpop.f32.mrf.mxu1 }
 0x374   : > { %19407 = vst [vmem:[#allocation29_spill] sm:$0xff] %v16908_v9 }
 0x379   : > { %v13076_v15 = vpop.f32.mrf.mxu0  ;;  %13279 = vmatmul.mubr.msk.bf16.gmra.mxu0 %vm1344_vm9, %v16716_v63 }
 0x37a   : > { %v13042_v34 = vpop.f32.mrf.mxu1  ;;  %13245 = vmatmul.mubr.msk.bf16.gmra.mxu1 %vm1344_vm9, %v16714_v4 }
 0x37b   : > { %v16914_v28 = vadd.f32 %v13076_v15, %v13042_v34  ;;  %v5153_v22 = vpop.f32.mrf.mxu0  ;;  %13284 = vmatprep.mubr.msk.bf16.mxu1 %vm1344_vm9, %v19404_v43 }
 0x37c   : > { %v4978_v44 = vpop.f32.mrf.mxu1 }
 0x37d   : > { %v16918_v46 = vadd.f32 %v5153_v22, %v4978_v44  ;;  %v13077_v27 = vpop.f32.mrf.mxu0 }
 0x37e   : > { %v13043_v2 = vpop.f32.mrf.mxu1 }
 0x37f   : > { %v16920_v13 = vadd.f32 %v13077_v27, %v13043_v2  ;;  %v16922_v40 = vpop.f32.mrf.mxu0 }
 0x380   : > { %19408 = vst [vmem:[#allocation33_spill] sm:$0xff] %v16922_v40  ;;  %v16924_v14 = vpop.f32.mrf.mxu1 }
 0x381   : > { %19409 = vst [vmem:[#allocation34_spill] sm:$0xff] %v16924_v14  ;;  %v13116_v62 = vpop.f32.mrf.mxu0 }
 0x382   : > { %v13082_v11 = vpop.f32.mrf.mxu1  ;;  %13285 = vmatmul.mubr.msk.bf16.vlgmr.msra.gmra.mxu1 %vm1344_vm9, %v16797_v33 }
 0x383   : > { %v5348_v15 = vadd.f32 %v13082_v11, %v16756_v31  ;;  %v5955_v34 = vpop.f32.mrf.mxu0  ;;  %13288 = vmatprep.mubr.msk.bf16.mxu1 %vm1344_vm9, %v16816_v56 }
 0x384   : > { %v5219_v43 = vpop.f32.mrf.mxu1 }
 0x385   : > { %v5346_v22 = vadd.f32 %v5219_v43, %v16767_v36  ;;  %v13117_v44 = vpop.f32.mrf.mxu0  ;;  %v16932_v27 = vadd.f32 %v13116_v62, %v5348_v15 }
 0x386   : > { %v13083_v2 = vpop.f32.mrf.mxu1 }
 0x387   : > { %v5349_v40 = vadd.f32 %v13083_v2, %v16775_v47  ;;  %v16935_v14 = vpop.f32.mrf.mxu0  ;;  %v16937_v42 = vadd.f32 %v5955_v34, %v5346_v22 }
 0x388   : > { %v5222_v33 = vpop.f32.mrf.mxu1 }
 0x389   : > { %v16940_v11 = vadd.f32 %v5222_v33, %v16779_v25  ;;  %v13120_v31 = vpop.f32.mrf.mxu0  ;;  %v16942_v9 = vadd.f32 %v13117_v44, %v5349_v40 }
 0x38a   : > { %v13086_v56 = vpop.f32.mrf.mxu1  ;;  %13289 = vmatmul.mubr.msk.bf16.gmra.mxu1 %vm1344_vm9, %v16608_v48 }
 0x38b   : > { %v5352_v36 = vadd.f32 %v13086_v56, %v16786_v51  ;;  %v5971_v62 = vpop.f32.mrf.mxu0  ;;  %13292 = vmatprep.mubr.msk.bf16.mxu1 %vm1344_vm9, %v16626_v39 }
 0x38c   : > { %v5235_v47 = vpop.f32.mrf.mxu1 }
 0x38d   : > { %v5350_v15 = vadd.f32 %v5235_v47, %v16789_v24  ;;  %v13121_v34 = vpop.f32.mrf.mxu0  ;;  %v16950_v43 = vadd.f32 %v13120_v31, %v5352_v36 }
 0x38e   : > { %v13087_v25 = vpop.f32.mrf.mxu1 }
 0x38f   : > { %v5353_v40 = vadd.f32 %v13087_v25, %v16793_v41  ;;  %v16953_v22 = vpop.f32.mrf.mxu0  ;;  %v16955_v44 = vadd.f32 %v5971_v62, %v5350_v15 }
 0x390   : > { %v5238_v48 = vpop.f32.mrf.mxu1 }
 0x391   : > { %v16958_v51 = vadd.f32 %v5238_v48, %v16799_v26  ;;  %v13124_v2 = vpop.f32.mrf.mxu0  ;;  %v16960_v33 = vadd.f32 %v13121_v34, %v5353_v40 }
 0x392   : > { %v13090_v39 = vpop.f32.mrf.mxu1  ;;  %13293 = vmatmul.mubr.msk.bf16.gmra.mxu1 %vm1344_vm9, %v16632_v30 }
 0x393   : > { %v5356_v24 = vadd.f32 %v13090_v39, %v16814_v3  ;;  %v5987_v31 = vpop.f32.mrf.mxu0  ;;  %13296 = vmatprep.mubr.msk.bf16.mxu1 %vm1344_vm9, %v16644_v19 }
 0x394   : > { %v5251_v41 = vpop.f32.mrf.mxu1 }
 0x395   : > { %v5354_v56 = vadd.f32 %v5251_v41, %v16818_v23  ;;  %v13125_v36 = vpop.f32.mrf.mxu0  ;;  %v16968_v62 = vadd.f32 %v13124_v2, %v5356_v24 }
 0x396   : > { %v13091_v26 = vpop.f32.mrf.mxu1 }
 0x397   : > { %v5357_v47 = vadd.f32 %v13091_v26, %v16826_v35  ;;  %v16971_v15 = vpop.f32.mrf.mxu0  ;;  %v16973_v34 = vadd.f32 %v5987_v31, %v5354_v56 }
 0x398   : > { %v5254_v30 = vpop.f32.mrf.mxu1 }
 0x399   : > { %v16976_v3 = vadd.f32 %v5254_v30, %v16830_v53  ;;  %v13128_v25 = vpop.f32.mrf.mxu0  ;;  %v16978_v40 = vadd.f32 %v13125_v36, %v5357_v47 }
 0x39a   : > { %v13094_v19 = vpop.f32.mrf.mxu1  ;;  %13297 = vmatmul.mubr.msk.bf16.gmra.mxu1 %vm1344_vm9, %v16649_v60 }
 0x39b   : > { %v5360_v23 = vadd.f32 %v13094_v19, %v16832_v32  ;;  %v6003_v48 = vpop.f32.mrf.mxu0  ;;  %13300 = vmatprep.mubr.msk.bf16.mxu1 %vm1344_vm9, %v16666_v5 }
 0x39c   : > { %v5267_v35 = vpop.f32.mrf.mxu1 }
 0x39d   : > { %v5358_v2 = vadd.f32 %v5267_v35, %v16840_v12  ;;  %v13129_v39 = vpop.f32.mrf.mxu0  ;;  %v16986_v24 = vadd.f32 %v13128_v25, %v5360_v23 }
 0x39e   : > { %v13095_v53 = vpop.f32.mrf.mxu1 }
 0x39f   : > { %v5361_v31 = vadd.f32 %v13095_v53, %v16844_v58  ;;  %v16989_v41 = vpop.f32.mrf.mxu0  ;;  %v16991_v56 = vadd.f32 %v6003_v48, %v5358_v2  ;;  %v13792_v58 = vld [vmem:[#allocation11 + $0x18] sm:$0xff]  }
 0x3a0   : > { %v5270_v60 = vpop.f32.mrf.mxu1  ;;  %13316 = vmatprep.subr.bf16.mxu0 %v13792_v58 }
 0x3a1   : > { %v16994_v32 = vadd.f32 %v5270_v60, %v16846_v16  ;;  %v13132_v36 = vpop.f32.mrf.mxu0  ;;  %v16996_v26 = vadd.f32 %v13129_v39, %v5361_v31  ;;  %13317 = vmatpush3.bf16.msra.mxu0 %v13792_v58  ;;  %v6595_v60 = vld [vmem:[#allocation3 + $0xcc] sm:$0xe]  ;;  %v7280_v58 = vrot.slane %v16741_v7, 5 }
 0x3a2   : > { %v13098_v5 = vpop.f32.mrf.mxu1  ;;  %13301 = vmatmul.mubr.msk.bf16.gmra.mxu1 %vm1344_vm9, %v16674_v61 }
 0x3a3   : > { %v5364_v12 = vadd.f32 %v13098_v5, %v16856_v38  ;;  %v6019_v47 = vpop.f32.mrf.mxu0  ;;  %13304 = vmatprep.mubr.msk.bf16.mxu1 %vm1344_vm9, %v16682_v8 }
 0x3a4   : > { %v5283_v30 = vpop.f32.mrf.mxu1 }
 0x3a5   : > { %v5362_v25 = vadd.f32 %v5283_v30, %v16858_v52  ;;  %v13133_v19 = vpop.f32.mrf.mxu0  ;;  %v17004_v16 = vadd.f32 %v13132_v36, %v5364_v12 }
 0x3a6   : > { %v13099_v23 = vpop.f32.mrf.mxu1 }
 0x3a7   : > { %v5365_v48 = vadd.f32 %v13099_v23, %v16860_v57  ;;  %v17007_v35 = vpop.f32.mrf.mxu0  ;;  %v17009_v61 = vadd.f32 %v6019_v47, %v5362_v25  ;;  %v7277_v57 = vrot.slane %v16728_v45, 5 }
 0x3a8   : > { %v17011_v38 = vpop.f32.mrf.mxu1 }
 0x3a9   : > { %v13136_v2 = vpop.f32.mrf.mxu0  ;;  %v17013_v8 = vadd.f32 %v13133_v19, %v5365_v48  ;;  %v7279_v25 = vrot.slane %v7277_v57, 4 }
 0x3aa   : > { %v13102_v39 = vpop.f32.mrf.mxu1  ;;  %13305 = vmatmul.mubr.msk.bf16.gmra.mxu1 %vm1344_vm9, %v16691_v0 }
 0x3ab   : > { %v5368_v52 = vadd.f32 %v13102_v39, %v16874_v54  ;;  %v6035_v53 = vpop.f32.mrf.mxu0  ;;  %13308 = vmatprep.mubr.msk.bf16.mxu1 %vm1344_vm9, %v16702_v59  ;;  %v11861_v54 = vrot.slane %v6595_v60, 9 }
 0x3ac   : > { %v5299_v31 = vpop.f32.mrf.mxu1 }
 0x3ad   : > { %v5366_v36 = vadd.f32 %v5299_v31, %v16876_v29  ;;  %v13137_v5 = vpop.f32.mrf.mxu0  ;;  %v17022_v12 = vadd.f32 %v13136_v2, %v5368_v52  ;;  %v7281_v2 = vsel %vm15001_vm15, %v7279_v25, %v7280_v58 }
 0x3ae   : > { %v13103_v47 = vpop.f32.mrf.mxu1 }
 0x3af   : > { %v5369_v0 = vadd.f32 %v13103_v47, %v16884_v17  ;;  %v17026_v30 = vpop.f32.mrf.mxu0  ;;  %v17028_v19 = vadd.f32 %v6035_v53, %v5366_v36  ;;  %v7278_v17 = vsel %vm15001_vm15, %v11861_v54, %v7277_v57 }
 0x3b0   : > { %v17030_v59 = vpop.f32.mrf.mxu1 }
 0x3b1   : > { %v13140_v45 = vpop.f32.mrf.mxu0  ;;  %v17032_v23 = vadd.f32 %v13137_v5, %v5369_v0 }
 0x3b2   : > { %v13106_v29 = vpop.f32.mrf.mxu1  ;;  %13309 = vmatmul.mubr.msk.bf16.gmra.mxu1 %vm1344_vm9, %v16714_v4  ;;  %v11862_v4 = vcombine.low %v7278_v17, %v7281_v2 }
 0x3b3   : > { %v5372_v48 = vadd.f32 %v13106_v29, %v16892_v50  ;;  %v6051_v7 = vpop.f32.mrf.mxu0  ;;  %13312 = vmatprep.mubr.msk.bf16.mxu1 %vm1344_vm9, %v16716_v63 }
 0x3b4   : > { %v5315_v39 = vpop.f32.mrf.mxu1 }
 0x3b5   : > { %v5370_v52 = vadd.f32 %v5315_v39, %v16894_v55  ;;  %v13141_v53 = vpop.f32.mrf.mxu0  ;;  %v17044_v31 = vadd.f32 %v13140_v45, %v5372_v48 }
 0x3b6   : > { %v13107_v60 = vpop.f32.mrf.mxu1 }
 0x3b7   : > { %v5373_v50 = vadd.f32 %v13107_v60, %v16902_v21  ;;  %v17047_v36 = vpop.f32.mrf.mxu0  ;;  %v17049_v5 = vadd.f32 %v6051_v7, %v5370_v52 }
 0x3b8   : > { %v17051_v63 = vpop.f32.mrf.mxu1 }
 0x3b9   : > { %v13144_v57 = vpop.f32.mrf.mxu0  ;;  %v17053_v47 = vadd.f32 %v13141_v53, %v5373_v50 }
 0x3ba   : > { %v13110_v58 = vpop.f32.mrf.mxu1  ;;  %13313 = vmatmul.mubr.msk.bf16.gmra.mxu1 %vm1344_vm9, %v11862_v4 }
 0x3bb   : > { %v5376_v55 = vadd.f32 %v13110_v58, %v16914_v28  ;;  %v6067_v0 = vpop.f32.mrf.mxu0  ;;  %v646_v28 = vld [vmem:[#allocation4 + $0x18] sm:$0x1] }
 0x3bc   : > { %v5331_v54 = vpop.f32.mrf.mxu1 }
 0x3bd   : > { %v5374_v25 = vadd.f32 %v5331_v54, %v16918_v46  ;;  %v13145_v45 = vpop.f32.mrf.mxu0  ;;  %v17058_v21 = vadd.f32 %v13144_v57, %v5376_v55  ;;  %v647_v46 = vsel %vm14273_vm3, 0, %v646_v28 }
 0x3be   : > { %v13111_v29 = vpop.f32.mrf.mxu1  ;;  %648 = vst [vmem:[#allocation4 + $0x18] sm:$0x1] %v647_v46 }
 0x3bf   : > { %v5377_v48 = vadd.f32 %v13111_v29, %v16920_v13  ;;  %v17061_v7 = vpop.f32.mrf.mxu0  ;;  %v17063_v17 = vadd.f32 %v6067_v0, %v5374_v25 }
 0x3c0   : > { %v17065_v2 = vpop.f32.mrf.mxu1 }
 0x3c1   : > { %v17067_v39 = vpop.f32.mrf.mxu0  ;;  %v17069_v52 = vadd.f32 %v13145_v45, %v5377_v48 }
 0x3c2   : > { %v13150_v53 = vpop.f32.mrf.mxu1 }
 0x3c3   : > { %v17074_v60 = vadd.f32 %v13150_v53, %v16932_v27  ;;  %v17076_v4 = vpop.f32.mrf.mxu0 }
 0x3c4   : > { %19410 = vst [vmem:[#allocation35_spill] sm:$0xff] %v17076_v4  ;;  %v6187_v13 = vpop.f32.mrf.mxu1 }
 0x3c5   : > { %v17079_v50 = vadd.f32 %v6187_v13, %v16937_v42  ;;  %v17081_v57 = vpop.f32.mrf.mxu0 }
 0x3c6   : > { %19412 = vst [vmem:[#allocation38_spill] sm:$0xff] %v17081_v57  ;;  %v13151_v58 = vpop.f32.mrf.mxu1 }
 0x3c7   : > { %19411 = vst [vmem:[#allocation37_spill] sm:$0xff] %v17079_v50  ;;  %v17084_v55 = vadd.f32 %v13151_v58, %v16942_v9  ;;  %v17086_v0 = vpop.f32.mrf.mxu0 }
 0x3c8   : > { %19414 = vst [vmem:[#allocation43_spill] sm:$0xff] %v17086_v0  ;;  %v17088_v54 = vpop.f32.mrf.mxu1 }
 0x3c9   : > { %19413 = vst [vmem:[#allocation42_spill] sm:$0xff] %v17084_v55  ;;  %v17090_v25 = vpop.f32.mrf.mxu0 }
 0x3ca   : > { %19415 = vst [vmem:[#allocation44_spill] sm:$0xff] %v17090_v25  ;;  %v13154_v27 = vpop.f32.mrf.mxu1 }
 0x3cb   : > { %v17093_v45 = vadd.f32 %v13154_v27, %v16950_v43  ;;  %v17095_v29 = vpop.f32.mrf.mxu0  ;;  %v643_v43 = vld [vmem:[#allocation4 + $0xc] sm:$0x1] }
 0x3cc   : > { %19417 = vst [vmem:[#allocation46_spill] sm:$0xff] %v17095_v29  ;;  %v6203_v42 = vpop.f32.mrf.mxu1 }
 0x3cd   : > { %19416 = vst [vmem:[#allocation39_spill] sm:$0xff] %v17093_v45  ;;  %v17098_v48 = vadd.f32 %v6203_v42, %v16955_v44  ;;  %v13189_v28 = vpop.f32.mrf.mxu0  ;;  %v644_v44 = vsel %vm14273_vm3, 0, %v643_v43  ;;  %v697_v45 = vld [vmem:[#allocation4 + $0x14] sm:$0x1] }
 0x3ce   : > { %v13155_v53 = vpop.f32.mrf.mxu1  ;;  %645 = vst [vmem:[#allocation4 + $0xc] sm:$0x1] %v644_v44  ;;  %v698_v43 = vsel %vm14279_vm5, 0, %v697_v45 }
 0x3cf   : > { %19418 = vst [vmem:[#allocation47_spill] sm:$0xff] %v17098_v48  ;;  %v6321_v9 = vadd.f32 %v13155_v53, %v16960_v33  ;;  %v17101_v46 = vpop.f32.mrf.mxu0  ;;  %v700_v48 = vld [vmem:[#allocation4 + $0x20] sm:$0x1]  ;;  %699 = vst [vmem:[#allocation4 + $0x14] sm:$0x1] %v698_v43 }
 0x3d0   : > { %19419 = vst [vmem:[#allocation41_spill] sm:$0xff] %v17101_v46  ;;  %v17103_v13 = vpop.f32.mrf.mxu1 }
 0x3d1   : > { %v13192_v58 = vpop.f32.mrf.mxu0  ;;  %v17105_v18 = vadd.f32 %v13189_v28, %v6321_v9  ;;  %v701_v28 = vsel %vm14279_vm5, 0, %v700_v48 }
 0x3d2   : > { %v13158_v25 = vpop.f32.mrf.mxu1  ;;  %702 = vst [vmem:[#allocation4 + $0x20] sm:$0x1] %v701_v28 }
 0x3d3   : > { %v6324_v27 = vadd.f32 %v13158_v25, %v16968_v62  ;;  %v6451_v29 = vpop.f32.mrf.mxu0 }
 0x3d4   : > { %v6219_v42 = vpop.f32.mrf.mxu1 }
 0x3d5   : > { %v6322_v33 = vadd.f32 %v6219_v42, %v16973_v34  ;;  %v13193_v53 = vpop.f32.mrf.mxu0  ;;  %v17111_v46 = vadd.f32 %v13192_v58, %v6324_v27  ;;  %v652_v27 = vld [vmem:[#allocation4 + $0x30] sm:$0x1] }
 0x3d6   : > { %v13159_v9 = vpop.f32.mrf.mxu1  ;;  %v653_v42 = vsel %vm14273_vm3, 0, %v652_v27 }
 0x3d7   : > { %v6325_v62 = vadd.f32 %v13159_v9, %v16978_v40  ;;  %v17116_v25 = vpop.f32.mrf.mxu0  ;;  %v17118_v0 = vadd.f32 %v6451_v29, %v6322_v33  ;;  %654 = vst [vmem:[#allocation4 + $0x30] sm:$0x1] %v653_v42  ;;  %v649_v29 = vld [vmem:[#allocation4 + $0x24] sm:$0x1] }
 0x3d8   : > { %19420 = vst [vmem:[#allocation45_spill] sm:$0xff] %v17116_v25  ;;  %v17122_v44 = vpop.f32.mrf.mxu1  ;;  %v650_v45 = vsel %vm14273_vm3, 0, %v649_v29 }
 0x3d9   : > { %v13196_v34 = vpop.f32.mrf.mxu0  ;;  %v17124_v58 = vadd.f32 %v13193_v53, %v6325_v62  ;;  %651 = vst [vmem:[#allocation4 + $0x24] sm:$0x1] %v650_v45  ;;  %v706_v62 = vld [vmem:[#allocation4 + $0x38] sm:$0x1] }
 0x3da   : > { %v13162_v48 = vpop.f32.mrf.mxu1 }
 0x3db   : > { %v6328_v40 = vadd.f32 %v13162_v48, %v16986_v24  ;;  %v6467_v28 = vpop.f32.mrf.mxu0  ;;  %v707_v48 = vsel %vm14279_vm5, 0, %v706_v62 }
 0x3dc   : > { %v6235_v33 = vpop.f32.mrf.mxu1  ;;  %708 = vst [vmem:[#allocation4 + $0x38] sm:$0x1] %v707_v48 }
 0x3dd   : > { %v6326_v9 = vadd.f32 %v6235_v33, %v16991_v56  ;;  %v13197_v43 = vpop.f32.mrf.mxu0  ;;  %v17132_v25 = vadd.f32 %v13196_v34, %v6328_v40  ;;  %v703_v40 = vld [vmem:[#allocation4 + $0x2c] sm:$0x1] }
 0x3de   : > { %v13163_v53 = vpop.f32.mrf.mxu1 }
 0x3df   : > { %v6329_v57 = vadd.f32 %v13163_v53, %v16996_v26  ;;  %v17135_v27 = vpop.f32.mrf.mxu0  ;;  %v17137_v24 = vadd.f32 %v6467_v28, %v6326_v9  ;;  %v704_v26 = vsel %vm14279_vm5, 0, %v703_v40 }
 0x3e0   : > { %19421 = vst [vmem:[#allocation49_spill] sm:$0xff] %v17135_v27  ;;  %v17141_v42 = vpop.f32.mrf.mxu1  ;;  %705 = vst [vmem:[#allocation4 + $0x2c] sm:$0x1] %v704_v26  ;;  %v658_v27 = vld [vmem:[#allocation4 + $0x48] sm:$0x1] }
 0x3e1   : > { %v13200_v29 = vpop.f32.mrf.mxu0  ;;  %v17143_v56 = vadd.f32 %v13197_v43, %v6329_v57  ;;  %v659_v57 = vsel %vm14273_vm3, 0, %v658_v27  ;;  %v709_v27 = vld [vmem:[#allocation4 + $0x44] sm:$0x1] }
 0x3e2   : > { %v13166_v34 = vpop.f32.mrf.mxu1  ;;  %660 = vst [vmem:[#allocation4 + $0x48] sm:$0x1] %v659_v57  ;;  %v664_v57 = vld [vmem:[#allocation4 + $0x60] sm:$0x1] }
 0x3e3   : > { %v6332_v33 = vadd.f32 %v13166_v34, %v17004_v16  ;;  %v6483_v45 = vpop.f32.mrf.mxu0  ;;  %v655_v34 = vld [vmem:[#allocation4 + $0x3c] sm:$0x1] }
 0x3e4   : > { %v6251_v53 = vpop.f32.mrf.mxu1 }
 0x3e5   : > { %v6330_v28 = vadd.f32 %v6251_v53, %v17009_v61  ;;  %v13201_v9 = vpop.f32.mrf.mxu0  ;;  %v17149_v62 = vadd.f32 %v13200_v29, %v6332_v33  ;;  %v656_v61 = vsel %vm14273_vm3, 0, %v655_v34  ;;  %v712_v53 = vld [vmem:[#allocation4 + $0x50] sm:$0x1] }
 0x3e6   : > { %v13167_v48 = vpop.f32.mrf.mxu1  ;;  %657 = vst [vmem:[#allocation4 + $0x3c] sm:$0x1] %v656_v61 }
 0x3e7   : > { %v6333_v43 = vadd.f32 %v13167_v48, %v17013_v8  ;;  %v17154_v55 = vpop.f32.mrf.mxu0  ;;  %v17156_v16 = vadd.f32 %v6483_v45, %v6330_v28  ;;  %v713_v45 = vsel %vm14279_vm5, 0, %v712_v53  ;;  %v710_v28 = vsel %vm14279_vm5, 0, %v709_v27 }
 0x3e8   : > { %19422 = vst [vmem:[#allocation48_spill] sm:$0xff] %v17154_v55  ;;  %v17158_v40 = vpop.f32.mrf.mxu1  ;;  %714 = vst [vmem:[#allocation4 + $0x50] sm:$0x1] %v713_v45 }
 0x3e9   : > { %v13204_v29 = vpop.f32.mrf.mxu0  ;;  %v17162_v33 = vadd.f32 %v13201_v9, %v6333_v43  ;;  %711 = vst [vmem:[#allocation4 + $0x44] sm:$0x1] %v710_v28  ;;  %v665_v9 = vsel %vm14273_vm3, 0, %v664_v57 }
 0x3ea   : > { %v13170_v26 = vpop.f32.mrf.mxu1  ;;  %666 = vst [vmem:[#allocation4 + $0x60] sm:$0x1] %v665_v9 }
 0x3eb   : > { %v6336_v8 = vadd.f32 %v13170_v26, %v17022_v12  ;;  %v6499_v48 = vpop.f32.mrf.mxu0 }
 0x3ec   : > { %v6267_v55 = vpop.f32.mrf.mxu1 }
 0x3ed   : > { %v6334_v43 = vadd.f32 %v6267_v55, %v17028_v19  ;;  %v13205_v34 = vpop.f32.mrf.mxu0  ;;  %v17172_v61 = vadd.f32 %v13204_v29, %v6336_v8  ;;  %v661_v55 = vld [vmem:[#allocation4 + $0x54] sm:$0x1] }
 0x3ee   : > { %v13171_v12 = vpop.f32.mrf.mxu1  ;;  %v662_v8 = vsel %vm14273_vm3, 0, %v661_v55 }
 0x3ef   : > { %v6337_v26 = vadd.f32 %v13171_v12, %v17032_v23  ;;  %v17175_v53 = vpop.f32.mrf.mxu0  ;;  %v17177_v4 = vadd.f32 %v6499_v48, %v6334_v43  ;;  %663 = vst [vmem:[#allocation4 + $0x54] sm:$0x1] %v662_v8  ;;  %v718_v48 = vld [vmem:[#allocation4 + $0x68] sm:$0x1]  ;;  %v640_v8 = vld [vmem:[#allocation4] sm:$0x1] }
 0x3f0   : > { %19423 = vst [vmem:[#allocation50_spill] sm:$0xff] %v17175_v53  ;;  %v17179_v27 = vpop.f32.mrf.mxu1  ;;  %v715_v53 = vld [vmem:[#allocation4 + $0x5c] sm:$0x1] }
 0x3f1   : > { %19424 = vst [vmem:[#allocation51_spill] sm:$0xff] %v17179_v27  ;;  %v13208_v45 = vpop.f32.mrf.mxu0  ;;  %v17181_v28 = vadd.f32 %v13205_v34, %v6337_v26  ;;  %v719_v34 = vsel %vm14279_vm5, 0, %v718_v48  ;;  %v13793_v26 = vld [vmem:[#allocation11] sm:$0xff]   ;;  %v670_v48 = vld [vmem:[#allocation4 + $0x78] sm:$0x1] }
 0x3f2   : > { %v13174_v50 = vpop.f32.mrf.mxu1  ;;  %720 = vst [vmem:[#allocation4 + $0x68] sm:$0x1] %v719_v34  ;;  %13350 = vmatprep.subr.bf16.mxu1 %v13793_v26  ;;  %v667_v34 = vld [vmem:[#allocation4 + $0x6c] sm:$0x1] }
 0x3f3   : > { %v6340_v57 = vadd.f32 %v13174_v50, %v17044_v31  ;;  %v6515_v19 = vpop.f32.mrf.mxu0  ;;  %13351 = vmatpush3.bf16.msra.mxu1 %v13793_v26  ;;  %v724_v26 = vld [vmem:[#allocation4 + $0x80] sm:$0x1] }
 0x3f4   : > { %v6283_v29 = vpop.f32.mrf.mxu1 }
 0x3f5   : > { %v6338_v23 = vadd.f32 %v6283_v29, %v17049_v5  ;;  %v13209_v9 = vpop.f32.mrf.mxu0  ;;  %v17187_v12 = vadd.f32 %v13208_v45, %v6340_v57  ;;  %v716_v5 = vsel %vm14279_vm5, 0, %v715_v53  ;;  %v671_v53 = vsel %vm14273_vm3, 0, %v670_v48 }
 0x3f6   : > { %v13175_v43 = vpop.f32.mrf.mxu1  ;;  %717 = vst [vmem:[#allocation4 + $0x5c] sm:$0x1] %v716_v5  ;;  %672 = vst [vmem:[#allocation4 + $0x78] sm:$0x1] %v671_v53 }
 0x3f7   : > { %v6341_v31 = vadd.f32 %v13175_v43, %v17053_v47  ;;  %v17192_v50 = vpop.f32.mrf.mxu0  ;;  %v17194_v27 = vadd.f32 %v6515_v19, %v6338_v23  ;;  %v641_v19 = vsel %vm14273_vm3, 0, %v640_v8  ;;  %v17207_v23 = vld [vmem:[#allocation11 + $0x30] sm:$0xff]   ;;  %v725_v8 = vsel %vm14279_vm5, 0, %v724_v26 }
 0x3f8   : > { %19425 = vst [vmem:[#allocation57_spill] sm:$0xff] %v17192_v50  ;;  %v17198_v45 = vpop.f32.mrf.mxu1  ;;  %19426 = vst [vmem:[#allocation52_spill] sm:$0xff] %v17207_v23  ;;  %13384 = vmatprep.subr.bf16.mxu0 %v17207_v23 }
 0x3f9   : > { %v13212_v57 = vpop.f32.mrf.mxu0  ;;  %v17200_v55 = vadd.f32 %v13209_v9, %v6341_v31  ;;  %642 = vst [vmem:[#allocation4] sm:$0x1] %v641_v19  ;;  %v668_v9 = vsel %vm14273_vm3, 0, %v667_v34  ;;  %726 = vst [vmem:[#allocation4 + $0x80] sm:$0x1] %v725_v8 }
 0x3fa   : > { %v13178_v29 = vpop.f32.mrf.mxu1  ;;  %669 = vst [vmem:[#allocation4 + $0x6c] sm:$0x1] %v668_v9 }
 0x3fb   : > { %v6344_v47 = vadd.f32 %v13178_v29, %v17058_v21  ;;  %v6531_v43 = vpop.f32.mrf.mxu0 }
 0x3fc   : > { %v6299_v5 = vpop.f32.mrf.mxu1 }
 0x3fd   : > { %v6342_v31 = vadd.f32 %v6299_v5, %v17063_v17  ;;  %v13213_v21 = vpop.f32.mrf.mxu0  ;;  %v17212_v29 = vadd.f32 %v13212_v57, %v6344_v47  ;;  %v721_v17 = vld [vmem:[#allocation4 + $0x74] sm:$0x1] }
 0x3fe   : > { %v13179_v48 = vpop.f32.mrf.mxu1  ;;  %v722_v47 = vsel %vm14279_vm5, 0, %v721_v17 }
 0x3ff   : > { %19427 = vst [vmem:[#allocation53_spill] sm:$0xff] %v17212_v29  ;;  %v6345_v19 = vadd.f32 %v13179_v48, %v17069_v52  ;;  %v17218_v53 = vpop.f32.mrf.mxu0  ;;  %v17220_v50 = vadd.f32 %v6531_v43, %v6342_v31  ;;  %723 = vst [vmem:[#allocation4 + $0x74] sm:$0x1] %v722_v47 }
 0x400   : > { %19428 = vst [vmem:[#allocation54_spill] sm:$0xff] %v17218_v53  ;;  %v17222_v34 = vpop.f32.mrf.mxu1  ;;  %v13794_v52 = vld [vmem:[#allocation4] sm:$0xff]  }
 0x401   : > { %19429 = vst [vmem:[#allocation61_spill] sm:$0xff] %v17220_v50  ;;  %v17224_v5 = vpop.f32.mrf.mxu0  ;;  %v17226_v57 = vadd.f32 %v13213_v21, %v6345_v19  ;;  %13352 = vmatprep.mubr.msk.bf16.mxu1 %vm1344_vm9, %v13794_v52  ;;  %v676_v21 = vld [vmem:[#allocation4 + $0x90] sm:$0x1]  ;;  %v673_v19 = vld [vmem:[#allocation4 + $0x84] sm:$0x1] }
 0x402   : > { %19430 = vst [vmem:[#allocation55_spill] sm:$0xff] %v17224_v5  ;;  %v17230_v9 = vpop.f32.mrf.mxu1  ;;  %v677_v17 = vsel %vm14273_vm3, 0, %v676_v21  ;;  %v674_v47 = vsel %vm14273_vm3, 0, %v673_v19  ;;  %v682_v19 = vld [vmem:[#allocation4 + $0xa8] sm:$0x1] }
 0x403   : > { %19431 = vst [vmem:[#allocation63_spill] sm:$0xff] %v17226_v57  ;;  %v17232_v26 = vpop.f32.mrf.mxu0  ;;  %v730_v57 = vld [vmem:[#allocation4 + $0x98] sm:$0x1]  ;;  %678 = vst [vmem:[#allocation4 + $0x90] sm:$0x1] %v677_v17  ;;  %v683_v17 = vsel %vm14273_vm3, 0, %v682_v19 }
 0x404   : > { %19432 = vst [vmem:[#allocation56_spill] sm:$0xff] %v17232_v26  ;;  %v17234_v8 = vpop.f32.mrf.mxu1  ;;  %675 = vst [vmem:[#allocation4 + $0x84] sm:$0x1] %v674_v47  ;;  %v731_v52 = vsel %vm14279_vm5, 0, %v730_v57 }
 0x405   : > { %v17236_v43 = vpop.f32.mrf.mxu0  ;;  %732 = vst [vmem:[#allocation4 + $0x98] sm:$0x1] %v731_v52  ;;  %684 = vst [vmem:[#allocation4 + $0xa8] sm:$0x1] %v683_v17  ;;  %v736_v17 = vld [vmem:[#allocation4 + $0xb0] sm:$0x1] }
 0x406   : > { %19433 = vst [vmem:[#allocation65_spill] sm:$0xff] %v17236_v43  ;;  %v17239_v31 = vpop.f32.mrf.mxu1 }
 0x407   : > { %v17241_v48 = vpop.f32.mrf.mxu0 }
 0x408   : > { %19434 = vst [vmem:[#allocation58_spill] sm:$0xff] %v17241_v48  ;;  %v17243_v23 = vpop.f32.mrf.mxu1  ;;  %v727_v48 = vld [vmem:[#allocation4 + $0x8c] sm:$0x1] }
 0x409   : > { %v17249_v26 = vpop.f32.mrf.mxu0  ;;  %v728_v21 = vsel %vm14279_vm5, 0, %v727_v48  ;;  %v679_v48 = vld [vmem:[#allocation4 + $0x9c] sm:$0x1] }
 0x40a   : > { %19435 = vst [vmem:[#allocation59_spill] sm:$0xff] %v17249_v26  ;;  %v17253_v43 = vpop.f32.mrf.mxu1  ;;  %729 = vst [vmem:[#allocation4 + $0x8c] sm:$0x1] %v728_v21  ;;  %v680_v21 = vsel %vm14273_vm3, 0, %v679_v48 }
 0x40b   : > { %v17255_v5 = vpop.f32.mrf.mxu0  ;;  %681 = vst [vmem:[#allocation4 + $0x9c] sm:$0x1] %v680_v21 }
 0x40c   : > { %19436 = vst [vmem:[#allocation60_spill] sm:$0xff] %v17255_v5  ;;  %v17259_v50 = vpop.f32.mrf.mxu1 }
 0x40d   : > { %v17261_v53 = vpop.f32.mrf.mxu0 }
 0x40e   : > { %19437 = vst [vmem:[#allocation62_spill] sm:$0xff] %v17261_v53  ;;  %v13223_v47 = vpop.f32.mrf.mxu1 }
 0x40f   : > { %v17266_v57 = vadd.f32 %v13223_v47, %v17105_v18  ;;  %v17268_v52 = vpop.f32.mrf.mxu0  ;;  %v737_v47 = vsel %vm14279_vm5, 0, %v736_v17 }
 0x410   : > { %19439 = vst [vmem:[#allocation40_spill] sm:$0xff] %v17268_v52  ;;  %v17270_v5 = vpop.f32.mrf.mxu1  ;;  %738 = vst [vmem:[#allocation4 + $0xb0] sm:$0x1] %v737_v47  ;;  %v685_v47 = vld [vmem:[#allocation4 + $0xb4] sm:$0x1] }
 0x411   : > { %19438 = vst [vmem:[#allocation64_spill] sm:$0xff] %v17266_v57  ;;  %v17272_v26 = vpop.f32.mrf.mxu0 }
 0x412   : > { %19440 = vst [vmem:[#allocation19_spill] sm:$0xff] %v17272_v26  ;;  %v13226_v29 = vpop.f32.mrf.mxu1 }
 0x413   : > { %v17277_v53 = vadd.f32 %v13226_v29, %v17111_v46  ;;  %v17279_v19 = vpop.f32.mrf.mxu0  ;;  %v733_v29 = vld [vmem:[#allocation4 + $0xa4] sm:$0x1] }
 0x414   : > { %19442 = vst [vmem:[#allocation28_spill] sm:$0xff] %v17279_v19  ;;  %v6927_v18 = vpop.f32.mrf.mxu1  ;;  %v734_v21 = vsel %vm14279_vm5, 0, %v733_v29 }
 0x415   : > { %19441 = vst [vmem:[#allocation31_spill] sm:$0xff] %v17277_v53  ;;  %v17284_v52 = vadd.f32 %v6927_v18, %v17118_v0  ;;  %v17286_v26 = vpop.f32.mrf.mxu0  ;;  %v688_v53 = vld [vmem:[#allocation4 + $0xc0] sm:$0x1]  ;;  %735 = vst [vmem:[#allocation4 + $0xa4] sm:$0x1] %v734_v21 }
 0x416   : > { %19443 = vst [vmem:[#allocation27_spill] sm:$0xff] %v17286_v26  ;;  %v13227_v57 = vpop.f32.mrf.mxu1  ;;  %v689_v0 = vsel %vm14273_vm3, 0, %v688_v53 }
 0x417   : > { %v17289_v48 = vadd.f32 %v13227_v57, %v17124_v58  ;;  %v17291_v46 = vpop.f32.mrf.mxu0  ;;  %690 = vst [vmem:[#allocation4 + $0xc0] sm:$0x1] %v689_v0 }
 0x418   : > { %19444 = vst [vmem:[#allocation26_spill] sm:$0xff] %v17291_v46  ;;  %v17293_v19 = vpop.f32.mrf.mxu1  ;;  %v686_v46 = vsel %vm14273_vm3, 0, %v685_v47 }
 0x419   : > { %v17297_v17 = vpop.f32.mrf.mxu0  ;;  %687 = vst [vmem:[#allocation4 + $0xb4] sm:$0x1] %v686_v46 }
 0x41a   : > { %19445 = vst [vmem:[#allocation30_spill] sm:$0xff] %v17297_v17  ;;  %v13230_v18 = vpop.f32.mrf.mxu1  ;;  %v742_v17 = vld [vmem:[#allocation4 + $0xc8] sm:$0x1] }
 0x41b   : > { %v17302_v58 = vadd.f32 %v13230_v18, %v17132_v25  ;;  %v17304_v57 = vpop.f32.mrf.mxu0  ;;  %v743_v0 = vsel %vm14279_vm5, 0, %v742_v17 }
 0x41c   : > { %v6943_v26 = vpop.f32.mrf.mxu1  ;;  %744 = vst [vmem:[#allocation4 + $0xc8] sm:$0x1] %v743_v0 }
 0x41d   : > { %v17309_v29 = vadd.f32 %v6943_v26, %v17137_v24  ;;  %v17311_v21 = vpop.f32.mrf.mxu0  ;;  %v740_v24 = vsel %vm14279_vm5, 0, %v739_v1 }
 0x41e   : > { %19446 = vst [vmem:[#allocation36_spill] sm:$0xff] %v17311_v21  ;;  %v13231_v53 = vpop.f32.mrf.mxu1  ;;  %741 = vst [vmem:[#allocation4 + $0xbc] sm:$0x1] %v740_v24 }
 0x41f   : > { %v17316_v25 = vadd.f32 %v13231_v53, %v17143_v56  ;;  %v17318_v18 = vpop.f32.mrf.mxu0 }
 0x420   : > { %19448 = vst [vmem:[#allocation24_spill] sm:$0xff] %v17318_v18  ;;  %v17320_v47 = vpop.f32.mrf.mxu1 }
 0x421   : > { %19447 = vst [vmem:[#allocation25_spill] sm:$0xff] %v17316_v25  ;;  %v17324_v26 = vpop.f32.mrf.mxu0 }
 0x422   : > { %19449 = vst [vmem:[#allocation66_spill] sm:$0xff] %v17324_v26  ;;  %v13234_v46 = vpop.f32.mrf.mxu1 }
 0x423   : > { %v17327_v21 = vadd.f32 %v13234_v46, %v17149_v62  ;;  %v17329_v17 = vpop.f32.mrf.mxu0 }
 0x424   : > { %19451 = vst [vmem:[#allocation68_spill] sm:$0xff] %v17329_v17  ;;  %v6959_v56 = vpop.f32.mrf.mxu1 }
 0x425   : > { %19450 = vst [vmem:[#allocation67_spill] sm:$0xff] %v17327_v21  ;;  %v17332_v53 = vadd.f32 %v6959_v56, %v17156_v16  ;;  %v17334_v0 = vpop.f32.mrf.mxu0  ;;  %v5109_v56 = vadd.f32 %v16862_v49, %v16866_v10  ;;  %v694_v21 = vld [vmem:[#allocation4 + $0x8] sm:$0x1] }
 0x426   : > { %19453 = vst [vmem:[#allocation70_spill] sm:$0xff] %v17334_v0  ;;  %v13235_v18 = vpop.f32.mrf.mxu1  ;;  %v19459_v0 = vld [vmem:[#allocation29_spill] sm:$0xff] }
 0x427   : > { %19452 = vst [vmem:[#allocation69_spill] sm:$0xff] %v17332_v53  ;;  %v17337_v25 = vadd.f32 %v13235_v18, %v17162_v33  ;;  %v17339_v1 = vpop.f32.mrf.mxu0  ;;  %v5125_v33 = vadd.f32 %v16886_v6, %v16890_v37  ;;  %v19461_v53 = vld [vmem:[#allocation34_spill] sm:$0xff]  ;;  %v5363_v49 = vadd.f32 %v17011_v38, %v5109_v56 }
 0x428   : > { %19455 = vst [vmem:[#allocation72_spill] sm:$0xff] %v17339_v1  ;;  %v17341_v26 = vpop.f32.mrf.mxu1 }
 0x429   : > { %19454 = vst [vmem:[#allocation71_spill] sm:$0xff] %v17337_v25  ;;  %v17343_v24 = vpop.f32.mrf.mxu0  ;;  %v5367_v10 = vadd.f32 %v17030_v59, %v5125_v33  ;;  %v19465_v33 = vld [vmem:[#allocation35_spill] sm:$0xff] }
 0x42a   : > { %19456 = vst [vmem:[#allocation73_spill] sm:$0xff] %v17343_v24  ;;  %v13238_v62 = vpop.f32.mrf.mxu1  ;;  %v19460_v24 = vld [vmem:[#allocation32_spill] sm:$0xff] }
 0x42b   : > { %v17346_v46 = vadd.f32 %v13238_v62, %v17172_v61  ;;  %v17348_v17 = vpop.f32.mrf.mxu0  ;;  %v5141_v25 = vadd.f32 %v19460_v24, %v19459_v0  ;;  %v19462_v61 = vld [vmem:[#allocation33_spill] sm:$0xff] }
 0x42c   : > { %19458 = vst [vmem:[#allocation75_spill] sm:$0xff] %v17348_v17  ;;  %v6975_v16 = vpop.f32.mrf.mxu1  ;;  %v5157_v62 = vadd.f32 %v19462_v61, %v19461_v53  ;;  %v17363_v17 = vld [vmem:[#allocation11 + $0x8] sm:$0xff]   ;;  %v6083_v53 = vadd.f32 %v16935_v14, %v16940_v11  ;;  %v6095_v14 = vadd.f32 %v16989_v41, %v16994_v32 }
 0x42d   : > { %19457 = vst [vmem:[#allocation74_spill] sm:$0xff] %v17346_v46  ;;  %v17355_v18 = vadd.f32 %v6975_v16, %v17177_v4  ;;  %v17357_v1 = vpop.f32.mrf.mxu0  ;;  %v695_v4 = vsel %vm14279_vm5, 0, %v694_v21  ;;  %v5371_v0 = vadd.f32 %v17051_v63, %v5141_v25  ;;  %13418 = vmatprep.subr.bf16.mxu1 %v17363_v17  ;;  %v6091_v63 = vadd.f32 %v16971_v15, %v16976_v3  ;;  %v19466_v61 = vld [vmem:[#allocation42_spill] sm:$0xff] }
 0x42e   : > { %v13239_v46 = vpop.f32.mrf.mxu1  ;;  %696 = vst [vmem:[#allocation4 + $0x8] sm:$0x1] %v695_v4  ;;  %v5375_v38 = vadd.f32 %v17065_v2, %v5157_v62  ;;  %v6099_v21 = vadd.f32 %v17007_v35, %v5363_v49  ;;  %v6103_v25 = vadd.f32 %v17026_v30, %v5367_v10  ;;  %v6548_v35 = vadd.f32 %v17067_v39, %v17074_v60  ;;  %v19469_v4 = vld [vmem:[#allocation39_spill] sm:$0xff]  ;;  %v19470_v39 = vld [vmem:[#allocation44_spill] sm:$0xff] }
 0x42f   : > { %v17368_v6 = vadd.f32 %v13239_v46, %v17181_v28  ;;  %v17370_v37 = vpop.f32.mrf.mxu0  ;;  %v6315_v28 = vadd.f32 %v17088_v54, %v6083_v53  ;;  %v6087_v46 = vadd.f32 %v16953_v22, %v16958_v51  ;;  %v6323_v22 = vadd.f32 %v17122_v44, %v6091_v63  ;;  %v19471_v53 = vld [vmem:[#allocation47_spill] sm:$0xff]  ;;  %v19473_v63 = vld [vmem:[#allocation41_spill] sm:$0xff] }
 0x430   : > { %v17377_v24 = vpop.f32.mrf.mxu1  ;;  %v6327_v51 = vadd.f32 %v17141_v42, %v6095_v14  ;;  %v6107_v15 = vadd.f32 %v17047_v36, %v5371_v0  ;;  %v6331_v41 = vadd.f32 %v17158_v40, %v6099_v21  ;;  %v6111_v32 = vadd.f32 %v17061_v7, %v5375_v38  ;;  %v19467_v42 = vld [vmem:[#allocation38_spill] sm:$0xff]  ;;  %v19468_v36 = vld [vmem:[#allocation43_spill] sm:$0xff]  ;;  %v19475_v21 = vld [vmem:[#allocation49_spill] sm:$0xff] }
 0x431   : > { %v17381_v59 = vpop.f32.mrf.mxu0  ;;  %v6319_v54 = vadd.f32 %v17103_v13, %v6087_v46  ;;  %v19464_v13 = vld [vmem:[#allocation37_spill] sm:$0xff]  ;;  %v6549_v62 = vadd.f32 %v19467_v42, %v19466_v61  ;;  %v6547_v49 = vadd.f32 %v19468_v36, %v6315_v28  ;;  %v6552_v60 = vadd.f32 %v19470_v39, %v19469_v4  ;;  %v19472_v38 = vld [vmem:[#allocation46_spill] sm:$0xff] }
 0x432   : > { %v13242_v11 = vpop.f32.mrf.mxu1  ;;  %v6546_v44 = vadd.f32 %v19465_v33, %v19464_v13  ;;  %v6339_v40 = vadd.f32 %v17198_v45, %v6107_v15  ;;  %v6343_v7 = vadd.f32 %v17222_v34, %v6111_v32  ;;  %v6550_v46 = vadd.f32 %v19472_v38, %v19471_v53  ;;  %v19476_v32 = vld [vmem:[#allocation48_spill] sm:$0xff]  ;;  %v19477_v61 = vld [vmem:[#allocation50_spill] sm:$0xff]  ;;  %v19484_v38 = vld [vmem:[#allocation65_spill] sm:$0xff] }
 0x433   : > { %v17393_v2 = vadd.f32 %v13242_v11, %v17187_v12  ;;  %v17395_v16 = vpop.f32.mrf.mxu0  ;;  %v19463_v12 = vld [vmem:[#allocation51_spill] sm:$0xff]  ;;  %v6551_v14 = vadd.f32 %v19473_v63, %v6319_v54  ;;  %v19474_v11 = vld [vmem:[#allocation45_spill] sm:$0xff]  ;;  %v7024_v34 = vadd.f32 %v17230_v9, %v6548_v35  ;;  %v8812_v13 = vld [vmem:[#allocation4 + $0x4] sm:$0xf]  ;;  %v7023_v33 = vadd.f32 %v17243_v23, %v6547_v49 }
 0x434   : > { %v6991_v3 = vpop.f32.mrf.mxu1  ;;  %v6335_v56 = vadd.f32 %v19463_v12, %v6103_v25  ;;  %v6555_v28 = vadd.f32 %v19474_v11, %v6323_v22  ;;  %v6559_v25 = vadd.f32 %v19475_v21, %v6327_v51  ;;  %v7022_v15 = vadd.f32 %v17234_v8, %v6546_v44  ;;  %v8811_v12 = vld [vmem:[#allocation4] sm:$0xf]  ;;  %v19478_v8 = vld [vmem:[#allocation57_spill] sm:$0xff] }
 0x435   : > { %v17406_v30 = vadd.f32 %v6991_v3, %v17194_v27  ;;  %v17418_v27 = vpop.f32.mrf.mxu0  ;;  %v7025_v3 = vadd.f32 %v17239_v31, %v6549_v62  ;;  %v7028_v54 = vadd.f32 %v17253_v43, %v6552_v60  ;;  %v7026_v22 = vadd.f32 %v17259_v50, %v6550_v46  ;;  %v19479_v31 = vld [vmem:[#allocation53_spill] sm:$0xff] }
 0x436   : > { %v13243_v10 = vpop.f32.mrf.mxu1  ;;  %v6567_v51 = vadd.f32 %v19477_v61, %v6335_v56  ;;  %v7027_v36 = vadd.f32 %v17270_v5, %v6551_v14  ;;  %v6571_v35 = vadd.f32 %v19478_v8, %v6339_v40  ;;  %v8866_v23 = vshrl.u32 %v8811_v12, 16  ;;  %v19481_v50 = vld [vmem:[#allocation61_spill] sm:$0xff]  ;;  %v19482_v56 = vld [vmem:[#allocation55_spill] sm:$0xff]  ;;  %v19483_v5 = vld [vmem:[#allocation56_spill] sm:$0xff] }
 0x437   : > { %v17421_v0 = vadd.f32 %v13243_v10, %v17200_v55  ;;  %v6563_v55 = vadd.f32 %v19476_v32, %v6331_v41  ;;  %v17439_v9 = vpop.f32.mrf.mxu0  ;;  %v19480_v41 = vld [vmem:[#allocation54_spill] sm:$0xff]  ;;  %v8869_v49 = vshll.u32 %v8811_v12, 16  ;;  %v8875_v43 = vshll.u32 %v8812_v13, 16  ;;  %v19487_v32 = vld [vmem:[#allocation60_spill] sm:$0xff] }
 0x438   : > { %v17428_v45 = vpop.f32.mrf.mxu1  ;;  %v6575_v62 = vadd.f32 %v19480_v41, %v6343_v7  ;;  %v8879_v4 = vshrl.u32 %v8812_v13, 16  ;;  %v7242_v60 = vadd.f32 %v19482_v56, %v7024_v34  ;;  %v7240_v53 = vadd.f32 %v19483_v5, %v7022_v15  ;;  %v19485_v14 = vld [vmem:[#allocation58_spill] sm:$0xff]  ;;  %v19486_v7 = vld [vmem:[#allocation59_spill] sm:$0xff]  ;;  %v19489_v15 = vld [vmem:[#allocation64_spill] sm:$0xff] }
 0x439   : > { %v7243_v46 = vadd.f32 %v19484_v38, %v7025_v3  ;;  %v7031_v40 = vadd.f32 %v17293_v19, %v6555_v28  ;;  %v7241_v11 = vadd.f32 %v19485_v14, %v7023_v33  ;;  %v17455_v21 = vadd.f32 %v19486_v7, %v7028_v54  ;;  %v13280_v61 = vpop.f32.mrf.mxu0  ;;  %v19490_v8 = vld [vmem:[#allocation62_spill] sm:$0xff]  ;;  %v19491_v19 = vld [vmem:[#allocation40_spill] sm:$0xff]  ;;  %v19495_v38 = vld [vmem:[#allocation27_spill] sm:$0xff] }
 0x43a   : > { %v13246_v42 = vpop.f32.mrf.mxu1  ;;  %v17458_v12 = vadd.f32 %v19487_v32, %v7026_v22  ;;  %v7035_v13 = vadd.f32 %v17320_v47, %v6559_v25  ;;  %v17466_v3 = vadd.f32 %v19490_v8, %v19489_v15  ;;  %v17469_v28 = vadd.f32 %v19491_v19, %v7027_v36  ;;  %v19492_v47 = vld [vmem:[#allocation31_spill] sm:$0xff]  ;;  %v19494_v56 = vld [vmem:[#allocation28_spill] sm:$0xff] }
 0x43b   : > { %v17443_v44 = vadd.f32 %v13246_v42, %v19479_v31  ;;  %v19488_v42 = vld [vmem:[#allocation63_spill] sm:$0xff]  ;;  %v8868_v31 = vrot.slane %v8866_v23, 4  ;;  %v8871_v54 = vrot.slane %v8869_v49, 5  ;;  %v17471_v41 = vrot.slane %v8875_v43, 5  ;;  %v17490_v43 = vld [vmem:[%s19195_s4] ss:$0 sm:$0xff] }
 0x43c   : > { %v7007_v10 = vpop.f32.mrf.mxu1  ;;  %v8881_v22 = vrot.slane %v8879_v4, 4  ;;  %v19493_v25 = vld [vmem:[#allocation19_spill] sm:$0xff]  ;;  %v17480_v5 = vadd.f32 %v19494_v56, %v17284_v52  ;;  %v17484_v36 = vadd.f32 %v19495_v38, %v17289_v48  ;;  %v7043_v23 = vadd.f32 %v17377_v24, %v6567_v51  ;;  %v19497_v4 = vld [vmem:[#allocation30_spill] sm:$0xff]  ;;  %v7225_v48 = vpop.f32.mrf.mxu0  ;;  %v19498_v24 = vld [vmem:[#allocation25_spill] sm:$0xff] }
 0x43d   : > { %v17447_v39 = vadd.f32 %v7007_v10, %v19481_v50  ;;  %v7039_v10 = vadd.f32 %v17341_v26, %v6563_v55  ;;  %v17476_v50 = vadd.f32 %v19493_v25, %v19492_v47  ;;  %v19496_v26 = vld [vmem:[#allocation26_spill] sm:$0xff]  ;;  %v17501_v52 = vadd.f32 %v17304_v57, %v17309_v29  ;;  %v19499_v51 = vld [vmem:[#allocation36_spill] sm:$0xff]  ;;  %v19501_v15 = vld [vmem:[#allocation67_spill] sm:$0xff] }
 0x43e   : > { %v13247_v63 = vpop.f32.mrf.mxu1  ;;  %v17493_v55 = vadd.f32 %v19496_v26, %v7031_v40  ;;  %v17505_v7 = vadd.f32 %v19499_v51, %v19498_v24  ;;  %v19500_v32 = vld [vmem:[#allocation24_spill] sm:$0xff]  ;;  %v19502_v40 = vld [vmem:[#allocation66_spill] sm:$0xff]  ;;  %v19505_v57 = vld [vmem:[#allocation71_spill] sm:$0xff]  ;;  %v8882_v38 = vor.u32 %v8881_v22, %v17471_v41 }
 0x43f   : > { %v17462_v34 = vadd.f32 %v13247_v63, %v19488_v42  ;;  %v17497_v63 = vadd.f32 %v19497_v4, %v17302_v58  ;;  %v17508_v42 = vadd.f32 %v19500_v32, %v7035_v13  ;;  %v17512_v8 = vadd.f32 %v19502_v40, %v19501_v15  ;;  %v19503_v58 = vld [vmem:[#allocation69_spill] sm:$0xff]  ;;  %v19504_v47 = vld [vmem:[#allocation68_spill] sm:$0xff]  ;;  %v19506_v29 = vld [vmem:[#allocation70_spill] sm:$0xff] }
 0x440   : > { %v7010_v33 = vpop.f32.mrf.mxu1  ;;  %v17516_v25 = vadd.f32 %v19504_v47, %v19503_v58  ;;  %v17520_v56 = vadd.f32 %v19506_v29, %v19505_v57  ;;  %v19507_v26 = vld [vmem:[#allocation72_spill] sm:$0xff]  ;;  %v19508_v24 = vld [vmem:[#allocation74_spill] sm:$0xff]  ;;  %v19509_v51 = vld [vmem:[#allocation73_spill] sm:$0xff]  ;;  %v7047_v15 = vadd.f32 %v17428_v45, %v6571_v35  ;;  %v17546_v45 = vadd.f32 %v17381_v59, %v17393_v2 }
 0x441   : > { %v17525_v4 = vadd.f32 %v19507_v26, %v7039_v10  ;;  %v17529_v32 = vadd.f32 %v19509_v51, %v19508_v24  ;;  %v19510_v58 = vld [vmem:[#allocation75_spill] sm:$0xff]  ;;  %v17548_v35 = vld [vmem:[#allocation4 + $0x8] sm:$0x1]  ;;  %v17561_v59 = vadd.f32 %v17418_v27, %v17421_v0 }
 0x442   : > { %v13286_v49 = vpop.f32.mrf.mxu1  ;;  %v17534_v47 = vadd.f32 %v19510_v58, %v17355_v18  ;;  %v7051_v18 = vadd.f32 %v7010_v33, %v6575_v62  ;;  %v17564_v2 = vadd.f32 %v17439_v9, %v7047_v15  ;;  %v7985_v15 = vld [vmem:[#allocation4 + $0x18] sm:$0xf] }
 0x443   : > { %v7460_v14 = vadd.f32 %v13286_v49, %v7242_v60  ;;  %v8872_v60 = vor.u32 %v8871_v54, %v8868_v31  ;;  %v17538_v31 = vadd.f32 %v17357_v1, %v17368_v6  ;;  %v13281_v54 = vpop.f32.mrf.mxu0  ;;  %v17552_v1 = vadd.f32 %v17395_v16, %v17406_v30 }
 0x444   : > { %v7331_v19 = vpop.f32.mrf.mxu1  ;;  %v17567_v16 = vadd.f32 %v13280_v61, %v17443_v44  ;;  %v8885_v30 = vshll.u32 %v17548_v35, 16  ;;  %v17576_v9 = vadd.f32 %v13281_v54, %v17462_v34  ;;  %v7978_v34 = vld [vmem:[#allocation4 + $0xc] sm:$0xf] }
 0x445   : > { %v7499_v49 = vadd.f32 %v17490_v43, %v7460_v14  ;;  %v7458_v13 = vadd.f32 %v7331_v19, %v7240_v53  ;;  %v17541_v53 = vadd.f32 %v17370_v37, %v7043_v23  ;;  %v17554_v6 = vrot.slane %v8872_v60, 4  ;;  %v7228_v62 = vpop.f32.mrf.mxu0 }
 0x446   : > { %v13287_v40 = vpop.f32.mrf.mxu1  ;;  %v17556_v37 = vrot.slane %v8882_v38, 4  ;;  %v17578_v26 = vadd.f32 %v7228_v62, %v7051_v18 }
 0x447   : > { %v7531_v22 = vmax.f32 %v7499_v49, 0.0  ;;  %v7497_v10 = vadd.f32 %v17490_v43, %v7458_v13  ;;  %v7461_v14 = vadd.f32 %v13287_v40, %v7243_v46  ;;  %v17571_v13 = vadd.f32 %v7225_v48, %v17447_v39 }
 0x448   : > { %v7334_v19 = vpop.f32.mrf.mxu1 }
 0x449   : > { %v12197_v23 = vpack.c.bf16 %v7531_v22, %v7531_v22  ;;  %v7529_v57 = vmax.f32 %v7497_v10, 0.0  ;;  %v7500_v46 = vadd.f32 %v17490_v43, %v7461_v14  ;;  %v7459_v29 = vadd.f32 %v7334_v19, %v7241_v11 }
 0x44a   : > { %v13290_v49 = vpop.f32.mrf.mxu1 }
 0x44b   : > { %v7675_v33 = vshrl.u32 %v12197_v23, 16  ;;  %v12195_v60 = vpack.c.bf16 %v7529_v57, %v7529_v57  ;;  %v7532_v38 = vmax.f32 %v7500_v46, 0.0  ;;  %v7498_v11 = vadd.f32 %v17490_v43, %v7459_v29 }
 0x44c   : > { %v7464_v27 = vadd.f32 %v13290_v49, %v17455_v21  ;;  %v7347_v0 = vpop.f32.mrf.mxu1  ;;  %v7678_v61 = vshll.u32 %v12197_v23, 16 }
 0x44d   : > { %v7677_v44 = vrot.slane %v7675_v33, 7  ;;  %v7658_v24 = vshrl.u32 %v12195_v60, 16  ;;  %v12198_v51 = vpack.c.bf16 %v7532_v38, %v7532_v38  ;;  %v7661_v40 = vshll.u32 %v12195_v60, 16 }
 0x44e   : > { %v7530_v58 = vmax.f32 %v7498_v11, 0.0  ;;  %v7503_v39 = vadd.f32 %v17490_v43, %v7464_v27  ;;  %v7462_v48 = vadd.f32 %v7347_v0, %v17458_v12  ;;  %v13291_v22 = vpop.f32.mrf.mxu1  ;;  %v7989_v12 = vld [vmem:[#allocation4 + $0x20] sm:$0x1] }
 0x44f   : > { %v7680_v10 = vor.u32 %v7678_v61, %v7677_v44  ;;  %v7681_v21 = vrot.slane %v7677_v44, 4  ;;  %v7660_v14 = vrot.slane %v7658_v24, 7  ;;  %v7683_v19 = vshrl.u32 %v12198_v51, 16 }
 0x450   : > { %v7686_v54 = vshll.u32 %v12198_v51, 16  ;;  %v12196_v18 = vpack.c.bf16 %v7530_v58, %v7530_v58  ;;  %v7535_v57 = vmax.f32 %v7503_v39, 0.0  ;;  %v7501_v23 = vadd.f32 %v17490_v43, %v7462_v48  ;;  %v7350_v46 = vpop.f32.mrf.mxu1 }
 0x451   : > { %v7986_v49 = vsel %vm14308_vm8, %v7680_v10, %v7985_v15  ;;  %v7663_v62 = vor.u32 %v7661_v40, %v7660_v14  ;;  %v7664_v33 = vrot.slane %v7660_v14, 4  ;;  %v7685_v60 = vrot.slane %v7683_v19, 7 }
 0x452   : > { %7987 = vst [vmem:[#allocation4 + $0x18] sm:$0xf] %v7986_v49  ;;  %v7666_v38 = vshrl.u32 %v12196_v18, 16  ;;  %v7669_v11 = vshll.u32 %v12196_v18, 16  ;;  %v12201_v27 = vpack.c.bf16 %v7535_v57, %v7535_v57  ;;  %v7533_v0 = vmax.f32 %v7501_v23, 0.0  ;;  %v13294_v44 = vpop.f32.mrf.mxu1 }
 0x453   : > { %v7979_v61 = vsel %vm14308_vm8, %v7663_v62, %v7978_v34  ;;  %v7688_v24 = vor.u32 %v7686_v54, %v7685_v60  ;;  %v7690_v51 = vrot.slane %v7685_v60, 4  ;;  %v7465_v58 = vadd.f32 %v13291_v22, %v17466_v3  ;;  %v7982_v23 = vld [vmem:[#allocation4 + $0x14] sm:$0x1] }
 0x454   : > { %7980 = vst [vmem:[#allocation4 + $0xc] sm:$0xf] %v7979_v61  ;;  %v7668_v39 = vrot.slane %v7666_v38, 7  ;;  %v7709_v15 = vshrl.u32 %v12201_v27, 16  ;;  %v7712_v40 = vshll.u32 %v12201_v27, 16  ;;  %v12199_v48 = vpack.c.bf16 %v7533_v0, %v7533_v0  ;;  %v7363_v10 = vpop.f32.mrf.mxu1 }
 0x455   : > { %v7689_v19 = vsel %vm14296_vm7, %v7681_v21, %v7688_v24  ;;  %v7990_v57 = vsel %vm14273_vm3, %v7690_v51, %v7989_v12  ;;  %v7504_v49 = vadd.f32 %v17490_v43, %v7465_v58  ;;  %v7463_v34 = vadd.f32 %v7350_v46, %v17469_v28  ;;  %v7999_v38 = vld [vmem:[#allocation4 + $0x30] sm:$0xf] }
 0x456   : > { %7988 = vst.msk [vmem:[#allocation4 + $0x1c] sm:$0xf] %vm396_vm0, %v7689_v19  ;;  %7991 = vst [vmem:[#allocation4 + $0x20] sm:$0x1] %v7990_v57  ;;  %v7671_v3 = vor.u32 %v7669_v11, %v7668_v39  ;;  %v7673_v22 = vrot.slane %v7668_v39, 4  ;;  %v7711_v54 = vrot.slane %v7709_v15, 7  ;;  %v13295_v60 = vpop.f32.mrf.mxu1  ;;  %v7468_v12 = vadd.f32 %v13294_v44, %v17476_v50 }
 0x457   : > { %v7692_v62 = vshrl.u32 %v12199_v48, 16  ;;  %v7695_v27 = vshll.u32 %v12199_v48, 16  ;;  %v7536_v0 = vmax.f32 %v7504_v49, 0.0  ;;  %v7502_v21 = vadd.f32 %v17490_v43, %v7463_v34  ;;  %v7992_v44 = vld [vmem:[#allocation4 + $0x24] sm:$0xf] }
 0x458   : > { %v7672_v61 = vsel %vm14296_vm7, %v7664_v33, %v7671_v3  ;;  %v7983_v28 = vsel %vm14273_vm3, %v7673_v22, %v7982_v23  ;;  %v7714_v46 = vor.u32 %v7712_v40, %v7711_v54  ;;  %v7715_v24 = vrot.slane %v7711_v54, 4  ;;  %v7366_v11 = vpop.f32.mrf.mxu1 }
 0x459   : > { %7981 = vst.msk [vmem:[#allocation4 + $0x10] sm:$0xf] %vm396_vm0, %v7672_v61  ;;  %7984 = vst [vmem:[#allocation4 + $0x14] sm:$0x1] %v7983_v28  ;;  %v17602_v51 = vrot.slane %v7692_v62, 7  ;;  %v12202_v58 = vpack.c.bf16 %v7536_v0, %v7536_v0  ;;  %v7534_v39 = vmax.f32 %v7502_v21, 0.0  ;;  %v7507_v15 = vadd.f32 %v17490_v43, %v7468_v12 }
 0x45a   : > { %v8000_v50 = vsel %vm14308_vm8, %v7714_v46, %v7999_v38  ;;  %v7466_v33 = vadd.f32 %v7363_v10, %v17480_v5  ;;  %v7469_v48 = vadd.f32 %v13295_v60, %v17484_v36  ;;  %v7467_v40 = vadd.f32 %v7366_v11, %v17493_v55  ;;  %v13298_v19 = vpop.f32.mrf.mxu1  ;;  %v8003_v60 = vld [vmem:[#allocation4 + $0x38] sm:$0x1] }
 0x45b   : > { %8001 = vst [vmem:[#allocation4 + $0x30] sm:$0xf] %v8000_v50  ;;  %v7697_v57 = vor.u32 %v7695_v27, %v17602_v51  ;;  %v7698_v23 = vrot.slane %v17602_v51, 4  ;;  %v7717_v49 = vshrl.u32 %v12202_v58, 16  ;;  %v7720_v34 = vshll.u32 %v12202_v58, 16 }
 0x45c   : > { %v12200_v3 = vpack.c.bf16 %v7534_v39, %v7534_v39  ;;  %v7539_v22 = vmax.f32 %v7507_v15, 0.0  ;;  %v7505_v54 = vadd.f32 %v17490_v43, %v7466_v33  ;;  %v7508_v62 = vadd.f32 %v17490_v43, %v7469_v48  ;;  %v17614_v38 = vpop.f32.mrf.mxu1 }
 0x45d   : > { %v7993_v5 = vsel %vm14308_vm8, %v7697_v57, %v7992_v44  ;;  %v7719_v36 = vrot.slane %v7717_v49, 7  ;;  %v7506_v55 = vadd.f32 %v17490_v43, %v7467_v40  ;;  %v7472_v10 = vadd.f32 %v13298_v19, %v17497_v63  ;;  %v7996_v40 = vld [vmem:[#allocation4 + $0x2c] sm:$0x1]  ;;  %v17626_v49 = vld [vmem:[#allocation4 + $0x18] sm:$0xff]  }
 0x45e   : > { %7994 = vst [vmem:[#allocation4 + $0x24] sm:$0xf] %v7993_v5  ;;  %v7700_v27 = vshrl.u32 %v12200_v3, 16  ;;  %v7703_v0 = vshll.u32 %v12200_v3, 16  ;;  %v12205_v21 = vpack.c.bf16 %v7539_v22, %v7539_v22  ;;  %v7537_v12 = vmax.f32 %v7505_v54, 0.0  ;;  %v13299_v61 = vpop.f32.mrf.mxu1 }
 0x45f   : > { %v7722_v28 = vor.u32 %v7720_v34, %v7719_v36  ;;  %v7724_v46 = vrot.slane %v7719_v36, 4  ;;  %v7540_v11 = vmax.f32 %v7508_v62, 0.0  ;;  %v7538_v51 = vmax.f32 %v7506_v55, 0.0  ;;  %v13813_v34 = vld [vmem:[#allocation11 + $0x20] sm:$0xff]  }
 0x460   : > { %v7702_v58 = vrot.slane %v7700_v27, 7  ;;  %v7743_v39 = vshrl.u32 %v12205_v21, 16  ;;  %v7746_v15 = vshll.u32 %v12205_v21, 16  ;;  %v12203_v50 = vpack.c.bf16 %v7537_v12, %v7537_v12  ;;  %v17620_v44 = vpop.f32.mrf.mxu1  ;;  %v13795_v33 = vld [vmem:[#allocation4 + $0xc] sm:$0xff]  }
 0x461   : > { %v7723_v63 = vsel %vm14296_vm7, %v7715_v24, %v7722_v28  ;;  %v8004_v48 = vsel %vm14273_vm3, %v7724_v46, %v8003_v60  ;;  %v12206_v19 = vpack.c.bf16 %v7540_v11, %v7540_v11  ;;  %v12204_v57 = vpack.c.bf16 %v7538_v51, %v7538_v51  ;;  %13318 = vmatprep.mubr.msk.bf16.mxu0 %vm1344_vm9, %v13795_v33  ;;  %v8013_v24 = vld [vmem:[#allocation4 + $0x48] sm:$0xf]  ;;  %v19514_v46 = vld [vmem:[#allocation52_spill] sm:$0xff] }
 0x462   : > { %8002 = vst.msk [vmem:[#allocation4 + $0x34] sm:$0xf] %vm396_vm0, %v7723_v63  ;;  %8005 = vst [vmem:[#allocation4 + $0x38] sm:$0x1] %v8004_v48  ;;  %v7705_v3 = vor.u32 %v7703_v0, %v7702_v58  ;;  %v7707_v22 = vrot.slane %v7702_v58, 4  ;;  %v7745_v54 = vrot.slane %v7743_v39, 7  ;;  %v13302_v5 = vpop.f32.mrf.mxu1  ;;  %13353 = vmatmul.mubr.msk.bf16.vlgmr.msra.gmra.mxu1 %vm1344_vm9, %v13795_v33  ;;  %13319 = vmatmul.mubr.msk.bf16.vlgmr.msra.gmra.mxu0 %vm1344_vm9, %v17626_v49 }
 0x463   : > { %v7726_v62 = vshrl.u32 %v12203_v50, 16  ;;  %v7729_v36 = vshll.u32 %v12203_v50, 16  ;;  %v7751_v55 = vshrl.u32 %v12206_v19, 16  ;;  %v7754_v60 = vshll.u32 %v12206_v19, 16  ;;  %13356 = vmatprep.mubr.msk.bf16.mxu1 %vm1344_vm9, %v17626_v49  ;;  %13385 = vmatpush3.bf16.msra.mxu0 %v19514_v46  ;;  %v8006_v33 = vld [vmem:[#allocation4 + $0x3c] sm:$0xf] }
 0x464   : > { %v7734_v27 = vshrl.u32 %v12204_v57, 16  ;;  %v7706_v0 = vsel %vm14296_vm7, %v7698_v23, %v7705_v3  ;;  %v7997_v21 = vsel %vm14273_vm3, %v7707_v22, %v7996_v40  ;;  %v7748_v12 = vor.u32 %v7746_v15, %v7745_v54  ;;  %v7395_v11 = vpop.f32.mrf.mxu1  ;;  %13419 = vmatpush3.bf16.msra.mxu1 %v17363_v17  ;;  %13452 = vmatprep.subr.bf16.mxu0 %v13813_v34  ;;  %v8017_v63 = vld [vmem:[#allocation4 + $0x50] sm:$0x1] }
 0x465   : > { %v7749_v28 = vrot.slane %v7745_v54, 4  ;;  %7995 = vst.msk [vmem:[#allocation4 + $0x28] sm:$0xf] %vm396_vm0, %v7706_v0  ;;  %7998 = vst [vmem:[#allocation4 + $0x2c] sm:$0x1] %v7997_v21  ;;  %v7728_v51 = vrot.slane %v7726_v62, 7  ;;  %v7511_v15 = vadd.f32 %v17490_v43, %v7472_v10  ;;  %v7470_v48 = vadd.f32 %v17614_v38, %v17501_v52 }
 0x466   : > { %v7753_v58 = vrot.slane %v7751_v55, 7  ;;  %v7736_v39 = vrot.slane %v7734_v27, 7  ;;  %v7737_v50 = vshll.u32 %v12204_v57, 16  ;;  %v8014_v23 = vsel %vm14308_vm8, %v7748_v12, %v8013_v24  ;;  %v13303_v40 = vpop.f32.mrf.mxu1  ;;  %v8010_v57 = vld [vmem:[#allocation4 + $0x44] sm:$0x1] }
 0x467   : > { %v7473_v17 = vadd.f32 %v13299_v61, %v17505_v7  ;;  %8015 = vst [vmem:[#allocation4 + $0x48] sm:$0xf] %v8014_v23  ;;  %v7731_v19 = vor.u32 %v7729_v36, %v7728_v51  ;;  %v7732_v3 = vrot.slane %v7728_v51, 4  ;;  %v7543_v55 = vmax.f32 %v7511_v15, 0.0 }
 0x468   : > { %v7756_v22 = vor.u32 %v7754_v60, %v7753_v58  ;;  %v7758_v54 = vrot.slane %v7753_v58, 4  ;;  %v7739_v34 = vor.u32 %v7737_v50, %v7736_v39  ;;  %v7741_v62 = vrot.slane %v7736_v39, 4  ;;  %v17649_v27 = vpop.f32.mrf.mxu1 }
 0x469   : > { %v7509_v24 = vadd.f32 %v17490_v43, %v7470_v48  ;;  %v8007_v10 = vsel %vm14308_vm8, %v7731_v19, %v8006_v33  ;;  %v7512_v38 = vadd.f32 %v17490_v43, %v7473_v17  ;;  %v12209_v60 = vpack.c.bf16 %v7543_v55, %v7543_v55  ;;  %v8027_v19 = vld [vmem:[#allocation4 + $0x60] sm:$0xf] }
 0x46a   : > { %v7757_v52 = vsel %vm14296_vm7, %v7749_v28, %v7756_v22  ;;  %v8018_v7 = vsel %vm14273_vm3, %v7758_v54, %v8017_v63  ;;  %8008 = vst [vmem:[#allocation4 + $0x3c] sm:$0xf] %v8007_v10  ;;  %v7740_v61 = vsel %vm14296_vm7, %v7732_v3, %v7739_v34  ;;  %v8011_v36 = vsel %vm14273_vm3, %v7741_v62, %v8010_v57  ;;  %v17663_v21 = vpop.f32.mrf.mxu1 }
 0x46b   : > { %8016 = vst.msk [vmem:[#allocation4 + $0x4c] sm:$0xf] %vm396_vm0, %v7757_v52  ;;  %8019 = vst [vmem:[#allocation4 + $0x50] sm:$0x1] %v8018_v7  ;;  %v7541_v0 = vmax.f32 %v7509_v24, 0.0  ;;  %v7544_v12 = vmax.f32 %v7512_v38, 0.0  ;;  %v7471_v28 = vadd.f32 %v17620_v44, %v17508_v42  ;;  %v7476_v46 = vadd.f32 %v13302_v5, %v17512_v8 }
 0x46c   : > { %8009 = vst.msk [vmem:[#allocation4 + $0x40] sm:$0xf] %vm396_vm0, %v7740_v61  ;;  %8012 = vst [vmem:[#allocation4 + $0x44] sm:$0x1] %v8011_v36  ;;  %v7474_v51 = vadd.f32 %v7395_v11, %v17516_v25  ;;  %v7777_v58 = vshrl.u32 %v12209_v60, 16  ;;  %v7780_v39 = vshll.u32 %v12209_v60, 16  ;;  %v7477_v23 = vadd.f32 %v13303_v40, %v17520_v56  ;;  %v17673_v63 = vpop.f32.mrf.mxu1 }
 0x46d   : > { %v12207_v50 = vpack.c.bf16 %v7541_v0, %v7541_v0  ;;  %v17671_v33 = vld [vmem:[#allocation4 + $0x24] sm:$0xff]   ;;  %v12210_v15 = vpack.c.bf16 %v7544_v12, %v7544_v12  ;;  %v7510_v48 = vadd.f32 %v17490_v43, %v7471_v28  ;;  %v7515_v17 = vadd.f32 %v17490_v43, %v7476_v46  ;;  %v17678_v44 = vld [vmem:[#allocation4 + $0x30] sm:$0xff]  }
 0x46e   : > { %v7513_v42 = vadd.f32 %v17490_v43, %v7474_v51  ;;  %v7779_v8 = vrot.slane %v7777_v58, 7  ;;  %v7516_v11 = vadd.f32 %v17490_v43, %v7477_v23  ;;  %13322 = vmatprep.mubr.msk.bf16.mxu0 %vm1344_vm9, %v17671_v33  ;;  %13357 = vmatmul.mubr.msk.bf16.gmra.mxu1 %vm1344_vm9, %v17671_v33  ;;  %v17685_v56 = vpop.f32.mrf.mxu1  ;;  %v17687_v40 = vld [vmem:[#allocation11 + $0x38] sm:$0xff]   ;;  %v8020_v24 = vld [vmem:[#allocation4 + $0x54] sm:$0xf]  ;;  %v8031_v28 = vld [vmem:[#allocation4 + $0x68] sm:$0x1] }
 0x46f   : > { %v7760_v25 = vshrl.u32 %v12207_v50, 16  ;;  %v7763_v5 = vshll.u32 %v12207_v50, 16  ;;  %v7785_v3 = vshrl.u32 %v12210_v15, 16  ;;  %v7788_v22 = vshll.u32 %v12210_v15, 16  ;;  %13323 = vmatmul.mubr.msk.bf16.gmra.mxu0 %vm1344_vm9, %v17678_v44  ;;  %13360 = vmatprep.mubr.msk.bf16.mxu1 %vm1344_vm9, %v17678_v44 }
 0x470   : > { %v7542_v54 = vmax.f32 %v7510_v48, 0.0  ;;  %v7547_v57 = vmax.f32 %v7515_v17, 0.0  ;;  %v7782_v34 = vor.u32 %v7780_v39, %v7779_v8  ;;  %v7783_v62 = vrot.slane %v7779_v8, 4  ;;  %v17693_v52 = vpop.f32.mrf.mxu1  ;;  %13486 = vmatprep.subr.bf16.mxu1 %v17687_v40 }
 0x471   : > { %v7762_v55 = vrot.slane %v7760_v25, 7  ;;  %v7545_v10 = vmax.f32 %v7513_v42, 0.0  ;;  %v7787_v7 = vrot.slane %v7785_v3, 7  ;;  %v7548_v36 = vmax.f32 %v7516_v11, 0.0 }
 0x472   : > { %v12208_v38 = vpack.c.bf16 %v7542_v54, %v7542_v54  ;;  %v12213_v61 = vpack.c.bf16 %v7547_v57, %v7547_v57  ;;  %v8028_v60 = vsel %vm14308_vm8, %v7782_v34, %v8027_v19  ;;  %v13310_v51 = vpop.f32.mrf.mxu1  ;;  %v17708_v3 = vld [vmem:[#allocation4 + $0x48] sm:$0xff]  }
 0x473   : > { %v7765_v0 = vor.u32 %v7763_v5, %v7762_v55  ;;  %v7766_v12 = vrot.slane %v7762_v55, 4  ;;  %v12211_v46 = vpack.c.bf16 %v7545_v10, %v7545_v10  ;;  %v17698_v58 = vld [vmem:[#allocation4 + $0x3c] sm:$0xff]   ;;  %8029 = vst [vmem:[#allocation4 + $0x60] sm:$0xf] %v8028_v60  ;;  %v7790_v39 = vor.u32 %v7788_v22, %v7787_v7 }
 0x474   : > { %v7792_v50 = vrot.slane %v7787_v7, 4  ;;  %v7768_v23 = vshrl.u32 %v12208_v38, 16  ;;  %v7771_v15 = vshll.u32 %v12208_v38, 16  ;;  %v7811_v17 = vshrl.u32 %v12213_v61, 16  ;;  %13326 = vmatprep.mubr.msk.bf16.mxu0 %vm1344_vm9, %v17698_v58  ;;  %v8024_v22 = vld [vmem:[#allocation4 + $0x5c] sm:$0x1] }
 0x475   : > { %v8021_v48 = vsel %vm14308_vm8, %v7765_v0, %v8020_v24  ;;  %v7814_v42 = vshll.u32 %v12213_v61, 16  ;;  %v7794_v8 = vshrl.u32 %v12211_v46, 16  ;;  %v7791_v25 = vsel %vm14296_vm7, %v7783_v62, %v7790_v39  ;;  %v7427_v62 = vpop.f32.mrf.mxu1  ;;  %v8041_v7 = vld [vmem:[#allocation4 + $0x78] sm:$0xf]  ;;  %v8034_v38 = vld [vmem:[#allocation4 + $0x6c] sm:$0xf] }
 0x476   : > { %8022 = vst [vmem:[#allocation4 + $0x54] sm:$0xf] %v8021_v48  ;;  %v8032_v5 = vsel %vm14273_vm3, %v7792_v50, %v8031_v28  ;;  %v7770_v11 = vrot.slane %v7768_v23, 7  ;;  %v7797_v19 = vshll.u32 %v12211_v46, 16  ;;  %8030 = vst.msk [vmem:[#allocation4 + $0x64] sm:$0xf] %vm396_vm0, %v7791_v25  ;;  %v12214_v34 = vpack.c.bf16 %v7548_v36, %v7548_v36  ;;  %13361 = vmatmul.mubr.msk.bf16.gmra.mxu1 %vm1344_vm9, %v17698_v58 }
 0x477   : > { %8033 = vst [vmem:[#allocation4 + $0x68] sm:$0x1] %v8032_v5  ;;  %v7813_v54 = vrot.slane %v7811_v17, 7  ;;  %v17711_v57 = vrot.slane %v7794_v8, 7  ;;  %v7475_v55 = vadd.f32 %v17649_v27, %v17525_v4  ;;  %v7480_v61 = vadd.f32 %v17663_v21, %v17529_v32  ;;  %13327 = vmatmul.mubr.msk.bf16.gmra.mxu0 %vm1344_vm9, %v17708_v3  ;;  %13364 = vmatprep.mubr.msk.bf16.mxu1 %vm1344_vm9, %v17708_v3  ;;  %v17738_v23 = vpop.f32.mrf.mxu1 }
 0x478   : > { %v7773_v24 = vor.u32 %v7771_v15, %v7770_v11  ;;  %v7775_v10 = vrot.slane %v7770_v11, 4  ;;  %v7478_v60 = vadd.f32 %v17673_v63, %v17534_v47  ;;  %v7819_v21 = vshrl.u32 %v12214_v34, 16 }
 0x479   : > { %v7816_v4 = vor.u32 %v7814_v42, %v7813_v54  ;;  %v7817_v27 = vrot.slane %v7813_v54, 4  ;;  %v7799_v36 = vor.u32 %v7797_v19, %v17711_v57  ;;  %v7800_v0 = vrot.slane %v17711_v57, 4  ;;  %v8045_v42 = vld [vmem:[#allocation4 + $0x80] sm:$0x1] }
 0x47a   : > { %v7774_v28 = vsel %vm14296_vm7, %v7766_v12, %v7773_v24  ;;  %v8025_v32 = vsel %vm14273_vm3, %v7775_v10, %v8024_v22  ;;  %v7822_v47 = vshll.u32 %v12214_v34, 16  ;;  %v7514_v39 = vadd.f32 %v17490_v43, %v7475_v55 }
 0x47b   : > { %8023 = vst.msk [vmem:[#allocation4 + $0x58] sm:$0xf] %vm396_vm0, %v7774_v28  ;;  %8026 = vst [vmem:[#allocation4 + $0x5c] sm:$0x1] %v8025_v32  ;;  %v8042_v63 = vsel %vm14308_vm8, %v7816_v4, %v8041_v7  ;;  %v8035_v46 = vsel %vm14308_vm8, %v7799_v36, %v8034_v38  ;;  %v7519_v50 = vadd.f32 %v17490_v43, %v7480_v61  ;;  %v7821_v12 = vrot.slane %v7819_v21, 7 }
 0x47c   : > { %8043 = vst [vmem:[#allocation4 + $0x78] sm:$0xf] %v8042_v63  ;;  %8036 = vst [vmem:[#allocation4 + $0x6c] sm:$0xf] %v8035_v46  ;;  %v7517_v15 = vadd.f32 %v17490_v43, %v7478_v60  ;;  %v7481_v48 = vadd.f32 %v17685_v56, %v17538_v31  ;;  %v7479_v17 = vadd.f32 %v17693_v52, %v17541_v53  ;;  %v7546_v8 = vmax.f32 %v7514_v39, 0.0  ;;  %v7430_v56 = vpop.f32.mrf.mxu1 }
 0x47d   : > { %v7551_v25 = vmax.f32 %v7519_v50, 0.0  ;;  %v7484_v5 = vadd.f32 %v13310_v51, %v17546_v45  ;;  %v7482_v11 = vadd.f32 %v7427_v62, %v17552_v1  ;;  %v7824_v19 = vor.u32 %v7822_v47, %v7821_v12  ;;  %v8038_v61 = vld [vmem:[#allocation4 + $0x74] sm:$0x1]  ;;  %v8055_v60 = vld [vmem:[#allocation4 + $0x90] sm:$0xf]  ;;  %v17758_v50 = vld [vmem:[#allocation4 + $0x60] sm:$0xff]  }
 0x47e   : > { %v7826_v22 = vrot.slane %v7821_v12, 4  ;;  %v7549_v54 = vmax.f32 %v7517_v15, 0.0  ;;  %v7520_v34 = vadd.f32 %v17490_v43, %v7481_v48  ;;  %v12212_v55 = vpack.c.bf16 %v7546_v8, %v7546_v8  ;;  %v13314_v39 = vpop.f32.mrf.mxu1 }
 0x47f   : > { %v12217_v24 = vpack.c.bf16 %v7551_v25, %v7551_v25  ;;  %v7518_v10 = vadd.f32 %v17490_v43, %v7479_v17  ;;  %v7523_v31 = vadd.f32 %v17490_v43, %v7484_v5  ;;  %v7825_v53 = vsel %vm14296_vm7, %v7817_v27, %v7824_v19  ;;  %v8048_v19 = vld [vmem:[#allocation4 + $0x84] sm:$0xf] }
 0x480   : > { %v8046_v45 = vsel %vm14273_vm3, %v7826_v22, %v8045_v42  ;;  %v12215_v52 = vpack.c.bf16 %v7549_v54, %v7549_v54  ;;  %v7552_v1 = vmax.f32 %v7520_v34, 0.0  ;;  %8044 = vst.msk [vmem:[#allocation4 + $0x7c] sm:$0xf] %vm396_vm0, %v7825_v53  ;;  %v7802_v51 = vshrl.u32 %v12212_v55, 16 }
 0x481   : > { %8047 = vst [vmem:[#allocation4 + $0x80] sm:$0x1] %v8046_v45  ;;  %v7805_v62 = vshll.u32 %v12212_v55, 16  ;;  %v7845_v7 = vshrl.u32 %v12217_v24, 16  ;;  %v7848_v38 = vshll.u32 %v12217_v24, 16  ;;  %v7550_v32 = vmax.f32 %v7518_v10, 0.0  ;;  %v7443_v45 = vpop.f32.mrf.mxu1 }
 0x482   : > { %v7828_v4 = vshrl.u32 %v12215_v52, 16  ;;  %v7831_v36 = vshll.u32 %v12215_v52, 16  ;;  %v12218_v28 = vpack.c.bf16 %v7552_v1, %v7552_v1  ;;  %v17755_v21 = vld [vmem:[#allocation4 + $0x54] sm:$0xff]   ;;  %v7804_v27 = vrot.slane %v7802_v51, 7 }
 0x483   : > { %v7847_v47 = vrot.slane %v7845_v7, 7  ;;  %v7555_v63 = vmax.f32 %v7523_v31, 0.0  ;;  %v7521_v46 = vadd.f32 %v17490_v43, %v7482_v11  ;;  %v12216_v17 = vpack.c.bf16 %v7550_v32, %v7550_v32  ;;  %13330 = vmatprep.mubr.msk.bf16.mxu0 %vm1344_vm9, %v17755_v21  ;;  %13365 = vmatmul.mubr.msk.bf16.gmra.mxu1 %vm1344_vm9, %v17755_v21  ;;  %v8059_v31 = vld [vmem:[#allocation4 + $0x98] sm:$0x1] }
 0x484   : > { %v7830_v12 = vrot.slane %v7828_v4, 7  ;;  %v7853_v15 = vshrl.u32 %v12218_v28, 16  ;;  %v7856_v48 = vshll.u32 %v12218_v28, 16  ;;  %v7807_v42 = vor.u32 %v7805_v62, %v7804_v27  ;;  %13331 = vmatmul.mubr.msk.bf16.gmra.mxu0 %vm1344_vm9, %v17758_v50  ;;  %13368 = vmatprep.mubr.msk.bf16.mxu1 %vm1344_vm9, %v17758_v50 }
 0x485   : > { %v7809_v8 = vrot.slane %v7804_v27, 4  ;;  %v7850_v25 = vor.u32 %v7848_v38, %v7847_v47  ;;  %v7851_v5 = vrot.slane %v7847_v47, 4  ;;  %v7836_v34 = vshrl.u32 %v12216_v17, 16 }
 0x486   : > { %v7833_v11 = vor.u32 %v7831_v36, %v7830_v12  ;;  %v7834_v22 = vrot.slane %v7830_v12, 4  ;;  %v7855_v54 = vrot.slane %v7853_v15, 7  ;;  %v7808_v55 = vsel %vm14296_vm7, %v7800_v0, %v7807_v42  ;;  %v8052_v0 = vld [vmem:[#allocation4 + $0x8c] sm:$0x1]  ;;  %v8069_v42 = vld [vmem:[#allocation4 + $0xa8] sm:$0xf] }
 0x487   : > { %v8039_v24 = vsel %vm14273_vm3, %v7809_v8, %v8038_v61  ;;  %v8056_v10 = vsel %vm14308_vm8, %v7850_v25, %v8055_v60  ;;  %v7839_v53 = vshll.u32 %v12216_v17, 16  ;;  %8037 = vst.msk [vmem:[#allocation4 + $0x70] sm:$0xf] %vm396_vm0, %v7808_v55  ;;  %v7838_v51 = vrot.slane %v7836_v34, 7  ;;  %v8062_v8 = vld [vmem:[#allocation4 + $0x9c] sm:$0xf] }
 0x488   : > { %8040 = vst [vmem:[#allocation4 + $0x74] sm:$0x1] %v8039_v24  ;;  %8057 = vst [vmem:[#allocation4 + $0x90] sm:$0xf] %v8056_v10  ;;  %v8049_v52 = vsel %vm14308_vm8, %v7833_v11, %v8048_v19  ;;  %v7858_v57 = vor.u32 %v7856_v48, %v7855_v54  ;;  %v7860_v1 = vrot.slane %v7855_v54, 4  ;;  %v12221_v62 = vpack.c.bf16 %v7555_v63, %v7555_v63 }
 0x489   : > { %8050 = vst [vmem:[#allocation4 + $0x84] sm:$0xf] %v8049_v52  ;;  %v7553_v7 = vmax.f32 %v7521_v46, 0.0  ;;  %v7485_v38 = vadd.f32 %v17738_v23, %v17561_v59  ;;  %v7483_v61 = vadd.f32 %v7430_v56, %v17564_v2  ;;  %v7841_v36 = vor.u32 %v7839_v53, %v7838_v51  ;;  %v13315_v46 = vpop.f32.mrf.mxu1  ;;  %v17802_v53 = vld [vmem:[#allocation4 + $0x78] sm:$0xff]  }
 0x48a   : > { %v7859_v60 = vsel %vm14296_vm7, %v7851_v5, %v7858_v57  ;;  %v8060_v4 = vsel %vm14273_vm3, %v7860_v1, %v8059_v31  ;;  %v7843_v28 = vrot.slane %v7838_v51, 4  ;;  %v7879_v32 = vshrl.u32 %v12221_v62, 16 }
 0x48b   : > { %8058 = vst.msk [vmem:[#allocation4 + $0x94] sm:$0xf] %vm396_vm0, %v7859_v60  ;;  %8061 = vst [vmem:[#allocation4 + $0x98] sm:$0x1] %v8060_v4  ;;  %v7882_v27 = vshll.u32 %v12221_v62, 16  ;;  %v12219_v47 = vpack.c.bf16 %v7553_v7, %v7553_v7  ;;  %v7524_v63 = vadd.f32 %v17490_v43, %v7485_v38  ;;  %v7842_v59 = vsel %vm14296_vm7, %v7834_v22, %v7841_v36  ;;  %v7446_v57 = vpop.f32.mrf.mxu1 }
 0x48c   : > { %v8053_v2 = vsel %vm14273_vm3, %v7843_v28, %v8052_v0  ;;  %v7522_v23 = vadd.f32 %v17490_v43, %v7483_v61  ;;  %v7488_v56 = vadd.f32 %v13314_v39, %v17567_v16  ;;  %8051 = vst.msk [vmem:[#allocation4 + $0x88] sm:$0xf] %vm396_vm0, %v7842_v59  ;;  %v7881_v12 = vrot.slane %v7879_v32, 7  ;;  %v8073_v61 = vld [vmem:[#allocation4 + $0xb0] sm:$0x1] }
 0x48d   : > { %8054 = vst [vmem:[#allocation4 + $0x8c] sm:$0x1] %v8053_v2  ;;  %v7862_v15 = vshrl.u32 %v12219_v47, 16  ;;  %v7865_v48 = vshll.u32 %v12219_v47, 16  ;;  %v7556_v17 = vmax.f32 %v7524_v63, 0.0  ;;  %v7486_v19 = vadd.f32 %v7443_v45, %v17571_v13 }
 0x48e   : > { %v7554_v25 = vmax.f32 %v7522_v23, 0.0  ;;  %v7527_v5 = vadd.f32 %v17490_v43, %v7488_v56  ;;  %v7489_v11 = vadd.f32 %v13315_v46, %v17576_v9  ;;  %v7884_v22 = vor.u32 %v7882_v27, %v7881_v12  ;;  %v17798_v39 = vld [vmem:[#allocation4 + $0x6c] sm:$0xff]   ;;  %v8066_v59 = vld [vmem:[#allocation4 + $0xa4] sm:$0x1] }
 0x48f   : > { %v7885_v54 = vrot.slane %v7881_v12, 4  ;;  %v7864_v34 = vrot.slane %v7862_v15, 7  ;;  %v12222_v16 = vpack.c.bf16 %v7556_v17, %v7556_v17  ;;  %v7525_v10 = vadd.f32 %v17490_v43, %v7486_v19  ;;  %13334 = vmatprep.mubr.msk.bf16.mxu0 %vm1344_vm9, %v17798_v39  ;;  %13369 = vmatmul.mubr.msk.bf16.gmra.mxu1 %vm1344_vm9, %v17798_v39  ;;  %v8814_v19 = vld [vmem:[#allocation4 + $0xc] sm:$0xf] }
 0x490   : > { %v12220_v55 = vpack.c.bf16 %v7554_v25, %v7554_v25  ;;  %v7559_v24 = vmax.f32 %v7527_v5, 0.0  ;;  %v7528_v31 = vadd.f32 %v17490_v43, %v7489_v11  ;;  %v8070_v52 = vsel %vm14308_vm8, %v7884_v22, %v8069_v42  ;;  %13335 = vmatmul.mubr.msk.bf16.gmra.mxu0 %vm1344_vm9, %v17802_v53  ;;  %13372 = vmatprep.mubr.msk.bf16.mxu1 %vm1344_vm9, %v17802_v53  ;;  %v8815_v11 = vld [vmem:[#allocation4 + $0x10] sm:$0xf] }
 0x491   : > { %v7867_v13 = vor.u32 %v7865_v48, %v7864_v34  ;;  %v7868_v45 = vrot.slane %v7864_v34, 4  ;;  %v7887_v9 = vshrl.u32 %v12222_v16, 16  ;;  %8071 = vst [vmem:[#allocation4 + $0xa8] sm:$0xf] %v8070_v52  ;;  %v7890_v1 = vshll.u32 %v12222_v16, 16 }
 0x492   : > { %v7870_v51 = vshrl.u32 %v12220_v55, 16  ;;  %v7873_v0 = vshll.u32 %v12220_v55, 16  ;;  %v12225_v62 = vpack.c.bf16 %v7559_v24, %v7559_v24  ;;  %v7557_v60 = vmax.f32 %v7525_v10, 0.0  ;;  %v8083_v48 = vld [vmem:[#allocation4 + $0xc0] sm:$0xf]  ;;  %v17835_v34 = vld [vmem:[#allocation4 + $0x90] sm:$0xff]  }
 0x493   : > { %v8063_v7 = vsel %vm14308_vm8, %v7867_v13, %v8062_v8  ;;  %v7889_v38 = vrot.slane %v7887_v9, 7  ;;  %v7560_v4 = vmax.f32 %v7528_v31, 0.0  ;;  %v7487_v27 = vadd.f32 %v7446_v57, %v17578_v26  ;;  %v17817_v47 = vld [vmem:[#allocation4 + $0x84] sm:$0xff]   ;;  %v8076_v13 = vld [vmem:[#allocation4 + $0xb4] sm:$0xf] }
 0x494   : > { %8064 = vst [vmem:[#allocation4 + $0x9c] sm:$0xf] %v8063_v7  ;;  %v7872_v36 = vrot.slane %v7870_v51, 7  ;;  %v7913_v28 = vshrl.u32 %v12225_v62, 16  ;;  %v7916_v32 = vshll.u32 %v12225_v62, 16  ;;  %v12223_v2 = vpack.c.bf16 %v7557_v60, %v7557_v60  ;;  %13338 = vmatprep.mubr.msk.bf16.mxu0 %vm1344_vm9, %v17817_v47 }
 0x495   : > { %v7892_v63 = vor.u32 %v7890_v1, %v7889_v38  ;;  %v7894_v46 = vrot.slane %v7889_v38, 4  ;;  %v12226_v23 = vpack.c.bf16 %v7560_v4, %v7560_v4  ;;  %v7526_v17 = vadd.f32 %v17490_v43, %v7487_v27  ;;  %v8087_v51 = vld [vmem:[#allocation4 + $0xc8] sm:$0x1]  ;;  %v8817_v60 = vld [vmem:[#allocation4 + $0x18] sm:$0xf] }
 0x496   : > { %v7875_v56 = vor.u32 %v7873_v0, %v7872_v36  ;;  %v7877_v12 = vrot.slane %v7872_v36, 4  ;;  %v7915_v15 = vrot.slane %v7913_v28, 7  ;;  %v7896_v8 = vshrl.u32 %v12223_v2, 16  ;;  %v8816_v27 = vld [vmem:[#allocation4 + $0x14] sm:$0x1] }
 0x497   : > { %v7893_v42 = vsel %vm14296_vm7, %v7885_v54, %v7892_v63  ;;  %v8074_v26 = vsel %vm14273_vm3, %v7894_v46, %v8073_v61  ;;  %v8878_v5 = vsel %vm14596_vm12, %v17554_v6, %v17471_v41  ;;  %v17839_v16 = vrot.slane %v8885_v30, 5  ;;  %13373 = vmatmul.mubr.msk.bf16.gmra.mxu1 %vm1344_vm9, %v17817_v47 }
 0x498   : > { %8072 = vst.msk [vmem:[#allocation4 + $0xac] sm:$0xf] %vm396_vm0, %v7893_v42  ;;  %8075 = vst [vmem:[#allocation4 + $0xb0] sm:$0x1] %v8074_v26  ;;  %v7876_v43 = vsel %vm14296_vm7, %v7868_v45, %v7875_v56  ;;  %v8067_v22 = vsel %vm14273_vm3, %v7877_v12, %v8066_v59  ;;  %v7918_v54 = vor.u32 %v7916_v32, %v7915_v15  ;;  %v7898_v55 = vrot.slane %v7896_v8, 7 }
 0x499   : > { %8065 = vst.msk [vmem:[#allocation4 + $0xa0] sm:$0xf] %vm396_vm0, %v7876_v43  ;;  %8068 = vst [vmem:[#allocation4 + $0xa4] sm:$0x1] %v8067_v22  ;;  %v7899_v24 = vshll.u32 %v12223_v2, 16  ;;  %v7921_v10 = vshrl.u32 %v12226_v23, 16  ;;  %13339 = vmatmul.mubr.msk.bf16.gmra.mxu0 %vm1344_vm9, %v17835_v34  ;;  %13376 = vmatprep.mubr.msk.bf16.mxu1 %vm1344_vm9, %v17835_v34  ;;  %v8888_v59 = vsel %vm14596_vm12, %v17556_v37, %v17839_v16 }
 0x49a   : > { %v7558_v31 = vmax.f32 %v7526_v17, 0.0  ;;  %v8084_v52 = vsel %vm14308_vm8, %v7918_v54, %v8083_v48  ;;  %v8890_v35 = vshrl.u32 %v8814_v19, 16  ;;  %v8893_v30 = vshll.u32 %v8814_v19, 16 }
 0x49b   : > { %v8899_v45 = vshll.u32 %v8815_v11, 16  ;;  %8085 = vst [vmem:[#allocation4 + $0xc0] sm:$0xf] %v8084_v52  ;;  %v7901_v9 = vor.u32 %v7899_v24, %v7898_v55  ;;  %v7923_v57 = vrot.slane %v7921_v10, 7  ;;  %v7924_v1 = vshll.u32 %v12226_v23, 16 }
 0x49c   : > { %v12224_v0 = vpack.c.bf16 %v7558_v31, %v7558_v31  ;;  %v7919_v62 = vrot.slane %v7915_v15, 4  ;;  %v8892_v7 = vrot.slane %v8890_v35, 4  ;;  %v8895_v38 = vrot.slane %v8893_v30, 5  ;;  %v8818_v23 = vld [vmem:[#allocation4 + $0x1c] sm:$0xf] }
 0x49d   : > { %v8903_v61 = vshrl.u32 %v8815_v11, 16  ;;  %v8077_v4 = vsel %vm14308_vm8, %v7901_v9, %v8076_v13  ;;  %v7926_v36 = vor.u32 %v7924_v1, %v7923_v57  ;;  %v7928_v28 = vrot.slane %v7923_v57, 4  ;;  %v8080_v15 = vld [vmem:[#allocation4 + $0xbc] sm:$0x1]  ;;  %v10013_v24 = vld [vmem:[#allocation4 + $0x18] sm:$0xe] }
 0x49e   : > { %v7904_v32 = vshrl.u32 %v12224_v0, 16  ;;  %v7902_v63 = vrot.slane %v7898_v55, 4  ;;  %8078 = vst [vmem:[#allocation4 + $0xb4] sm:$0xf] %v8077_v4  ;;  %v7907_v46 = vshll.u32 %v12224_v0, 16  ;;  %v17856_v2 = vrot.slane %v8899_v45, 5 }
 0x49f   : > { %v7927_v56 = vsel %vm14296_vm7, %v7919_v62, %v7926_v36  ;;  %v8088_v29 = vsel %vm14273_vm3, %v7928_v28, %v8087_v51  ;;  %v8914_v48 = vshrl.u32 %v8817_v60, 16  ;;  %v8896_v42 = vor.u32 %v8895_v38, %v8892_v7  ;;  %v17865_v43 = vld [vmem:[#allocation4 + $0xa8] sm:$0xff]   ;;  %v8819_v52 = vld [vmem:[#allocation4 + $0x20] sm:$0x1]  ;;  %v8820_v35 = vld [vmem:[#allocation4 + $0x24] sm:$0xf] }
 0x4a0   : > { %v7906_v12 = vrot.slane %v7904_v32, 7  ;;  %8086 = vst.msk [vmem:[#allocation4 + $0xc4] sm:$0xf] %vm396_vm0, %v7927_v56  ;;  %8089 = vst [vmem:[#allocation4 + $0xc8] sm:$0x1] %v8088_v29  ;;  %v17863_v17 = vld [vmem:[#allocation4 + $0x9c] sm:$0xff]   ;;  %v11982_v14 = vcombine.low %v8878_v5, %v8888_v59 }
 0x4a1   : > { %v8905_v26 = vrot.slane %v8903_v61, 4  ;;  %v8909_v37 = vshll.u32 %v8816_v27, 16  ;;  %v8917_v8 = vshll.u32 %v8817_v60, 16  ;;  %v8916_v22 = vrot.slane %v8914_v48, 4  ;;  %13342 = vmatprep.mubr.msk.bf16.mxu0 %vm1344_vm9, %v17863_v17  ;;  %13377 = vmatmul.mubr.msk.bf16.gmra.mxu1 %vm1344_vm9, %v17863_v17  ;;  %v8821_v9 = vld [vmem:[#allocation4 + $0x28] sm:$0xf] }
 0x4a2   : > { %v7909_v19 = vor.u32 %v7907_v46, %v7906_v12  ;;  %v7911_v11 = vrot.slane %v7906_v12, 4  ;;  %v8923_v54 = vshll.u32 %v8818_v23, 16  ;;  %v8927_v55 = vshrl.u32 %v8818_v23, 16  ;;  %13343 = vmatmul.mubr.msk.bf16.gmra.mxu0 %vm1344_vm9, %v17865_v43  ;;  %13380 = vmatprep.mubr.msk.bf16.mxu1 %vm1344_vm9, %v17865_v43  ;;  %v8823_v60 = vld [vmem:[#allocation4 + $0x30] sm:$0xf] }
 0x4a3   : > { %v8919_v16 = vrot.slane %v8917_v8, 5  ;;  %v8906_v30 = vor.u32 %v8905_v26, %v17856_v2  ;;  %v17888_v57 = vrot.slane %v8896_v42, 4  ;;  %v17890_v1 = vrot.slane %v8909_v37, 5  ;;  %v8822_v32 = vld [vmem:[#allocation4 + $0x2c] sm:$0x1] }
 0x4a4   : > { %v7910_v10 = vsel %vm14296_vm7, %v7902_v63, %v7909_v19  ;;  %v8081_v31 = vsel %vm14273_vm3, %v7911_v11, %v8080_v15  ;;  %v17879_v13 = vrot.slane %v8923_v54, 5  ;;  %v8929_v45 = vrot.slane %v8927_v55, 4  ;;  %v17899_v12 = vld [vmem:[#allocation4 + $0x34] sm:$0xf]  ;;  %v8826_v37 = vld [vmem:[#allocation4 + $0x3c] sm:$0xf] }
 0x4a5   : > { %8079 = vst.msk [vmem:[#allocation4 + $0xb8] sm:$0xf] %vm396_vm0, %v7910_v10  ;;  %8082 = vst [vmem:[#allocation4 + $0xbc] sm:$0x1] %v8081_v31  ;;  %v8920_v51 = vor.u32 %v8919_v16, %v8916_v22  ;;  %v10093_v0 = vrot.slane %v8818_v23, 5  ;;  %v12053_v62 = vrot.slane %v10013_v24, 9  ;;  %v8902_v15 = vsel %vm14596_vm12, %v17888_v57, %v17856_v2 }
 0x4a6   : > { %v10096_v7 = vrot.slane %v8819_v52, 5  ;;  %v8938_v38 = vshrl.u32 %v8820_v35, 16  ;;  %v8941_v61 = vshll.u32 %v8820_v35, 16  ;;  %v8930_v4 = vor.u32 %v8929_v45, %v17879_v13  ;;  %19517 = vst [vmem:[#allocation29_spill] sm:$0xff] %v17899_v12  ;;  %v17921_v45 = vld [vmem:[#allocation4 + $0x40] sm:$0xf] }
 0x4a7   : > { %v10095_v36 = vrot.slane %v10093_v0, 4  ;;  %v8947_v41 = vshll.u32 %v8821_v9, 16  ;;  %v8951_v6 = vshrl.u32 %v8821_v9, 16  ;;  %v8907_v5 = vrot.slane %v8906_v30, 4  ;;  %v17910_v16 = vld [vmem:[#allocation4 + $0xc0] sm:$0xff]   ;;  %19519 = vst [vmem:[#allocation34_spill] sm:$0xff] %v17921_v45 }
 0x4a8   : > { %v8933_v28 = vshll.u32 %v8819_v52, 16  ;;  %v8940_v27 = vrot.slane %v8938_v38, 4  ;;  %v8943_v63 = vrot.slane %v8941_v61, 5  ;;  %v10094_v59 = vsel %vm15001_vm15, %v12053_v62, %v10093_v0  ;;  %v17929_v57 = vld [vmem:[#allocation4 + $0x38] sm:$0x1] }
 0x4a9   : > { %v10097_v23 = vsel %vm15001_vm15, %v10095_v36, %v10096_v7  ;;  %v17897_v56 = vrot.slane %v8947_v41, 5  ;;  %v8953_v29 = vrot.slane %v8951_v6, 4  ;;  %v8921_v48 = vrot.slane %v8920_v51, 4  ;;  %19520 = vst [vmem:[#allocation33_spill] sm:$0xff] %v17929_v57 }
 0x4aa   : > { %v17905_v42 = vcombine.low %v10094_v59, %v10097_v23  ;;  %v8962_v26 = vshrl.u32 %v8823_v60, 16  ;;  %v8931_v19 = vrot.slane %v8930_v4, 4  ;;  %v8957_v22 = vshll.u32 %v8822_v32, 16  ;;  %v17945_v32 = vld [vmem:[#allocation4 + $0x4c] sm:$0xf] }
 0x4ab   : > { %v8954_v11 = vor.u32 %v8953_v29, %v17897_v56  ;;  %v8965_v54 = vshll.u32 %v8823_v60, 16  ;;  %v8944_v55 = vor.u32 %v8943_v63, %v8940_v27  ;;  %v8971_v10 = vshll.u32 %v17899_v12, 16 }
 0x4ac   : > { %19518 = vst [vmem:[#allocation32_spill] sm:$0xff] %v17905_v42  ;;  %v17907_v8 = vld [vmem:[#allocation4 + $0xb4] sm:$0xff]   ;;  %v8964_v24 = vrot.slane %v8962_v26, 4  ;;  %v8975_v2 = vshrl.u32 %v17899_v12, 16  ;;  %v8912_v31 = vsel %vm14596_vm12, %v8907_v5, %v17890_v1  ;;  %v8935_v52 = vrot.slane %v8933_v28, 5 }
 0x4ad   : > { %13346 = vmatprep.mubr.msk.bf16.mxu0 %vm1344_vm9, %v17907_v8  ;;  %13381 = vmatmul.mubr.msk.bf16.gmra.mxu1 %vm1344_vm9, %v17907_v8  ;;  %v8955_v35 = vrot.slane %v8954_v11, 4  ;;  %v8967_v30 = vrot.slane %v8965_v54, 5  ;;  %v8926_v9 = vsel %vm14596_vm12, %v8921_v48, %v17879_v13  ;;  %v17931_v51 = vrot.slane %v8971_v10, 5  ;;  %v17938_v13 = vld [vmem:[#allocation4 + $0x44] sm:$0x1] }
 0x4ae   : > { %13347 = vmatmul.mubr.msk.bf16.gmra.mxu0 %vm1344_vm9, %v17910_v16  ;;  %13420 = vmatprep.mubr.msk.bf16.mxu1 %vm1344_vm9, %v11982_v14  ;;  %v8977_v0 = vrot.slane %v8975_v2, 4  ;;  %v8986_v1 = vshrl.u32 %v8826_v37, 16  ;;  %v8936_v62 = vsel %vm14596_vm12, %v8931_v19, %v8935_v52  ;;  %v8959_v7 = vrot.slane %v8957_v22, 5  ;;  %v8829_v14 = vld [vmem:[#allocation4 + $0x48] sm:$0xf]  ;;  %19521 = vst [vmem:[#allocation51_spill] sm:$0xff] %v17938_v13 }
 0x4af   : > { %13386 = vmatprep.mubr.msk.bf16.mxu0 %vm1344_vm9, %v17626_v49  ;;  %v8968_v38 = vor.u32 %v8967_v30, %v8964_v24  ;;  %v8989_v61 = vshll.u32 %v8826_v37, 16  ;;  %v8945_v60 = vrot.slane %v8944_v55, 4  ;;  %v8995_v41 = vshll.u32 %v17921_v45, 16  ;;  %v8832_v55 = vld [vmem:[#allocation4 + $0x54] sm:$0xf]  ;;  %v17958_v24 = vld [vmem:[#allocation11 + $0x10] sm:$0xff]  }
 0x4b0   : > { %v8978_v4 = vor.u32 %v8977_v0, %v17931_v51  ;;  %v8988_v36 = vrot.slane %v8986_v1, 4  ;;  %v8960_v6 = vsel %vm14596_vm12, %v8955_v35, %v8959_v7  ;;  %v8981_v49 = vshll.u32 %v17929_v57, 16  ;;  %v17966_v52 = vld [vmem:[#allocation4 + $0x58] sm:$0xf]  ;;  %v17977_v30 = vld [vmem:[#allocation4 + $0x50] sm:$0x1] }
 0x4b1   : > { %v8991_v5 = vrot.slane %v8989_v61, 5  ;;  %v8999_v28 = vshrl.u32 %v17921_v45, 16  ;;  %v8969_v27 = vrot.slane %v8968_v38, 4  ;;  %v17947_v63 = vrot.slane %v8995_v41, 5  ;;  %v18098_v57 = vld [vmem:[#allocation4 + $0xa0] sm:$0xf] }
 0x4b2   : > { %v9010_v59 = vshrl.u32 %v8829_v14, 16  ;;  %v9013_v23 = vshll.u32 %v8829_v14, 16  ;;  %v17949_v29 = vcombine.low %v8902_v15, %v8912_v31  ;;  %v17951_v48 = vcombine.low %v8926_v9, %v8936_v62  ;;  %v13841_v62 = vld [vmem:[#allocation11 + $0x20] sm:$0xff]  }
 0x4b3   : > { %v8979_v26 = vrot.slane %v8978_v4, 4  ;;  %v9001_v37 = vrot.slane %v8999_v28, 4  ;;  %v8950_v19 = vsel %vm14596_vm12, %v8945_v60, %v17897_v56  ;;  %v8992_v11 = vor.u32 %v8991_v5, %v8988_v36  ;;  %v17968_v56 = vld [vmem:[#allocation11 + $0x28] sm:$0xff]   ;;  %v8835_v36 = vld [vmem:[#allocation4 + $0x60] sm:$0xf] }
 0x4b4   : > { %v9005_v22 = vshll.u32 %v17938_v13, 16  ;;  %v9019_v54 = vshll.u32 %v17945_v32, 16  ;;  %v17962_v15 = vcombine.low %v8950_v19, %v8960_v6  ;;  %v8983_v10 = vrot.slane %v8981_v49, 5  ;;  %v17991_v5 = vld [vmem:[#allocation4 + $0x64] sm:$0xf] }
 0x4b5   : > { %13421 = vmatmul.mubr.msk.bf16.vlgmr.msra.gmra.mxu1 %vm1344_vm9, %v17949_v29  ;;  %v9002_v2 = vor.u32 %v9001_v37, %v17947_v63  ;;  %v9023_v31 = vshrl.u32 %v17945_v32, 16  ;;  %v8974_v35 = vsel %vm14596_vm12, %v8969_v27, %v17931_v51  ;;  %v9012_v9 = vrot.slane %v9010_v59, 4  ;;  %v18000_v37 = vld [vmem:[#allocation4 + $0x5c] sm:$0x1] }
 0x4b6   : > { %13387 = vmatmul.mubr.msk.bf16.vlgmr.msra.gmra.mxu0 %vm1344_vm9, %v17671_v33  ;;  %13424 = vmatprep.mubr.msk.bf16.mxu1 %vm1344_vm9, %v17951_v48  ;;  %v9015_v0 = vrot.slane %v9013_v23, 5  ;;  %v17979_v1 = vrot.slane %v9019_v54, 5  ;;  %v8984_v33 = vsel %vm14596_vm12, %v8979_v26, %v8983_v10  ;;  %v9034_v61 = vshrl.u32 %v8832_v55, 16 }
 0x4b7   : > { %13453 = vmatpush3.bf16.msra.mxu0 %v13841_v62  ;;  %13390 = vmatprep.mubr.msk.bf16.mxu0 %vm1344_vm9, %v17678_v44  ;;  %v9003_v7 = vrot.slane %v9002_v2, 4  ;;  %v9025_v38 = vrot.slane %v9023_v31, 4  ;;  %v8993_v14 = vrot.slane %v8992_v11, 4  ;;  %v9007_v60 = vrot.slane %v9005_v22, 5  ;;  %v8838_v62 = vld [vmem:[#allocation4 + $0x6c] sm:$0xf] }
 0x4b8   : > { %v9037_v51 = vshll.u32 %v8832_v55, 16  ;;  %v9043_v4 = vshll.u32 %v17966_v52, 16  ;;  %13487 = vmatpush3.bf16.msra.mxu1 %v17687_v40  ;;  %13520 = vmatprep.subr.bf16.mxu0 %v17958_v24  ;;  %v9029_v44 = vshll.u32 %v17977_v30, 16  ;;  %v9036_v6 = vrot.slane %v9034_v61, 4 }
 0x4b9   : > { %v9026_v41 = vor.u32 %v9025_v38, %v17979_v1  ;;  %v9047_v49 = vshrl.u32 %v17966_v52, 16  ;;  %13554 = vmatprep.subr.bf16.mxu1 %v17968_v56  ;;  %v17994_v28 = vcombine.low %v8974_v35, %v8984_v33  ;;  %v9016_v27 = vor.u32 %v9015_v0, %v9012_v9  ;;  %v18010_v9 = vld [vmem:[#allocation4 + $0x68] sm:$0x1] }
 0x4ba   : > { %v9039_v59 = vrot.slane %v9037_v51, 5  ;;  %v17996_v23 = vrot.slane %v9043_v4, 5  ;;  %v9008_v40 = vsel %vm14596_vm12, %v9003_v7, %v9007_v60  ;;  %v9058_v11 = vshrl.u32 %v8835_v36, 16  ;;  %v18017_v60 = vld [vmem:[#allocation4 + $0x70] sm:$0xf] }
 0x4bb   : > { %v9027_v26 = vrot.slane %v9026_v41, 4  ;;  %v9049_v19 = vrot.slane %v9047_v49, 4  ;;  %v9061_v54 = vshll.u32 %v8835_v36, 16  ;;  %v9067_v55 = vshll.u32 %v17991_v5, 16 }
 0x4bc   : > { %v9040_v22 = vor.u32 %v9039_v59, %v9036_v6  ;;  %v9071_v10 = vshrl.u32 %v17991_v5, 16  ;;  %v8998_v2 = vsel %vm14596_vm12, %v8993_v14, %v17947_v63  ;;  %v9031_v31 = vrot.slane %v9029_v44, 5  ;;  %v8841_v59 = vld [vmem:[#allocation4 + $0x78] sm:$0xf] }
 0x4bd   : > { %13425 = vmatmul.mubr.msk.bf16.gmra.mxu1 %vm1344_vm9, %v17962_v15  ;;  %v9050_v35 = vor.u32 %v9049_v19, %v17996_v23  ;;  %v9060_v0 = vrot.slane %v9058_v11, 4  ;;  %v9017_v33 = vrot.slane %v9016_v27, 4  ;;  %v9053_v7 = vshll.u32 %v18000_v37, 16 }
 0x4be   : > { %13391 = vmatmul.mubr.msk.bf16.gmra.mxu0 %vm1344_vm9, %v17698_v58  ;;  %13428 = vmatprep.mubr.msk.bf16.mxu1 %vm1344_vm9, %v17994_v28  ;;  %v9063_v38 = vrot.slane %v9061_v54, 5  ;;  %v9069_v61 = vrot.slane %v9067_v55, 5  ;;  %v18021_v63 = vcombine.low %v8998_v2, %v9008_v40  ;;  %v9032_v14 = vsel %vm14596_vm12, %v9027_v26, %v9031_v31  ;;  %v18030_v26 = vld [vmem:[#allocation4 + $0x7c] sm:$0xf]  ;;  %v18034_v55 = vld [vmem:[#allocation4 + $0x74] sm:$0x1] }
 0x4bf   : > { %13394 = vmatprep.mubr.msk.bf16.mxu0 %vm1344_vm9, %v17708_v3  ;;  %v9073_v51 = vrot.slane %v9071_v10, 4  ;;  %v9041_v58 = vrot.slane %v9040_v22, 4  ;;  %v9051_v4 = vrot.slane %v9050_v35, 4  ;;  %v9082_v36 = vshrl.u32 %v8838_v62, 16 }
 0x4c0   : > { %v9085_v41 = vshll.u32 %v8838_v62, 16  ;;  %v9064_v44 = vor.u32 %v9063_v38, %v9060_v0  ;;  %v9077_v49 = vshll.u32 %v18010_v9, 16  ;;  %v9091_v27 = vshll.u32 %v18017_v60, 16 }
 0x4c1   : > { %v9074_v6 = vor.u32 %v9073_v51, %v9069_v61  ;;  %v9022_v3 = vsel %vm14596_vm12, %v9017_v33, %v17979_v1  ;;  %v9055_v40 = vrot.slane %v9053_v7, 5  ;;  %v9084_v19 = vrot.slane %v9082_v36, 4 }
 0x4c2   : > { %v9087_v11 = vrot.slane %v9085_v41, 5  ;;  %v18032_v22 = vcombine.low %v9022_v3, %v9032_v14  ;;  %v18036_v10 = vrot.slane %v9091_v27, 5  ;;  %v9095_v2 = vshrl.u32 %v18017_v60, 16  ;;  %v8844_v14 = vld [vmem:[#allocation4 + $0x84] sm:$0xf] }
 0x4c3   : > { %v9075_v54 = vrot.slane %v9074_v6, 4  ;;  %v9046_v31 = vsel %vm14596_vm12, %v9041_v58, %v17996_v23  ;;  %v9056_v1 = vsel %vm14596_vm12, %v9051_v4, %v9055_v40  ;;  %v9106_v35 = vshrl.u32 %v8841_v59, 16  ;;  %v18062_v27 = vld [vmem:[#allocation4 + $0x80] sm:$0x1] }
 0x4c4   : > { %v9109_v0 = vshll.u32 %v8841_v59, 16  ;;  %v9065_v62 = vrot.slane %v9064_v44, 4  ;;  %v9079_v33 = vrot.slane %v9077_v49, 5  ;;  %v9097_v7 = vrot.slane %v9095_v2, 4 }
 0x4c5   : > { %13429 = vmatmul.mubr.msk.bf16.gmra.mxu1 %vm1344_vm9, %v18021_v63  ;;  %v9115_v38 = vshll.u32 %v18030_v26, 16  ;;  %v9088_v23 = vor.u32 %v9087_v11, %v9084_v19  ;;  %v9101_v51 = vshll.u32 %v18034_v55, 16  ;;  %v9108_v58 = vrot.slane %v9106_v35, 4  ;;  %v18066_v11 = vld [vmem:[#allocation4 + $0x8c] sm:$0x1] }
 0x4c6   : > { %13395 = vmatmul.mubr.msk.bf16.gmra.mxu0 %vm1344_vm9, %v17755_v21  ;;  %13432 = vmatprep.mubr.msk.bf16.mxu1 %vm1344_vm9, %v18032_v22  ;;  %v9111_v4 = vrot.slane %v9109_v0, 5  ;;  %v9080_v36 = vsel %vm14596_vm12, %v9075_v54, %v9079_v33  ;;  %v9098_v41 = vor.u32 %v9097_v7, %v18036_v10  ;;  %v9119_v6 = vshrl.u32 %v18030_v26, 16  ;;  %v18058_v21 = vld [vmem:[#allocation4 + $0x88] sm:$0xf] }
 0x4c7   : > { %13398 = vmatprep.mubr.msk.bf16.mxu0 %vm1344_vm9, %v17758_v50  ;;  %v9117_v44 = vrot.slane %v9115_v38, 5  ;;  %v18060_v49 = vcombine.low %v9046_v31, %v9056_v1  ;;  %v9130_v3 = vshrl.u32 %v8844_v14, 16  ;;  %v9070_v40 = vsel %vm14596_vm12, %v9065_v62, %v9069_v61  ;;  %v8847_v1 = vld [vmem:[#allocation4 + $0x90] sm:$0xf] }
 0x4c8   : > { %v9112_v59 = vor.u32 %v9111_v4, %v9108_v58  ;;  %v9099_v50 = vrot.slane %v9098_v41, 4  ;;  %v9121_v19 = vrot.slane %v9119_v6, 4  ;;  %v9133_v54 = vshll.u32 %v8844_v14, 16  ;;  %v18073_v4 = vld [vmem:[#allocation4 + $0x94] sm:$0xf] }
 0x4c9   : > { %19522 = vst [vmem:[#allocation37_spill] sm:$0xff] %v18060_v49  ;;  %v18068_v2 = vcombine.low %v9070_v40, %v9080_v36  ;;  %v9103_v35 = vrot.slane %v9101_v51, 5  ;;  %v9139_v0 = vshll.u32 %v18058_v21, 16  ;;  %v9143_v31 = vshrl.u32 %v18058_v21, 16 }
 0x4ca   : > { %v9089_v33 = vrot.slane %v9088_v23, 4  ;;  %v9113_v7 = vrot.slane %v9112_v59, 4  ;;  %v9122_v38 = vor.u32 %v9121_v19, %v9117_v44  ;;  %v9125_v58 = vshll.u32 %v18062_v27, 16 }
 0x4cb   : > { %19523 = vst [vmem:[#allocation35_spill] sm:$0xff] %v18068_v2  ;;  %v9132_v61 = vrot.slane %v9130_v3, 4  ;;  %v9135_v62 = vrot.slane %v9133_v54, 5  ;;  %v18075_v41 = vrot.slane %v9139_v0, 5  ;;  %v9145_v14 = vrot.slane %v9143_v31, 4 }
 0x4cc   : > { %v9104_v51 = vsel %vm14596_vm12, %v9099_v50, %v9103_v35  ;;  %v9123_v36 = vrot.slane %v9122_v38, 4  ;;  %v9149_v23 = vshll.u32 %v18066_v11, 16  ;;  %v9154_v6 = vshrl.u32 %v8847_v1, 16  ;;  %v18094_v35 = vld [vmem:[#allocation4 + $0x98] sm:$0x1] }
 0x4cd   : > { %13433 = vmatmul.mubr.msk.bf16.gmra.mxu1 %vm1344_vm9, %v18060_v49  ;;  %v9157_v59 = vshll.u32 %v8847_v1, 16  ;;  %v9163_v3 = vshll.u32 %v18073_v4, 16  ;;  %v9167_v40 = vshrl.u32 %v18073_v4, 16  ;;  %v9094_v50 = vsel %vm14596_vm12, %v9089_v33, %v18036_v10  ;;  %v8850_v0 = vld [vmem:[#allocation4 + $0x9c] sm:$0xf] }
 0x4ce   : > { %13399 = vmatmul.mubr.msk.bf16.gmra.mxu0 %vm1344_vm9, %v17798_v39  ;;  %13436 = vmatprep.mubr.msk.bf16.mxu1 %vm1344_vm9, %v18068_v2  ;;  %v9127_v19 = vrot.slane %v9125_v58, 5  ;;  %v9146_v54 = vor.u32 %v9145_v14, %v18075_v41  ;;  %v9156_v39 = vrot.slane %v9154_v6, 4  ;;  %v18096_v31 = vcombine.low %v9094_v50, %v9104_v51  ;;  %v8853_v51 = vld [vmem:[#allocation4 + $0xa8] sm:$0xf]  ;;  %v691_v2 = vld [vmem:[#allocation4 + $0xcc] sm:$0x1] }
 0x4cf   : > { %13402 = vmatprep.mubr.msk.bf16.mxu0 %vm1344_vm9, %v17802_v53  ;;  %v9136_v1 = vor.u32 %v9135_v62, %v9132_v61  ;;  %v9159_v38 = vrot.slane %v9157_v59, 5  ;;  %v9165_v13 = vrot.slane %v9163_v3, 5  ;;  %v9118_v53 = vsel %vm14596_vm12, %v9113_v7, %v9117_v44 }
 0x4d0   : > { %19524 = vst [vmem:[#allocation42_spill] sm:$0xff] %v18096_v31  ;;  %v9128_v10 = vsel %vm14596_vm12, %v9123_v36, %v9127_v19  ;;  %v9151_v33 = vrot.slane %v9149_v23, 5  ;;  %v9169_v58 = vrot.slane %v9167_v40, 4  ;;  %v9173_v42 = vshll.u32 %v18094_v35, 16  ;;  %v18109_v36 = vld [vmem:[#allocation4 + $0xac] sm:$0xf] }
 0x4d1   : > { %v9160_v14 = vor.u32 %v9159_v38, %v9156_v39  ;;  %v9178_v6 = vshrl.u32 %v8850_v0, 16  ;;  %v9181_v45 = vshll.u32 %v8850_v0, 16  ;;  %v9147_v50 = vrot.slane %v9146_v54, 4  ;;  %v18117_v0 = vld [vmem:[#allocation4 + $0xa4] sm:$0x1] }
 0x4d2   : > { %v9170_v61 = vor.u32 %v9169_v58, %v9165_v13  ;;  %v9187_v62 = vshll.u32 %v18098_v57, 16  ;;  %v9191_v59 = vshrl.u32 %v18098_v57, 16  ;;  %v18107_v3 = vcombine.low %v9118_v53, %v9128_v10  ;;  %v8856_v58 = vld [vmem:[#allocation4 + $0xb4] sm:$0xf] }
 0x4d3   : > { %v9137_v44 = vrot.slane %v9136_v1, 4  ;;  %v9180_v7 = vrot.slane %v9178_v6, 4  ;;  %v9183_v12 = vrot.slane %v9181_v45, 5  ;;  %v9202_v39 = vshrl.u32 %v8853_v51, 16 }
 0x4d4   : > { %19525 = vst [vmem:[#allocation38_spill] sm:$0xff] %v18107_v3  ;;  %v9171_v23 = vrot.slane %v9170_v61, 4  ;;  %v9189_v40 = vrot.slane %v9187_v62, 5  ;;  %v9193_v19 = vrot.slane %v9191_v59, 4  ;;  %v9161_v54 = vrot.slane %v9160_v14, 4 }
 0x4d5   : > { %13437 = vmatmul.mubr.msk.bf16.gmra.mxu1 %vm1344_vm9, %v18096_v31  ;;  %v9205_v1 = vshll.u32 %v8853_v51, 16  ;;  %v9152_v45 = vsel %vm14596_vm12, %v9147_v50, %v9151_v33  ;;  %v9175_v38 = vrot.slane %v9173_v42, 5  ;;  %v9204_v53 = vrot.slane %v9202_v39, 4  ;;  %v18127_v14 = vld [vmem:[#allocation4 + $0xb0] sm:$0x1] }
 0x4d6   : > { %13403 = vmatmul.mubr.msk.bf16.gmra.mxu0 %vm1344_vm9, %v17817_v47  ;;  %13440 = vmatprep.mubr.msk.bf16.mxu1 %vm1344_vm9, %v18107_v3  ;;  %v9211_v10 = vshll.u32 %v18109_v36, 16  ;;  %v9142_v47 = vsel %vm14596_vm12, %v9137_v44, %v18075_v41  ;;  %v9194_v6 = vor.u32 %v9193_v19, %v9189_v40  ;;  %v9215_v51 = vshrl.u32 %v18109_v36, 16  ;;  %v18130_v62 = vld [vmem:[#allocation4 + $0xb8] sm:$0xf] }
 0x4d7   : > { %13406 = vmatprep.mubr.msk.bf16.mxu0 %vm1344_vm9, %v17835_v34  ;;  %v9207_v61 = vrot.slane %v9205_v1, 5  ;;  %v9176_v34 = vsel %vm14596_vm12, %v9171_v23, %v9175_v38  ;;  %v9184_v42 = vor.u32 %v9183_v12, %v9180_v7  ;;  %v9197_v33 = vshll.u32 %v18117_v0, 16 }
 0x4d8   : > { %v9213_v50 = vrot.slane %v9211_v10, 5  ;;  %v18135_v59 = vcombine.low %v9142_v47, %v9152_v45  ;;  %v9166_v41 = vsel %vm14596_vm12, %v9161_v54, %v9165_v13  ;;  %v9217_v44 = vrot.slane %v9215_v51, 4  ;;  %v745_v51 = vld [vmem:[#allocation4 + $0xd4] sm:$0x1] }
 0x4d9   : > { %v9226_v19 = vshrl.u32 %v8856_v58, 16  ;;  %v9208_v39 = vor.u32 %v9207_v61, %v9204_v53  ;;  %v9221_v1 = vshll.u32 %v18127_v14, 16  ;;  %v9229_v3 = vshll.u32 %v8856_v58, 16 }
 0x4da   : > { %v9235_v31 = vshll.u32 %v18130_v62, 16  ;;  %v18141_v49 = vcombine.low %v9166_v41, %v9176_v34  ;;  %v9195_v12 = vrot.slane %v9194_v6, 4  ;;  %v9218_v7 = vor.u32 %v9217_v44, %v9213_v50 }
 0x4db   : > { %v9185_v23 = vrot.slane %v9184_v42, 4  ;;  %v9199_v45 = vrot.slane %v9197_v33, 5  ;;  %v9239_v13 = vshrl.u32 %v18130_v62, 16  ;;  %v9228_v53 = vrot.slane %v9226_v19, 4 }
 0x4dc   : > { %v9237_v38 = vrot.slane %v9235_v31, 5  ;;  %v9219_v54 = vrot.slane %v9218_v7, 4  ;;  %v9231_v10 = vrot.slane %v9229_v3, 5  ;;  %v692_v58 = vsel %vm14273_vm3, 0, %v691_v2  ;;  %v18154_v31 = vld [vmem:[#allocation4 + $0xbc] sm:$0x1] }
 0x4dd   : > { %13441 = vmatmul.mubr.msk.bf16.gmra.mxu1 %vm1344_vm9, %v18135_v59  ;;  %v9209_v47 = vrot.slane %v9208_v39, 4  ;;  %v9223_v6 = vrot.slane %v9221_v1, 5  ;;  %v9241_v61 = vrot.slane %v9239_v13, 4  ;;  %693 = vst [vmem:[#allocation4 + $0xcc] sm:$0x1] %v692_v58  ;;  %v9190_v18 = vsel %vm14596_vm12, %v9185_v23, %v9189_v40  ;;  %v18197_v58 = vld [vmem:[#allocation11 + $0x40] sm:$0xff]  }
 0x4de   : > { %13407 = vmatmul.mubr.msk.bf16.gmra.mxu0 %vm1344_vm9, %v17863_v17  ;;  %13444 = vmatprep.mubr.msk.bf16.mxu1 %vm1344_vm9, %v18141_v49  ;;  %v9200_v17 = vsel %vm14596_vm12, %v9195_v12, %v9199_v45  ;;  %v9232_v2 = vor.u32 %v9231_v10, %v9228_v53  ;;  %v746_v41 = vsel %vm14279_vm5, 0, %v745_v51  ;;  %v10121_v7 = vrot.slane %v17945_v32, 5  ;;  %v10019_v23 = vld [vmem:[#allocation4 + $0x60] sm:$0xe] }
 0x4df   : > { %13410 = vmatprep.mubr.msk.bf16.mxu0 %vm1344_vm9, %v17865_v43  ;;  %v9224_v34 = vsel %vm14596_vm12, %v9219_v54, %v9223_v6  ;;  %v9242_v3 = vor.u32 %v9241_v61, %v9237_v38  ;;  %v9245_v43 = vshll.u32 %v18154_v31, 16  ;;  %v18163_v42 = vcombine.low %v9190_v18, %v9200_v17  ;;  %747 = vst [vmem:[#allocation4 + $0xd4] sm:$0x1] %v746_v41  ;;  %v10020_v54 = vld [vmem:[#allocation4 + $0x6c] sm:$0xe] }
 0x4e0   : > { %v9214_v33 = vsel %vm14596_vm12, %v9209_v47, %v9213_v50  ;;  %v9233_v40 = vrot.slane %v9232_v2, 4  ;;  %v10124_v45 = vrot.slane %v17977_v30, 5  ;;  %v10128_v13 = vrot.slane %v17966_v52, 5  ;;  %v10021_v61 = vld [vmem:[#allocation4 + $0x78] sm:$0xe] }
 0x4e1   : > { %v18169_v44 = vcombine.low %v9214_v33, %v9224_v34  ;;  %v9243_v19 = vrot.slane %v9242_v3, 4  ;;  %v9247_v39 = vrot.slane %v9245_v43, 5  ;;  %v10138_v53 = vrot.slane %v18010_v9, 5  ;;  %v10022_v3 = vld [vmem:[#allocation4 + $0x84] sm:$0xe] }
 0x4e2   : > { %v9238_v50 = vsel %vm14596_vm12, %v9233_v40, %v9237_v38  ;;  %v10152_v10 = vrot.slane %v18062_v27, 5  ;;  %v10123_v47 = vrot.slane %v10121_v7, 4  ;;  %v10130_v30 = vrot.slane %v10128_v13, 4  ;;  %v10023_v41 = vld [vmem:[#allocation4 + $0x90] sm:$0xe] }
 0x4e3   : > { %v9248_v20 = vsel %vm14596_vm12, %v9243_v19, %v9247_v39  ;;  %v10131_v52 = vrot.slane %v18000_v37, 5  ;;  %v10142_v17 = vrot.slane %v18017_v60, 5  ;;  %v12059_v51 = vrot.slane %v10019_v23, 9 }
 0x4e4   : > { %v13814_v1 = vld [vmem:[#allocation4 + $0xcc] sm:$0xff]   ;;  %v18183_v12 = vcombine.low %v9238_v50, %v9248_v20  ;;  %v10125_v9 = vsel %vm15001_vm15, %v10123_v47, %v10124_v45  ;;  %v12060_v34 = vrot.slane %v10020_v54, 9  ;;  %v12061_v18 = vrot.slane %v10021_v61, 9 }
 0x4e5   : > { %13445 = vmatmul.mubr.msk.bf16.gmra.mxu1 %vm1344_vm9, %v18163_v42  ;;  %v10144_v2 = vrot.slane %v10142_v17, 4  ;;  %v10149_v43 = vrot.slane %v18030_v26, 5  ;;  %v10156_v33 = vrot.slane %v18058_v21, 5  ;;  %v12062_v40 = vrot.slane %v10022_v3, 9 }
 0x4e6   : > { %13411 = vmatmul.mubr.msk.bf16.gmra.mxu0 %vm1344_vm9, %v17907_v8  ;;  %13448 = vmatprep.mubr.msk.bf16.mxu1 %vm1344_vm9, %v18169_v44  ;;  %v10017_v8 = vld [vmem:[#allocation4 + $0x48] sm:$0xe]  ;;  %v10143_v19 = vsel %vm15001_vm15, %v12060_v34, %v10142_v17  ;;  %v10163_v39 = vrot.slane %v18073_v4, 5  ;;  %v10159_v26 = vrot.slane %v18066_v11, 5  ;;  %v10170_v11 = vrot.slane %v18098_v57, 5 }
 0x4e7   : > { %13414 = vmatprep.mubr.msk.bf16.mxu0 %vm1344_vm9, %v17910_v16  ;;  %v10018_v16 = vld [vmem:[#allocation4 + $0x54] sm:$0xe]  ;;  %v12057_v38 = vrot.slane %v10017_v8, 9  ;;  %v10151_v50 = vrot.slane %v10149_v43, 4  ;;  %v10150_v8 = vsel %vm15001_vm15, %v12061_v18, %v10149_v43  ;;  %v10157_v23 = vsel %vm15001_vm15, %v12062_v40, %v10156_v33  ;;  %v10027_v17 = vld [vmem:[#allocation4 + $0xc0] sm:$0xe] }
 0x4e8   : > { %v12058_v6 = vrot.slane %v10018_v16, 9  ;;  %v10158_v16 = vrot.slane %v10156_v33, 4  ;;  %v10165_v45 = vrot.slane %v10163_v39, 4  ;;  %v10180_v61 = vrot.slane %v18127_v14, 5  ;;  %v19526_v43 = vld [vmem:[#allocation37_spill] sm:$0xff] }
 0x4e9   : > { %v10122_v32 = vsel %vm15001_vm15, %v12057_v38, %v10121_v7  ;;  %v12063_v7 = vrot.slane %v10023_v41, 9  ;;  %v10153_v4 = vsel %vm15001_vm15, %v10151_v50, %v10152_v10  ;;  %v8860_v38 = vld [vmem:[#allocation4 + $0xc4] sm:$0xf]  ;;  %v19529_v50 = vld [vmem:[#allocation38_spill] sm:$0xff] }
 0x4ea   : > { %v10129_v27 = vsel %vm15001_vm15, %v12058_v6, %v10128_v13  ;;  %v18218_v37 = vcombine.low %v10122_v32, %v10125_v9  ;;  %v18256_v13 = vld [vmem:[#allocation4 + $0xc8] sm:$0x1]  ;;  %v18258_v54 = vcombine.low %v10150_v8, %v10153_v4  ;;  %v10172_v6 = vrot.slane %v10170_v11, 4  ;;  %v18318_v4 = vld [vmem:[#allocation4 + $0xd0] sm:$0xf] }
 0x4eb   : > { %v10164_v10 = vsel %vm15001_vm15, %v12063_v7, %v10163_v39  ;;  %v10173_v32 = vrot.slane %v18117_v0, 5  ;;  %v10492_v0 = vrot.slane %v8860_v38, 5  ;;  %v8862_v7 = vld [vmem:[#allocation4 + $0xcc] sm:$0xf] }
 0x4ed   : > { %13449 = vmatmul.mubr.msk.bf16.gmra.mxu1 %vm1344_vm9, %v18183_v12 }
 0x4ee   : > { %13415 = vmatmul.mubr.msk.bf16.gmra.mxu0 %vm1344_vm9, %v13814_v1  ;;  %13488 = vmatprep.mubr.msk.bf16.mxu1 %vm1344_vm9, %v17951_v48  ;;  %v10024_v1 = vld [vmem:[#allocation4 + $0x9c] sm:$0xe] }
 0x4ef   : > { %13454 = vmatprep.mubr.msk.bf16.mxu0 %vm1344_vm9, %v17949_v29  ;;  %v10166_v29 = vrot.slane %v18094_v35, 5  ;;  %v10135_v35 = vrot.slane %v17991_v5, 5  ;;  %v12064_v47 = vrot.slane %v10024_v1, 9  ;;  %v9561_v1 = vshrl.u32 %v8860_v38, 16 }
 0x4f1   : > { %v10137_v60 = vrot.slane %v10135_v35, 4 }
 0x4f5   : > { %13489 = vmatmul.mubr.msk.bf16.vlgmr.msra.gmra.mxu1 %vm1344_vm9, %v17962_v15 }
 0x4f6   : > { %13455 = vmatmul.mubr.msk.bf16.vlgmr.msra.gmra.mxu0 %vm1344_vm9, %v17951_v48  ;;  %13492 = vmatprep.mubr.msk.bf16.mxu1 %vm1344_vm9, %v17994_v28  ;;  %v10132_v48 = vsel %vm15001_vm15, %v10130_v30, %v10131_v52  ;;  %v10025_v30 = vld [vmem:[#allocation4 + $0xa8] sm:$0xe]  ;;  %v10026_v52 = vld [vmem:[#allocation4 + $0xb4] sm:$0xe] }
 0x4f7   : > { %13521 = vmatpush3.bf16.msra.mxu0 %v17958_v24  ;;  %13458 = vmatprep.mubr.msk.bf16.mxu0 %vm1344_vm9, %v17962_v15  ;;  %v18224_v5 = vcombine.low %v10129_v27, %v10132_v48  ;;  %v10145_v24 = vrot.slane %v18034_v55, 5  ;;  %v10136_v15 = vsel %vm15001_vm15, %v12059_v51, %v10135_v35  ;;  %v10177_v27 = vrot.slane %v18109_v36, 5 }
 0x4f8   : > { %13555 = vmatpush3.bf16.msra.mxu1 %v17968_v56  ;;  %13588 = vmatprep.subr.bf16.mxu0 %v18197_v58  ;;  %v10139_v56 = vsel %vm15001_vm15, %v10137_v60, %v10138_v53  ;;  %v10160_v53 = vsel %vm15001_vm15, %v10158_v16, %v10159_v26  ;;  %v10184_v35 = vrot.slane %v18130_v62, 5  ;;  %v10171_v48 = vsel %vm15001_vm15, %v12064_v47, %v10170_v11 }
 0x4f9   : > { %v18236_v55 = vcombine.low %v10136_v15, %v10139_v56  ;;  %v10146_v20 = vsel %vm15001_vm15, %v10144_v2, %v10145_v24  ;;  %v18266_v57 = vcombine.low %v10157_v23, %v10160_v53  ;;  %v12065_v34 = vrot.slane %v10025_v30, 9 }
 0x4fa   : > { %v18241_v21 = vcombine.low %v10143_v19, %v10146_v20  ;;  %v10179_v14 = vrot.slane %v10177_v27, 4  ;;  %v12066_v3 = vrot.slane %v10026_v52, 9  ;;  %v10186_v60 = vrot.slane %v10184_v35, 4  ;;  %v19527_v19 = vld [vmem:[#allocation35_spill] sm:$0xff]  ;;  %v19528_v20 = vld [vmem:[#allocation42_spill] sm:$0xff] }
 0x4fb   : > { %v10187_v36 = vrot.slane %v18154_v31, 5  ;;  %v12100_v24 = vrot.slane %v10027_v17, 9  ;;  %v10494_v62 = vrot.slane %v10492_v0, 4  ;;  %v10178_v18 = vsel %vm15001_vm15, %v12065_v34, %v10177_v27  ;;  %v18331_v17 = vld [vmem:[#allocation4 + $0xd4] sm:$0x1] }
 0x4fc   : > { %v10181_v15 = vsel %vm15001_vm15, %v10179_v14, %v10180_v61  ;;  %v10185_v2 = vsel %vm15001_vm15, %v12066_v3, %v10184_v35  ;;  %v9557_v26 = vshll.u32 %v8860_v38, 16  ;;  %v9780_v11 = vshrl.u32 %v8862_v7, 16  ;;  %v13842_v34 = vld [vmem:[#allocation4 + $0x4] sm:$0xf] }
 0x4fd   : > { %13493 = vmatmul.mubr.msk.bf16.gmra.mxu1 %vm1344_vm9, %v18021_v63  ;;  %v18292_v33 = vcombine.low %v10178_v18, %v10181_v15  ;;  %v10188_v41 = vsel %vm15001_vm15, %v10186_v60, %v10187_v36  ;;  %v10493_v31 = vsel %vm15001_vm15, %v12100_v24, %v10492_v0  ;;  %v9783_v53 = vshll.u32 %v8862_v7, 16  ;;  %v13843_v60 = vld [vmem:[#allocation4 + $0x10] sm:$0xf]  ;;  %v13845_v7 = vld [vmem:[#allocation4 + $0x14] sm:$0x1] }
 0x4fe   : > { %13459 = vmatmul.mubr.msk.bf16.gmra.mxu0 %vm1344_vm9, %v17994_v28  ;;  %13496 = vmatprep.mubr.msk.bf16.mxu1 %vm1344_vm9, %v18032_v22  ;;  %v10167_v28 = vsel %vm15001_vm15, %v10165_v45, %v10166_v29  ;;  %v10174_v29 = vsel %vm15001_vm15, %v10172_v6, %v10173_v32  ;;  %v18304_v40 = vcombine.low %v10185_v2, %v10188_v41  ;;  %v9559_v23 = vrot.slane %v9557_v26, 5 }
 0x4ff   : > { %13462 = vmatprep.mubr.msk.bf16.mxu0 %vm1344_vm9, %v18021_v63  ;;  %v18272_v9 = vcombine.low %v10164_v10, %v10167_v28  ;;  %v10495_v63 = vrot.slane %v18256_v13, 5  ;;  %v18281_v51 = vcombine.low %v10171_v48, %v10174_v29  ;;  %v9563_v45 = vrot.slane %v9561_v1, 4 }
 0x500   : > { %v9789_v38 = vshll.u32 %v18318_v4, 16  ;;  %v9793_v10 = vshrl.u32 %v18318_v4, 16  ;;  %v9782_v32 = vrot.slane %v9780_v11, 4  ;;  %v9785_v30 = vrot.slane %v9783_v53, 5 }
 0x501   : > { %v10496_v56 = vsel %vm15001_vm15, %v10494_v62, %v10495_v63  ;;  %v9564_v6 = vor.u32 %v9563_v45, %v9559_v23  ;;  %v9567_v35 = vshll.u32 %v18256_v13, 16  ;;  %v9799_v29 = vshll.u32 %v18331_v17, 16 }
 0x502   : > { %v18306_v39 = vcombine.low %v10493_v31, %v10496_v56  ;;  %v9791_v52 = vrot.slane %v9789_v38, 5  ;;  %v9795_v61 = vrot.slane %v9793_v10, 4  ;;  %v10079_v14 = vrot.slane %v13842_v34, 5  ;;  %v13844_v31 = vld [vmem:[#allocation4 + $0x8] sm:$0x1] }
 0x503   : > { %v9565_v63 = vrot.slane %v9564_v6, 4  ;;  %v9569_v0 = vrot.slane %v9567_v35, 5  ;;  %v10086_v36 = vrot.slane %v13843_v60, 5  ;;  %v9801_v18 = vrot.slane %v9799_v29, 5 }
 0x504   : > { %v9796_v48 = vor.u32 %v9795_v61, %v9791_v52  ;;  %v10082_v56 = vrot.slane %v13844_v31, 5 }
 0x505   : > { %13497 = vmatmul.mubr.msk.bf16.gmra.mxu1 %vm1344_vm9, %v19526_v43  ;;  %v9570_v3 = vsel %vm14596_vm12, %v9565_v63, %v9569_v0  ;;  %v19530_v0 = vld [vmem:[#allocation29_spill] sm:$0xff] }
 0x506   : > { %13463 = vmatmul.mubr.msk.bf16.gmra.mxu0 %vm1344_vm9, %v18032_v22  ;;  %13500 = vmatprep.mubr.msk.bf16.mxu1 %vm1344_vm9, %v19527_v19  ;;  %v8859_v22 = vld [vmem:[#allocation4 + $0xc0] sm:$0xf]  ;;  %v9797_v62 = vrot.slane %v9796_v48, 4  ;;  %v13847_v48 = vld [vmem:[#allocation4 + $0x2c] sm:$0x1]  ;;  %v10107_v34 = vrot.slane %v19530_v0, 5 }
 0x507   : > { %13466 = vmatprep.mubr.msk.bf16.mxu0 %vm1344_vm9, %v19526_v43  ;;  %v9548_v8 = vshrl.u32 %v8859_v22, 16  ;;  %v9551_v16 = vshll.u32 %v8859_v22, 16  ;;  %v10103_v29 = vrot.slane %v13847_v48, 5 }
 0x509   : > { %v9550_v47 = vrot.slane %v9548_v8, 4  ;;  %v9553_v28 = vrot.slane %v9551_v16, 5  ;;  %v9802_v8 = vsel %vm14596_vm12, %v9797_v62, %v9801_v18 }
 0x50b   : > { %v9554_v27 = vor.u32 %v9553_v28, %v9550_v47  ;;  %v13846_v28 = vld [vmem:[#allocation4 + $0x28] sm:$0xf] }
 0x50c   : > { %v10100_v6 = vrot.slane %v13846_v28, 5 }
 0x50d   : > { %13501 = vmatmul.mubr.msk.bf16.gmra.mxu1 %vm1344_vm9, %v19528_v20  ;;  %v9555_v13 = vrot.slane %v9554_v27, 4 }
 0x50e   : > { %13467 = vmatmul.mubr.msk.bf16.gmra.mxu0 %vm1344_vm9, %v19527_v19  ;;  %13504 = vmatprep.mubr.msk.bf16.mxu1 %vm1344_vm9, %v19529_v50  ;;  %v10102_v63 = vrot.slane %v10100_v6, 4 }
 0x50f   : > { %13470 = vmatprep.mubr.msk.bf16.mxu0 %vm1344_vm9, %v19528_v20  ;;  %v9560_v15 = vsel %vm14596_vm12, %v9555_v13, %v9559_v23  ;;  %v10012_v20 = vld [vmem:[#allocation4 + $0xc] sm:$0xe]  ;;  %v10089_v23 = vrot.slane %v13845_v7, 5 }
 0x510   : > { %v12015_v43 = vcombine.low %v9560_v15, %v9570_v3  ;;  %v12052_v53 = vrot.slane %v10012_v20, 9  ;;  %v10104_v60 = vsel %vm15001_vm15, %v10102_v63, %v10103_v29 }
 0x515   : > { %13505 = vmatmul.mubr.msk.bf16.gmra.mxu1 %vm1344_vm9, %v18135_v59 }
 0x516   : > { %13471 = vmatmul.mubr.msk.bf16.gmra.mxu0 %vm1344_vm9, %v19529_v50  ;;  %13508 = vmatprep.mubr.msk.bf16.mxu1 %vm1344_vm9, %v18141_v49  ;;  %v10088_v50 = vrot.slane %v10086_v36, 4 }
 0x517   : > { %13474 = vmatprep.mubr.msk.bf16.mxu0 %vm1344_vm9, %v18135_v59  ;;  %v9786_v59 = vor.u32 %v9785_v30, %v9782_v32 }
 0x518   : > { %v10090_v25 = vsel %vm15001_vm15, %v10088_v50, %v10089_v23  ;;  %v19534_v23 = vld [vmem:[#allocation51_spill] sm:$0xff] }
 0x519   : > { %v9787_v24 = vrot.slane %v9786_v59, 4  ;;  %v10014_v59 = vld [vmem:[#allocation4 + $0x24] sm:$0xe] }
 0x51a   : > { %v12054_v3 = vrot.slane %v10014_v59, 9 }
 0x51b   : > { %v9792_v1 = vsel %vm14596_vm12, %v9787_v24, %v9791_v52  ;;  %v10087_v52 = vsel %vm15001_vm15, %v12052_v53, %v10086_v36 }
 0x51c   : > { %v12033_v47 = vcombine.low %v9792_v1, %v9802_v8  ;;  %v12068_v35 = vcombine.low %v10087_v52, %v10090_v25  ;;  %v10101_v15 = vsel %vm15001_vm15, %v12054_v3, %v10100_v6  ;;  %v19533_v1 = vld [vmem:[#allocation33_spill] sm:$0xff] }
 0x51d   : > { %13509 = vmatmul.mubr.msk.bf16.gmra.mxu1 %vm1344_vm9, %v18163_v42  ;;  %v10110_v8 = vrot.slane %v19533_v1, 5 }
 0x51e   : > { %13475 = vmatmul.mubr.msk.bf16.gmra.mxu0 %vm1344_vm9, %v18141_v49  ;;  %13512 = vmatprep.mubr.msk.bf16.mxu1 %vm1344_vm9, %v18169_v44  ;;  %v10011_v49 = vld [vmem:[#allocation4] sm:$0xe] }
 0x51f   : > { %13478 = vmatprep.mubr.msk.bf16.mxu0 %vm1344_vm9, %v18163_v42  ;;  %v12051_v41 = vrot.slane %v10011_v49, 9  ;;  %v10081_v42 = vrot.slane %v10079_v14, 4  ;;  %v19531_v49 = vld [vmem:[#allocation34_spill] sm:$0xff] }
 0x520   : > { %v10114_v24 = vrot.slane %v19531_v49, 5 }
 0x521   : > { %v10083_v38 = vsel %vm15001_vm15, %v10081_v42, %v10082_v56  ;;  %v10109_v42 = vrot.slane %v10107_v34, 4  ;;  %v19532_v56 = vld [vmem:[#allocation32_spill] sm:$0xff] }
 0x522   : > { %v13354_v2 = vpop.f32.mrf.mxu1  ;;  %v13320_v19 = vpop.f32.mrf.mxu0  ;;  %v10116_v20 = vrot.slane %v10114_v24, 4 }
 0x523   : > { %v18348_v22 = vadd.f32 %v13354_v2, %v13320_v19  ;;  %v10015_v19 = vld [vmem:[#allocation4 + $0x30] sm:$0xe] }
 0x524   : > { %v8474_v26 = vpop.f32.mrf.mxu1  ;;  %v8299_v16 = vpop.f32.mrf.mxu0 }
 0x525   : > { %13513 = vmatmul.mubr.msk.bf16.gmra.mxu1 %vm1344_vm9, %v18183_v12  ;;  %v18359_v45 = vadd.f32 %v8474_v26, %v8299_v16  ;;  %v10016_v16 = vld [vmem:[#allocation4 + $0x3c] sm:$0xe] }
 0x526   : > { %13479 = vmatmul.mubr.msk.bf16.gmra.mxu0 %vm1344_vm9, %v18169_v44  ;;  %13516 = vmatprep.mubr.msk.bf16.mxu1 %vm1344_vm9, %v12015_v43  ;;  %v13355_v11 = vpop.f32.mrf.mxu1  ;;  %v10080_v44 = vsel %vm15001_vm15, %v12051_v41, %v10079_v14  ;;  %v13321_v10 = vpop.f32.mrf.mxu0  ;;  %v18387_v41 = vcombine.low %v10101_v15, %v10104_v60  ;;  %v12056_v25 = vrot.slane %v10016_v16, 9 }
 0x527   : > { %13482 = vmatprep.mubr.msk.bf16.mxu0 %vm1344_vm9, %v18183_v12  ;;  %v18367_v12 = vadd.f32 %v13355_v11, %v13321_v10  ;;  %v12067_v61 = vcombine.low %v10080_v44, %v10083_v38  ;;  %v10117_v11 = vrot.slane %v19534_v23, 5  ;;  %v12055_v38 = vrot.slane %v10015_v19, 9 }
 0x528   : > { %v8477_v32 = vpop.f32.mrf.mxu1  ;;  %v8302_v30 = vpop.f32.mrf.mxu0  ;;  %v10111_v10 = vsel %vm15001_vm15, %v10109_v42, %v10110_v8 }
 0x529   : > { %v18371_v27 = vadd.f32 %v8477_v32, %v8302_v30  ;;  %v10118_v28 = vsel %vm15001_vm15, %v10116_v20, %v10117_v11  ;;  %v10108_v32 = vsel %vm15001_vm15, %v12055_v38, %v10107_v34 }
 0x52a   : > { %v18411_v52 = vcombine.low %v10108_v32, %v10111_v10 }
 0x52d   : > { %13517 = vmatmul.mubr.msk.bf16.gmra.mxu1 %vm1344_vm9, %v12033_v47 }
 0x52e   : > { %13483 = vmatmul.mubr.msk.bf16.gmra.mxu0 %vm1344_vm9, %v12015_v43  ;;  %13556 = vmatprep.mubr.msk.bf16.mxu1 %vm1344_vm9, %v12068_v35  ;;  %v13358_v13 = vpop.f32.mrf.mxu1 }
 0x52f   : > { %13522 = vmatprep.mubr.msk.bf16.mxu0 %vm1344_vm9, %v12067_v61  ;;  %v13324_v14 = vpop.f32.mrf.mxu0  ;;  %v10115_v61 = vsel %vm15001_vm15, %v12056_v25, %v10114_v24 }
 0x530   : > { %v18380_v36 = vadd.f32 %v13358_v13, %v13324_v14  ;;  %v8490_v62 = vpop.f32.mrf.mxu1  ;;  %v18417_v59 = vcombine.low %v10115_v61, %v10118_v28 }
 0x531   : > { %v8315_v18 = vpop.f32.mrf.mxu0 }
 0x532   : > { %v18385_v2 = vadd.f32 %v8490_v62, %v8315_v18  ;;  %v13359_v43 = vpop.f32.mrf.mxu1 }
 0x533   : > { %v13325_v31 = vpop.f32.mrf.mxu0 }
 0x534   : > { %v18391_v50 = vadd.f32 %v13359_v43, %v13325_v31  ;;  %v8493_v26 = vpop.f32.mrf.mxu1 }
 0x535   : > { %13557 = vmatmul.mubr.msk.bf16.vlgmr.msra.gmra.mxu1 %vm1344_vm9, %v19532_v56  ;;  %v8318_v7 = vpop.f32.mrf.mxu0 }
 0x536   : > { %13523 = vmatmul.mubr.msk.bf16.vlgmr.msra.gmra.mxu0 %vm1344_vm9, %v12068_v35  ;;  %13560 = vmatprep.mubr.msk.bf16.mxu1 %vm1344_vm9, %v18387_v41  ;;  %v18401_v53 = vadd.f32 %v8493_v26, %v8318_v7  ;;  %v13362_v44 = vpop.f32.mrf.mxu1 }
 0x537   : > { %13589 = vmatpush3.bf16.msra.mxu0 %v18197_v58  ;;  %13526 = vmatprep.mubr.msk.bf16.mxu0 %vm1344_vm9, %v19532_v56  ;;  %v13328_v47 = vpop.f32.mrf.mxu0 }
 0x538   : > { %v18407_v6 = vadd.f32 %v13362_v44, %v13328_v47  ;;  %v8506_v58 = vpop.f32.mrf.mxu1 }
 0x539   : > { %v8331_v30 = vpop.f32.mrf.mxu0 }
 0x53a   : > { %v18415_v35 = vadd.f32 %v8506_v58, %v8331_v30  ;;  %v13363_v63 = vpop.f32.mrf.mxu1 }
 0x53b   : > { %v13329_v48 = vpop.f32.mrf.mxu0 }
 0x53c   : > { %v18421_v29 = vadd.f32 %v13363_v63, %v13329_v48  ;;  %v8509_v13 = vpop.f32.mrf.mxu1 }
 0x53d   : > { %13561 = vmatmul.mubr.msk.bf16.gmra.mxu1 %vm1344_vm9, %v18411_v52  ;;  %v8334_v0 = vpop.f32.mrf.mxu0 }
 0x53e   : > { %13527 = vmatmul.mubr.msk.bf16.gmra.mxu0 %vm1344_vm9, %v18387_v41  ;;  %13564 = vmatprep.mubr.msk.bf16.mxu1 %vm1344_vm9, %v18417_v59  ;;  %v18429_v34 = vadd.f32 %v8509_v13, %v8334_v0 }
 0x53f   : > { %13530 = vmatprep.mubr.msk.bf16.mxu0 %vm1344_vm9, %v18411_v52 }
 0x543   : > { %v13366_v14 = vpop.f32.mrf.mxu1 }
 0x544   : > { %v13332_v3 = vpop.f32.mrf.mxu0 }
 0x545   : > { %13565 = vmatmul.mubr.msk.bf16.gmra.mxu1 %vm1344_vm9, %v18218_v37  ;;  %v18437_v60 = vadd.f32 %v13366_v14, %v13332_v3  ;;  %v8522_v49 = vpop.f32.mrf.mxu1 }
 0x546   : > { %13531 = vmatmul.mubr.msk.bf16.gmra.mxu0 %vm1344_vm9, %v18417_v59  ;;  %13568 = vmatprep.mubr.msk.bf16.mxu1 %vm1344_vm9, %v18224_v5  ;;  %v8347_v24 = vpop.f32.mrf.mxu0 }
 0x547   : > { %13534 = vmatprep.mubr.msk.bf16.mxu0 %vm1344_vm9, %v18218_v37  ;;  %v18441_v62 = vadd.f32 %v8522_v49, %v8347_v24  ;;  %v13367_v18 = vpop.f32.mrf.mxu1 }
 0x548   : > { %v13333_v15 = vpop.f32.mrf.mxu0 }
 0x549   : > { %v18443_v43 = vadd.f32 %v13367_v18, %v13333_v15  ;;  %v8525_v42 = vpop.f32.mrf.mxu1 }
 0x54a   : > { %v8350_v31 = vpop.f32.mrf.mxu0 }
 0x54b   : > { %v18445_v19 = vadd.f32 %v8525_v42, %v8350_v31 }
 0x54d   : > { %13569 = vmatmul.mubr.msk.bf16.gmra.mxu1 %vm1344_vm9, %v18236_v55 }
 0x54e   : > { %13535 = vmatmul.mubr.msk.bf16.gmra.mxu0 %vm1344_vm9, %v18224_v5  ;;  %13572 = vmatprep.mubr.msk.bf16.mxu1 %vm1344_vm9, %v18241_v21 }
 0x54f   : > { %13538 = vmatprep.mubr.msk.bf16.mxu0 %vm1344_vm9, %v18236_v55  ;;  %v13370_v20 = vpop.f32.mrf.mxu1 }
 0x550   : > { %v13336_v26 = vpop.f32.mrf.mxu0 }
 0x551   : > { %v18455_v1 = vadd.f32 %v13370_v20, %v13336_v26  ;;  %v8538_v8 = vpop.f32.mrf.mxu1 }
 0x552   : > { %v8363_v16 = vpop.f32.mrf.mxu0 }
 0x553   : > { %v18459_v7 = vadd.f32 %v8538_v8, %v8363_v16  ;;  %v13371_v23 = vpop.f32.mrf.mxu1 }
 0x554   : > { %v13337_v11 = vpop.f32.mrf.mxu0 }
 0x555   : > { %13573 = vmatmul.mubr.msk.bf16.gmra.mxu1 %vm1344_vm9, %v18258_v54  ;;  %v18467_v44 = vadd.f32 %v13371_v23, %v13337_v11  ;;  %v18469_v38 = vpop.f32.mrf.mxu1 }
 0x556   : > { %13539 = vmatmul.mubr.msk.bf16.gmra.mxu0 %vm1344_vm9, %v18241_v21  ;;  %13576 = vmatprep.mubr.msk.bf16.mxu1 %vm1344_vm9, %v18266_v57  ;;  %v18471_v10 = vpop.f32.mrf.mxu0 }
 0x557   : > { %13542 = vmatprep.mubr.msk.bf16.mxu0 %vm1344_vm9, %v18258_v54  ;;  %v13374_v47 = vpop.f32.mrf.mxu1 }
 0x559   : > { %v13340_v25 = vpop.f32.mrf.mxu0  ;;  %v8554_v58 = vpop.f32.mrf.mxu1 }
 0x55a   : > { %v18473_v28 = vadd.f32 %v13374_v47, %v13340_v25 }
 0x55b   : > { %v8379_v32 = vpop.f32.mrf.mxu0  ;;  %v13375_v61 = vpop.f32.mrf.mxu1 }
 0x55c   : > { %v18477_v30 = vadd.f32 %v8554_v58, %v8379_v32 }
 0x55d   : > { %13577 = vmatmul.mubr.msk.bf16.gmra.mxu1 %vm1344_vm9, %v18272_v9  ;;  %v13341_v63 = vpop.f32.mrf.mxu0  ;;  %v18487_v13 = vpop.f32.mrf.mxu1 }
 0x55e   : > { %13543 = vmatmul.mubr.msk.bf16.gmra.mxu0 %vm1344_vm9, %v18266_v57  ;;  %13580 = vmatprep.mubr.msk.bf16.mxu1 %vm1344_vm9, %v18281_v51  ;;  %v18485_v48 = vadd.f32 %v13375_v61, %v13341_v63 }
 0x55f   : > { %13546 = vmatprep.mubr.msk.bf16.mxu0 %vm1344_vm9, %v18272_v9  ;;  %v18489_v0 = vpop.f32.mrf.mxu0 }
 0x561   : > { %v13378_v14 = vpop.f32.mrf.mxu1 }
 0x562   : > { %v13344_v3 = vpop.f32.mrf.mxu0 }
 0x563   : > { %v18491_v49 = vadd.f32 %v13378_v14, %v13344_v3  ;;  %v8570_v24 = vpop.f32.mrf.mxu1 }
 0x564   : > { %v8395_v18 = vpop.f32.mrf.mxu0 }
 0x565   : > { %13581 = vmatmul.mubr.msk.bf16.gmra.mxu1 %vm1344_vm9, %v18292_v33  ;;  %v18499_v15 = vadd.f32 %v8570_v24, %v8395_v18  ;;  %v13379_v42 = vpop.f32.mrf.mxu1 }
 0x566   : > { %13547 = vmatmul.mubr.msk.bf16.gmra.mxu0 %vm1344_vm9, %v18281_v51  ;;  %13584 = vmatprep.mubr.msk.bf16.mxu1 %vm1344_vm9, %v18304_v40  ;;  %v13345_v31 = vpop.f32.mrf.mxu0 }
 0x567   : > { %13550 = vmatprep.mubr.msk.bf16.mxu0 %vm1344_vm9, %v18292_v33  ;;  %v18503_v20 = vadd.f32 %v13379_v42, %v13345_v31  ;;  %v18505_v26 = vpop.f32.mrf.mxu1 }
 0x568   : > { %v18507_v8 = vpop.f32.mrf.mxu0 }
 0x56d   : > { %v13382_v16 = vpop.f32.mrf.mxu1  ;;  %13585 = vmatmul.mubr.msk.bf16.gmra.mxu1 %vm1344_vm9, %v18306_v39 }
 0x56e   : > { %v13348_v23 = vpop.f32.mrf.mxu0  ;;  %13551 = vmatmul.mubr.msk.bf16.gmra.mxu0 %vm1344_vm9, %v18304_v40 }
 0x56f   : > { %v18513_v11 = vadd.f32 %v13382_v16, %v13348_v23  ;;  %v8586_v47 = vpop.f32.mrf.mxu1  ;;  %13590 = vmatprep.mubr.msk.bf16.mxu0 %vm1344_vm9, %v19532_v56 }
 0x570   : > { %v8411_v25 = vpop.f32.mrf.mxu0 }
 0x571   : > { %v18517_v58 = vadd.f32 %v8586_v47, %v8411_v25  ;;  %v13383_v32 = vpop.f32.mrf.mxu1 }
 0x572   : > { %v13349_v61 = vpop.f32.mrf.mxu0 }
 0x573   : > { %v18519_v63 = vadd.f32 %v13383_v32, %v13349_v61  ;;  %v18521_v14 = vpop.f32.mrf.mxu1 }
 0x574   : > { %19536 = vst [vmem:[#allocation39_spill] sm:$0xff] %v18521_v14  ;;  %v18523_v3 = vpop.f32.mrf.mxu0 }
 0x575   : > { %19535 = vst [vmem:[#allocation43_spill] sm:$0xff] %v18519_v63  ;;  %v13422_v24 = vpop.f32.mrf.mxu1 }
 0x576   : > { %v13388_v18 = vpop.f32.mrf.mxu0  ;;  %13591 = vmatmul.mubr.msk.bf16.vlgmr.msra.gmra.mxu0 %vm1344_vm9, %v18387_v41 }
 0x577   : > { %v8781_v42 = vadd.f32 %v13388_v18, %v18348_v22  ;;  %v9388_v31 = vpop.f32.mrf.mxu1  ;;  %13594 = vmatprep.mubr.msk.bf16.mxu0 %vm1344_vm9, %v18411_v52 }
 0x578   : > { %v8652_v56 = vpop.f32.mrf.mxu0 }
 0x579   : > { %v8779_v16 = vadd.f32 %v8652_v56, %v18359_v45  ;;  %v13423_v23 = vpop.f32.mrf.mxu1  ;;  %v18531_v47 = vadd.f32 %v13422_v24, %v8781_v42 }
 0x57a   : > { %v13389_v25 = vpop.f32.mrf.mxu0 }
 0x57b   : > { %v8782_v32 = vadd.f32 %v13389_v25, %v18367_v12  ;;  %v18534_v61 = vpop.f32.mrf.mxu1  ;;  %v18536_v63 = vadd.f32 %v9388_v31, %v8779_v16 }
 0x57c   : > { %v8655_v41 = vpop.f32.mrf.mxu0 }
 0x57d   : > { %v18539_v22 = vadd.f32 %v8655_v41, %v18371_v27  ;;  %v13426_v18 = vpop.f32.mrf.mxu1  ;;  %v18541_v14 = vadd.f32 %v13423_v23, %v8782_v32 }
 0x57e   : > { %v13392_v52 = vpop.f32.mrf.mxu0  ;;  %13595 = vmatmul.mubr.msk.bf16.gmra.mxu0 %vm1344_vm9, %v18417_v59 }
 0x57f   : > { %v8785_v45 = vadd.f32 %v13392_v52, %v18380_v36  ;;  %v9404_v24 = vpop.f32.mrf.mxu1  ;;  %13598 = vmatprep.mubr.msk.bf16.mxu0 %vm1344_vm9, %v18218_v37  ;;  %v13819_v37 = vld [vmem:[%s19198_s7] sm:$0xff]  }
 0x580   : > { %v8668_v12 = vpop.f32.mrf.mxu0  ;;  %13622 = vmatprep.subr.bf16.mxu1 %v13819_v37 }
 0x581   : > { %v8783_v42 = vadd.f32 %v8668_v12, %v18385_v2  ;;  %v13427_v31 = vpop.f32.mrf.mxu1  ;;  %v18549_v56 = vadd.f32 %v13426_v18, %v8785_v45  ;;  %13623 = vmatpush3.bf16.msra.mxu1 %v13819_v37 }
 0x582   : > { %v13393_v27 = vpop.f32.mrf.mxu0 }
 0x583   : > { %v8786_v16 = vadd.f32 %v13393_v27, %v18391_v50  ;;  %v18552_v23 = vpop.f32.mrf.mxu1  ;;  %v18554_v25 = vadd.f32 %v9404_v24, %v8783_v42 }
 0x584   : > { %v8671_v59 = vpop.f32.mrf.mxu0 }
 0x585   : > { %v18557_v36 = vadd.f32 %v8671_v59, %v18401_v53  ;;  %v13430_v32 = vpop.f32.mrf.mxu1  ;;  %v18559_v41 = vadd.f32 %v13427_v31, %v8786_v16 }
 0x586   : > { %v13396_v2 = vpop.f32.mrf.mxu0  ;;  %13599 = vmatmul.mubr.msk.bf16.gmra.mxu0 %vm1344_vm9, %v18224_v5 }
 0x587   : > { %v8789_v50 = vadd.f32 %v13396_v2, %v18407_v6  ;;  %v9420_v18 = vpop.f32.mrf.mxu1  ;;  %13602 = vmatprep.mubr.msk.bf16.mxu0 %vm1344_vm9, %v18236_v55 }
 0x588   : > { %v8684_v53 = vpop.f32.mrf.mxu0 }
 0x589   : > { %v8787_v52 = vadd.f32 %v8684_v53, %v18415_v35  ;;  %v13431_v45 = vpop.f32.mrf.mxu1  ;;  %v18570_v24 = vadd.f32 %v13430_v32, %v8789_v50 }
 0x58a   : > { %v13397_v12 = vpop.f32.mrf.mxu0 }
 0x58b   : > { %v8790_v42 = vadd.f32 %v13397_v12, %v18421_v29  ;;  %v18573_v31 = vpop.f32.mrf.mxu1  ;;  %v18575_v5 = vadd.f32 %v9420_v18, %v8787_v52 }
 0x58c   : > { %v8687_v6 = vpop.f32.mrf.mxu0 }
 0x58d   : > { %v18578_v27 = vadd.f32 %v8687_v6, %v18429_v34  ;;  %v13434_v55 = vpop.f32.mrf.mxu1  ;;  %v18580_v16 = vadd.f32 %v13431_v45, %v8790_v42 }
 0x58e   : > { %v13400_v59 = vpop.f32.mrf.mxu0  ;;  %13603 = vmatmul.mubr.msk.bf16.gmra.mxu0 %vm1344_vm9, %v18241_v21 }
 0x58f   : > { %v8793_v35 = vadd.f32 %v13400_v59, %v18437_v60  ;;  %v9436_v32 = vpop.f32.mrf.mxu1  ;;  %13606 = vmatprep.mubr.msk.bf16.mxu0 %vm1344_vm9, %v18258_v54 }
 0x590   : > { %v8700_v29 = vpop.f32.mrf.mxu0 }
 0x591   : > { %v8791_v37 = vadd.f32 %v8700_v29, %v18441_v62  ;;  %v13435_v2 = vpop.f32.mrf.mxu1  ;;  %v18588_v50 = vadd.f32 %v13434_v55, %v8793_v35  ;;  %v8542_v35 = vadd.f32 %v18469_v38, %v18471_v10  ;;  %v10028_v38 = vld [vmem:[#allocation4 + $0xcc] sm:$0xe] }
 0x592   : > { %v13401_v34 = vpop.f32.mrf.mxu0 }
 0x593   : > { %v8794_v18 = vadd.f32 %v13401_v34, %v18443_v43  ;;  %v18591_v53 = vpop.f32.mrf.mxu1  ;;  %v18593_v52 = vadd.f32 %v9436_v32, %v8791_v37 }
 0x594   : > { %v8703_v21 = vpop.f32.mrf.mxu0 }
 0x595   : > { %v18596_v60 = vadd.f32 %v8703_v21, %v18445_v19  ;;  %v13438_v45 = vpop.f32.mrf.mxu1  ;;  %v18598_v12 = vadd.f32 %v13435_v2, %v8794_v18 }
 0x596   : > { %v13404_v54 = vpop.f32.mrf.mxu0  ;;  %13607 = vmatmul.mubr.msk.bf16.gmra.mxu0 %vm1344_vm9, %v18266_v57 }
 0x597   : > { %v8797_v62 = vadd.f32 %v13404_v54, %v18455_v1  ;;  %v9452_v42 = vpop.f32.mrf.mxu1  ;;  %13610 = vmatprep.mubr.msk.bf16.mxu0 %vm1344_vm9, %v18272_v9 }
 0x598   : > { %v8716_v43 = vpop.f32.mrf.mxu0 }
 0x599   : > { %v8795_v6 = vadd.f32 %v8716_v43, %v18459_v7  ;;  %v13439_v55 = vpop.f32.mrf.mxu1  ;;  %v18606_v59 = vadd.f32 %v13438_v45, %v8797_v62  ;;  %v12119_v43 = vrot.slane %v10028_v38, 9 }
 0x59a   : > { %v13405_v19 = vpop.f32.mrf.mxu0 }
 0x59b   : > { %v8798_v32 = vadd.f32 %v13405_v19, %v18467_v44  ;;  %v9455_v29 = vpop.f32.mrf.mxu1  ;;  %v18611_v57 = vadd.f32 %v9452_v42, %v8795_v6  ;;  %v10710_v44 = vrot.slane %v18318_v4, 5 }
 0x59c   : > { %v8719_v1 = vpop.f32.mrf.mxu0 }
 0x59d   : > { %v8796_v37 = vadd.f32 %v8719_v1, %v8542_v35  ;;  %v13442_v2 = vpop.f32.mrf.mxu1  ;;  %v18613_v34 = vadd.f32 %v13439_v55, %v8798_v32  ;;  %v10712_v55 = vrot.slane %v10710_v44, 4 }
 0x59e   : > { %v13408_v9 = vpop.f32.mrf.mxu0  ;;  %13611 = vmatmul.mubr.msk.bf16.gmra.mxu0 %vm1344_vm9, %v18281_v51  ;;  %v10713_v51 = vrot.slane %v18331_v17, 5 }
 0x59f   : > { %v8801_v7 = vadd.f32 %v13408_v9, %v18473_v28  ;;  %v9468_v18 = vpop.f32.mrf.mxu1  ;;  %13614 = vmatprep.mubr.msk.bf16.mxu0 %vm1344_vm9, %v18292_v33  ;;  %v18621_v10 = vadd.f32 %v9455_v29, %v8796_v37  ;;  %v8558_v28 = vadd.f32 %v18487_v13, %v18489_v0 }
 0x5a0   : > { %v8732_v21 = vpop.f32.mrf.mxu0  ;;  %v10714_v13 = vsel %vm15001_vm15, %v10712_v55, %v10713_v51 }
 0x5a1   : > { %v8799_v45 = vadd.f32 %v8732_v21, %v18477_v30  ;;  %v13443_v54 = vpop.f32.mrf.mxu1  ;;  %v18624_v62 = vadd.f32 %v13442_v2, %v8801_v7 }
 0x5a2   : > { %v13409_v42 = vpop.f32.mrf.mxu0 }
 0x5a3   : > { %v8802_v33 = vadd.f32 %v13409_v42, %v18485_v48  ;;  %v9471_v6 = vpop.f32.mrf.mxu1  ;;  %v18630_v4 = vadd.f32 %v9468_v18, %v8799_v45  ;;  %v10711_v48 = vsel %vm15001_vm15, %v12119_v43, %v10710_v44  ;;  %v8574_v18 = vadd.f32 %v18505_v26, %v18507_v8 }
 0x5a4   : > { %v8735_v19 = vpop.f32.mrf.mxu0 }
 0x5a5   : > { %v8800_v35 = vadd.f32 %v8735_v19, %v8558_v28  ;;  %v13446_v32 = vpop.f32.mrf.mxu1  ;;  %v18632_v30 = vadd.f32 %v13443_v54, %v8802_v33  ;;  %v19538_v19 = vld [vmem:[#allocation43_spill] sm:$0xff] }
 0x5a6   : > { %v13412_v29 = vpop.f32.mrf.mxu0  ;;  %13615 = vmatmul.mubr.msk.bf16.gmra.mxu0 %vm1344_vm9, %v18304_v40 }
 0x5a7   : > { %v8805_v17 = vadd.f32 %v13412_v29, %v18491_v49  ;;  %v9484_v1 = vpop.f32.mrf.mxu1  ;;  %13618 = vmatprep.mubr.msk.bf16.mxu0 %vm1344_vm9, %v18306_v39  ;;  %v18643_v0 = vadd.f32 %v9471_v6, %v8800_v35  ;;  %v12120_v49 = vcombine.low %v10711_v48, %v10714_v13  ;;  %v19537_v6 = vld [vmem:[#allocation39_spill] sm:$0xff] }
 0x5a8   : > { %v8748_v37 = vpop.f32.mrf.mxu0  ;;  %v8590_v55 = vadd.f32 %v19537_v6, %v18523_v3  ;;  %v9520_v6 = vadd.f32 %v18552_v23, %v18557_v36 }
 0x5a9   : > { %v8803_v2 = vadd.f32 %v8748_v37, %v18499_v15  ;;  %v13447_v9 = vpop.f32.mrf.mxu1  ;;  %v18646_v7 = vadd.f32 %v13446_v32, %v8805_v17 }
 0x5aa   : > { %v13413_v40 = vpop.f32.mrf.mxu0 }
 0x5ab   : > { %v8806_v39 = vadd.f32 %v13413_v40, %v18503_v20  ;;  %v9487_v38 = vpop.f32.mrf.mxu1  ;;  %v18651_v44 = vadd.f32 %v9484_v1, %v8803_v2 }
 0x5ac   : > { %v8751_v46 = vpop.f32.mrf.mxu0 }
 0x5ad   : > { %v8804_v21 = vadd.f32 %v8751_v46, %v8574_v18  ;;  %v13450_v45 = vpop.f32.mrf.mxu1  ;;  %v18653_v54 = vadd.f32 %v13447_v9, %v8806_v39  ;;  %v9516_v46 = vadd.f32 %v18534_v61, %v18539_v22 }
 0x5ae   : > { %v13416_v42 = vpop.f32.mrf.mxu0  ;;  %13619 = vmatmul.mubr.msk.bf16.gmra.mxu0 %vm1344_vm9, %v12120_v49 }
 0x5af   : > { %v8809_v15 = vadd.f32 %v13416_v42, %v18513_v11  ;;  %v9500_v43 = vpop.f32.mrf.mxu1  ;;  %v18657_v51 = vadd.f32 %v9487_v38, %v8804_v21 }
 0x5b0   : > { %v8764_v28 = vpop.f32.mrf.mxu0 }
 0x5b1   : > { %v8807_v26 = vadd.f32 %v8764_v28, %v18517_v58  ;;  %v13451_v20 = vpop.f32.mrf.mxu1  ;;  %v18660_v8 = vadd.f32 %v13450_v45, %v8809_v15 }
 0x5b2   : > { %v13417_v33 = vpop.f32.mrf.mxu0 }
 0x5b3   : > { %v8810_v35 = vadd.f32 %v13417_v33, %v19538_v19  ;;  %v9503_v32 = vpop.f32.mrf.mxu1  ;;  %v18665_v29 = vadd.f32 %v9500_v43, %v8807_v26 }
 0x5b4   : > { %v8767_v17 = vpop.f32.mrf.mxu0 }
 0x5b5   : > { %v8808_v11 = vadd.f32 %v8767_v17, %v8590_v55  ;;  %v13490_v1 = vpop.f32.mrf.mxu1  ;;  %v18667_v48 = vadd.f32 %v13451_v20, %v8810_v35 }
 0x5b6   : > { %v13456_v13 = vpop.f32.mrf.mxu0 }
 0x5b7   : > { %v9749_v58 = vadd.f32 %v13456_v13, %v18531_v47  ;;  %v9852_v37 = vpop.f32.mrf.mxu1  ;;  %v18670_v2 = vadd.f32 %v9503_v32, %v8808_v11 }
 0x5b8   : > { %v9620_v9 = vpop.f32.mrf.mxu0 }
 0x5b9   : > { %v9747_v40 = vadd.f32 %v9620_v9, %v18536_v63  ;;  %v18673_v3 = vpop.f32.mrf.mxu1  ;;  %v18675_v49 = vadd.f32 %v13490_v1, %v9749_v58 }
 0x5ba   : > { %v13457_v18 = vpop.f32.mrf.mxu0 }
 0x5bb   : > { %v18678_v39 = vadd.f32 %v13457_v18, %v18541_v14  ;;  %v18680_v38 = vpop.f32.mrf.mxu1  ;;  %v18684_v47 = vadd.f32 %v9852_v37, %v9747_v40  ;;  %v9524_v37 = vadd.f32 %v18573_v31, %v18578_v27 }
 0x5bc   : > { %v9623_v21 = vpop.f32.mrf.mxu0 }
 0x5bd   : > { %v18686_v45 = vadd.f32 %v9623_v21, %v9516_v46  ;;  %v13494_v42 = vpop.f32.mrf.mxu1 }
 0x5be   : > { %v13460_v63 = vpop.f32.mrf.mxu0 }
 0x5bf   : > { %v9753_v15 = vadd.f32 %v13460_v63, %v18549_v56  ;;  %v9868_v43 = vpop.f32.mrf.mxu1 }
 0x5c0   : > { %v9636_v28 = vpop.f32.mrf.mxu0 }
 0x5c1   : > { %v9751_v26 = vadd.f32 %v9636_v28, %v18554_v25  ;;  %v18690_v14 = vpop.f32.mrf.mxu1  ;;  %v18692_v20 = vadd.f32 %v13494_v42, %v9753_v15  ;;  %v9528_v28 = vadd.f32 %v18591_v53, %v18596_v60 }
 0x5c2   : > { %v13461_v33 = vpop.f32.mrf.mxu0 }
 0x5c3   : > { %v18695_v61 = vadd.f32 %v13461_v33, %v18559_v41  ;;  %v18697_v22 = vpop.f32.mrf.mxu1  ;;  %v18701_v55 = vadd.f32 %v9868_v43, %v9751_v26 }
 0x5c4   : > { %v9639_v56 = vpop.f32.mrf.mxu0 }
 0x5c5   : > { %v18703_v19 = vadd.f32 %v9639_v56, %v9520_v6  ;;  %v13498_v35 = vpop.f32.mrf.mxu1 }
 0x5c6   : > { %v13464_v25 = vpop.f32.mrf.mxu0 }
 0x5c7   : > { %v9757_v32 = vadd.f32 %v13464_v25, %v18570_v24  ;;  %v9884_v17 = vpop.f32.mrf.mxu1 }
 0x5c8   : > { %v9652_v11 = vpop.f32.mrf.mxu0 }
 0x5c9   : > { %v9755_v1 = vadd.f32 %v9652_v11, %v18575_v5  ;;  %v18707_v41 = vpop.f32.mrf.mxu1  ;;  %v18709_v13 = vadd.f32 %v13498_v35, %v9757_v32 }
 0x5ca   : > { %v13465_v58 = vpop.f32.mrf.mxu0 }
 0x5cb   : > { %v18712_v23 = vadd.f32 %v13465_v58, %v18580_v16  ;;  %v18714_v36 = vpop.f32.mrf.mxu1  ;;  %v18718_v9 = vadd.f32 %v9884_v17, %v9755_v1 }
 0x5cc   : > { %v9655_v24 = vpop.f32.mrf.mxu0 }
 0x5cd   : > { %v18720_v40 = vadd.f32 %v9655_v24, %v9524_v37  ;;  %v13502_v18 = vpop.f32.mrf.mxu1 }
 0x5ce   : > { %v13468_v5 = vpop.f32.mrf.mxu0 }
 0x5cf   : > { %v9761_v46 = vadd.f32 %v13468_v5, %v18588_v50  ;;  %v9900_v21 = vpop.f32.mrf.mxu1 }
 0x5d0   : > { %v9668_v42 = vpop.f32.mrf.mxu0 }
 0x5d1   : > { %v9759_v63 = vadd.f32 %v9668_v42, %v18593_v52  ;;  %v18724_v16 = vpop.f32.mrf.mxu1  ;;  %v18726_v15 = vadd.f32 %v13502_v18, %v9761_v46 }
 0x5d2   : > { %v13469_v43 = vpop.f32.mrf.mxu0 }
 0x5d3   : > { %v18729_v31 = vadd.f32 %v13469_v43, %v18598_v12  ;;  %v18731_v27 = vpop.f32.mrf.mxu1  ;;  %v18735_v26 = vadd.f32 %v9900_v21, %v9759_v63 }
 0x5d4   : > { %v9671_v50 = vpop.f32.mrf.mxu0 }
 0x5d5   : > { %v18737_v33 = vadd.f32 %v9671_v50, %v9528_v28  ;;  %v13506_v6 = vpop.f32.mrf.mxu1 }
 0x5d6   : > { %v13472_v52 = vpop.f32.mrf.mxu0 }
 0x5d7   : > { %v9765_v56 = vadd.f32 %v13472_v52, %v18606_v59  ;;  %v9916_v35 = vpop.f32.mrf.mxu1 }
 0x5d8   : > { %v9684_v25 = vpop.f32.mrf.mxu0 }
 0x5d9   : > { %v9763_v32 = vadd.f32 %v9684_v25, %v18611_v57  ;;  %v18741_v12 = vpop.f32.mrf.mxu1  ;;  %v18743_v17 = vadd.f32 %v13506_v6, %v9765_v56 }
 0x5da   : > { %v13473_v11 = vpop.f32.mrf.mxu0 }
 0x5db   : > { %v18746_v53 = vadd.f32 %v13473_v11, %v18613_v34  ;;  %v18748_v60 = vpop.f32.mrf.mxu1  ;;  %v18750_v1 = vadd.f32 %v9916_v35, %v9763_v32 }
 0x5dc   : > { %19539 = vst [vmem:[#allocation44_spill] sm:$0xff] %v18748_v60  ;;  %v9687_v58 = vpop.f32.mrf.mxu0 }
 0x5dd   : > { %v18753_v37 = vadd.f32 %v9687_v58, %v18621_v10  ;;  %v13510_v59 = vpop.f32.mrf.mxu1 }
 0x5de   : > { %v13476_v24 = vpop.f32.mrf.mxu0 }
 0x5df   : > { %v9769_v57 = vadd.f32 %v13476_v24, %v18624_v62  ;;  %v9932_v18 = vpop.f32.mrf.mxu1 }
 0x5e0   : > { %v9700_v5 = vpop.f32.mrf.mxu0 }
 0x5e1   : > { %v9767_v46 = vadd.f32 %v9700_v5, %v18630_v4  ;;  %v18757_v21 = vpop.f32.mrf.mxu1  ;;  %v18759_v34 = vadd.f32 %v13510_v59, %v9769_v57 }
 0x5e2   : > { %19540 = vst [vmem:[#allocation47_spill] sm:$0xff] %v18757_v21  ;;  %v13477_v42 = vpop.f32.mrf.mxu0 }
 0x5e3   : > { %v18762_v63 = vadd.f32 %v13477_v42, %v18632_v30  ;;  %v18764_v43 = vpop.f32.mrf.mxu1  ;;  %v18766_v10 = vadd.f32 %v9932_v18, %v9767_v46 }
 0x5e4   : > { %19542 = vst [vmem:[#allocation41_spill] sm:$0xff] %v18764_v43  ;;  %v9703_v28 = vpop.f32.mrf.mxu0 }
 0x5e5   : > { %19541 = vst [vmem:[#allocation46_spill] sm:$0xff] %v18762_v63  ;;  %v18769_v50 = vadd.f32 %v9703_v28, %v18643_v0  ;;  %v13514_v62 = vpop.f32.mrf.mxu1 }
 0x5e6   : > { %v13480_v6 = vpop.f32.mrf.mxu0 }
 0x5e7   : > { %19543 = vst [vmem:[#allocation45_spill] sm:$0xff] %v18769_v50  ;;  %v9773_v4 = vadd.f32 %v13480_v6, %v18646_v7  ;;  %v9948_v52 = vpop.f32.mrf.mxu1 }
 0x5e8   : > { %v9716_v56 = vpop.f32.mrf.mxu0 }
 0x5e9   : > { %v9771_v35 = vadd.f32 %v9716_v56, %v18651_v44  ;;  %v18773_v25 = vpop.f32.mrf.mxu1  ;;  %v18775_v30 = vadd.f32 %v13514_v62, %v9773_v4 }
 0x5ea   : > { %19544 = vst [vmem:[#allocation49_spill] sm:$0xff] %v18773_v25  ;;  %v13481_v32 = vpop.f32.mrf.mxu0 }
 0x5eb   : > { %v18778_v11 = vadd.f32 %v13481_v32, %v18653_v54  ;;  %v18780_v58 = vpop.f32.mrf.mxu1  ;;  %v18782_v0 = vadd.f32 %v9948_v52, %v9771_v35 }
 0x5ec   : > { %19546 = vst [vmem:[#allocation50_spill] sm:$0xff] %v18780_v58  ;;  %v9719_v59 = vpop.f32.mrf.mxu0 }
 0x5ed   : > { %19545 = vst [vmem:[#allocation48_spill] sm:$0xff] %v18778_v11  ;;  %v18785_v24 = vadd.f32 %v9719_v59, %v18657_v51  ;;  %v13518_v7 = vpop.f32.mrf.mxu1 }
 0x5ee   : > { %v13484_v57 = vpop.f32.mrf.mxu0 }
 0x5ef   : > { %19547 = vst [vmem:[#allocation57_spill] sm:$0xff] %v18785_v24  ;;  %v9777_v44 = vadd.f32 %v13484_v57, %v18660_v8  ;;  %v9964_v18 = vpop.f32.mrf.mxu1 }
 0x5f0   : > { %v9732_v5 = vpop.f32.mrf.mxu0 }
 0x5f1   : > { %v9775_v46 = vadd.f32 %v9732_v5, %v18665_v29  ;;  %v18789_v42 = vpop.f32.mrf.mxu1  ;;  %v18791_v54 = vadd.f32 %v13518_v7, %v9777_v44 }
 0x5f2   : > { %19548 = vst [vmem:[#allocation53_spill] sm:$0xff] %v18789_v42  ;;  %v13485_v28 = vpop.f32.mrf.mxu0 }
 0x5f3   : > { %v18794_v62 = vadd.f32 %v13485_v28, %v18667_v48  ;;  %v18796_v6 = vpop.f32.mrf.mxu1  ;;  %v18798_v51 = vadd.f32 %v9964_v18, %v9775_v46 }
 0x5f4   : > { %19550 = vst [vmem:[#allocation61_spill] sm:$0xff] %v18796_v6  ;;  %v9735_v4 = vpop.f32.mrf.mxu0 }
 0x5f5   : > { %19549 = vst [vmem:[#allocation54_spill] sm:$0xff] %v18794_v62  ;;  %v18801_v52 = vadd.f32 %v9735_v4, %v18670_v2  ;;  %v18803_v8 = vpop.f32.mrf.mxu1 }
 0x5f6   : > { %v13524_v56 = vpop.f32.mrf.mxu0 }
 0x5f7   : > { %19551 = vst [vmem:[#allocation55_spill] sm:$0xff] %v18801_v52  ;;  %v18806_v29 = vadd.f32 %v13524_v56, %v18675_v49  ;;  %v18811_v48 = vpop.f32.mrf.mxu1 }
 0x5f8   : > { %v10328_v35 = vpop.f32.mrf.mxu0 }
 0x5f9   : > { %v18809_v32 = vadd.f32 %v10328_v35, %v18684_v47  ;;  %v18815_v57 = vpop.f32.mrf.mxu1 }
 0x5fa   : > { %v13525_v59 = vpop.f32.mrf.mxu0 }
 0x5fb   : > { %v18823_v49 = vpop.f32.mrf.mxu1 }
 0x5fc   : > { %v18813_v7 = vpop.f32.mrf.mxu0 }
 0x5fd   : > { %v18829_v28 = vpop.f32.mrf.mxu1 }
 0x5fe   : > { %v13528_v44 = vpop.f32.mrf.mxu0 }
 0x5ff   : > { %v18818_v2 = vadd.f32 %v13528_v44, %v18692_v20  ;;  %v18837_v44 = vpop.f32.mrf.mxu1 }
 0x600   : > { %v10344_v18 = vpop.f32.mrf.mxu0 }
 0x601   : > { %v18821_v5 = vadd.f32 %v10344_v18, %v18701_v55  ;;  %v18843_v6 = vpop.f32.mrf.mxu1 }
 0x602   : > { %v18825_v46 = vpop.f32.mrf.mxu0 }
 0x604   : > { %v18827_v47 = vpop.f32.mrf.mxu0 }
 0x606   : > { %v13532_v4 = vpop.f32.mrf.mxu0 }
 0x607   : > { %v18832_v56 = vadd.f32 %v13532_v4, %v18709_v13  ;;  %v18851_v4 = vpop.f32.mrf.mxu1 }
 0x608   : > { %v10360_v35 = vpop.f32.mrf.mxu0 }
 0x609   : > { %v18835_v20 = vadd.f32 %v10360_v35, %v18718_v9  ;;  %v18857_v58 = vpop.f32.mrf.mxu1 }
 0x60a   : > { %v18839_v55 = vpop.f32.mrf.mxu0 }
 0x60c   : > { %v18841_v18 = vpop.f32.mrf.mxu0 }
 0x60e   : > { %v13536_v52 = vpop.f32.mrf.mxu0 }
 0x60f   : > { %v18846_v42 = vadd.f32 %v13536_v52, %v18726_v15  ;;  %v18865_v52 = vpop.f32.mrf.mxu1 }
 0x610   : > { %v10376_v62 = vpop.f32.mrf.mxu0 }
 0x611   : > { %v18849_v13 = vadd.f32 %v10376_v62, %v18735_v26  ;;  %v18871_v43 = vpop.f32.mrf.mxu1 }
 0x612   : > { %v18853_v9 = vpop.f32.mrf.mxu0 }
 0x614   : > { %v18855_v35 = vpop.f32.mrf.mxu0 }
 0x616   : > { %v13540_v24 = vpop.f32.mrf.mxu0 }
 0x617   : > { %v18860_v25 = vadd.f32 %v13540_v24, %v18743_v17  ;;  %v18879_v24 = vpop.f32.mrf.mxu1 }
 0x618   : > { %v10392_v11 = vpop.f32.mrf.mxu0 }
 0x619   : > { %19552 = vst [vmem:[#allocation56_spill] sm:$0xff] %v18860_v25  ;;  %v18863_v15 = vadd.f32 %v10392_v11, %v18750_v1 }
 0x61a   : > { %v18867_v26 = vpop.f32.mrf.mxu0 }
 0x61b   : > { %19553 = vst [vmem:[#allocation65_spill] sm:$0xff] %v18863_v15  ;;  %v18885_v15 = vpop.f32.mrf.mxu1 }
 0x61c   : > { %v18869_v62 = vpop.f32.mrf.mxu0 }
 0x61d   : > { %19554 = vst [vmem:[#allocation58_spill] sm:$0xff] %v18869_v62 }
 0x61e   : > { %v13544_v50 = vpop.f32.mrf.mxu0 }
 0x61f   : > { %v18874_v21 = vadd.f32 %v13544_v50, %v18759_v34  ;;  %v18893_v50 = vpop.f32.mrf.mxu1 }
 0x620   : > { %v10408_v63 = vpop.f32.mrf.mxu0 }
 0x621   : > { %19555 = vst [vmem:[#allocation59_spill] sm:$0xff] %v18874_v21  ;;  %v18877_v17 = vadd.f32 %v10408_v63, %v18766_v10 }
 0x622   : > { %v18881_v1 = vpop.f32.mrf.mxu0 }
 0x623   : > { %19556 = vst [vmem:[#allocation60_spill] sm:$0xff] %v18877_v17  ;;  %19557 = vst [vmem:[#allocation63_spill] sm:$0xff] %v18881_v1  ;;  %v18899_v17 = vpop.f32.mrf.mxu1 }
 0x624   : > { %v18883_v11 = vpop.f32.mrf.mxu0 }
 0x625   : > { %19558 = vst [vmem:[#allocation64_spill] sm:$0xff] %v18883_v11 }
 0x626   : > { %v13548_v25 = vpop.f32.mrf.mxu0 }
 0x627   : > { %v18888_v62 = vadd.f32 %v13548_v25, %v18775_v30  ;;  %v18907_v30 = vpop.f32.mrf.mxu1 }
 0x628   : > { %v10424_v60 = vpop.f32.mrf.mxu0 }
 0x629   : > { %19559 = vst [vmem:[#allocation62_spill] sm:$0xff] %v18888_v62  ;;  %v18891_v34 = vadd.f32 %v10424_v60, %v18782_v0  ;;  %v9982_v0 = vadd.f32 %v18673_v3, %v18678_v39  ;;  %v9980_v62 = vadd.f32 %v18680_v38, %v18686_v45  ;;  %v18927_v3 = vld [vmem:[%s19197_s6] ss:$0 sm:$0xff]  ;;  %v9986_v45 = vadd.f32 %v18690_v14, %v18695_v61 }
 0x62a   : > { %v18895_v63 = vpop.f32.mrf.mxu0  ;;  %v10679_v14 = vadd.f32 %v18829_v28, %v18818_v2 }
 0x62b   : > { %19560 = vst [vmem:[#allocation40_spill] sm:$0xff] %v18891_v34 }
 0x62c   : > { %v18897_v10 = vpop.f32.mrf.mxu0 }
 0x62d   : > { %19561 = vst [vmem:[#allocation31_spill] sm:$0xff] %v18897_v10  ;;  %v10458_v10 = vadd.f32 %v13525_v59, %v9982_v0  ;;  %v9984_v0 = vadd.f32 %v18697_v22, %v18703_v19 }
 0x62e   : > { %v13552_v21 = vpop.f32.mrf.mxu0 }
 0x62f   : > { %v18902_v11 = vadd.f32 %v13552_v21, %v18791_v54  ;;  %v10675_v21 = vadd.f32 %v18803_v8, %v18806_v29  ;;  %v18919_v54 = vpop.f32.mrf.mxu1  ;;  %v10676_v38 = vadd.f32 %v18815_v57, %v10458_v10  ;;  %v10460_v61 = vadd.f32 %v18827_v47, %v9984_v0 }
 0x630   : > { %v10440_v1 = vpop.f32.mrf.mxu0  ;;  %v9990_v47 = vadd.f32 %v18707_v41, %v18712_v23  ;;  %v10683_v23 = vadd.f32 %v18857_v58, %v18832_v56 }
 0x631   : > { %19562 = vst [vmem:[#allocation19_spill] sm:$0xff] %v18902_v11  ;;  %v18905_v25 = vadd.f32 %v10440_v1, %v18798_v51  ;;  %v10456_v1 = vadd.f32 %v18813_v7, %v9980_v62  ;;  %v10673_v11 = vadd.f32 %v18811_v48, %v18809_v32  ;;  %v18932_v8 = vpop.f32.mrf.mxu1  ;;  %v10462_v48 = vadd.f32 %v18825_v46, %v9986_v45 }
 0x632   : > { %v18909_v60 = vpop.f32.mrf.mxu0  ;;  %v10466_v0 = vadd.f32 %v18839_v55, %v9990_v47 }
 0x633   : > { %19563 = vst [vmem:[#allocation28_spill] sm:$0xff] %v18905_v25  ;;  %v10674_v32 = vadd.f32 %v18823_v49, %v10456_v1  ;;  %v10677_v49 = vadd.f32 %v18837_v44, %v18821_v5 }
 0x634   : > { %v18913_v34 = vpop.f32.mrf.mxu0 }
 0x636   : > { %v13592_v51 = vpop.f32.mrf.mxu0 }
 0x637   : > { %v10893_v25 = vadd.f32 %v13592_v51, %v10675_v21 }
 0x638   : > { %v10764_v39 = vpop.f32.mrf.mxu0 }
 0x639   : > { %v10891_v59 = vadd.f32 %v10764_v39, %v10673_v11  ;;  %v10932_v7 = vadd.f32 %v18927_v3, %v10893_v25  ;;  %v18944_v25 = vpop.f32.mrf.mxu1 }
 0x63a   : > { %v13593_v29 = vpop.f32.mrf.mxu0 }
 0x63b   : > { %v10894_v62 = vadd.f32 %v13593_v29, %v10676_v38  ;;  %v10930_v11 = vadd.f32 %v18927_v3, %v10891_v59  ;;  %v10964_v46 = vmax.f32 %v10932_v7, 0.0  ;;  %v10680_v59 = vadd.f32 %v18843_v6, %v10462_v48  ;;  %v18952_v28 = vpop.f32.mrf.mxu1 }
 0x63c   : > { %v10767_v21 = vpop.f32.mrf.mxu0  ;;  %v10678_v7 = vadd.f32 %v18851_v4, %v10460_v61  ;;  %v9988_v6 = vadd.f32 %v18714_v36, %v18720_v40  ;;  %v10681_v36 = vadd.f32 %v18865_v52, %v18835_v20 }
 0x63d   : > { %v10933_v57 = vadd.f32 %v18927_v3, %v10894_v62  ;;  %v10892_v10 = vadd.f32 %v10767_v21, %v10674_v32  ;;  %v10962_v38 = vmax.f32 %v10930_v11, 0.0 }
 0x63e   : > { %v13596_v51 = vpop.f32.mrf.mxu0 }
 0x63f   : > { %v10965_v1 = vmax.f32 %v10933_v57, 0.0  ;;  %v10931_v22 = vadd.f32 %v18927_v3, %v10892_v10  ;;  %v10897_v19 = vadd.f32 %v13596_v51, %v10679_v14  ;;  %v10464_v57 = vadd.f32 %v18841_v18, %v9988_v6  ;;  %v18965_v10 = vpop.f32.mrf.mxu1 }
 0x640   : > { %v10780_v39 = vpop.f32.mrf.mxu0  ;;  %v9998_v6 = vadd.f32 %v18741_v12, %v18746_v53  ;;  %v19565_v53 = vld [vmem:[#allocation56_spill] sm:$0xff] }
 0x641   : > { %v10995_v45 = vpack.c.bf16 %v10965_v1, %v10964_v46  ;;  %v10963_v29 = vmax.f32 %v10931_v22, 0.0  ;;  %v10895_v2 = vadd.f32 %v10780_v39, %v10677_v49  ;;  %v10936_v5 = vadd.f32 %v18927_v3, %v10897_v19  ;;  %v18974_v22 = vpop.f32.mrf.mxu1 }
 0x642   : > { %v13597_v62 = vpop.f32.mrf.mxu0  ;;  %v10684_v49 = vadd.f32 %v18871_v43, %v10466_v0  ;;  %v9994_v1 = vadd.f32 %v18724_v16, %v18729_v31  ;;  %v9992_v43 = vadd.f32 %v18731_v27, %v18737_v33  ;;  %v10687_v31 = vadd.f32 %v18885_v15, %v18846_v42 }
 0x643   : > { %v10994_v32 = vpack.c.bf16 %v10963_v29, %v10962_v38  ;;  %v10898_v44 = vadd.f32 %v13597_v62, %v10680_v59  ;;  %v10934_v21 = vadd.f32 %v18927_v3, %v10895_v2  ;;  %v10968_v40 = vmax.f32 %v10936_v5, 0.0  ;;  %v18987_v62 = vpop.f32.mrf.mxu1 }
 0x644   : > { %v10783_v48 = vpop.f32.mrf.mxu0  ;;  %v10682_v59 = vadd.f32 %v18879_v24, %v10464_v57  ;;  %v10470_v38 = vadd.f32 %v18853_v9, %v9994_v1  ;;  %v10468_v47 = vadd.f32 %v18855_v35, %v9992_v43  ;;  %v10685_v27 = vadd.f32 %v18893_v50, %v18849_v13 }
 0x645   : > { %v10937_v11 = vadd.f32 %v18927_v3, %v10898_v44  ;;  %v10896_v41 = vadd.f32 %v10783_v48, %v10678_v7  ;;  %13624 = vmatprep.mubr.msk.bf16.mxu1 %vm1344_vm9, %v10994_v32  ;;  %v10966_v46 = vmax.f32 %v10934_v21, 0.0  ;;  %v18996_v48 = vpop.f32.mrf.mxu1 }
 0x646   : > { %v13600_v4 = vpop.f32.mrf.mxu0  ;;  %13625 = vmatmul.mubr.msk.bf16.vlgmr.msra.gmra.mxu1 %vm1344_vm9, %v10995_v45  ;;  %v10688_v7 = vadd.f32 %v18899_v17, %v10470_v38  ;;  %v19564_v17 = vld [vmem:[#allocation44_spill] sm:$0xff] }
 0x647   : > { %v10969_v55 = vmax.f32 %v10937_v11, 0.0  ;;  %v10935_v14 = vadd.f32 %v18927_v3, %v10896_v41  ;;  %v10901_v61 = vadd.f32 %v13600_v4, %v10683_v23  ;;  %v10686_v41 = vadd.f32 %v18907_v30, %v10468_v47 }
 0x648   : > { %v10796_v51 = vpop.f32.mrf.mxu0  ;;  %v10474_v23 = vadd.f32 %v18867_v26, %v9998_v6  ;;  %v9996_v57 = vadd.f32 %v19564_v17, %v18753_v37  ;;  %v19567_v26 = vld [vmem:[#allocation65_spill] sm:$0xff] }
 0x649   : > { %v10997_v58 = vpack.c.bf16 %v10969_v55, %v10968_v40  ;;  %v10967_v56 = vmax.f32 %v10935_v14, 0.0  ;;  %v10899_v18 = vadd.f32 %v10796_v51, %v10681_v36  ;;  %v10940_v20 = vadd.f32 %v18927_v3, %v10901_v61  ;;  %v19566_v14 = vld [vmem:[#allocation58_spill] sm:$0xff]  ;;  %v13582_v51 = vpop.f32.mrf.mxu1 }
 0x64a   : > { %v13601_v19 = vpop.f32.mrf.mxu0  ;;  %v10691_v55 = vadd.f32 %v18919_v54, %v19565_v53  ;;  %v10472_v61 = vadd.f32 %v19566_v14, %v9996_v57  ;;  %v10689_v37 = vadd.f32 %v18932_v8, %v19567_v26  ;;  %v10692_v1 = vadd.f32 %v18944_v25, %v10474_v23 }
 0x64b   : > { %v10996_v39 = vpack.c.bf16 %v10967_v56, %v10966_v46  ;;  %v10902_v52 = vadd.f32 %v13601_v19, %v10684_v49  ;;  %v10938_v29 = vadd.f32 %v18927_v3, %v10899_v18  ;;  %v10972_v33 = vmax.f32 %v10940_v20, 0.0  ;;  %v10642_v43 = vpop.f32.mrf.mxu1 }
 0x64c   : > { %v10799_v45 = vpop.f32.mrf.mxu0 }
 0x64d   : > { %v10941_v2 = vadd.f32 %v18927_v3, %v10902_v52  ;;  %v10900_v16 = vadd.f32 %v10799_v45, %v10682_v59  ;;  %13628 = vmatprep.mubr.msk.bf16.mxu1 %vm1344_vm9, %v10996_v39  ;;  %v10970_v0 = vmax.f32 %v10938_v29, 0.0  ;;  %v19568_v52 = vld [vmem:[#allocation46_spill] sm:$0xff]  ;;  %v19569_v59 = vld [vmem:[#allocation47_spill] sm:$0xff] }
 0x64e   : > { %v13604_v24 = vpop.f32.mrf.mxu0  ;;  %13629 = vmatmul.mubr.msk.bf16.gmra.mxu1 %vm1344_vm9, %v10997_v58  ;;  %v10002_v38 = vadd.f32 %v19569_v59, %v19568_v52 }
 0x64f   : > { %v10973_v9 = vmax.f32 %v10941_v2, 0.0  ;;  %v10939_v32 = vadd.f32 %v18927_v3, %v10900_v16  ;;  %v10905_v5 = vadd.f32 %v13604_v24, %v10687_v31  ;;  %v10690_v16 = vadd.f32 %v18952_v28, %v10472_v61  ;;  %v19570_v31 = vld [vmem:[#allocation63_spill] sm:$0xff]  ;;  %v19571_v24 = vld [vmem:[#allocation45_spill] sm:$0xff] }
 0x650   : > { %v10812_v44 = vpop.f32.mrf.mxu0  ;;  %v10478_v47 = vadd.f32 %v19570_v31, %v10002_v38 }
 0x651   : > { %v10999_v42 = vpack.c.bf16 %v10973_v9, %v10972_v33  ;;  %v10971_v15 = vmax.f32 %v10939_v32, 0.0  ;;  %v10903_v35 = vadd.f32 %v10812_v44, %v10685_v27  ;;  %v10944_v13 = vadd.f32 %v18927_v3, %v10905_v5  ;;  %v19572_v27 = vld [vmem:[#allocation41_spill] sm:$0xff]  ;;  %v19573_v44 = vld [vmem:[#allocation59_spill] sm:$0xff] }
 0x652   : > { %v13605_v21 = vpop.f32.mrf.mxu0  ;;  %v10000_v25 = vadd.f32 %v19572_v27, %v19571_v24  ;;  %v10696_v23 = vadd.f32 %v18987_v62, %v10478_v47  ;;  %v19583_v27 = vld [vmem:[#allocation54_spill] sm:$0xff] }
 0x653   : > { %v10998_v11 = vpack.c.bf16 %v10971_v15, %v10970_v0  ;;  %v10906_v50 = vadd.f32 %v13605_v21, %v10688_v7  ;;  %v10942_v36 = vadd.f32 %v18927_v3, %v10903_v35  ;;  %v10976_v49 = vmax.f32 %v10944_v13, 0.0  ;;  %v19574_v0 = vld [vmem:[#allocation64_spill] sm:$0xff]  ;;  %v13583_v15 = vpop.f32.mrf.mxu1 }
 0x654   : > { %v10815_v4 = vpop.f32.mrf.mxu0  ;;  %v10695_v7 = vadd.f32 %v18965_v10, %v19573_v44  ;;  %v19575_v35 = vld [vmem:[#allocation60_spill] sm:$0xff] }
 0x655   : > { %v10945_v40 = vadd.f32 %v18927_v3, %v10906_v50  ;;  %v10904_v12 = vadd.f32 %v10815_v4, %v10686_v41  ;;  %13632 = vmatprep.mubr.msk.bf16.mxu1 %vm1344_vm9, %v10998_v11  ;;  %v10974_v19 = vmax.f32 %v10942_v36, 0.0  ;;  %v10693_v6 = vadd.f32 %v18974_v22, %v19575_v35  ;;  %v19576_v36 = vld [vmem:[#allocation48_spill] sm:$0xff]  ;;  %v10645_v53 = vpop.f32.mrf.mxu1 }
 0x656   : > { %v13608_v30 = vpop.f32.mrf.mxu0  ;;  %13633 = vmatmul.mubr.msk.bf16.gmra.mxu1 %vm1344_vm9, %v10999_v42  ;;  %v10476_v42 = vadd.f32 %v19574_v0, %v10000_v25  ;;  %v19584_v25 = vld [vmem:[#allocation53_spill] sm:$0xff]  ;;  %v19585_v0 = vld [vmem:[#allocation55_spill] sm:$0xff] }
 0x657   : > { %v10977_v46 = vmax.f32 %v10945_v40, 0.0  ;;  %v10943_v58 = vadd.f32 %v18927_v3, %v10904_v12  ;;  %v10909_v56 = vadd.f32 %v13608_v30, %v10691_v55  ;;  %v19577_v40 = vld [vmem:[#allocation49_spill] sm:$0xff] }
 0x658   : > { %v10828_v18 = vpop.f32.mrf.mxu0  ;;  %v10006_v12 = vadd.f32 %v19577_v40, %v19576_v36  ;;  %v10694_v30 = vadd.f32 %v18996_v48, %v10476_v42  ;;  %v19586_v42 = vld [vmem:[#allocation61_spill] sm:$0xff] }
 0x659   : > { %v11001_v39 = vpack.c.bf16 %v10977_v46, %v10976_v49  ;;  %v10975_v54 = vmax.f32 %v10943_v58, 0.0  ;;  %v10907_v20 = vadd.f32 %v10828_v18, %v10689_v37  ;;  %v10948_v8 = vadd.f32 %v18927_v3, %v10909_v56  ;;  %v19578_v37 = vld [vmem:[#allocation57_spill] sm:$0xff]  ;;  %v19579_v49 = vld [vmem:[#allocation50_spill] sm:$0xff] }
 0x65a   : > { %v13609_v45 = vpop.f32.mrf.mxu0  ;;  %v10482_v26 = vadd.f32 %v18895_v63, %v10006_v12  ;;  %v10004_v62 = vadd.f32 %v19579_v49, %v19578_v37  ;;  %v19582_v63 = vld [vmem:[#allocation40_spill] sm:$0xff] }
 0x65b   : > { %v11000_v29 = vpack.c.bf16 %v10975_v54, %v10974_v19  ;;  %v10910_v2 = vadd.f32 %v13609_v45, %v10692_v1  ;;  %v10946_v9 = vadd.f32 %v18927_v3, %v10907_v20  ;;  %v10980_v21 = vmax.f32 %v10948_v8, 0.0  ;;  %v19580_v1 = vld [vmem:[#allocation62_spill] sm:$0xff]  ;;  %v13586_v20 = vpop.f32.mrf.mxu1 }
 0x65c   : > { %v10831_v33 = vpop.f32.mrf.mxu0  ;;  %v10699_v19 = vadd.f32 %v13582_v51, %v19580_v1  ;;  %v10697_v48 = vadd.f32 %v10642_v43, %v19582_v63  ;;  %v19073_v63 = vld [vmem:[%s19199_s8] ss:$0 sm:$0xff] }
 0x65d   : > { %v10949_v32 = vadd.f32 %v18927_v3, %v10910_v2  ;;  %v10908_v5 = vadd.f32 %v10831_v33, %v10690_v16  ;;  %13636 = vmatprep.mubr.msk.bf16.mxu1 %vm1344_vm9, %v11000_v29  ;;  %v10978_v17 = vmax.f32 %v10946_v9, 0.0  ;;  %v10700_v2 = vadd.f32 %v13583_v15, %v10482_v26  ;;  %v10658_v51 = vpop.f32.mrf.mxu1 }
 0x65e   : > { %v13612_v28 = vpop.f32.mrf.mxu0  ;;  %13637 = vmatmul.mubr.msk.bf16.gmra.mxu1 %vm1344_vm9, %v11001_v39  ;;  %v19581_v39 = vld [vmem:[#allocation31_spill] sm:$0xff]  ;;  %v10010_v33 = vadd.f32 %v19584_v25, %v19583_v27 }
 0x65f   : > { %v10981_v11 = vmax.f32 %v10949_v32, 0.0  ;;  %v10947_v13 = vadd.f32 %v18927_v3, %v10908_v5  ;;  %v10913_v50 = vadd.f32 %v13612_v28, %v10695_v7  ;;  %v10480_v54 = vadd.f32 %v19581_v39, %v10004_v62 }
 0x660   : > { %v10844_v41 = vpop.f32.mrf.mxu0  ;;  %v10486_v7 = vadd.f32 %v18909_v60, %v10010_v33  ;;  %v10008_v28 = vadd.f32 %v19586_v42, %v19585_v0  ;;  %v19588_v60 = vld [vmem:[#allocation28_spill] sm:$0xff] }
 0x661   : > { %v11003_v57 = vpack.c.bf16 %v10981_v11, %v10980_v21  ;;  %v10979_v10 = vmax.f32 %v10947_v13, 0.0  ;;  %v10911_v4 = vadd.f32 %v10844_v41, %v10693_v6  ;;  %v10952_v22 = vadd.f32 %v18927_v3, %v10913_v50  ;;  %v19587_v11 = vld [vmem:[#allocation19_spill] sm:$0xff]  ;;  %v13587_v50 = vpop.f32.mrf.mxu1 }
 0x662   : > { %v13613_v55 = vpop.f32.mrf.mxu0  ;;  %v10698_v44 = vadd.f32 %v10645_v53, %v10480_v54  ;;  %v10703_v13 = vadd.f32 %v13586_v20, %v19587_v11  ;;  %v10484_v41 = vadd.f32 %v18913_v34, %v10008_v28  ;;  %v10704_v12 = vadd.f32 %v13587_v50, %v10486_v7 }
 0x663   : > { %v11002_v14 = vpack.c.bf16 %v10979_v10, %v10978_v17  ;;  %v10914_v61 = vadd.f32 %v13613_v55, %v10696_v23  ;;  %v10950_v58 = vadd.f32 %v18927_v3, %v10911_v4  ;;  %v10984_v59 = vmax.f32 %v10952_v22, 0.0 }
 0x664   : > { %v10847_v46 = vpop.f32.mrf.mxu0  ;;  %v10701_v17 = vadd.f32 %v10658_v51, %v19588_v60 }
 0x665   : > { %v10953_v56 = vadd.f32 %v18927_v3, %v10914_v61  ;;  %v10912_v18 = vadd.f32 %v10847_v46, %v10694_v30  ;;  %13640 = vmatprep.mubr.msk.bf16.mxu1 %vm1344_vm9, %v11002_v14  ;;  %v10982_v16 = vmax.f32 %v10950_v58, 0.0  ;;  %v10661_v61 = vpop.f32.mrf.mxu1 }
 0x666   : > { %v13616_v52 = vpop.f32.mrf.mxu0  ;;  %13641 = vmatmul.mubr.msk.bf16.gmra.mxu1 %vm1344_vm9, %v11003_v57  ;;  %v10702_v49 = vadd.f32 %v10661_v61, %v10484_v41 }
 0x667   : > { %v10985_v38 = vmax.f32 %v10953_v56, 0.0  ;;  %v10951_v45 = vadd.f32 %v18927_v3, %v10912_v18  ;;  %v10917_v29 = vadd.f32 %v13616_v52, %v10699_v19 }
 0x668   : > { %v10860_v8 = vpop.f32.mrf.mxu0 }
 0x669   : > { %v11005_v31 = vpack.c.bf16 %v10985_v38, %v10984_v59  ;;  %v10983_v47 = vmax.f32 %v10951_v45, 0.0  ;;  %v10915_v24 = vadd.f32 %v10860_v8, %v10697_v48  ;;  %v10956_v5 = vadd.f32 %v18927_v3, %v10917_v29 }
 0x66a   : > { %v13617_v9 = vpop.f32.mrf.mxu0 }
 0x66b   : > { %v11004_v32 = vpack.c.bf16 %v10983_v47, %v10982_v16  ;;  %v10918_v43 = vadd.f32 %v13617_v9, %v10700_v2  ;;  %v10954_v35 = vadd.f32 %v18927_v3, %v10915_v24  ;;  %v10988_v57 = vmax.f32 %v10956_v5, 0.0 }
 0x66c   : > { %v10863_v15 = vpop.f32.mrf.mxu0 }
 0x66d   : > { %v10957_v6 = vadd.f32 %v18927_v3, %v10918_v43  ;;  %v10916_v21 = vadd.f32 %v10863_v15, %v10698_v44  ;;  %13644 = vmatprep.mubr.msk.bf16.mxu1 %vm1344_vm9, %v11004_v32  ;;  %v10986_v53 = vmax.f32 %v10954_v35, 0.0 }
 0x66e   : > { %v13620_v23 = vpop.f32.mrf.mxu0  ;;  %13645 = vmatmul.mubr.msk.bf16.gmra.mxu1 %vm1344_vm9, %v11005_v31 }
 0x66f   : > { %v10989_v10 = vmax.f32 %v10957_v6, 0.0  ;;  %v10955_v4 = vadd.f32 %v18927_v3, %v10916_v21  ;;  %v10921_v36 = vadd.f32 %v13620_v23, %v10703_v13 }
 0x670   : > { %v10876_v40 = vpop.f32.mrf.mxu0 }
 0x671   : > { %v11007_v55 = vpack.c.bf16 %v10989_v10, %v10988_v57  ;;  %v10987_v14 = vmax.f32 %v10955_v4, 0.0  ;;  %v10919_v22 = vadd.f32 %v10876_v40, %v10701_v17  ;;  %v10960_v34 = vadd.f32 %v18927_v3, %v10921_v36 }
 0x672   : > { %v13621_v30 = vpop.f32.mrf.mxu0 }
 0x673   : > { %v11006_v26 = vpack.c.bf16 %v10987_v14, %v10986_v53  ;;  %v10922_v37 = vadd.f32 %v13621_v30, %v10704_v12  ;;  %v10958_v46 = vadd.f32 %v18927_v3, %v10919_v22  ;;  %v10992_v18 = vmax.f32 %v10960_v34, 0.0 }
 0x674   : > { %v10879_v62 = vpop.f32.mrf.mxu0 }
 0x675   : > { %v10961_v58 = vadd.f32 %v18927_v3, %v10922_v37  ;;  %v10920_v56 = vadd.f32 %v10879_v62, %v10702_v49  ;;  %13648 = vmatprep.mubr.msk.bf16.mxu1 %vm1344_vm9, %v11006_v26  ;;  %v10990_v39 = vmax.f32 %v10958_v46, 0.0 }
 0x676   : > { %13649 = vmatmul.mubr.msk.bf16.gmra.mxu1 %vm1344_vm9, %v11007_v55 }
 0x677   : > { %v10993_v1 = vmax.f32 %v10961_v58, 0.0  ;;  %v10959_v19 = vadd.f32 %v18927_v3, %v10920_v56 }
 0x679   : > { %v11009_v54 = vpack.c.bf16 %v10993_v1, %v10992_v18  ;;  %v10991_v20 = vmax.f32 %v10959_v19, 0.0 }
 0x67b   : > { %v11008_v52 = vpack.c.bf16 %v10991_v20, %v10990_v39 }
 0x67d   : > { %13652 = vmatprep.mubr.msk.bf16.mxu1 %vm1344_vm9, %v11008_v52 }
 0x67e   : > { %13653 = vmatmul.mubr.msk.bf16.gmra.mxu1 %vm1344_vm9, %v11009_v54 }
 0x706   : > { %v13626_v48 = vpop.f32.mrf.mxu1 }
 0x707   : > { %v11116_v59 = vadd.f32 %v13626_v48, %v19073_v63 }
 0x708   : > { %v11107_v38 = vpop.f32.mrf.mxu1 }
 0x709   : > { %11236 = vst [vmem:[%s19076_s5 + $0x10] sm:$0xff] %v11116_v59  ;;  %v11108_v3 = vadd.f32 %v19073_v63, %v11107_v38 }
 0x70a   : > { %v13627_v45 = vpop.f32.mrf.mxu1 }
 0x70b   : > { %11234 = vst [vmem:[%s19076_s5] sm:$0xff] %v11108_v3  ;;  %v11119_v29 = vadd.f32 %v13627_v45, %v19073_v63 }
 0x70c   : > { %v11110_v8 = vpop.f32.mrf.mxu1 }
 0x70d   : > { %11237 = vst [vmem:[%s19076_s5 + $0x18] sm:$0xff] %v11119_v29  ;;  %v11111_v2 = vadd.f32 %v19073_v63, %v11110_v8 }
 0x70e   : > { %v13630_v16 = vpop.f32.mrf.mxu1 }
 0x70f   : > { %11235 = vst [vmem:[%s19076_s5 + $0x8] sm:$0xff] %v11111_v2  ;;  %v11132_v31 = vadd.f32 %v13630_v16, %v19073_v63 }
 0x710   : > { %v11123_v47 = vpop.f32.mrf.mxu1 }
 0x711   : > { %11240 = vst [vmem:[%s19076_s5 + $0x30] sm:$0xff] %v11132_v31  ;;  %v11124_v24 = vadd.f32 %v19073_v63, %v11123_v47 }
 0x712   : > { %v13631_v51 = vpop.f32.mrf.mxu1 }
 0x713   : > { %11238 = vst [vmem:[%s19076_s5 + $0x20] sm:$0xff] %v11124_v24  ;;  %v11135_v27 = vadd.f32 %v13631_v51, %v19073_v63 }
 0x714   : > { %v11126_v25 = vpop.f32.mrf.mxu1 }
 0x715   : > { %11241 = vst [vmem:[%s19076_s5 + $0x38] sm:$0xff] %v11135_v27  ;;  %v11127_v33 = vadd.f32 %v19073_v63, %v11126_v25 }
 0x716   : > { %v13634_v9 = vpop.f32.mrf.mxu1 }
 0x717   : > { %11239 = vst [vmem:[%s19076_s5 + $0x28] sm:$0xff] %v11127_v33  ;;  %v11148_v32 = vadd.f32 %v13634_v9, %v19073_v63 }
 0x718   : > { %v11139_v5 = vpop.f32.mrf.mxu1 }
 0x719   : > { %11244 = vst [vmem:[%s19076_s5 + $0x50] sm:$0xff] %v11148_v32  ;;  %v11140_v43 = vadd.f32 %v19073_v63, %v11139_v5 }
 0x71a   : > { %v13635_v44 = vpop.f32.mrf.mxu1 }
 0x71b   : > { %11242 = vst [vmem:[%s19076_s5 + $0x40] sm:$0xff] %v11140_v43  ;;  %v11151_v7 = vadd.f32 %v13635_v44, %v19073_v63 }
 0x71c   : > { %v11142_v0 = vpop.f32.mrf.mxu1 }
 0x71d   : > { %11245 = vst [vmem:[%s19076_s5 + $0x58] sm:$0xff] %v11151_v7  ;;  %v11143_v42 = vadd.f32 %v19073_v63, %v11142_v0 }
 0x71e   : > { %v13638_v28 = vpop.f32.mrf.mxu1 }
 0x71f   : > { %11243 = vst [vmem:[%s19076_s5 + $0x48] sm:$0xff] %v11143_v42  ;;  %v11164_v15 = vadd.f32 %v13638_v28, %v19073_v63 }
 0x720   : > { %v11155_v35 = vpop.f32.mrf.mxu1 }
 0x721   : > { %11248 = vst [vmem:[%s19076_s5 + $0x70] sm:$0xff] %v11164_v15  ;;  %v11156_v6 = vadd.f32 %v19073_v63, %v11155_v35 }
 0x722   : > { %v13639_v21 = vpop.f32.mrf.mxu1 }
 0x723   : > { %11246 = vst [vmem:[%s19076_s5 + $0x60] sm:$0xff] %v11156_v6  ;;  %v11167_v11 = vadd.f32 %v13639_v21, %v19073_v63 }
 0x724   : > { %v11158_v13 = vpop.f32.mrf.mxu1 }
 0x725   : > { %11249 = vst [vmem:[%s19076_s5 + $0x78] sm:$0xff] %v11167_v11  ;;  %v11159_v50 = vadd.f32 %v19073_v63, %v11158_v13 }
 0x726   : > { %v13642_v41 = vpop.f32.mrf.mxu1 }
 0x727   : > { %11247 = vst [vmem:[%s19076_s5 + $0x68] sm:$0xff] %v11159_v50  ;;  %v11180_v23 = vadd.f32 %v13642_v41, %v19073_v63 }
 0x728   : > { %v11171_v60 = vpop.f32.mrf.mxu1 }
 0x729   : > { %11252 = vst [vmem:[%s19076_s5 + $0x90] sm:$0xff] %v11180_v23  ;;  %v11172_v17 = vadd.f32 %v19073_v63, %v11171_v60 }
 0x72a   : > { %v13643_v57 = vpop.f32.mrf.mxu1 }
 0x72b   : > { %11250 = vst [vmem:[%s19076_s5 + $0x80] sm:$0xff] %v11172_v17  ;;  %v11183_v10 = vadd.f32 %v13643_v57, %v19073_v63 }
 0x72c   : > { %v11174_v4 = vpop.f32.mrf.mxu1 }
 0x72d   : > { %11253 = vst [vmem:[%s19076_s5 + $0x98] sm:$0xff] %v11183_v10  ;;  %v11175_v36 = vadd.f32 %v19073_v63, %v11174_v4 }
 0x72e   : > { %v13646_v40 = vpop.f32.mrf.mxu1 }
 0x72f   : > { %11251 = vst [vmem:[%s19076_s5 + $0x88] sm:$0xff] %v11175_v36  ;;  %v11196_v12 = vadd.f32 %v13646_v40, %v19073_v63 }
 0x730   : > { %v11187_v53 = vpop.f32.mrf.mxu1 }
 0x731   : > { %11256 = vst [vmem:[%s19076_s5 + $0xb0] sm:$0xff] %v11196_v12  ;;  %v11188_v55 = vadd.f32 %v19073_v63, %v11187_v53 }
 0x732   : > { %v13647_v14 = vpop.f32.mrf.mxu1 }
 0x733   : > { %11254 = vst [vmem:[%s19076_s5 + $0xa0] sm:$0xff] %v11188_v55  ;;  %v11199_v22 = vadd.f32 %v13647_v14, %v19073_v63 }
 0x734   : > { %v11190_v61 = vpop.f32.mrf.mxu1 }
 0x735   : > { %11257 = vst [vmem:[%s19076_s5 + $0xb8] sm:$0xff] %v11199_v22  ;;  %v11191_v30 = vadd.f32 %v19073_v63, %v11190_v61 }
 0x736   : > { %v13650_v26 = vpop.f32.mrf.mxu1 }
 0x737   : > { %11255 = vst [vmem:[%s19076_s5 + $0xa8] sm:$0xff] %v11191_v30  ;;  %v11212_v34 = vadd.f32 %v13650_v26, %v19073_v63 }
 0x738   : > { %v11203_v37 = vpop.f32.mrf.mxu1 }
 0x739   : > { %11260 = vst [vmem:[%s19076_s5 + $0xd0] sm:$0xff] %v11212_v34  ;;  %v11204_v49 = vadd.f32 %v19073_v63, %v11203_v37 }
 0x73a   : > { %v13651_v62 = vpop.f32.mrf.mxu1 }
 0x73b   : > { %11258 = vst [vmem:[%s19076_s5 + $0xc0] sm:$0xff] %v11204_v49  ;;  %v11215_v46 = vadd.f32 %v13651_v62, %v19073_v63 }
 0x73c   : > { %v11206_v58 = vpop.f32.mrf.mxu1 }
 0x73d   : > { %11261 = vst [vmem:[%s19076_s5 + $0xd8] sm:$0xff] %v11215_v46  ;;  %v11207_v56 = vadd.f32 %v19073_v63, %v11206_v58 }
 0x73e   : > { %v13654_v18 = vpop.f32.mrf.mxu1 }
 0x73f   : > { %11259 = vst [vmem:[%s19076_s5 + $0xc8] sm:$0xff] %v11207_v56  ;;  %v11228_v1 = vadd.f32 %v13654_v18, %v19073_v63 }
 0x740   : > { %v11219_v19 = vpop.f32.mrf.mxu1 }
 0x741   : > { %11264 = vst [vmem:[%s19076_s5 + $0xf0] sm:$0xff] %v11228_v1  ;;  %v11220_v39 = vadd.f32 %v19073_v63, %v11219_v19 }
 0x742   : > { %v13655_v54 = vpop.f32.mrf.mxu1 }
 0x743   : > { %11262 = vst [vmem:[%s19076_s5 + $0xe0] sm:$0xff] %v11220_v39  ;;  %v11231_v20 = vadd.f32 %v13655_v54, %v19073_v63 }
 0x744   : > { %v11222_v52 = vpop.f32.mrf.mxu1 }
 0x745   : > { %11265 = vst [vmem:[%s19076_s5 + $0xf8] sm:$0xff] %v11231_v20  ;;  %v11223_v48 = vadd.f32 %v19073_v63, %v11222_v52 }
 0x747   : > { %11263 = vst [vmem:[%s19076_s5 + $0xe8] sm:$0xff] %v11223_v48 }
 0x748   : > { %13967 = shalt.err (!%p13964_p10)
}
 0x749   : > { %s13968_s18 = scalar_lea.hbm %s19143_s26, 4096  ;;  %s13972_s19 = scalar_lea.hbm %s19200_s9, 8192 }
 0x74a   : > { %p13969_p6 = scmp.ne.s32.totalorder %s19143_s26, %s13968_s18  ;;  %p13973_p3 = scmp.lt.s32.totalorder %s19143_s26, %s19200_s9 }
 0x74b   : > { %p13974_p11 = scmp.lt.s32.totalorder %s13972_s19, %s13968_s18 }
 0x74c   : > { %p13970_p4 = pnand %p13969_p6, %p19589_p1 }
 0x74d   : > { %p13975_p5 = por %p13974_p11, %p13973_p3 }
 0x74e   : > { %p13971_p8 = pneg %p13970_p4 }
 0x750   : > { %p13976_p7 = pnand %p13975_p5, %p13971_p8 }
 0x752   : > { %13979 = shalt.err (!%p13976_p7)
}
 0x753   : > { %s14036_s15 = smov 128   ;;  %s14037_s17 = smov 8  }
 0x754   : > { %13670 = dma.vmem_to_hbm [thread:$0]  (%p19589_p1), %s19145_s23, 4096, %s19143_s26, %s11267_s13, %s14036_s15, %s14036_s15, %s14037_s17  }
 0x755 PF: > { %s11295_s27 = sand.u32 1, %s14014_s30   ;;  %p19590_p12 = scmp.ne.s32.totalorder %s19255_s16, 0 }
 0x756   : > { %p19591_p9 = scmp.ge.s32.totalorder %s14026_s12, 2  ;;  %s11296_s25 = scalar_lea.sflag [#allocation7], %s11295_s27 }
 0x758   : > { %p13687_p13 = pnand %p19591_p9, %p19590_p12 }
 0x75a   : > { %p13688_p0 = pneg %p13687_p13 }
 0x75c   : > { %14009 = dma.done.wait (%p13688_p0), %s11296_s25, 4096  }
 0x75d   : > { %14011 = vsyncadd (%p13688_p0), %s11296_s25, 4294963200  ;;  %p24_p2 = scmp.ge.s32.totalorder %s14177_s22, 4   ;;  %s19592_s30 = smov %s14018_s10 }
 0x75e   : > { %s19593_s10 = smov %s14022_s11  ;;  %s19594_s11 = smov %s14187_s29 }
 0x75f   : > { %s19595_s12 = smov %s14177_s22  ;;  %26 = sbr.rel (!%p24_p2) target bundleno = 11 (0xb), region = 143 }
 0x764   :  { %11301 = vsyncpa [#allocation6], 1 }
 0x765   :  { %11303 = vsyncpa [#allocation6 + $0x1], 1 }
 0x766   :  { %11304 = vsyncpa [#allocation9], 1 }
 0x767   :  { %11305 = vsyncpa [#allocation12], 1 }
 0x768   :  { %11306 = vsyncpa [#allocation7], 1 }
 0x769   :  { %11308 = vsyncpa [#allocation7 + $0x1], 1 }

</bundles_post_ra>
